<compile_context>
chip_gen: v6e
topology: v6e:2x2x1
jax: 0.10.0
libtpu: 0.0.40
codegen_flags: <defaults>
</compile_context>

<pallas_src>
import functools
import numpy as np
import jax
import jax.numpy as jnp
from jax import lax
from jax.experimental import pallas as pl
from jax.experimental.pallas import tpu as pltpu


def _leaky(x):
    # torch.nn.LeakyReLU(0.1)
    return jnp.where(x > 0, x, 0.1 * x)


def _round_up(x, m):
    return ((x + m - 1) // m) * m


_BIG = 3.0e38      # compare / select-only sentinels (never fed to arithmetic)
_NEG = -3.0e38


# -----------------------------------------------------------------------------
# Fused kernel: conv x3 -> GRU over T -> DynamicEdgeConv -> mean pool -> Linear
# One grid step processes a block of `bb` subjects.
# -----------------------------------------------------------------------------
def fused_kernel(x_ref, wconv_ref, wbd_ref, wh_ref, ab_ref, wc_ref,
                 auxr_ref, auxc_ref, out_ref,
                 gi_scr, feat_scr, uv_scr, pool_scr,
                 *, T, L, n_nodes, bb, h1p, h2p, cp, knn):
    f32 = jnp.float32
    bf16 = jnp.bfloat16
    N = n_nodes
    M = bb * N
    TL = T * L
    G3 = 3 * h1p
    TG3 = T * G3

    # Per-tap timestep-boundary masks (rows 8..12 of the aux_col slab, first TL lanes).
    masks = [auxc_ref[8 + k:9 + k, :TL] for k in range(5)]            # each (1, TL)

    # ---- stage 1: three Conv1d(N, N, 5, padding=2) + LeakyReLU -------------------
    # All bb subjects and all T timesteps at once: the 5 taps are static lane-shifted
    # copies (masked at per-timestep boundaries) folded into ONE matmul per layer;
    # the conv weight is block-diagonal over the bb subjects so M = bb*N rows hit the MXU.
    x = x_ref[...]                                                    # (M, TL) f32
    zpad = jnp.zeros((M, 2), f32)
    for c in range(3):
        xp = jnp.concatenate([zpad, x, zpad], axis=1)                 # (M, TL + 4)
        xstack = jnp.concatenate(
            [xp[:, k:k + TL] * masks[k] for k in range(5)], axis=0)   # (5M, TL)
        w_c = wconv_ref[c * M:(c + 1) * M, :]                         # (M, 5M) bf16 (resident)
        y = jnp.dot(w_c, xstack.astype(bf16), preferred_element_type=f32)   # (M, TL)
        x = _leaky(y + auxr_ref[:, c:c + 1])                          # + per-row conv bias

    # ---- stage 2: GRU input projection for ALL timesteps, hoisted off the recurrence.
    # wbd = kron(I_T, Wi_packed): fine while T*L is small (32 here); switch to
    # per-timestep (M, L) @ (L, 3*H1p) matmuls if T*L grows.  Result goes straight
    # to VMEM scratch to bound live ranges.
    gi_scr[...] = (jnp.dot(x.astype(bf16), wbd_ref[...], preferred_element_type=f32)
                   + auxc_ref[0:1, :TG3])                             # (M, T*3*H1p)

    # ---- stage 3: serial GRU recurrence (only h @ Wh + gate math per step) --------
    wh = wh_ref[...]                                                  # (H1p, 3*H1p) bf16
    bhn = auxc_ref[1:2, :h1p]                                         # (1, H1p)
    h = jnp.zeros((M, h1p), f32)                                      # first_hidden = zeros
    for t in range(T):                                                # T small & static
        g = gi_scr[:, t * G3:(t + 1) * G3]                            # scratch-backed slice
        gh = jnp.dot(h.astype(bf16), wh, preferred_element_type=f32)  # (M, 3*H1p)
        r = jax.nn.sigmoid(g[:, :h1p] + gh[:, :h1p])
        z = jax.nn.sigmoid(g[:, h1p:2 * h1p] + gh[:, h1p:2 * h1p])
        n = jnp.tanh(g[:, 2 * h1p:] + r * (gh[:, 2 * h1p:] + bhn))
        h = (1.0 - z) * n + z * h
        feat_scr[:, t * h1p:(t + 1) * h1p] = _leaky(h)                # forward()'s LeakyReLU

    # ---- stage 4: DynamicEdgeConv(h_theta1, knn, max aggr) + global_mean_pool -----
    # message(i<-j) = (Wa - Wb) x_i + Wb x_j + b ; the linear part is batched over
    # all bb*N rows, the kNN graph + max aggregation are per-subject (block diagonal).
    uv_scr[...] = jnp.dot(feat_scr[...].astype(bf16), ab_ref[...],
                          preferred_element_type=f32)                 # (M, 2*H2p)

    ri = lax.broadcasted_iota(jnp.int32, (N, N), 0)
    ci = lax.broadcasted_iota(jnp.int32, (N, N), 1)
    eye = jnp.where(ri == ci, 1.0, 0.0).astype(f32)                   # (N, N)
    bh2 = auxc_ref[2:3, :h2p]                                         # (1, H2p)

    @pl.loop(0, bb)
    def _per_subject(b):
        r0 = pl.multiple_of(b * N, N)
        feat_b = feat_scr[pl.ds(r0, N), :]                            # (N, Fp) f32
        uv_b = uv_scr[pl.ds(r0, N), :]                                # (N, 2*H2p)
        u_b = uv_b[:, :h2p]                                           # (Wa - Wb) x_i
        v_b = uv_b[:, h2p:]                                           # Wb x_j

        # kNN distances kept in f32 (tiny per-subject matmul) for graph fidelity.
        gram = lax.dot_general(feat_b, feat_b, (((1,), (1,)), ((), ())),
                               preferred_element_type=f32)            # (N, N), symmetric
        sq_j = jnp.sum(gram * eye, axis=0, keepdims=True)             # (1, N) = ||x_j||^2
        d = sq_j - 2.0 * gram                                         # d[i, j]: same ranking as ||x_i-x_j||^2
        # knn-th smallest per centre node i (self always included, as
        # torch_cluster.knn(x, x, k)); exact distance ties may admit extra neighbours.
        kth = jnp.min(d, axis=1, keepdims=True)                       # (N, 1)
        work = d
        for _ in range(knn - 1):
            work = jnp.where(work <= kth, _BIG, work)
            kth = jnp.min(work, axis=1, keepdims=True)
        neigh = jnp.where(d <= kth, 1.0, 0.0)                         # (N_i, N_j) 0/1

        # Max aggregation without the (N, N, H2p) broadcast: loop over source nodes j,
        # column-of-neigh (lane-splat) x row-of-v (sublane-splat) select + running max.
        maxv = jnp.full((N, h2p), _NEG, f32)
        for j in range(N):
            sel = neigh[:, j:j + 1] > 0.5                             # (N, 1)
            maxv = jnp.maximum(maxv, jnp.where(sel, v_b[j:j + 1, :], _NEG))

        node = _leaky(u_b + maxv + bh2)
        # TODO(synk): F.dropout(p=0.5) implemented as identity (eval-mode semantics).
        pool_scr[pl.ds(b, 1), :] = jnp.mean(node, axis=0, keepdims=True)   # global_mean_pool

    # ---- classifier: one small batched matmul, lane-dense (bb, 128) store ---------
    out_ref[...] = (jnp.dot(pool_scr[...], wc_ref[...], preferred_element_type=f32)
                    + auxc_ref[3:4, :cp])


# -----------------------------------------------------------------------------
# Parameter init (same layouts as the PyTorch module's parameters)
# -----------------------------------------------------------------------------
def init_params(key, n_nodes, init_size, num_cuts, h1, h2, num_classes):
    ks = jax.random.split(key, 10)
    s = 0.1
    f = num_cuts * h1
    return dict(
        wconv=jax.random.normal(ks[0], (3, n_nodes, n_nodes, 5), jnp.float32) * s,  # (conv, out, in, tap)
        bconv=jax.random.normal(ks[1], (3, n_nodes), jnp.float32) * s,
        w_ih=jax.random.normal(ks[2], (3, h1, init_size), jnp.float32) * s,          # gates r, z, n
        w_hh=jax.random.normal(ks[3], (3, h1, h1), jnp.float32) * s,
        b_ih=jax.random.normal(ks[4], (3, h1), jnp.float32) * s,
        b_hh=jax.random.normal(ks[5], (3, h1), jnp.float32) * s,
        w_theta=jax.random.normal(ks[6], (h2, 2 * f), jnp.float32) * (1.0 / np.sqrt(2 * f)),
        b_theta=jax.random.normal(ks[7], (h2,), jnp.float32) * s,
        w_cls=jax.random.normal(ks[8], (num_classes, h2), jnp.float32) * s,
        b_cls=jax.random.normal(ks[9], (num_classes,), jnp.float32) * s,
    )


# -----------------------------------------------------------------------------
# Wrapper: layout plumbing (wrapper-side XLA) + one pallas_call over subject blocks
# -----------------------------------------------------------------------------
def grnn_reduced_forward(ts, params, *, knn=6, block_b=8):
    """ts: (B, T, N, L) batched subjects, or (T, N, L) single subject -> (B, C)."""
    if ts.ndim == 3:
        ts = ts[None]
    B, T, N, L = ts.shape
    H1 = params["w_ih"].shape[1]
    H2 = params["w_theta"].shape[0]
    C = params["w_cls"].shape[0]
    H1p = _round_up(H1, 128)
    H2p = _round_up(H2, 128)
    CP = _round_up(C, 128)
    TL = T * L
    G3 = 3 * H1p
    TG3 = T * G3
    F = T * H1
    Fp = T * H1p

    BB = max(1, min(block_b, B))                     # subjects per grid step
    Bp = _round_up(B, BB)
    if Bp != B:
        ts = jnp.concatenate([ts, jnp.zeros((Bp - B, T, N, L), ts.dtype)], axis=0)
    M = BB * N

    # activations: (Bp, T, N, L) -> (Bp*N, T*L)   (row b*N+node, col t*L+l)
    x0 = jnp.transpose(ts, (0, 2, 1, 3)).reshape(Bp * N, TL).astype(jnp.float32)

    # conv weights folded over taps AND block-diagonal over the BB subjects of a block:
    # Wfold[b*N+i, k*M + b*N + j] = Wconv[c, i, j, k]   ->  (3*M, 5*M) bf16, VMEM-resident.
    eye_bb = jnp.eye(BB, dtype=jnp.float32)
    wfold_layers = []
    for c in range(3):
        taps = [jnp.kron(eye_bb, params["wconv"][c, :, :, k]) for k in range(5)]  # (M, M)
        wfold_layers.append(jnp.concatenate(taps, axis=1))                         # (M, 5M)
    wfold = jnp.concatenate(wfold_layers, axis=0).astype(jnp.bfloat16)             # (3M, 5M)

    # GRU weights: per-gate packed, zero-padded to H1p lanes.
    wi_t = jnp.pad(jnp.transpose(params["w_ih"], (0, 2, 1)),         # (3, L, H1) -> (3, L, H1p)
                   ((0, 0), (0, 0), (0, H1p - H1)))
    wi_pack = jnp.concatenate([wi_t[0], wi_t[1], wi_t[2]], axis=1)   # (L, 3*H1p)
    wbd = jnp.kron(jnp.eye(T, dtype=jnp.float32), wi_pack).astype(jnp.bfloat16)    # (TL, TG3)

    wh_t = jnp.pad(jnp.transpose(params["w_hh"], (0, 2, 1)),         # (3, H1, H1) -> (3, H1p, H1p)
                   ((0, 0), (0, H1p - H1), (0, H1p - H1)))
    wh_pack = jnp.concatenate([wh_t[0], wh_t[1], wh_t[2]], axis=1).astype(jnp.bfloat16)  # (H1p, 3*H1p)

    # h_theta1 weight (H2, 2F): first F cols hit x_i, last F cols hit (x_j - x_i):
    # message = (Wa - Wb) x_i + Wb x_j + b
    wa = params["w_theta"][:, :F]
    wb = params["w_theta"][:, F:]

    def _pad_theta(w):                                               # (H2, F) -> (Fp, H2p)
        w3 = jnp.transpose(w).reshape(T, H1, H2)
        w3 = jnp.pad(w3, ((0, 0), (0, H1p - H1), (0, H2p - H2)))
        return w3.reshape(Fp, H2p)

    ab = jnp.concatenate([_pad_theta(wa - wb), _pad_theta(wb)], axis=1).astype(jnp.bfloat16)  # (Fp, 2*H2p)

    wc = jnp.pad(jnp.transpose(params["w_cls"]),
                 ((0, H2p - H2), (0, CP - C))).astype(jnp.float32)   # (H2p, CP)

    # aux_row: per-row constants (conv biases), one lane-dense (M, 128) slab.
    aux_row = jnp.zeros((M, 128), jnp.float32)
    for c in range(3):
        aux_row = aux_row.at[:, c].set(jnp.tile(params["bconv"][c], BB))

    # aux_col: per-column row constants + the 5 tap-boundary masks, one slab.
    W_aux = _round_up(max(TG3, TL, 128), 128)

    def _padvec(v, width):
        return jnp.pad(v, (0, width - v.shape[0]))

    gate_bias = jnp.concatenate([
        _padvec(params["b_ih"][0] + params["b_hh"][0], H1p),
        _padvec(params["b_ih"][1] + params["b_hh"][1], H1p),
        _padvec(params["b_ih"][2], H1p)])                            # (3*H1p,)
    bgi = jnp.tile(gate_bias, T)                                     # (TG3,)

    m = np.zeros((5, TL), np.float32)                                # tap boundary masks
    for k in range(5):
        for t in range(T):
            for l in range(L):
                if 0 <= l + k - 2 < L:
                    m[k, t * L + l] = 1.0

    aux_col = jnp.zeros((16, W_aux), jnp.float32)
    aux_col = aux_col.at[0, :TG3].set(bgi)                           # row 0: GRU input biases
    aux_col = aux_col.at[1, :H1].set(params["b_hh"][2])              # row 1: b_hn
    aux_col = aux_col.at[2, :H2].set(params["b_theta"])              # row 2: edge-conv bias
    aux_col = aux_col.at[3, :C].set(params["b_cls"])                 # row 3: classifier bias
    aux_col = aux_col.at[8:13, :TL].set(jnp.asarray(m))              # rows 8..12: tap masks

    kernel = functools.partial(fused_kernel, T=T, L=L, n_nodes=N, bb=BB,
                               h1p=H1p, h2p=H2p, cp=CP, knn=knn)

    out = pl.pallas_call(
        kernel,
        out_shape=jax.ShapeDtypeStruct((Bp, CP), jnp.float32),
        grid_spec=pltpu.PrefetchScalarGridSpec(
            num_scalar_prefetch=0,
            grid=(Bp // BB,),
            in_specs=[
                pl.BlockSpec((M, TL), lambda g: (g, 0)),             # activations (per block)
                pl.BlockSpec((3 * M, 5 * M), lambda g: (0, 0)),      # conv weights (resident)
                pl.BlockSpec((TL, TG3), lambda g: (0, 0)),           # GRU input projection
                pl.BlockSpec((H1p, G3), lambda g: (0, 0)),           # GRU hidden projection
                pl.BlockSpec((Fp, 2 * H2p), lambda g: (0, 0)),       # edge-conv linear
                pl.BlockSpec((H2p, CP), lambda g: (0, 0)),           # classifier
                pl.BlockSpec((M, 128), lambda g: (0, 0)),            # aux_row (conv biases)
                pl.BlockSpec((16, W_aux), lambda g: (0, 0)),         # aux_col (biases + masks)
            ],
            out_specs=pl.BlockSpec((BB, CP), lambda g: (g, 0)),
            scratch_shapes=[
                pltpu.VMEM((M, TG3), jnp.float32),                   # gi (hoisted GRU inputs)
                pltpu.VMEM((M, Fp), jnp.float32),                    # feat (GRU outputs)
                pltpu.VMEM((M, 2 * H2p), jnp.float32),               # uv (edge messages)
                pltpu.VMEM((BB, H2p), jnp.float32),                  # pooled per subject
            ],
        ),
        compiler_params=pltpu.CompilerParams(
            dimension_semantics=("parallel",)),
    )(x0, wfold, wbd, wh_pack, ab, wc, aux_row, aux_col)

    return out[:B, :C]


if __name__ == "__main__":
    # small shapes consistent with the module's forward
    NUM_NODES = 16       # num_nodes
    INIT_SIZE = 8        # feature_size[0] == GRU input size == Conv1d length
    NUM_CUTS = 4         # num_cuts == number of timesteps (h_theta1 dims must match)
    H1, H2 = 100, 50     # hidden_size_1, hidden_size_2 (fixed in the module)
    NUM_CLASSES = 2
    KNN = 6
    BATCH = 16           # subjects; processed 8 per grid step ("parallel" axis)

    key = jax.random.PRNGKey(0)
    k_in, k_par = jax.random.split(key)
    params = init_params(k_par, NUM_NODES, INIT_SIZE, NUM_CUTS, H1, H2, NUM_CLASSES)

    # per subject: NUM_CUTS tensors of shape (1, num_nodes, initial_size), stacked
    ts = jax.random.normal(k_in, (BATCH, NUM_CUTS, NUM_NODES, INIT_SIZE), jnp.float32)

    out = grnn_reduced_forward(ts, params, knn=KNN, block_b=8)
    out = jax.block_until_ready(out)
    assert out.shape == (BATCH, NUM_CLASSES)
    print("KERNEL_OK")
</pallas_src>

<mosaic_0001>
module attributes {stable_mosaic.version = 11 : i64} {
  func.func @fused_kernel(%arg0: i32, %arg1: memref<128x32xf32, #tpu.memory_space<vmem>>, %arg2: memref<384x640xbf16, #tpu.memory_space<vmem>>, %arg3: memref<32x1536xbf16, #tpu.memory_space<vmem>>, %arg4: memref<128x384xbf16, #tpu.memory_space<vmem>>, %arg5: memref<512x256xbf16, #tpu.memory_space<vmem>>, %arg6: memref<128x128xf32, #tpu.memory_space<vmem>>, %arg7: memref<128x128xf32, #tpu.memory_space<vmem>>, %arg8: memref<16x1536xf32, #tpu.memory_space<vmem>>, %arg9: memref<8x128xf32, #tpu.memory_space<vmem>>, %arg10: memref<128x1536xf32, #tpu.memory_space<vmem>>, %arg11: memref<128x512xf32, #tpu.memory_space<vmem>>, %arg12: memref<128x256xf32, #tpu.memory_space<vmem>>, %arg13: memref<8x128xf32, #tpu.memory_space<vmem>>) attributes {dimension_semantics = [#tpu.dimension_semantics<parallel>], iteration_bounds = array<i64: 2>, scalar_prefetch = 0 : i64, scratch_operands = 4 : i64, tpu.core_type = #tpu.core_type<tc>, window_params = [{transform_indices = @transform_0, window_bounds = array<i64: 128, 32>}, {pipeline_mode = #tpu.pipeline_mode<synchronous>, transform_indices = @transform_1, window_bounds = array<i64: 384, 640>}, {pipeline_mode = #tpu.pipeline_mode<synchronous>, transform_indices = @transform_2, window_bounds = array<i64: 32, 1536>}, {pipeline_mode = #tpu.pipeline_mode<synchronous>, transform_indices = @transform_3, window_bounds = array<i64: 128, 384>}, {pipeline_mode = #tpu.pipeline_mode<synchronous>, transform_indices = @transform_4, window_bounds = array<i64: 512, 256>}, {pipeline_mode = #tpu.pipeline_mode<synchronous>, transform_indices = @transform_5, window_bounds = array<i64: 128, 128>}, {pipeline_mode = #tpu.pipeline_mode<synchronous>, transform_indices = @transform_6, window_bounds = array<i64: 128, 128>}, {pipeline_mode = #tpu.pipeline_mode<synchronous>, transform_indices = @transform_7, window_bounds = array<i64: 16, 1536>}, {transform_indices = @transform_8, window_bounds = array<i64: 8, 128>}]} {
    %c8 = arith.constant 8 : index
    %c0 = arith.constant 0 : index
    %0 = vector.load %arg8[%c8, %c0] : memref<16x1536xf32, #tpu.memory_space<vmem>>, vector<1x32xf32>
    %c9 = arith.constant 9 : index
    %c0_0 = arith.constant 0 : index
    %1 = vector.load %arg8[%c9, %c0_0] : memref<16x1536xf32, #tpu.memory_space<vmem>>, vector<1x32xf32>
    %c10 = arith.constant 10 : index
    %c0_1 = arith.constant 0 : index
    %2 = vector.load %arg8[%c10, %c0_1] : memref<16x1536xf32, #tpu.memory_space<vmem>>, vector<1x32xf32>
    %c11 = arith.constant 11 : index
    %c0_2 = arith.constant 0 : index
    %3 = vector.load %arg8[%c11, %c0_2] : memref<16x1536xf32, #tpu.memory_space<vmem>>, vector<1x32xf32>
    %c12 = arith.constant 12 : index
    %c0_3 = arith.constant 0 : index
    %4 = vector.load %arg8[%c12, %c0_3] : memref<16x1536xf32, #tpu.memory_space<vmem>>, vector<1x32xf32>
    %c0_4 = arith.constant 0 : index
    %c0_5 = arith.constant 0 : index
    %5 = vector.load %arg1[%c0_4, %c0_5] : memref<128x32xf32, #tpu.memory_space<vmem>>, vector<128x32xf32>
    %cst = arith.constant 0.000000e+00 : f32
    %6 = vector.broadcast %cst : f32 to vector<128x2xf32>
    %7 = tpu.concatenate %6, %5, %6 in 1 : vector<128x2xf32>, vector<128x32xf32>, vector<128x2xf32> -> vector<128x36xf32>
    %8 = vector.extract_strided_slice %7 {offsets = [0, 0], sizes = [128, 32], strides = [1, 1]} : vector<128x36xf32> to vector<128x32xf32>
    %9 = vector.broadcast %0 : vector<1x32xf32> to vector<128x32xf32>
    %10 = arith.mulf %8, %9 : vector<128x32xf32>
    %11 = vector.extract_strided_slice %7 {offsets = [0, 1], sizes = [128, 32], strides = [1, 1]} : vector<128x36xf32> to vector<128x32xf32>
    %12 = vector.broadcast %1 : vector<1x32xf32> to vector<128x32xf32>
    %13 = arith.mulf %11, %12 : vector<128x32xf32>
    %14 = vector.extract_strided_slice %7 {offsets = [0, 2], sizes = [128, 32], strides = [1, 1]} : vector<128x36xf32> to vector<128x32xf32>
    %15 = vector.broadcast %2 : vector<1x32xf32> to vector<128x32xf32>
    %16 = arith.mulf %14, %15 : vector<128x32xf32>
    %17 = vector.extract_strided_slice %7 {offsets = [0, 3], sizes = [128, 32], strides = [1, 1]} : vector<128x36xf32> to vector<128x32xf32>
    %18 = vector.broadcast %3 : vector<1x32xf32> to vector<128x32xf32>
    %19 = arith.mulf %17, %18 : vector<128x32xf32>
    %20 = vector.extract_strided_slice %7 {offsets = [0, 4], sizes = [128, 32], strides = [1, 1]} : vector<128x36xf32> to vector<128x32xf32>
    %21 = vector.broadcast %4 : vector<1x32xf32> to vector<128x32xf32>
    %22 = arith.mulf %20, %21 : vector<128x32xf32>
    %23 = tpu.concatenate %10, %13, %16, %19, %22 in 0 : vector<128x32xf32>, vector<128x32xf32>, vector<128x32xf32>, vector<128x32xf32>, vector<128x32xf32> -> vector<640x32xf32>
    %c0_6 = arith.constant 0 : index
    %c0_7 = arith.constant 0 : index
    %24 = vector.load %arg2[%c0_6, %c0_7] : memref<384x640xbf16, #tpu.memory_space<vmem>>, vector<128x640xbf16>
    %25 = arith.truncf %23 : vector<640x32xf32> to vector<640x32xbf16>
    %cst_8 = arith.constant dense<0.000000e+00> : vector<128x32xf32>
    %26 = tpu.matmul %24, %25, %cst_8 {dimension_numbers = #tpu.dot_dimension_numbers<[1], [0], [0], [1], [0, 0, 1, 1], [], []>} : vector<128x640xbf16>, vector<640x32xbf16>, vector<128x32xf32> -> vector<128x32xf32>
    %c0_9 = arith.constant 0 : index
    %c0_10 = arith.constant 0 : index
    %27 = vector.load %arg7[%c0_9, %c0_10] : memref<128x128xf32, #tpu.memory_space<vmem>>, vector<128x1xf32>
    %28 = vector.broadcast %27 : vector<128x1xf32> to vector<128x32xf32>
    %29 = arith.addf %26, %28 : vector<128x32xf32>
    %cst_11 = arith.constant 0.000000e+00 : f32
    %30 = vector.broadcast %cst_11 : f32 to vector<128x32xf32>
    %31 = arith.cmpf ogt, %29, %30 : vector<128x32xf32>
    %cst_12 = arith.constant 1.000000e-01 : f32
    %32 = vector.broadcast %cst_12 : f32 to vector<128x32xf32>
    %33 = arith.mulf %32, %29 : vector<128x32xf32>
    %34 = arith.select %31, %29, %33 : vector<128x32xi1>, vector<128x32xf32>
    %35 = tpu.concatenate %6, %34, %6 in 1 : vector<128x2xf32>, vector<128x32xf32>, vector<128x2xf32> -> vector<128x36xf32>
    %36 = vector.extract_strided_slice %35 {offsets = [0, 0], sizes = [128, 32], strides = [1, 1]} : vector<128x36xf32> to vector<128x32xf32>
    %37 = vector.broadcast %0 : vector<1x32xf32> to vector<128x32xf32>
    %38 = arith.mulf %36, %37 : vector<128x32xf32>
    %39 = vector.extract_strided_slice %35 {offsets = [0, 1], sizes = [128, 32], strides = [1, 1]} : vector<128x36xf32> to vector<128x32xf32>
    %40 = vector.broadcast %1 : vector<1x32xf32> to vector<128x32xf32>
    %41 = arith.mulf %39, %40 : vector<128x32xf32>
    %42 = vector.extract_strided_slice %35 {offsets = [0, 2], sizes = [128, 32], strides = [1, 1]} : vector<128x36xf32> to vector<128x32xf32>
    %43 = vector.broadcast %2 : vector<1x32xf32> to vector<128x32xf32>
    %44 = arith.mulf %42, %43 : vector<128x32xf32>
    %45 = vector.extract_strided_slice %35 {offsets = [0, 3], sizes = [128, 32], strides = [1, 1]} : vector<128x36xf32> to vector<128x32xf32>
    %46 = vector.broadcast %3 : vector<1x32xf32> to vector<128x32xf32>
    %47 = arith.mulf %45, %46 : vector<128x32xf32>
    %48 = vector.extract_strided_slice %35 {offsets = [0, 4], sizes = [128, 32], strides = [1, 1]} : vector<128x36xf32> to vector<128x32xf32>
    %49 = vector.broadcast %4 : vector<1x32xf32> to vector<128x32xf32>
    %50 = arith.mulf %48, %49 : vector<128x32xf32>
    %51 = tpu.concatenate %38, %41, %44, %47, %50 in 0 : vector<128x32xf32>, vector<128x32xf32>, vector<128x32xf32>, vector<128x32xf32>, vector<128x32xf32> -> vector<640x32xf32>
    %c128 = arith.constant 128 : index
    %c0_13 = arith.constant 0 : index
    %52 = vector.load %arg2[%c128, %c0_13] : memref<384x640xbf16, #tpu.memory_space<vmem>>, vector<128x640xbf16>
    %53 = arith.truncf %51 : vector<640x32xf32> to vector<640x32xbf16>
    %cst_14 = arith.constant dense<0.000000e+00> : vector<128x32xf32>
    %54 = tpu.matmul %52, %53, %cst_14 {dimension_numbers = #tpu.dot_dimension_numbers<[1], [0], [0], [1], [0, 0, 1, 1], [], []>} : vector<128x640xbf16>, vector<640x32xbf16>, vector<128x32xf32> -> vector<128x32xf32>
    %c0_15 = arith.constant 0 : index
    %c1 = arith.constant 1 : index
    %55 = vector.load %arg7[%c0_15, %c1] : memref<128x128xf32, #tpu.memory_space<vmem>>, vector<128x1xf32>
    %56 = vector.broadcast %55 : vector<128x1xf32> to vector<128x32xf32>
    %57 = arith.addf %54, %56 : vector<128x32xf32>
    %cst_16 = arith.constant 0.000000e+00 : f32
    %58 = vector.broadcast %cst_16 : f32 to vector<128x32xf32>
    %59 = arith.cmpf ogt, %57, %58 : vector<128x32xf32>
    %cst_17 = arith.constant 1.000000e-01 : f32
    %60 = vector.broadcast %cst_17 : f32 to vector<128x32xf32>
    %61 = arith.mulf %60, %57 : vector<128x32xf32>
    %62 = arith.select %59, %57, %61 : vector<128x32xi1>, vector<128x32xf32>
    %63 = tpu.concatenate %6, %62, %6 in 1 : vector<128x2xf32>, vector<128x32xf32>, vector<128x2xf32> -> vector<128x36xf32>
    %64 = vector.extract_strided_slice %63 {offsets = [0, 0], sizes = [128, 32], strides = [1, 1]} : vector<128x36xf32> to vector<128x32xf32>
    %65 = vector.broadcast %0 : vector<1x32xf32> to vector<128x32xf32>
    %66 = arith.mulf %64, %65 : vector<128x32xf32>
    %67 = vector.extract_strided_slice %63 {offsets = [0, 1], sizes = [128, 32], strides = [1, 1]} : vector<128x36xf32> to vector<128x32xf32>
    %68 = vector.broadcast %1 : vector<1x32xf32> to vector<128x32xf32>
    %69 = arith.mulf %67, %68 : vector<128x32xf32>
    %70 = vector.extract_strided_slice %63 {offsets = [0, 2], sizes = [128, 32], strides = [1, 1]} : vector<128x36xf32> to vector<128x32xf32>
    %71 = vector.broadcast %2 : vector<1x32xf32> to vector<128x32xf32>
    %72 = arith.mulf %70, %71 : vector<128x32xf32>
    %73 = vector.extract_strided_slice %63 {offsets = [0, 3], sizes = [128, 32], strides = [1, 1]} : vector<128x36xf32> to vector<128x32xf32>
    %74 = vector.broadcast %3 : vector<1x32xf32> to vector<128x32xf32>
    %75 = arith.mulf %73, %74 : vector<128x32xf32>
    %76 = vector.extract_strided_slice %63 {offsets = [0, 4], sizes = [128, 32], strides = [1, 1]} : vector<128x36xf32> to vector<128x32xf32>
    %77 = vector.broadcast %4 : vector<1x32xf32> to vector<128x32xf32>
    %78 = arith.mulf %76, %77 : vector<128x32xf32>
    %79 = tpu.concatenate %66, %69, %72, %75, %78 in 0 : vector<128x32xf32>, vector<128x32xf32>, vector<128x32xf32>, vector<128x32xf32>, vector<128x32xf32> -> vector<640x32xf32>
    %c256 = arith.constant 256 : index
    %c0_18 = arith.constant 0 : index
    %80 = vector.load %arg2[%c256, %c0_18] : memref<384x640xbf16, #tpu.memory_space<vmem>>, vector<128x640xbf16>
    %81 = arith.truncf %79 : vector<640x32xf32> to vector<640x32xbf16>
    %cst_19 = arith.constant dense<0.000000e+00> : vector<128x32xf32>
    %82 = tpu.matmul %80, %81, %cst_19 {dimension_numbers = #tpu.dot_dimension_numbers<[1], [0], [0], [1], [0, 0, 1, 1], [], []>} : vector<128x640xbf16>, vector<640x32xbf16>, vector<128x32xf32> -> vector<128x32xf32>
    %c0_20 = arith.constant 0 : index
    %c2 = arith.constant 2 : index
    %83 = vector.load %arg7[%c0_20, %c2] : memref<128x128xf32, #tpu.memory_space<vmem>>, vector<128x1xf32>
    %84 = vector.broadcast %83 : vector<128x1xf32> to vector<128x32xf32>
    %85 = arith.addf %82, %84 : vector<128x32xf32>
    %cst_21 = arith.constant 0.000000e+00 : f32
    %86 = vector.broadcast %cst_21 : f32 to vector<128x32xf32>
    %87 = arith.cmpf ogt, %85, %86 : vector<128x32xf32>
    %cst_22 = arith.constant 1.000000e-01 : f32
    %88 = vector.broadcast %cst_22 : f32 to vector<128x32xf32>
    %89 = arith.mulf %88, %85 : vector<128x32xf32>
    %90 = arith.select %87, %85, %89 : vector<128x32xi1>, vector<128x32xf32>
    %91 = arith.truncf %90 : vector<128x32xf32> to vector<128x32xbf16>
    %c0_23 = arith.constant 0 : index
    %c0_24 = arith.constant 0 : index
    %92 = vector.load %arg3[%c0_23, %c0_24] : memref<32x1536xbf16, #tpu.memory_space<vmem>>, vector<32x1536xbf16>
    %cst_25 = arith.constant dense<0.000000e+00> : vector<128x1536xf32>
    %93 = tpu.matmul %91, %92, %cst_25 {dimension_numbers = #tpu.dot_dimension_numbers<[1], [0], [0], [1], [0, 0, 1, 1], [], []>} : vector<128x32xbf16>, vector<32x1536xbf16>, vector<128x1536xf32> -> vector<128x1536xf32>
    %c0_26 = arith.constant 0 : index
    %c0_27 = arith.constant 0 : index
    %94 = vector.load %arg8[%c0_26, %c0_27] : memref<16x1536xf32, #tpu.memory_space<vmem>>, vector<1x1536xf32>
    %95 = vector.broadcast %94 : vector<1x1536xf32> to vector<128x1536xf32>
    %96 = arith.addf %93, %95 : vector<128x1536xf32>
    %c0_28 = arith.constant 0 : index
    %c0_29 = arith.constant 0 : index
    %97 = vector.load %arg10[%c0_28, %c0_29] : memref<128x1536xf32, #tpu.memory_space<vmem>>, vector<128x1536xf32>
    tpu.vector_store %arg10[%c0_28, %c0_29], %96 {strides = array<i32>} : memref<128x1536xf32, #tpu.memory_space<vmem>>, vector<128x1536xf32>,
    %c0_30 = arith.constant 0 : index
    %c0_31 = arith.constant 0 : index
    %98 = vector.load %arg4[%c0_30, %c0_31] : memref<128x384xbf16, #tpu.memory_space<vmem>>, vector<128x384xbf16>
    %c1_32 = arith.constant 1 : index
    %c0_33 = arith.constant 0 : index
    %99 = vector.load %arg8[%c1_32, %c0_33] : memref<16x1536xf32, #tpu.memory_space<vmem>>, vector<1x128xf32>
    %cst_34 = arith.constant 0.000000e+00 : f32
    %100 = vector.broadcast %cst_34 : f32 to vector<128x128xf32>
    %c0_35 = arith.constant 0 : index
    %c0_36 = arith.constant 0 : index
    %101 = vector.load %arg10[%c0_35, %c0_36] : memref<128x1536xf32, #tpu.memory_space<vmem>>, vector<128x384xf32>
    %102 = arith.truncf %100 : vector<128x128xf32> to vector<128x128xbf16>
    %cst_37 = arith.constant dense<0.000000e+00> : vector<128x384xf32>
    %103 = tpu.matmul %102, %98, %cst_37 {dimension_numbers = #tpu.dot_dimension_numbers<[1], [0], [0], [1], [0, 0, 1, 1], [], []>} : vector<128x128xbf16>, vector<128x384xbf16>, vector<128x384xf32> -> vector<128x384xf32>
    %104 = vector.extract_strided_slice %101 {offsets = [0, 0], sizes = [128, 128], strides = [1, 1]} : vector<128x384xf32> to vector<128x128xf32>
    %105 = vector.extract_strided_slice %103 {offsets = [0, 0], sizes = [128, 128], strides = [1, 1]} : vector<128x384xf32> to vector<128x128xf32>
    %106 = arith.addf %104, %105 : vector<128x128xf32>
    %107 = arith.negf %106 : vector<128x128xf32>
    %108 = math.exp %107 : vector<128x128xf32>
    %cst_38 = arith.constant 1.000000e+00 : f32
    %109 = vector.broadcast %cst_38 : f32 to vector<128x128xf32>
    %110 = arith.addf %109, %108 : vector<128x128xf32>
    %111 = arith.divf %109, %110 : vector<128x128xf32>
    %112 = vector.extract_strided_slice %101 {offsets = [0, 128], sizes = [128, 128], strides = [1, 1]} : vector<128x384xf32> to vector<128x128xf32>
    %113 = vector.extract_strided_slice %103 {offsets = [0, 128], sizes = [128, 128], strides = [1, 1]} : vector<128x384xf32> to vector<128x128xf32>
    %114 = arith.addf %112, %113 : vector<128x128xf32>
    %115 = arith.negf %114 : vector<128x128xf32>
    %116 = math.exp %115 : vector<128x128xf32>
    %cst_39 = arith.constant 1.000000e+00 : f32
    %117 = vector.broadcast %cst_39 : f32 to vector<128x128xf32>
    %118 = arith.addf %117, %116 : vector<128x128xf32>
    %119 = arith.divf %117, %118 : vector<128x128xf32>
    %120 = vector.extract_strided_slice %101 {offsets = [0, 256], sizes = [128, 128], strides = [1, 1]} : vector<128x384xf32> to vector<128x128xf32>
    %121 = vector.extract_strided_slice %103 {offsets = [0, 256], sizes = [128, 128], strides = [1, 1]} : vector<128x384xf32> to vector<128x128xf32>
    %122 = vector.broadcast %99 : vector<1x128xf32> to vector<128x128xf32>
    %123 = arith.addf %121, %122 : vector<128x128xf32>
    %124 = arith.mulf %111, %123 : vector<128x128xf32>
    %125 = arith.addf %120, %124 : vector<128x128xf32>
    %126 = math.tanh %125 : vector<128x128xf32>
    %cst_40 = arith.constant 1.000000e+00 : f32
    %127 = vector.broadcast %cst_40 : f32 to vector<128x128xf32>
    %128 = arith.subf %127, %119 : vector<128x128xf32>
    %129 = arith.mulf %128, %126 : vector<128x128xf32>
    %130 = arith.mulf %119, %100 : vector<128x128xf32>
    %131 = arith.addf %129, %130 : vector<128x128xf32>
    %cst_41 = arith.constant 0.000000e+00 : f32
    %132 = vector.broadcast %cst_41 : f32 to vector<128x128xf32>
    %133 = arith.cmpf ogt, %131, %132 : vector<128x128xf32>
    %cst_42 = arith.constant 1.000000e-01 : f32
    %134 = vector.broadcast %cst_42 : f32 to vector<128x128xf32>
    %135 = arith.mulf %134, %131 : vector<128x128xf32>
    %136 = arith.select %133, %131, %135 : vector<128x128xi1>, vector<128x128xf32>
    %c0_43 = arith.constant 0 : index
    %c0_44 = arith.constant 0 : index
    %137 = vector.load %arg11[%c0_43, %c0_44] : memref<128x512xf32, #tpu.memory_space<vmem>>, vector<128x128xf32>
    tpu.vector_store %arg11[%c0_43, %c0_44], %136 {strides = array<i32>} : memref<128x512xf32, #tpu.memory_space<vmem>>, vector<128x128xf32>,
    %c0_45 = arith.constant 0 : index
    %c384 = arith.constant 384 : index
    %138 = vector.load %arg10[%c0_45, %c384] : memref<128x1536xf32, #tpu.memory_space<vmem>>, vector<128x384xf32>
    %139 = arith.truncf %131 : vector<128x128xf32> to vector<128x128xbf16>
    %cst_46 = arith.constant dense<0.000000e+00> : vector<128x384xf32>
    %140 = tpu.matmul %139, %98, %cst_46 {dimension_numbers = #tpu.dot_dimension_numbers<[1], [0], [0], [1], [0, 0, 1, 1], [], []>} : vector<128x128xbf16>, vector<128x384xbf16>, vector<128x384xf32> -> vector<128x384xf32>
    %141 = vector.extract_strided_slice %138 {offsets = [0, 0], sizes = [128, 128], strides = [1, 1]} : vector<128x384xf32> to vector<128x128xf32>
    %142 = vector.extract_strided_slice %140 {offsets = [0, 0], sizes = [128, 128], strides = [1, 1]} : vector<128x384xf32> to vector<128x128xf32>
    %143 = arith.addf %141, %142 : vector<128x128xf32>
    %144 = arith.negf %143 : vector<128x128xf32>
    %145 = math.exp %144 : vector<128x128xf32>
    %cst_47 = arith.constant 1.000000e+00 : f32
    %146 = vector.broadcast %cst_47 : f32 to vector<128x128xf32>
    %147 = arith.addf %146, %145 : vector<128x128xf32>
    %148 = arith.divf %146, %147 : vector<128x128xf32>
    %149 = vector.extract_strided_slice %138 {offsets = [0, 128], sizes = [128, 128], strides = [1, 1]} : vector<128x384xf32> to vector<128x128xf32>
    %150 = vector.extract_strided_slice %140 {offsets = [0, 128], sizes = [128, 128], strides = [1, 1]} : vector<128x384xf32> to vector<128x128xf32>
    %151 = arith.addf %149, %150 : vector<128x128xf32>
    %152 = arith.negf %151 : vector<128x128xf32>
    %153 = math.exp %152 : vector<128x128xf32>
    %cst_48 = arith.constant 1.000000e+00 : f32
    %154 = vector.broadcast %cst_48 : f32 to vector<128x128xf32>
    %155 = arith.addf %154, %153 : vector<128x128xf32>
    %156 = arith.divf %154, %155 : vector<128x128xf32>
    %157 = vector.extract_strided_slice %138 {offsets = [0, 256], sizes = [128, 128], strides = [1, 1]} : vector<128x384xf32> to vector<128x128xf32>
    %158 = vector.extract_strided_slice %140 {offsets = [0, 256], sizes = [128, 128], strides = [1, 1]} : vector<128x384xf32> to vector<128x128xf32>
    %159 = vector.broadcast %99 : vector<1x128xf32> to vector<128x128xf32>
    %160 = arith.addf %158, %159 : vector<128x128xf32>
    %161 = arith.mulf %148, %160 : vector<128x128xf32>
    %162 = arith.addf %157, %161 : vector<128x128xf32>
    %163 = math.tanh %162 : vector<128x128xf32>
    %cst_49 = arith.constant 1.000000e+00 : f32
    %164 = vector.broadcast %cst_49 : f32 to vector<128x128xf32>
    %165 = arith.subf %164, %156 : vector<128x128xf32>
    %166 = arith.mulf %165, %163 : vector<128x128xf32>
    %167 = arith.mulf %156, %131 : vector<128x128xf32>
    %168 = arith.addf %166, %167 : vector<128x128xf32>
    %cst_50 = arith.constant 0.000000e+00 : f32
    %169 = vector.broadcast %cst_50 : f32 to vector<128x128xf32>
    %170 = arith.cmpf ogt, %168, %169 : vector<128x128xf32>
    %cst_51 = arith.constant 1.000000e-01 : f32
    %171 = vector.broadcast %cst_51 : f32 to vector<128x128xf32>
    %172 = arith.mulf %171, %168 : vector<128x128xf32>
    %173 = arith.select %170, %168, %172 : vector<128x128xi1>, vector<128x128xf32>
    %c0_52 = arith.constant 0 : index
    %c128_53 = arith.constant 128 : index
    %174 = vector.load %arg11[%c0_52, %c128_53] : memref<128x512xf32, #tpu.memory_space<vmem>>, vector<128x128xf32>
    tpu.vector_store %arg11[%c0_52, %c128_53], %173 {strides = array<i32>} : memref<128x512xf32, #tpu.memory_space<vmem>>, vector<128x128xf32>,
    %c0_54 = arith.constant 0 : index
    %c768 = arith.constant 768 : index
    %175 = vector.load %arg10[%c0_54, %c768] : memref<128x1536xf32, #tpu.memory_space<vmem>>, vector<128x384xf32>
    %176 = arith.truncf %168 : vector<128x128xf32> to vector<128x128xbf16>
    %cst_55 = arith.constant dense<0.000000e+00> : vector<128x384xf32>
    %177 = tpu.matmul %176, %98, %cst_55 {dimension_numbers = #tpu.dot_dimension_numbers<[1], [0], [0], [1], [0, 0, 1, 1], [], []>} : vector<128x128xbf16>, vector<128x384xbf16>, vector<128x384xf32> -> vector<128x384xf32>
    %178 = vector.extract_strided_slice %175 {offsets = [0, 0], sizes = [128, 128], strides = [1, 1]} : vector<128x384xf32> to vector<128x128xf32>
    %179 = vector.extract_strided_slice %177 {offsets = [0, 0], sizes = [128, 128], strides = [1, 1]} : vector<128x384xf32> to vector<128x128xf32>
    %180 = arith.addf %178, %179 : vector<128x128xf32>
    %181 = arith.negf %180 : vector<128x128xf32>
    %182 = math.exp %181 : vector<128x128xf32>
    %cst_56 = arith.constant 1.000000e+00 : f32
    %183 = vector.broadcast %cst_56 : f32 to vector<128x128xf32>
    %184 = arith.addf %183, %182 : vector<128x128xf32>
    %185 = arith.divf %183, %184 : vector<128x128xf32>
    %186 = vector.extract_strided_slice %175 {offsets = [0, 128], sizes = [128, 128], strides = [1, 1]} : vector<128x384xf32> to vector<128x128xf32>
    %187 = vector.extract_strided_slice %177 {offsets = [0, 128], sizes = [128, 128], strides = [1, 1]} : vector<128x384xf32> to vector<128x128xf32>
    %188 = arith.addf %186, %187 : vector<128x128xf32>
    %189 = arith.negf %188 : vector<128x128xf32>
    %190 = math.exp %189 : vector<128x128xf32>
    %cst_57 = arith.constant 1.000000e+00 : f32
    %191 = vector.broadcast %cst_57 : f32 to vector<128x128xf32>
    %192 = arith.addf %191, %190 : vector<128x128xf32>
    %193 = arith.divf %191, %192 : vector<128x128xf32>
    %194 = vector.extract_strided_slice %175 {offsets = [0, 256], sizes = [128, 128], strides = [1, 1]} : vector<128x384xf32> to vector<128x128xf32>
    %195 = vector.extract_strided_slice %177 {offsets = [0, 256], sizes = [128, 128], strides = [1, 1]} : vector<128x384xf32> to vector<128x128xf32>
    %196 = vector.broadcast %99 : vector<1x128xf32> to vector<128x128xf32>
    %197 = arith.addf %195, %196 : vector<128x128xf32>
    %198 = arith.mulf %185, %197 : vector<128x128xf32>
    %199 = arith.addf %194, %198 : vector<128x128xf32>
    %200 = math.tanh %199 : vector<128x128xf32>
    %cst_58 = arith.constant 1.000000e+00 : f32
    %201 = vector.broadcast %cst_58 : f32 to vector<128x128xf32>
    %202 = arith.subf %201, %193 : vector<128x128xf32>
    %203 = arith.mulf %202, %200 : vector<128x128xf32>
    %204 = arith.mulf %193, %168 : vector<128x128xf32>
    %205 = arith.addf %203, %204 : vector<128x128xf32>
    %cst_59 = arith.constant 0.000000e+00 : f32
    %206 = vector.broadcast %cst_59 : f32 to vector<128x128xf32>
    %207 = arith.cmpf ogt, %205, %206 : vector<128x128xf32>
    %cst_60 = arith.constant 1.000000e-01 : f32
    %208 = vector.broadcast %cst_60 : f32 to vector<128x128xf32>
    %209 = arith.mulf %208, %205 : vector<128x128xf32>
    %210 = arith.select %207, %205, %209 : vector<128x128xi1>, vector<128x128xf32>
    %c0_61 = arith.constant 0 : index
    %c256_62 = arith.constant 256 : index
    %211 = vector.load %arg11[%c0_61, %c256_62] : memref<128x512xf32, #tpu.memory_space<vmem>>, vector<128x128xf32>
    tpu.vector_store %arg11[%c0_61, %c256_62], %210 {strides = array<i32>} : memref<128x512xf32, #tpu.memory_space<vmem>>, vector<128x128xf32>,
    %c0_63 = arith.constant 0 : index
    %c1152 = arith.constant 1152 : index
    %212 = vector.load %arg10[%c0_63, %c1152] : memref<128x1536xf32, #tpu.memory_space<vmem>>, vector<128x384xf32>
    %213 = arith.truncf %205 : vector<128x128xf32> to vector<128x128xbf16>
    %cst_64 = arith.constant dense<0.000000e+00> : vector<128x384xf32>
    %214 = tpu.matmul %213, %98, %cst_64 {dimension_numbers = #tpu.dot_dimension_numbers<[1], [0], [0], [1], [0, 0, 1, 1], [], []>} : vector<128x128xbf16>, vector<128x384xbf16>, vector<128x384xf32> -> vector<128x384xf32>
    %215 = vector.extract_strided_slice %212 {offsets = [0, 0], sizes = [128, 128], strides = [1, 1]} : vector<128x384xf32> to vector<128x128xf32>
    %216 = vector.extract_strided_slice %214 {offsets = [0, 0], sizes = [128, 128], strides = [1, 1]} : vector<128x384xf32> to vector<128x128xf32>
    %217 = arith.addf %215, %216 : vector<128x128xf32>
    %218 = arith.negf %217 : vector<128x128xf32>
    %219 = math.exp %218 : vector<128x128xf32>
    %cst_65 = arith.constant 1.000000e+00 : f32
    %220 = vector.broadcast %cst_65 : f32 to vector<128x128xf32>
    %221 = arith.addf %220, %219 : vector<128x128xf32>
    %222 = arith.divf %220, %221 : vector<128x128xf32>
    %223 = vector.extract_strided_slice %212 {offsets = [0, 128], sizes = [128, 128], strides = [1, 1]} : vector<128x384xf32> to vector<128x128xf32>
    %224 = vector.extract_strided_slice %214 {offsets = [0, 128], sizes = [128, 128], strides = [1, 1]} : vector<128x384xf32> to vector<128x128xf32>
    %225 = arith.addf %223, %224 : vector<128x128xf32>
    %226 = arith.negf %225 : vector<128x128xf32>
    %227 = math.exp %226 : vector<128x128xf32>
    %cst_66 = arith.constant 1.000000e+00 : f32
    %228 = vector.broadcast %cst_66 : f32 to vector<128x128xf32>
    %229 = arith.addf %228, %227 : vector<128x128xf32>
    %230 = arith.divf %228, %229 : vector<128x128xf32>
    %231 = vector.extract_strided_slice %212 {offsets = [0, 256], sizes = [128, 128], strides = [1, 1]} : vector<128x384xf32> to vector<128x128xf32>
    %232 = vector.extract_strided_slice %214 {offsets = [0, 256], sizes = [128, 128], strides = [1, 1]} : vector<128x384xf32> to vector<128x128xf32>
    %233 = vector.broadcast %99 : vector<1x128xf32> to vector<128x128xf32>
    %234 = arith.addf %232, %233 : vector<128x128xf32>
    %235 = arith.mulf %222, %234 : vector<128x128xf32>
    %236 = arith.addf %231, %235 : vector<128x128xf32>
    %237 = math.tanh %236 : vector<128x128xf32>
    %cst_67 = arith.constant 1.000000e+00 : f32
    %238 = vector.broadcast %cst_67 : f32 to vector<128x128xf32>
    %239 = arith.subf %238, %230 : vector<128x128xf32>
    %240 = arith.mulf %239, %237 : vector<128x128xf32>
    %241 = arith.mulf %230, %205 : vector<128x128xf32>
    %242 = arith.addf %240, %241 : vector<128x128xf32>
    %cst_68 = arith.constant 0.000000e+00 : f32
    %243 = vector.broadcast %cst_68 : f32 to vector<128x128xf32>
    %244 = arith.cmpf ogt, %242, %243 : vector<128x128xf32>
    %cst_69 = arith.constant 1.000000e-01 : f32
    %245 = vector.broadcast %cst_69 : f32 to vector<128x128xf32>
    %246 = arith.mulf %245, %242 : vector<128x128xf32>
    %247 = arith.select %244, %242, %246 : vector<128x128xi1>, vector<128x128xf32>
    %c0_70 = arith.constant 0 : index
    %c384_71 = arith.constant 384 : index
    %248 = vector.load %arg11[%c0_70, %c384_71] : memref<128x512xf32, #tpu.memory_space<vmem>>, vector<128x128xf32>
    tpu.vector_store %arg11[%c0_70, %c384_71], %247 {strides = array<i32>} : memref<128x512xf32, #tpu.memory_space<vmem>>, vector<128x128xf32>,
    %c0_72 = arith.constant 0 : index
    %c0_73 = arith.constant 0 : index
    %249 = vector.load %arg11[%c0_72, %c0_73] : memref<128x512xf32, #tpu.memory_space<vmem>>, vector<128x512xf32>
    %250 = arith.truncf %249 : vector<128x512xf32> to vector<128x512xbf16>
    %c0_74 = arith.constant 0 : index
    %c0_75 = arith.constant 0 : index
    %251 = vector.load %arg5[%c0_74, %c0_75] : memref<512x256xbf16, #tpu.memory_space<vmem>>, vector<512x256xbf16>
    %cst_76 = arith.constant dense<0.000000e+00> : vector<128x256xf32>
    %252 = tpu.matmul %250, %251, %cst_76 {dimension_numbers = #tpu.dot_dimension_numbers<[1], [0], [0], [1], [0, 0, 1, 1], [], []>} : vector<128x512xbf16>, vector<512x256xbf16>, vector<128x256xf32> -> vector<128x256xf32>
    %c0_77 = arith.constant 0 : index
    %c0_78 = arith.constant 0 : index
    %253 = vector.load %arg12[%c0_77, %c0_78] : memref<128x256xf32, #tpu.memory_space<vmem>>, vector<128x256xf32>
    tpu.vector_store %arg12[%c0_77, %c0_78], %252 {strides = array<i32>} : memref<128x256xf32, #tpu.memory_space<vmem>>, vector<128x256xf32>,
    %254 = tpu.iota {dimensions = array<i32: 0>} : vector<16x16xi32>
    %255 = tpu.iota {dimensions = array<i32: 1>} : vector<16x16xi32>
    %256 = arith.cmpi eq, %254, %255 : vector<16x16xi32>
    %cst_79 = arith.constant 1.000000e+00 : f32
    %cst_80 = arith.constant 0.000000e+00 : f32
    %257 = vector.broadcast %cst_79 : f32 to vector<16x16xf32>
    %258 = vector.broadcast %cst_80 : f32 to vector<16x16xf32>
    %259 = arith.select %256, %257, %258 : vector<16x16xi1>, vector<16x16xf32>
    %c2_81 = arith.constant 2 : index
    %c0_82 = arith.constant 0 : index
    %260 = vector.load %arg8[%c2_81, %c0_82] : memref<16x1536xf32, #tpu.memory_space<vmem>>, vector<1x128xf32>
    %c0_i32 = arith.constant 0 : i32
    %c8_i32 = arith.constant 8 : i32
    %261 = arith.addi %c0_i32, %c8_i32 : i32
    %c1_i32 = arith.constant 1 : i32
    scf.for %arg14 = %c0_i32 to %261 step %c1_i32  : i32 {
      %c1_i32_92 = arith.constant 1 : i32
      %269 = arith.muli %arg14, %c1_i32_92 : i32
      %c0_i32_93 = arith.constant 0 : i32
      %270 = arith.addi %c0_i32_93, %269 : i32
      %c16_i32 = arith.constant 16 : i32
      %271 = arith.muli %270, %c16_i32 : i32
      %272 = tpu.assume_multiple %271, 16 : i32
      %273 = arith.index_cast %272 : i32 to index
      %c0_94 = arith.constant 0 : index
      %274 = vector.load %arg11[%273, %c0_94] : memref<128x512xf32, #tpu.memory_space<vmem>>, vector<16x512xf32>
      %275 = arith.index_cast %272 : i32 to index
      %c0_95 = arith.constant 0 : index
      %276 = vector.load %arg12[%275, %c0_95] : memref<128x256xf32, #tpu.memory_space<vmem>>, vector<16x256xf32>
      %277 = vector.extract_strided_slice %276 {offsets = [0, 0], sizes = [16, 128], strides = [1, 1]} : vector<16x256xf32> to vector<16x128xf32>
      %278 = vector.extract_strided_slice %276 {offsets = [0, 128], sizes = [16, 128], strides = [1, 1]} : vector<16x256xf32> to vector<16x128xf32>
      %cst_96 = arith.constant dense<0.000000e+00> : vector<16x16xf32>
      %279 = tpu.matmul %274, %274, %cst_96 {dimension_numbers = #tpu.dot_dimension_numbers<[1], [1], [0], [0], [0, 0, 1, 0], [], []>} : vector<16x512xf32>, vector<16x512xf32>, vector<16x16xf32> -> vector<16x16xf32>
      %280 = arith.mulf %279, %259 : vector<16x16xf32>
      %cst_97 = arith.constant dense<0.000000e+00> : vector<16xf32>
      %281 = vector.multi_reduction <add>, %280, %cst_97 [0] : vector<16x16xf32> to vector<16xf32>
      %282 = vector.shape_cast %281 : vector<16xf32> to vector<1x16xf32>
      %cst_98 = arith.constant 2.000000e+00 : f32
      %283 = vector.broadcast %cst_98 : f32 to vector<16x16xf32>
      %284 = arith.mulf %283, %279 : vector<16x16xf32>
      %285 = vector.broadcast %282 : vector<1x16xf32> to vector<16x16xf32>
      %286 = arith.subf %285, %284 : vector<16x16xf32>
      %cst_99 = arith.constant dense<0x7F800000> : vector<16xf32>
      %287 = vector.multi_reduction <minimumf>, %286, %cst_99 [1] : vector<16x16xf32> to vector<16xf32>
      %288 = vector.shape_cast %287 : vector<16xf32> to vector<16x1xf32>
      %289 = vector.broadcast %288 : vector<16x1xf32> to vector<16x16xf32>
      %290 = arith.cmpf ole, %286, %289 : vector<16x16xf32>
      %cst_100 = arith.constant 3.000000e+38 : f32
      %291 = vector.broadcast %cst_100 : f32 to vector<16x16xf32>
      %292 = arith.select %290, %291, %286 : vector<16x16xi1>, vector<16x16xf32>
      %cst_101 = arith.constant dense<0x7F800000> : vector<16xf32>
      %293 = vector.multi_reduction <minimumf>, %292, %cst_101 [1] : vector<16x16xf32> to vector<16xf32>
      %294 = vector.shape_cast %293 : vector<16xf32> to vector<16x1xf32>
      %295 = vector.broadcast %294 : vector<16x1xf32> to vector<16x16xf32>
      %296 = arith.cmpf ole, %292, %295 : vector<16x16xf32>
      %cst_102 = arith.constant 3.000000e+38 : f32
      %297 = vector.broadcast %cst_102 : f32 to vector<16x16xf32>
      %298 = arith.select %296, %297, %292 : vector<16x16xi1>, vector<16x16xf32>
      %cst_103 = arith.constant dense<0x7F800000> : vector<16xf32>
      %299 = vector.multi_reduction <minimumf>, %298, %cst_103 [1] : vector<16x16xf32> to vector<16xf32>
      %300 = vector.shape_cast %299 : vector<16xf32> to vector<16x1xf32>
      %301 = vector.broadcast %300 : vector<16x1xf32> to vector<16x16xf32>
      %302 = arith.cmpf ole, %298, %301 : vector<16x16xf32>
      %cst_104 = arith.constant 3.000000e+38 : f32
      %303 = vector.broadcast %cst_104 : f32 to vector<16x16xf32>
      %304 = arith.select %302, %303, %298 : vector<16x16xi1>, vector<16x16xf32>
      %cst_105 = arith.constant dense<0x7F800000> : vector<16xf32>
      %305 = vector.multi_reduction <minimumf>, %304, %cst_105 [1] : vector<16x16xf32> to vector<16xf32>
      %306 = vector.shape_cast %305 : vector<16xf32> to vector<16x1xf32>
      %307 = vector.broadcast %306 : vector<16x1xf32> to vector<16x16xf32>
      %308 = arith.cmpf ole, %304, %307 : vector<16x16xf32>
      %cst_106 = arith.constant 3.000000e+38 : f32
      %309 = vector.broadcast %cst_106 : f32 to vector<16x16xf32>
      %310 = arith.select %308, %309, %304 : vector<16x16xi1>, vector<16x16xf32>
      %cst_107 = arith.constant dense<0x7F800000> : vector<16xf32>
      %311 = vector.multi_reduction <minimumf>, %310, %cst_107 [1] : vector<16x16xf32> to vector<16xf32>
      %312 = vector.shape_cast %311 : vector<16xf32> to vector<16x1xf32>
      %313 = vector.broadcast %312 : vector<16x1xf32> to vector<16x16xf32>
      %314 = arith.cmpf ole, %310, %313 : vector<16x16xf32>
      %cst_108 = arith.constant 3.000000e+38 : f32
      %315 = vector.broadcast %cst_108 : f32 to vector<16x16xf32>
      %316 = arith.select %314, %315, %310 : vector<16x16xi1>, vector<16x16xf32>
      %cst_109 = arith.constant dense<0x7F800000> : vector<16xf32>
      %317 = vector.multi_reduction <minimumf>, %316, %cst_109 [1] : vector<16x16xf32> to vector<16xf32>
      %318 = vector.shape_cast %317 : vector<16xf32> to vector<16x1xf32>
      %319 = vector.broadcast %318 : vector<16x1xf32> to vector<16x16xf32>
      %320 = arith.cmpf ole, %286, %319 : vector<16x16xf32>
      %cst_110 = arith.constant 1.000000e+00 : f32
      %cst_111 = arith.constant 0.000000e+00 : f32
      %321 = vector.broadcast %cst_110 : f32 to vector<16x16xf32>
      %322 = vector.broadcast %cst_111 : f32 to vector<16x16xf32>
      %323 = arith.select %320, %321, %322 : vector<16x16xi1>, vector<16x16xf32>
      %cst_112 = arith.constant -3.000000e+38 : f32
      %324 = vector.broadcast %cst_112 : f32 to vector<16x128xf32>
      %325 = vector.extract_strided_slice %323 {offsets = [0, 0], sizes = [16, 1], strides = [1, 1]} : vector<16x16xf32> to vector<16x1xf32>
      %cst_113 = arith.constant 5.000000e-01 : f32
      %326 = vector.broadcast %cst_113 : f32 to vector<16x1xf32>
      %327 = arith.cmpf ogt, %325, %326 : vector<16x1xf32>
      %328 = vector.extract_strided_slice %278 {offsets = [0, 0], sizes = [1, 128], strides = [1, 1]} : vector<16x128xf32> to vector<1x128xf32>
      %cst_114 = arith.constant -3.000000e+38 : f32
      %329 = vector.shape_cast %327 : vector<16x1xi1> to vector<16x1xi1>
      %330 = vector.broadcast %329 : vector<16x1xi1> to vector<16x128xi1>
      %331 = vector.shape_cast %328 : vector<1x128xf32> to vector<1x128xf32>
      %332 = vector.broadcast %331 : vector<1x128xf32> to vector<16x128xf32>
      %333 = vector.broadcast %cst_114 : f32 to vector<16x128xf32>
      %334 = arith.select %330, %332, %333 : vector<16x128xi1>, vector<16x128xf32>
      %335 = arith.maximumf %324, %334 : vector<16x128xf32>
      %336 = vector.extract_strided_slice %323 {offsets = [0, 1], sizes = [16, 1], strides = [1, 1]} : vector<16x16xf32> to vector<16x1xf32>
      %cst_115 = arith.constant 5.000000e-01 : f32
      %337 = vector.broadcast %cst_115 : f32 to vector<16x1xf32>
      %338 = arith.cmpf ogt, %336, %337 : vector<16x1xf32>
      %339 = vector.extract_strided_slice %278 {offsets = [1, 0], sizes = [1, 128], strides = [1, 1]} : vector<16x128xf32> to vector<1x128xf32>
      %cst_116 = arith.constant -3.000000e+38 : f32
      %340 = vector.shape_cast %338 : vector<16x1xi1> to vector<16x1xi1>
      %341 = vector.broadcast %340 : vector<16x1xi1> to vector<16x128xi1>
      %342 = vector.shape_cast %339 : vector<1x128xf32> to vector<1x128xf32>
      %343 = vector.broadcast %342 : vector<1x128xf32> to vector<16x128xf32>
      %344 = vector.broadcast %cst_116 : f32 to vector<16x128xf32>
      %345 = arith.select %341, %343, %344 : vector<16x128xi1>, vector<16x128xf32>
      %346 = arith.maximumf %335, %345 : vector<16x128xf32>
      %347 = vector.extract_strided_slice %323 {offsets = [0, 2], sizes = [16, 1], strides = [1, 1]} : vector<16x16xf32> to vector<16x1xf32>
      %cst_117 = arith.constant 5.000000e-01 : f32
      %348 = vector.broadcast %cst_117 : f32 to vector<16x1xf32>
      %349 = arith.cmpf ogt, %347, %348 : vector<16x1xf32>
      %350 = vector.extract_strided_slice %278 {offsets = [2, 0], sizes = [1, 128], strides = [1, 1]} : vector<16x128xf32> to vector<1x128xf32>
      %cst_118 = arith.constant -3.000000e+38 : f32
      %351 = vector.shape_cast %349 : vector<16x1xi1> to vector<16x1xi1>
      %352 = vector.broadcast %351 : vector<16x1xi1> to vector<16x128xi1>
      %353 = vector.shape_cast %350 : vector<1x128xf32> to vector<1x128xf32>
      %354 = vector.broadcast %353 : vector<1x128xf32> to vector<16x128xf32>
      %355 = vector.broadcast %cst_118 : f32 to vector<16x128xf32>
      %356 = arith.select %352, %354, %355 : vector<16x128xi1>, vector<16x128xf32>
      %357 = arith.maximumf %346, %356 : vector<16x128xf32>
      %358 = vector.extract_strided_slice %323 {offsets = [0, 3], sizes = [16, 1], strides = [1, 1]} : vector<16x16xf32> to vector<16x1xf32>
      %cst_119 = arith.constant 5.000000e-01 : f32
      %359 = vector.broadcast %cst_119 : f32 to vector<16x1xf32>
      %360 = arith.cmpf ogt, %358, %359 : vector<16x1xf32>
      %361 = vector.extract_strided_slice %278 {offsets = [3, 0], sizes = [1, 128], strides = [1, 1]} : vector<16x128xf32> to vector<1x128xf32>
      %cst_120 = arith.constant -3.000000e+38 : f32
      %362 = vector.shape_cast %360 : vector<16x1xi1> to vector<16x1xi1>
      %363 = vector.broadcast %362 : vector<16x1xi1> to vector<16x128xi1>
      %364 = vector.shape_cast %361 : vector<1x128xf32> to vector<1x128xf32>
      %365 = vector.broadcast %364 : vector<1x128xf32> to vector<16x128xf32>
      %366 = vector.broadcast %cst_120 : f32 to vector<16x128xf32>
      %367 = arith.select %363, %365, %366 : vector<16x128xi1>, vector<16x128xf32>
      %368 = arith.maximumf %357, %367 : vector<16x128xf32>
      %369 = vector.extract_strided_slice %323 {offsets = [0, 4], sizes = [16, 1], strides = [1, 1]} : vector<16x16xf32> to vector<16x1xf32>
      %cst_121 = arith.constant 5.000000e-01 : f32
      %370 = vector.broadcast %cst_121 : f32 to vector<16x1xf32>
      %371 = arith.cmpf ogt, %369, %370 : vector<16x1xf32>
      %372 = vector.extract_strided_slice %278 {offsets = [4, 0], sizes = [1, 128], strides = [1, 1]} : vector<16x128xf32> to vector<1x128xf32>
      %cst_122 = arith.constant -3.000000e+38 : f32
      %373 = vector.shape_cast %371 : vector<16x1xi1> to vector<16x1xi1>
      %374 = vector.broadcast %373 : vector<16x1xi1> to vector<16x128xi1>
      %375 = vector.shape_cast %372 : vector<1x128xf32> to vector<1x128xf32>
      %376 = vector.broadcast %375 : vector<1x128xf32> to vector<16x128xf32>
      %377 = vector.broadcast %cst_122 : f32 to vector<16x128xf32>
      %378 = arith.select %374, %376, %377 : vector<16x128xi1>, vector<16x128xf32>
      %379 = arith.maximumf %368, %378 : vector<16x128xf32>
      %380 = vector.extract_strided_slice %323 {offsets = [0, 5], sizes = [16, 1], strides = [1, 1]} : vector<16x16xf32> to vector<16x1xf32>
      %cst_123 = arith.constant 5.000000e-01 : f32
      %381 = vector.broadcast %cst_123 : f32 to vector<16x1xf32>
      %382 = arith.cmpf ogt, %380, %381 : vector<16x1xf32>
      %383 = vector.extract_strided_slice %278 {offsets = [5, 0], sizes = [1, 128], strides = [1, 1]} : vector<16x128xf32> to vector<1x128xf32>
      %cst_124 = arith.constant -3.000000e+38 : f32
      %384 = vector.shape_cast %382 : vector<16x1xi1> to vector<16x1xi1>
      %385 = vector.broadcast %384 : vector<16x1xi1> to vector<16x128xi1>
      %386 = vector.shape_cast %383 : vector<1x128xf32> to vector<1x128xf32>
      %387 = vector.broadcast %386 : vector<1x128xf32> to vector<16x128xf32>
      %388 = vector.broadcast %cst_124 : f32 to vector<16x128xf32>
      %389 = arith.select %385, %387, %388 : vector<16x128xi1>, vector<16x128xf32>
      %390 = arith.maximumf %379, %389 : vector<16x128xf32>
      %391 = vector.extract_strided_slice %323 {offsets = [0, 6], sizes = [16, 1], strides = [1, 1]} : vector<16x16xf32> to vector<16x1xf32>
      %cst_125 = arith.constant 5.000000e-01 : f32
      %392 = vector.broadcast %cst_125 : f32 to vector<16x1xf32>
      %393 = arith.cmpf ogt, %391, %392 : vector<16x1xf32>
      %394 = vector.extract_strided_slice %278 {offsets = [6, 0], sizes = [1, 128], strides = [1, 1]} : vector<16x128xf32> to vector<1x128xf32>
      %cst_126 = arith.constant -3.000000e+38 : f32
      %395 = vector.shape_cast %393 : vector<16x1xi1> to vector<16x1xi1>
      %396 = vector.broadcast %395 : vector<16x1xi1> to vector<16x128xi1>
      %397 = vector.shape_cast %394 : vector<1x128xf32> to vector<1x128xf32>
      %398 = vector.broadcast %397 : vector<1x128xf32> to vector<16x128xf32>
      %399 = vector.broadcast %cst_126 : f32 to vector<16x128xf32>
      %400 = arith.select %396, %398, %399 : vector<16x128xi1>, vector<16x128xf32>
      %401 = arith.maximumf %390, %400 : vector<16x128xf32>
      %402 = vector.extract_strided_slice %323 {offsets = [0, 7], sizes = [16, 1], strides = [1, 1]} : vector<16x16xf32> to vector<16x1xf32>
      %cst_127 = arith.constant 5.000000e-01 : f32
      %403 = vector.broadcast %cst_127 : f32 to vector<16x1xf32>
      %404 = arith.cmpf ogt, %402, %403 : vector<16x1xf32>
      %405 = vector.extract_strided_slice %278 {offsets = [7, 0], sizes = [1, 128], strides = [1, 1]} : vector<16x128xf32> to vector<1x128xf32>
      %cst_128 = arith.constant -3.000000e+38 : f32
      %406 = vector.shape_cast %404 : vector<16x1xi1> to vector<16x1xi1>
      %407 = vector.broadcast %406 : vector<16x1xi1> to vector<16x128xi1>
      %408 = vector.shape_cast %405 : vector<1x128xf32> to vector<1x128xf32>
      %409 = vector.broadcast %408 : vector<1x128xf32> to vector<16x128xf32>
      %410 = vector.broadcast %cst_128 : f32 to vector<16x128xf32>
      %411 = arith.select %407, %409, %410 : vector<16x128xi1>, vector<16x128xf32>
      %412 = arith.maximumf %401, %411 : vector<16x128xf32>
      %413 = vector.extract_strided_slice %323 {offsets = [0, 8], sizes = [16, 1], strides = [1, 1]} : vector<16x16xf32> to vector<16x1xf32>
      %cst_129 = arith.constant 5.000000e-01 : f32
      %414 = vector.broadcast %cst_129 : f32 to vector<16x1xf32>
      %415 = arith.cmpf ogt, %413, %414 : vector<16x1xf32>
      %416 = vector.extract_strided_slice %278 {offsets = [8, 0], sizes = [1, 128], strides = [1, 1]} : vector<16x128xf32> to vector<1x128xf32>
      %cst_130 = arith.constant -3.000000e+38 : f32
      %417 = vector.shape_cast %415 : vector<16x1xi1> to vector<16x1xi1>
      %418 = vector.broadcast %417 : vector<16x1xi1> to vector<16x128xi1>
      %419 = vector.shape_cast %416 : vector<1x128xf32> to vector<1x128xf32>
      %420 = vector.broadcast %419 : vector<1x128xf32> to vector<16x128xf32>
      %421 = vector.broadcast %cst_130 : f32 to vector<16x128xf32>
      %422 = arith.select %418, %420, %421 : vector<16x128xi1>, vector<16x128xf32>
      %423 = arith.maximumf %412, %422 : vector<16x128xf32>
      %424 = vector.extract_strided_slice %323 {offsets = [0, 9], sizes = [16, 1], strides = [1, 1]} : vector<16x16xf32> to vector<16x1xf32>
      %cst_131 = arith.constant 5.000000e-01 : f32
      %425 = vector.broadcast %cst_131 : f32 to vector<16x1xf32>
      %426 = arith.cmpf ogt, %424, %425 : vector<16x1xf32>
      %427 = vector.extract_strided_slice %278 {offsets = [9, 0], sizes = [1, 128], strides = [1, 1]} : vector<16x128xf32> to vector<1x128xf32>
      %cst_132 = arith.constant -3.000000e+38 : f32
      %428 = vector.shape_cast %426 : vector<16x1xi1> to vector<16x1xi1>
      %429 = vector.broadcast %428 : vector<16x1xi1> to vector<16x128xi1>
      %430 = vector.shape_cast %427 : vector<1x128xf32> to vector<1x128xf32>
      %431 = vector.broadcast %430 : vector<1x128xf32> to vector<16x128xf32>
      %432 = vector.broadcast %cst_132 : f32 to vector<16x128xf32>
      %433 = arith.select %429, %431, %432 : vector<16x128xi1>, vector<16x128xf32>
      %434 = arith.maximumf %423, %433 : vector<16x128xf32>
      %435 = vector.extract_strided_slice %323 {offsets = [0, 10], sizes = [16, 1], strides = [1, 1]} : vector<16x16xf32> to vector<16x1xf32>
      %cst_133 = arith.constant 5.000000e-01 : f32
      %436 = vector.broadcast %cst_133 : f32 to vector<16x1xf32>
      %437 = arith.cmpf ogt, %435, %436 : vector<16x1xf32>
      %438 = vector.extract_strided_slice %278 {offsets = [10, 0], sizes = [1, 128], strides = [1, 1]} : vector<16x128xf32> to vector<1x128xf32>
      %cst_134 = arith.constant -3.000000e+38 : f32
      %439 = vector.shape_cast %437 : vector<16x1xi1> to vector<16x1xi1>
      %440 = vector.broadcast %439 : vector<16x1xi1> to vector<16x128xi1>
      %441 = vector.shape_cast %438 : vector<1x128xf32> to vector<1x128xf32>
      %442 = vector.broadcast %441 : vector<1x128xf32> to vector<16x128xf32>
      %443 = vector.broadcast %cst_134 : f32 to vector<16x128xf32>
      %444 = arith.select %440, %442, %443 : vector<16x128xi1>, vector<16x128xf32>
      %445 = arith.maximumf %434, %444 : vector<16x128xf32>
      %446 = vector.extract_strided_slice %323 {offsets = [0, 11], sizes = [16, 1], strides = [1, 1]} : vector<16x16xf32> to vector<16x1xf32>
      %cst_135 = arith.constant 5.000000e-01 : f32
      %447 = vector.broadcast %cst_135 : f32 to vector<16x1xf32>
      %448 = arith.cmpf ogt, %446, %447 : vector<16x1xf32>
      %449 = vector.extract_strided_slice %278 {offsets = [11, 0], sizes = [1, 128], strides = [1, 1]} : vector<16x128xf32> to vector<1x128xf32>
      %cst_136 = arith.constant -3.000000e+38 : f32
      %450 = vector.shape_cast %448 : vector<16x1xi1> to vector<16x1xi1>
      %451 = vector.broadcast %450 : vector<16x1xi1> to vector<16x128xi1>
      %452 = vector.shape_cast %449 : vector<1x128xf32> to vector<1x128xf32>
      %453 = vector.broadcast %452 : vector<1x128xf32> to vector<16x128xf32>
      %454 = vector.broadcast %cst_136 : f32 to vector<16x128xf32>
      %455 = arith.select %451, %453, %454 : vector<16x128xi1>, vector<16x128xf32>
      %456 = arith.maximumf %445, %455 : vector<16x128xf32>
      %457 = vector.extract_strided_slice %323 {offsets = [0, 12], sizes = [16, 1], strides = [1, 1]} : vector<16x16xf32> to vector<16x1xf32>
      %cst_137 = arith.constant 5.000000e-01 : f32
      %458 = vector.broadcast %cst_137 : f32 to vector<16x1xf32>
      %459 = arith.cmpf ogt, %457, %458 : vector<16x1xf32>
      %460 = vector.extract_strided_slice %278 {offsets = [12, 0], sizes = [1, 128], strides = [1, 1]} : vector<16x128xf32> to vector<1x128xf32>
      %cst_138 = arith.constant -3.000000e+38 : f32
      %461 = vector.shape_cast %459 : vector<16x1xi1> to vector<16x1xi1>
      %462 = vector.broadcast %461 : vector<16x1xi1> to vector<16x128xi1>
      %463 = vector.shape_cast %460 : vector<1x128xf32> to vector<1x128xf32>
      %464 = vector.broadcast %463 : vector<1x128xf32> to vector<16x128xf32>
      %465 = vector.broadcast %cst_138 : f32 to vector<16x128xf32>
      %466 = arith.select %462, %464, %465 : vector<16x128xi1>, vector<16x128xf32>
      %467 = arith.maximumf %456, %466 : vector<16x128xf32>
      %468 = vector.extract_strided_slice %323 {offsets = [0, 13], sizes = [16, 1], strides = [1, 1]} : vector<16x16xf32> to vector<16x1xf32>
      %cst_139 = arith.constant 5.000000e-01 : f32
      %469 = vector.broadcast %cst_139 : f32 to vector<16x1xf32>
      %470 = arith.cmpf ogt, %468, %469 : vector<16x1xf32>
      %471 = vector.extract_strided_slice %278 {offsets = [13, 0], sizes = [1, 128], strides = [1, 1]} : vector<16x128xf32> to vector<1x128xf32>
      %cst_140 = arith.constant -3.000000e+38 : f32
      %472 = vector.shape_cast %470 : vector<16x1xi1> to vector<16x1xi1>
      %473 = vector.broadcast %472 : vector<16x1xi1> to vector<16x128xi1>
      %474 = vector.shape_cast %471 : vector<1x128xf32> to vector<1x128xf32>
      %475 = vector.broadcast %474 : vector<1x128xf32> to vector<16x128xf32>
      %476 = vector.broadcast %cst_140 : f32 to vector<16x128xf32>
      %477 = arith.select %473, %475, %476 : vector<16x128xi1>, vector<16x128xf32>
      %478 = arith.maximumf %467, %477 : vector<16x128xf32>
      %479 = vector.extract_strided_slice %323 {offsets = [0, 14], sizes = [16, 1], strides = [1, 1]} : vector<16x16xf32> to vector<16x1xf32>
      %cst_141 = arith.constant 5.000000e-01 : f32
      %480 = vector.broadcast %cst_141 : f32 to vector<16x1xf32>
      %481 = arith.cmpf ogt, %479, %480 : vector<16x1xf32>
      %482 = vector.extract_strided_slice %278 {offsets = [14, 0], sizes = [1, 128], strides = [1, 1]} : vector<16x128xf32> to vector<1x128xf32>
      %cst_142 = arith.constant -3.000000e+38 : f32
      %483 = vector.shape_cast %481 : vector<16x1xi1> to vector<16x1xi1>
      %484 = vector.broadcast %483 : vector<16x1xi1> to vector<16x128xi1>
      %485 = vector.shape_cast %482 : vector<1x128xf32> to vector<1x128xf32>
      %486 = vector.broadcast %485 : vector<1x128xf32> to vector<16x128xf32>
      %487 = vector.broadcast %cst_142 : f32 to vector<16x128xf32>
      %488 = arith.select %484, %486, %487 : vector<16x128xi1>, vector<16x128xf32>
      %489 = arith.maximumf %478, %488 : vector<16x128xf32>
      %490 = vector.extract_strided_slice %323 {offsets = [0, 15], sizes = [16, 1], strides = [1, 1]} : vector<16x16xf32> to vector<16x1xf32>
      %cst_143 = arith.constant 5.000000e-01 : f32
      %491 = vector.broadcast %cst_143 : f32 to vector<16x1xf32>
      %492 = arith.cmpf ogt, %490, %491 : vector<16x1xf32>
      %493 = vector.extract_strided_slice %278 {offsets = [15, 0], sizes = [1, 128], strides = [1, 1]} : vector<16x128xf32> to vector<1x128xf32>
      %cst_144 = arith.constant -3.000000e+38 : f32
      %494 = vector.shape_cast %492 : vector<16x1xi1> to vector<16x1xi1>
      %495 = vector.broadcast %494 : vector<16x1xi1> to vector<16x128xi1>
      %496 = vector.shape_cast %493 : vector<1x128xf32> to vector<1x128xf32>
      %497 = vector.broadcast %496 : vector<1x128xf32> to vector<16x128xf32>
      %498 = vector.broadcast %cst_144 : f32 to vector<16x128xf32>
      %499 = arith.select %495, %497, %498 : vector<16x128xi1>, vector<16x128xf32>
      %500 = arith.maximumf %489, %499 : vector<16x128xf32>
      %501 = arith.addf %277, %500 : vector<16x128xf32>
      %502 = vector.broadcast %260 : vector<1x128xf32> to vector<16x128xf32>
      %503 = arith.addf %501, %502 : vector<16x128xf32>
      %cst_145 = arith.constant 0.000000e+00 : f32
      %504 = vector.broadcast %cst_145 : f32 to vector<16x128xf32>
      %505 = arith.cmpf ogt, %503, %504 : vector<16x128xf32>
      %cst_146 = arith.constant 1.000000e-01 : f32
      %506 = vector.broadcast %cst_146 : f32 to vector<16x128xf32>
      %507 = arith.mulf %506, %503 : vector<16x128xf32>
      %508 = arith.select %505, %503, %507 : vector<16x128xi1>, vector<16x128xf32>
      %cst_147 = arith.constant dense<0.000000e+00> : vector<128xf32>
      %509 = vector.multi_reduction <add>, %508, %cst_147 [0] : vector<16x128xf32> to vector<128xf32>
      %510 = vector.shape_cast %509 : vector<128xf32> to vector<1x128xf32>
      %cst_148 = arith.constant 1.600000e+01 : f32
      %511 = vector.broadcast %cst_148 : f32 to vector<1x128xf32>
      %512 = arith.divf %510, %511 : vector<1x128xf32>
      %513 = arith.index_cast %270 : i32 to index
      %c0_149 = arith.constant 0 : index
      %514 = vector.load %arg13[%513, %c0_149] : memref<8x128xf32, #tpu.memory_space<vmem>>, vector<1x128xf32>
      tpu.vector_store %arg13[%513, %c0_149], %512 {strides = array<i32>} : memref<8x128xf32, #tpu.memory_space<vmem>>, vector<1x128xf32>,
    }
    %c8_i32_83 = arith.constant 8 : i32
    %c0_84 = arith.constant 0 : index
    %c0_85 = arith.constant 0 : index
    %262 = vector.load %arg13[%c0_84, %c0_85] : memref<8x128xf32, #tpu.memory_space<vmem>>, vector<8x128xf32>
    %c0_86 = arith.constant 0 : index
    %c0_87 = arith.constant 0 : index
    %263 = vector.load %arg6[%c0_86, %c0_87] : memref<128x128xf32, #tpu.memory_space<vmem>>, vector<128x128xf32>
    %cst_88 = arith.constant dense<0.000000e+00> : vector<8x128xf32>
    %264 = tpu.matmul %262, %263, %cst_88 {dimension_numbers = #tpu.dot_dimension_numbers<[1], [0], [0], [1], [0, 0, 1, 1], [], []>} : vector<8x128xf32>, vector<128x128xf32>, vector<8x128xf32> -> vector<8x128xf32>
    %c3 = arith.constant 3 : index
    %c0_89 = arith.constant 0 : index
    %265 = vector.load %arg8[%c3, %c0_89] : memref<16x1536xf32, #tpu.memory_space<vmem>>, vector<1x128xf32>
    %266 = vector.broadcast %265 : vector<1x128xf32> to vector<8x128xf32>
    %267 = arith.addf %264, %266 : vector<8x128xf32>
    %c0_90 = arith.constant 0 : index
    %c0_91 = arith.constant 0 : index
    %268 = vector.load %arg9[%c0_90, %c0_91] : memref<8x128xf32, #tpu.memory_space<vmem>>, vector<8x128xf32>
    tpu.vector_store %arg9[%c0_90, %c0_91], %267 {strides = array<i32>} : memref<8x128xf32, #tpu.memory_space<vmem>>, vector<8x128xf32>,
    return
  }
  func.func @transform_0(%arg0: i32) -> (i32, i32) {
    %c0_i32 = arith.constant 0 : i32
    %c0_i32_0 = arith.constant 0 : i32
    return %arg0, %c0_i32 : i32, i32
  }
  func.func @transform_1(%arg0: i32) -> (i32, i32) {
    %c0_i32 = arith.constant 0 : i32
    %c0_i32_0 = arith.constant 0 : i32
    %c0_i32_1 = arith.constant 0 : i32
    return %c0_i32, %c0_i32_0 : i32, i32
  }
  func.func @transform_2(%arg0: i32) -> (i32, i32) {
    %c0_i32 = arith.constant 0 : i32
    %c0_i32_0 = arith.constant 0 : i32
    %c0_i32_1 = arith.constant 0 : i32
    return %c0_i32, %c0_i32_0 : i32, i32
  }
  func.func @transform_3(%arg0: i32) -> (i32, i32) {
    %c0_i32 = arith.constant 0 : i32
    %c0_i32_0 = arith.constant 0 : i32
    %c0_i32_1 = arith.constant 0 : i32
    return %c0_i32, %c0_i32_0 : i32, i32
  }
  func.func @transform_4(%arg0: i32) -> (i32, i32) {
    %c0_i32 = arith.constant 0 : i32
    %c0_i32_0 = arith.constant 0 : i32
    %c0_i32_1 = arith.constant 0 : i32
    return %c0_i32, %c0_i32_0 : i32, i32
  }
  func.func @transform_5(%arg0: i32) -> (i32, i32) {
    %c0_i32 = arith.constant 0 : i32
    %c0_i32_0 = arith.constant 0 : i32
    %c0_i32_1 = arith.constant 0 : i32
    return %c0_i32, %c0_i32_0 : i32, i32
  }
  func.func @transform_6(%arg0: i32) -> (i32, i32) {
    %c0_i32 = arith.constant 0 : i32
    %c0_i32_0 = arith.constant 0 : i32
    %c0_i32_1 = arith.constant 0 : i32
    return %c0_i32, %c0_i32_0 : i32, i32
  }
  func.func @transform_7(%arg0: i32) -> (i32, i32) {
    %c0_i32 = arith.constant 0 : i32
    %c0_i32_0 = arith.constant 0 : i32
    %c0_i32_1 = arith.constant 0 : i32
    return %c0_i32, %c0_i32_0 : i32, i32
  }
  func.func @transform_8(%arg0: i32) -> (i32, i32) {
    %c0_i32 = arith.constant 0 : i32
    %c0_i32_0 = arith.constant 0 : i32
    return %arg0, %c0_i32 : i32, i32
  }
}

</mosaic_0001>

<bundles_post_ra>
// kernel: tpu_custom_call.1
= control target key start
LH: loop header
LB: loop body
LE: loop exit
PB: predicated region body
PF: predicated region fallthrough
CT: control target
= control target key end

     0   :  { %13 = vsyncpa [#allocation7], 0  ;;  %s16468_s0 = inlined_call_operand.vmem [shape: f32[256,32], index: 0, kind: input, shape index: {}]   ;;  %s16469_s1 = inlined_call_operand.hbm [shape: bf16[384,640], index: 1, kind: input, shape index: {}]   ;;  %s16470_s2 = inlined_call_operand.vmem [shape: bf16[32,1536], index: 2, kind: input, shape index: {}]   ;;  %s16471_s3 = inlined_call_operand.hbm [shape: bf16[128,384], index: 3, kind: input, shape index: {}]   ;;  %s16472_s4 = inlined_call_operand.hbm [shape: bf16[512,256], index: 4, kind: input, shape index: {}]   ;;  %s16473_s5 = inlined_call_operand.vmem [shape: f32[128,128], index: 5, kind: input, shape index: {}]   ;;  %s16474_s6 = inlined_call_operand.hbm [shape: f32[128,128], index: 6, kind: input, shape index: {}]   ;;  %s16475_s7 = inlined_call_operand.hbm [shape: f32[16,1536], index: 7, kind: input, shape index: {}]   ;;  %s16476_s8 = inlined_call_operand.hbm [shape: f32[16,128], index: 8, kind: output, shape index: {}]  }
   0x1   :  { %14 = vsyncpa [#allocation10], 0 }
   0x2   :  { %15 = vsyncpa [#allocation13], 0 }
   0x3   :  { %16 = vsyncpa [#allocation8], 0 }
   0x4   :  { %18 = vsyncpa [#allocation8 + $0x1], 0  ;;  %s12555_s27 = smov 0   ;;  %s12557_s28 = smov 0  }
   0x5   :  { %s12559_s29 = smov 0   ;;  %s12561_s30 = smov 0  }
   0x6 LB: > { %s12576_s9 = sadd.s32 4294967295, %s12460_s30   ;;  %s9343_s10 = sadd.s32 4294967294, %s12460_s30   ;;  %s12460_s30 = sphi %s12561_s30, %s16983_s30   ;;  %s12456_s29 = sphi %s12559_s29, %s16982_s29   ;;  %s12452_s28 = sphi %s12557_s28, %s16981_s28   ;;  %s12448_s27 = sphi %s12555_s27, %s16980_s27  }
   0x7   : > { %s12580_s11 = sadd.s32 1, %s12460_s30   ;;  %s204_s12 = sadd.s32 1, %s12456_s29 }
   0x8   : > { %s201_s13 = ssub.s32 %s12460_s30, %s12580_s11  ;;  %p214_p0 = scmp.ne.s32.totalorder %s12456_s29, %s12452_s28 }
   0x9   : > { %p202_p1 = scmp.eq.s32.totalorder %s201_s13, 0  ;;  %p215_p2 = scmp.eq.s32.totalorder %s12576_s9, 1 }
   0xa   : > { %p220_p3 = scmp.ne.s32.totalorder %s12452_s28, %s12448_s27  ;;  %p221_p4 = scmp.eq.s32.totalorder %s9343_s10, 1 }
   0xb   : > { %s12591_s14 = scalar_select %p202_p1, %s12456_s29, %s204_s12  }
   0xc   : > { %p12593_p5 = por %p215_p2, %p214_p0  ;;  %p12597_p6 = por %p221_p4, %p220_p3 }
   0xd   : > { %16529 = sst [smem:[#allocation20_spill]] %s12591_s14  ;;  %p9344_p7 = scmp.ge.s32.totalorder %s12460_s30, 1 }
   0xe   : > { %p228_p8 = scmp.lt.s32.totalorder %s12460_s30, 3  ;;  %p16479_p9 = scmp.eq.s32.totalorder %s12576_s9, 0 }
   0xf   : > { %s12466_s18 = smov [#allocation9]   ;;  %s12467_s21 = smov [#allocation12]  }
  0x10   : > { %p12604_p10 = pnand %p9344_p7, %p228_p8  ;;  %s256_s19 = sshll.u32 %s12466_s18, 4  ;;  %s257_s19 = int_to_ptr.vmem [resolvable:$true] %s256_s19 }
  0x11   : > { %s285_s22 = sshll.u32 %s12467_s21, 4  ;;  %s12265_s24 = scalar_lea.vmem %s257_s19, 3072  ;;  %s286_s22 = int_to_ptr.vmem [resolvable:$true] %s285_s22 }
  0x12   : > { %p10573_p11 = pneg %p12604_p10  ;;  %p12266_p0 = scmp.ne.s32.totalorder %s257_s19, %s12265_s24 }
  0x13   : > { %p12273_p3 = scmp.lt.s32.totalorder %s257_s19, %s257_s19  ;;  %p12274_p4 = scmp.lt.s32.totalorder %s12265_s24, %s12265_s24 }
  0x14   : > { %p12612_p12 = pnand %p16479_p9, %p10573_p11 }
  0x15   : > { %p12275_p7 = por %p12274_p4, %p12273_p3 }
  0x16   : > { %p12618_p13 = pneg %p12612_p12 }
  0x18   : > { %p12268_p1 = pnand %p12266_p0, %p12618_p13 }
  0x1a   : > { %p12269_p2 = pneg %p12268_p1 }
  0x1c   : > { %p12276_p8 = pnand %p12275_p7, %p12269_p2 }
  0x1e   : > { %12279 = shalt.err (!%p12276_p8)
}
  0x1f   : > { %s12468_s25 = smov 192   ;;  %s12469_s26 = smov 12  }
  0x20   : > { %10579 = dma.hbm_to_vmem [thread:$0]  (!%p12612_p12), %s16471_s3, 3072, %s257_s19, [#allocation10], %s12468_s25, %s12468_s25, %s12469_s26  }
  0x21   : > { %s12470_s13 = smov [#allocation6]   ;;  %s12291_s21 = scalar_lea.vmem %s286_s22, 2048 }
  0x22   : > { %s240_s18 = sshll.u32 %s12470_s13, 4  ;;  %p12292_p11 = scmp.ne.s32.totalorder %s286_s22, %s12291_s21  ;;  %s241_s18 = int_to_ptr.vmem [resolvable:$true] %s240_s18 }
  0x23   : > { %p12299_p3 = scmp.lt.s32.totalorder %s286_s22, %s286_s22  ;;  %p12300_p2 = scmp.lt.s32.totalorder %s12291_s21, %s12291_s21 }
  0x24   : > { %p12294_p0 = pnand %p12292_p11, %p12618_p13 }
  0x25   : > { %p12301_p4 = por %p12300_p2, %p12299_p3 }
  0x26   : > { %p12295_p1 = pneg %p12294_p0 }
  0x28   : > { %p12302_p7 = pnand %p12301_p4, %p12295_p1 }
  0x2a   : > { %12305 = shalt.err (!%p12302_p7)
}
  0x2b   : > { %s16477_s24 = smov 128   ;;  %s16478_s14 = smov 8  }
  0x2c   : > { %10585 = dma.hbm_to_vmem [thread:$0]  (!%p12612_p12), %s16474_s6, 2048, %s286_s22, [#allocation13], %s16477_s24, %s16477_s24, %s16478_s14  }
  0x2d   : > { %s12317_s26 = scalar_lea.vmem %s241_s18, 15360  ;;  %p12325_p1 = scmp.lt.s32.totalorder %s241_s18, %s241_s18 }
  0x2e   : > { %p12318_p8 = scmp.ne.s32.totalorder %s241_s18, %s12317_s26  ;;  %p12326_p3 = scmp.lt.s32.totalorder %s12317_s26, %s12317_s26 }
  0x30   : > { %p12320_p11 = pnand %p12318_p8, %p12618_p13  ;;  %p12327_p2 = por %p12326_p3, %p12325_p1 }
  0x32   : > { %p12321_p0 = pneg %p12320_p11 }
  0x34   : > { %p12328_p4 = pnand %p12327_p2, %p12321_p0 }
  0x36   : > { %12331 = shalt.err (!%p12328_p4)
}
  0x37   : > { %s12473_s10 = smov 320   ;;  %s12474_s12 = smov 20  }
  0x38   : > { %10576 = dma.hbm_to_vmem [thread:$0]  (!%p12612_p12), %s16469_s1, 15360, %s241_s18, [#allocation7], %s12473_s10, %s12473_s10, %s12474_s12  }
  0x39   : > { %s12475_s22 = smov [#allocation11]   ;;  %s12476_s25 = smov [#allocation14]  }
  0x3a   : > { %s269_s19 = sshll.u32 %s12475_s22, 4  ;;  %s298_s24 = sshll.u32 %s12476_s25, 4  ;;  %s270_s19 = int_to_ptr.vmem [resolvable:$true] %s269_s19  ;;  %s299_s24 = int_to_ptr.vmem [resolvable:$true] %s298_s24 }
  0x3b   : > { %s12343_s14 = scalar_lea.vmem %s270_s19, 8192  ;;  %p12351_p0 = scmp.lt.s32.totalorder %s270_s19, %s270_s19 }
  0x3c   : > { %p12344_p7 = scmp.ne.s32.totalorder %s270_s19, %s12343_s14  ;;  %p12352_p1 = scmp.lt.s32.totalorder %s12343_s14, %s12343_s14 }
  0x3e   : > { %p12346_p8 = pnand %p12344_p7, %p12618_p13  ;;  %p12353_p3 = por %p12352_p1, %p12351_p0 }
  0x40   : > { %p12347_p11 = pneg %p12346_p8 }
  0x42   : > { %p12354_p2 = pnand %p12353_p3, %p12347_p11 }
  0x44   : > { %12357 = shalt.err (!%p12354_p2)
}
  0x45   : > { %s16535_s26 = smov 8   ;;  %s16536_s13 = smov 128  }
  0x46   : > { %10582 = dma.hbm_to_vmem [thread:$0]  (!%p12612_p12), %s16472_s4, 8192, %s270_s19, [#allocation10], %s16536_s13, %s16536_s13, %s16535_s26  }
  0x47   : > { %s12369_s12 = scalar_lea.vmem %s299_s24, 3072  ;;  %p12377_p9 = scmp.lt.s32.totalorder %s299_s24, %s299_s24 }
  0x48   : > { %p12370_p4 = scmp.ne.s32.totalorder %s299_s24, %s12369_s12  ;;  %p12378_p0 = scmp.lt.s32.totalorder %s12369_s12, %s12369_s12 }
  0x4a   : > { %p12372_p7 = pnand %p12370_p4, %p12618_p13  ;;  %p12379_p11 = por %p12378_p0, %p12377_p9 }
  0x4c   : > { %p12373_p8 = pneg %p12372_p7 }
  0x4e   : > { %p12380_p1 = pnand %p12379_p11, %p12373_p8 }
  0x50   : > { %12383 = shalt.err (!%p12380_p1)
}
  0x51   : > { %s12477_s14 = smov 1536   ;;  %s12478_s21 = smov 96  }
  0x52   : > { %10588 = dma.hbm_to_vmem [thread:$0]  (!%p12612_p12), %s16475_s7, 3072, %s299_s24, [#allocation13], %s12477_s14, %s12477_s14, %s12478_s21  }
  0x53   : > { %323 = sbr.rel (%p12604_p10) target bundleno = 4843 (0x12eb), region = 52 }
  0x58   : > { %p16537_p3 = scmp.eq.s32.totalorder %s12576_s9, 0 }
  0x5a   : > { %12431 = dma.done.wait (%p16537_p3), [#allocation7], 15360   ;;  %p16538_p13 = pmov %p16537_p3 }
  0x5b   : > { %p16539_p9 = pmov %p16537_p3 }
  0x5c   : > { %12433 = vsyncadd (%p16538_p13), [#allocation7], 4294951936 }
  0x5d   : > { %12435 = dma.done.wait (%p16539_p9), [#allocation10], 11264   ;;  %p16540_p2 = pmov %p16537_p3 }
  0x5f   : > { %12437 = vsyncadd (%p16540_p2), [#allocation10], 4294956032  ;;  %p16541_p4 = pmov %p16540_p2 }
  0x60   : > { %p16542_p12 = pmov %p16540_p2 }
  0x61   : > { %12439 = dma.done.wait (%p16541_p4), [#allocation13], 5120  }
  0x62   : > { %12441 = vsyncadd (%p16542_p12), [#allocation13], 4294962176  ;;  %s9358_s17 = sshll.u32 %s12576_s9, 4  ;;  %v12683_v0 = vld [vmem:[#allocation14 + $0x2] ss:$0 sm:$0xff]  ;;  %s12479_s26 = smov 2  }
  0x63   : > { %p374_p10 = scmp.lt.s32.totalorder %s9358_s17, 31  ;;  %16543 = vst [vmem:[#allocation21_spill] sm:$0xff] %v12683_v0  ;;  %v381_v2 = vld [vmem:[#allocation14 + $0x61] ss:$0 sm:$0xff]  ;;  %s12480_s13 = smov 1   ;;  %vm465_vm0 = vcmask 15360  }
  0x64   : > { %516 = vrot.lane.b32.xlu1 %v381_v2, %s12480_s13  ;;  %v383_v18 = vld [vmem:[#allocation14 + $0x63] ss:$0 sm:$0xff]  ;;  %v382_v19 = vld [vmem:[#allocation14 + $0x62] ss:$0 sm:$0xff]  ;;  %s12481_s18 = smov 3   ;;  %s12482_s10 = smov 4  }
  0x65   : > { %s16985_s17 = smov (!%p374_p10, %s9358_s17), 31  ;;  %v384_v20 = vld [vmem:[#allocation14 + $0x64] ss:$0 sm:$0xff]  ;;  %vm482_vm1 = vcmask 277504   ;;  %s370_s12 = sand.u32 1, %s12452_s28  }
  0x66   : > { %s9359_s20 = sshll.u32 %s16985_s17, 3  ;;  %s12724_s14 = sshll.u32 %s370_s12, 3  ;;  %v12729_v27 = vld [vmem:[#allocation14 + $0x60] ss:$0 sm:$0xff] }
  0x67   : > { %s12681_s19 = scalar_lea.vmem %s16468_s0, %s9359_s20  ;;  %s12483_s21 = smov 127  }
  0x68   : > { %v399_v1 = vld [vmem:[%s12681_s19 + $0x70] sm:$0xff]  ;;  %v400_v3 = vld [vmem:[%s12681_s19 + $0x78] sm:$0xff]  ;;  %v397_v4 = vld [vmem:[%s12681_s19 + $0x60] sm:$0xff]  ;;  %s12484_s22 = smov 125   ;;  %s12485_s25 = smov 126  }
  0x69   : > { %445 = vrot.lane.b32.xlu0 %v399_v1, %s12479_s26  ;;  %441 = vrot.lane.b32.xlu1 %v397_v4, %s12479_s26  ;;  %v398_v5 = vld [vmem:[%s12681_s19 + $0x68] sm:$0xff]  ;;  %v395_v6 = vld [vmem:[%s12681_s19 + $0x50] sm:$0xff]  ;;  %s12486_s17 = smov 124   ;;  %s372_s20 = scalar_lea.vmem [#allocation15], %s12724_s14 }
  0x6a   : > { %v396_v7 = vld [vmem:[%s12681_s19 + $0x58] sm:$0xff]  ;;  %v393_v8 = vld [vmem:[%s12681_s19 + $0x40] sm:$0xff]  ;;  %v394_v9 = vld [vmem:[%s12681_s19 + $0x48] sm:$0xff]  ;;  %s16231_s23 = smov 0  }
  0x6b   : > { %v391_v10 = vld [vmem:[%s12681_s19 + $0x30] sm:$0xff]  ;;  %v392_v11 = vld [vmem:[%s12681_s19 + $0x38] sm:$0xff]  ;;  %v389_v12 = vld [vmem:[%s12681_s19 + $0x20] sm:$0xff] }
  0x6c   : > { %v390_v13 = vld [vmem:[%s12681_s19 + $0x28] sm:$0xff]  ;;  %v387_v14 = vld [vmem:[%s12681_s19 + $0x10] sm:$0xff]  ;;  %v388_v15 = vld [vmem:[%s12681_s19 + $0x18] sm:$0xff] }
  0x6d   : > { %447 = vrot.lane.b32.xlu0 %v400_v3, %s12479_s26  ;;  %437 = vrot.lane.b32.xlu1 %v395_v6, %s12479_s26  ;;  %v385_v16 = vld [vmem:[%s12681_s19] sm:$0xff]  ;;  %v386_v17 = vld [vmem:[%s12681_s19 + $0x8] sm:$0xff] }
  0x71   : > { %443 = vrot.lane.b32.xlu0 %v398_v5, %s12479_s26  ;;  %433 = vrot.lane.b32.xlu1 %v393_v8, %s12479_s26 }
  0x75   : > { %439 = vrot.lane.b32.xlu0 %v396_v7, %s12479_s26  ;;  %429 = vrot.lane.b32.xlu1 %v391_v10, %s12479_s26 }
  0x79   : > { %435 = vrot.lane.b32.xlu0 %v394_v9, %s12479_s26  ;;  %425 = vrot.lane.b32.xlu1 %v389_v12, %s12479_s26 }
  0x7d   : > { %431 = vrot.lane.b32.xlu0 %v392_v11, %s12479_s26  ;;  %421 = vrot.lane.b32.xlu1 %v387_v14, %s12479_s26 }
  0x81   : > { %427 = vrot.lane.b32.xlu0 %v390_v13, %s12479_s26  ;;  %417 = vrot.lane.b32.xlu1 %v385_v16, %s12479_s26 }
  0x85   : > { %423 = vrot.lane.b32.xlu0 %v388_v15, %s12479_s26  ;;  %556 = vrot.lane.b32.xlu1 %v383_v18, %s12481_s18 }
  0x89   : > { %419 = vrot.lane.b32.xlu0 %v386_v17, %s12479_s26 }
  0x8d   : > { %536 = vrot.lane.b32.xlu0 %v382_v19, %s12479_s26 }
  0x91   : > { %576 = vrot.lane.b32.xlu0 %v384_v20, %s12482_s10 }
  0xd6   : > { %v12718_v22 = vpop.permute.xlu1 %516 }
  0xd7   : > { %16544 = vst [vmem:[#allocation22_spill] sm:$0xff] %v12718_v22 }
  0xdb   : > { %v446_v21 = vpop.permute.xlu0 %445  ;;  %v442_v26 = vpop.permute.xlu1 %441 }
  0xdc   : > { %v480_v23 = vsel %vm465_vm0, 0.0, %v446_v21  ;;  %v478_v29 = vsel %vm465_vm0, 0.0, %v442_v26 }
  0xdd   : > { %v12727_v24 = vsel %vm482_vm1, %v480_v23, 0.0  ;;  %v12749_v35 = vsel %vm482_vm1, %v478_v29, 0.0 }
  0xde   : > { %v533_v31 = vmul.f32 %v12718_v22, %v12727_v24  ;;  %v12742_v33 = vmul.f32 %v12727_v24, %v12729_v27  ;;  %v531_v43 = vmul.f32 %v12718_v22, %v12749_v35  ;;  %v12765_v45 = vmul.f32 %v12749_v35, %v12729_v27 }
  0xdf   : > { %v448_v25 = vpop.permute.xlu0 %447  ;;  %v438_v37 = vpop.permute.xlu1 %437 }
  0xe0   : > { %v481_v28 = vsel %vm465_vm0, 0.0, %v448_v25  ;;  %v476_v39 = vsel %vm465_vm0, 0.0, %v438_v37 }
  0xe1   : > { %v12734_v30 = vsel %vm482_vm1, %v481_v28, 0.0  ;;  %v12772_v47 = vsel %vm482_vm1, %v476_v39, 0.0 }
  0xe2   : > { %v534_v32 = vmul.f32 %v12718_v22, %v12734_v30  ;;  %v12746_v34 = vmul.f32 %v12734_v30, %v12729_v27  ;;  %v529_v55 = vmul.f32 %v12718_v22, %v12772_v47  ;;  %v12788_v57 = vmul.f32 %v12772_v47, %v12729_v27 }
  0xe3   : > { %v444_v36 = vpop.permute.xlu0 %443  ;;  %v434_v49 = vpop.permute.xlu1 %433 }
  0xe4   : > { %v479_v38 = vsel %vm465_vm0, 0.0, %v444_v36  ;;  %v10687_v40 = vpack.i.bf16 %v534_v32, %v533_v31  ;;  %v906_v41 = vpack.c.bf16 %v12746_v34, %v12742_v33  ;;  %v474_v51 = vsel %vm465_vm0, 0.0, %v434_v49 }
  0xe5   : > { %v12756_v42 = vsel %vm482_vm1, %v479_v38, 0.0  ;;  %v12795_v59 = vsel %vm482_vm1, %v474_v51, 0.0 }
  0xe6   : > { %10688 = vrot.lane.b32.xlu1 %v10687_v40, %s12483_s21  ;;  %v532_v44 = vmul.f32 %v12718_v22, %v12756_v42  ;;  %v12769_v46 = vmul.f32 %v12756_v42, %v12729_v27  ;;  %v527_v4 = vmul.f32 %v12718_v22, %v12795_v59  ;;  %v12811_v6 = vmul.f32 %v12795_v59, %v12729_v27 }
  0xe7   : > { %v440_v48 = vpop.permute.xlu0 %439  ;;  %v430_v61 = vpop.permute.xlu1 %429 }
  0xe8   : > { %v477_v50 = vsel %vm465_vm0, 0.0, %v440_v48  ;;  %v10692_v52 = vpack.i.bf16 %v532_v44, %v531_v43  ;;  %v905_v53 = vpack.c.bf16 %v12769_v46, %v12765_v45  ;;  %v472_v63 = vsel %vm465_vm0, 0.0, %v430_v61 }
  0xe9   : > { %v12779_v54 = vsel %vm482_vm1, %v477_v50, 0.0  ;;  %v12818_v8 = vsel %vm482_vm1, %v472_v63, 0.0 }
  0xea   : > { %10693 = vrot.lane.b32.xlu1 %v10692_v52, %s12483_s21  ;;  %v530_v56 = vmul.f32 %v12718_v22, %v12779_v54  ;;  %v12792_v58 = vmul.f32 %v12779_v54, %v12729_v27  ;;  %v525_v16 = vmul.f32 %v12718_v22, %v12818_v8  ;;  %v12834_v18 = vmul.f32 %v12818_v8, %v12729_v27 }
  0xeb   : > { %v436_v60 = vpop.permute.xlu0 %435  ;;  %v426_v10 = vpop.permute.xlu1 %425 }
  0xec   : > { %v475_v62 = vsel %vm465_vm0, 0.0, %v436_v60  ;;  %v10697_v1 = vpack.i.bf16 %v530_v56, %v529_v55  ;;  %v904_v2 = vpack.c.bf16 %v12792_v58, %v12788_v57  ;;  %v470_v12 = vsel %vm465_vm0, 0.0, %v426_v10 }
  0xed   : > { %v12802_v3 = vsel %vm482_vm1, %v475_v62, 0.0  ;;  %v12841_v20 = vsel %vm482_vm1, %v470_v12, 0.0 }
  0xee   : > { %10698 = vrot.lane.b32.xlu0 %v10697_v1, %s12483_s21  ;;  %v528_v5 = vmul.f32 %v12718_v22, %v12802_v3  ;;  %v12815_v7 = vmul.f32 %v12802_v3, %v12729_v27  ;;  %v523_v32 = vmul.f32 %v12718_v22, %v12841_v20  ;;  %v12857_v37 = vmul.f32 %v12841_v20, %v12729_v27 }
  0xef   : > { %v432_v9 = vpop.permute.xlu0 %431  ;;  %v422_v23 = vpop.permute.xlu1 %421 }
  0xf0   : > { %v473_v11 = vsel %vm465_vm0, 0.0, %v432_v9  ;;  %v10702_v13 = vpack.i.bf16 %v528_v5, %v527_v4  ;;  %v903_v14 = vpack.c.bf16 %v12815_v7, %v12811_v6  ;;  %v468_v26 = vsel %vm465_vm0, 0.0, %v422_v23  ;;  %v11175_v4 = vld [vmem:[#allocation6 + $0x4] ss:$20 sps:$4 sm:$0xff]  }
  0xf1   : > { %v12825_v15 = vsel %vm482_vm1, %v473_v11, 0.0  ;;  %v12864_v39 = vsel %vm482_vm1, %v468_v26, 0.0  ;;  %1275 = vmatprep.mubr.bf16.mxu0 %v11175_v4 }
  0xf2   : > { %10703 = vrot.lane.b32.xlu1 %v10702_v13, %s12483_s21  ;;  %v526_v17 = vmul.f32 %v12718_v22, %v12825_v15  ;;  %v12838_v19 = vmul.f32 %v12825_v15, %v12729_v27  ;;  %v521_v52 = vmul.f32 %v12718_v22, %v12864_v39 }
  0xf3   : > { %v428_v21 = vpop.permute.xlu0 %427  ;;  %v418_v43 = vpop.permute.xlu1 %417 }
  0xf4   : > { %v471_v25 = vsel %vm465_vm0, 0.0, %v428_v21  ;;  %v10707_v28 = vpack.i.bf16 %v526_v17, %v525_v16  ;;  %v902_v29 = vpack.c.bf16 %v12838_v19, %v12834_v18  ;;  %v466_v51 = vsel %vm465_vm0, 0.0, %v418_v43 }
  0xf5   : > { %v12848_v31 = vsel %vm482_vm1, %v471_v25, 0.0  ;;  %v12886_v5 = vsel %vm482_vm1, %v466_v51, 0.0 }
  0xf6   : > { %10708 = vrot.lane.b32.xlu0 %v10707_v28, %s12483_s21  ;;  %v524_v36 = vmul.f32 %v12718_v22, %v12848_v31  ;;  %v12861_v38 = vmul.f32 %v12848_v31, %v12729_v27  ;;  %v519_v17 = vmul.f32 %v12718_v22, %v12886_v5 }
  0xf7   : > { %v424_v40 = vpop.permute.xlu0 %423  ;;  %v12878_v60 = vpop.permute.xlu1 %556 }
  0xf8   : > { %v469_v44 = vsel %vm465_vm0, 0.0, %v424_v40  ;;  %v10712_v48 = vpack.i.bf16 %v524_v36, %v523_v32  ;;  %v901_v49 = vpack.c.bf16 %v12861_v38, %v12857_v37  ;;  %16545 = vst [vmem:[#allocation23_spill] sm:$0xff] %v12878_v60  ;;  %v573_v63 = vmul.f32 %v12878_v60, %v12727_v24 }
  0xf9   : > { %v12870_v50 = vsel %vm482_vm1, %v469_v44, 0.0  ;;  %v574_v1 = vmul.f32 %v12878_v60, %v12734_v30  ;;  %v571_v21 = vmul.f32 %v12878_v60, %v12749_v35  ;;  %v572_v23 = vmul.f32 %v12878_v60, %v12756_v42 }
  0xfa   : > { %10713 = vrot.lane.b32.xlu1 %v10712_v48, %s12483_s21  ;;  %v522_v55 = vmul.f32 %v12718_v22, %v12870_v50  ;;  %v569_v36 = vmul.f32 %v12878_v60, %v12772_v47  ;;  %v570_v40 = vmul.f32 %v12878_v60, %v12779_v54  ;;  %v565_v4 = vmul.f32 %v12878_v60, %v12818_v8 }
  0xfb   : > { %v420_v56 = vpop.permute.xlu0 %419  ;;  %v10722_v10 = vpack.i.bf16 %v574_v1, %v573_v63  ;;  %v10737_v44 = vpack.i.bf16 %v572_v23, %v571_v21  ;;  %v12933_v1 = vmul.f32 %v12870_v50, %v12729_v27 }
  0xfc   : > { %v467_v61 = vsel %vm465_vm0, 0.0, %v420_v56  ;;  %v10717_v62 = vpack.i.bf16 %v522_v55, %v521_v52  ;;  %v567_v52 = vmul.f32 %v12878_v60, %v12795_v59  ;;  %v568_v55 = vmul.f32 %v12878_v60, %v12802_v3 }
  0xfd   : > { %v12889_v9 = vsel %vm482_vm1, %v467_v61, 0.0  ;;  %v10747_v61 = vpack.i.bf16 %v570_v40, %v569_v36 }
  0xfe   : > { %10718 = vrot.lane.b32.xlu0 %v10717_v62, %s12483_s21  ;;  %v520_v11 = vmul.f32 %v12718_v22, %v12889_v9  ;;  %10723 = vrot.lane.b32.xlu1 %v10722_v10, %s12484_s22  ;;  %v566_v10 = vmul.f32 %v12878_v60, %v12825_v15 }
  0xff   : > { %v12894_v12 = vpop.permute.xlu0 %536 }
 0x100   : > { %16546 = vst [vmem:[#allocation24_spill] sm:$0xff] %v12894_v12  ;;  %v553_v13 = vmul.f32 %v12894_v12, %v12727_v24  ;;  %v554_v16 = vmul.f32 %v12894_v12, %v12734_v30  ;;  %v10732_v26 = vpack.i.bf16 %v520_v11, %v519_v17  ;;  %v551_v28 = vmul.f32 %v12894_v12, %v12749_v35 }
 0x101   : > { %v552_v32 = vmul.f32 %v12894_v12, %v12756_v42  ;;  %v549_v48 = vmul.f32 %v12894_v12, %v12772_v47  ;;  %v550_v51 = vmul.f32 %v12894_v12, %v12779_v54  ;;  %v547_v62 = vmul.f32 %v12894_v12, %v12795_v59 }
 0x102   : > { %v10727_v25 = vpack.i.bf16 %v554_v16, %v553_v13  ;;  %10733 = vrot.lane.b32.xlu1 %v10732_v26, %s12483_s21  ;;  %v548_v63 = vmul.f32 %v12894_v12, %v12802_v3  ;;  %v12943_v11 = vmul.f32 %v12864_v39, %v12729_v27  ;;  %v10757_v16 = vpack.i.bf16 %v568_v55, %v567_v52 }
 0x103   : > { %v10742_v43 = vpack.i.bf16 %v552_v32, %v551_v28  ;;  %v10752_v56 = vpack.i.bf16 %v550_v51, %v549_v48  ;;  %v545_v17 = vmul.f32 %v12894_v12, %v12818_v8  ;;  %v546_v21 = vmul.f32 %v12894_v12, %v12825_v15 }
 0x104   : > { %10728 = vrot.lane.b32.xlu0 %v10727_v25, %s12485_s25  ;;  %v10762_v13 = vpack.i.bf16 %v548_v63, %v547_v62  ;;  %v900_v23 = vpack.c.bf16 %v12933_v1, %v12943_v11  ;;  %v12953_v25 = vmul.f32 %v12886_v5, %v12729_v27  ;;  %v12957_v26 = vmul.f32 %v12889_v9, %v12729_v27  ;;  %v11187_v62 = vld [vmem:[#allocation6 + $0xc] ss:$20 sps:$4 sm:$0xff]  }
 0x105   : > { %v10767_v28 = vpack.i.bf16 %v566_v10, %v565_v4  ;;  %v543_v32 = vmul.f32 %v12894_v12, %v12841_v20  ;;  %v10772_v40 = vpack.i.bf16 %v546_v21, %v545_v17  ;;  %v564_v27 = vmul.f32 %v12878_v60, %v12848_v31  ;;  %v12987_v10 = vpop.permute.xlu0 %576  ;;  %1372 = vmatprep.mubr.bf16.mxu1 %v11187_v62  ;;  %v11176_v1 = vld [vmem:[#allocation6 + $0x2c] ss:$20 sps:$4 sm:$0xff]  }
 0x106   : > { %10743 = vrot.lane.b32.xlu1 %v10742_v43, %s12485_s25  ;;  %v899_v36 = vpack.c.bf16 %v12957_v26, %v12953_v25  ;;  %v544_v43 = vmul.f32 %v12894_v12, %v12848_v31  ;;  %v541_v48 = vmul.f32 %v12894_v12, %v12864_v39  ;;  %v542_v51 = vmul.f32 %v12894_v12, %v12870_v50 }
 0x107   : > { %v539_v63 = vmul.f32 %v12894_v12, %v12886_v5  ;;  %v540_v4 = vmul.f32 %v12894_v12, %v12889_v9  ;;  %16547 = vst [vmem:[#allocation25_spill] sm:$0xff] %v12987_v10  ;;  %v560_v17 = vmul.f32 %v12878_v60, %v12889_v9  ;;  %v559_v21 = vmul.f32 %v12878_v60, %v12886_v5 }
 0x108   : > { %10738 = vrot.lane.b32.xlu0 %v10737_v44, %s12484_s22  ;;  %v563_v44 = vmul.f32 %v12878_v60, %v12841_v20  ;;  %v10782_v52 = vpack.i.bf16 %v544_v43, %v543_v32  ;;  %v591_v32 = vmul.f32 %v12987_v10, %v12749_v35  ;;  %v592_v43 = vmul.f32 %v12987_v10, %v12756_v42 }
 0x109   : > { %v588_v35 = vmul.f32 %v12987_v10, %v12802_v3  ;;  %v589_v42 = vmul.f32 %v12987_v10, %v12772_v47  ;;  %v584_v3 = vmul.f32 %v12987_v10, %v12848_v31  ;;  %v586_v47 = vmul.f32 %v12987_v10, %v12825_v15 }
 0x10a   : > { %10753 = vrot.lane.b32.xlu1 %v10752_v56, %s12485_s25  ;;  %v10777_v55 = vpack.i.bf16 %v564_v27, %v563_v44  ;;  %v561_v56 = vmul.f32 %v12878_v60, %v12864_v39  ;;  %v593_v44 = vmul.f32 %v12987_v10, %v12727_v24  ;;  %v594_v27 = vmul.f32 %v12987_v10, %v12734_v30 }
 0x10b   : > { %v590_v24 = vmul.f32 %v12987_v10, %v12779_v54  ;;  %v579_v54 = vmul.f32 %v12987_v10, %v12886_v5 }
 0x10c   : > { %10748 = vrot.lane.b32.xlu0 %v10747_v61, %s12484_s22  ;;  %v562_v61 = vmul.f32 %v12878_v60, %v12870_v50 }
 0x10e   : > { %10763 = vrot.lane.b32.xlu1 %v10762_v13, %s12485_s25  ;;  %v10792_v13 = vpack.i.bf16 %v542_v51, %v541_v48  ;;  %v587_v48 = vmul.f32 %v12987_v10, %v12795_v59  ;;  %v10812_v51 = vpack.i.bf16 %v592_v43, %v591_v32  ;;  %v583_v59 = vmul.f32 %v12987_v10, %v12841_v20  ;;  %v946_v32 = vld [vmem:[#allocation12 + $0x38] sm:$0xff]  ;;  %v944_v43 = vld [vmem:[#allocation12 + $0x28] sm:$0xff] }
 0x10f   : > { %v580_v20 = vmul.f32 %v12987_v10, %v12889_v9  ;;  %v953_v9 = vld [vmem:[#allocation12 + $0x70] sm:$0xff] }
 0x110   : > { %10758 = vrot.lane.b32.xlu0 %v10757_v16, %s12484_s22  ;;  %v10787_v16 = vpack.i.bf16 %v562_v61, %v561_v56  ;;  %v10822_v30 = vpack.i.bf16 %v588_v35, %v587_v48  ;;  %v585_v56 = vmul.f32 %v12987_v10, %v12818_v8  ;;  %v581_v61 = vmul.f32 %v12987_v10, %v12864_v39  ;;  %v954_v39 = vld [vmem:[#allocation12 + $0x78] sm:$0xff]  ;;  %v939_v48 = vld [vmem:[#allocation12] sm:$0xff]  ;;  %v940_v35 = vld [vmem:[#allocation12 + $0x8] sm:$0xff] }
 0x111   : > { %v10832_v31 = vpack.i.bf16 %v584_v3, %v583_v59  ;;  %v582_v8 = vmul.f32 %v12987_v10, %v12870_v50  ;;  %v10842_v15 = vpack.i.bf16 %v580_v20, %v579_v54  ;;  %v951_v50 = vld [vmem:[#allocation12 + $0x60] sm:$0xff] }
 0x112   : > { %10773 = vrot.lane.b32.xlu1 %v10772_v40, %s12485_s25  ;;  %v10797_v40 = vpack.i.bf16 %v560_v17, %v559_v21  ;;  %v10827_v62 = vpack.i.bf16 %v586_v47, %v585_v56  ;;  %v947_v17 = vld [vmem:[#allocation12 + $0x40] sm:$0xff]  ;;  %v948_v21 = vld [vmem:[#allocation12 + $0x48] sm:$0xff] }
 0x113   : > { %v10837_v5 = vpack.i.bf16 %v582_v8, %v581_v61 }
 0x114   : > { %10768 = vrot.lane.b32.xlu0 %v10767_v28, %s12484_s22  ;;  %v10802_v28 = vpack.i.bf16 %v540_v4, %v539_v63  ;;  %v16480_v63 = vmov 0   ;;  %v952_v4 = vld [vmem:[#allocation12 + $0x68] sm:$0xff] }
 0x115   : > { %10848 = vset.pattern.permute.xlu1 %v16480_v63  ;;  %10847 = vset.pattern.permute.xlu0 %v16480_v63 }
 0x116   : > { %10783 = vrot.lane.b32.xlu1 %v10782_v52, %s12485_s25  ;;  %v10807_v52 = vpack.i.bf16 %v594_v27, %v593_v44  ;;  %v941_v44 = vld [vmem:[#allocation12 + $0x10] sm:$0xff]  ;;  %v942_v27 = vld [vmem:[#allocation12 + $0x18] sm:$0xff] }
 0x118   : > { %10778 = vrot.lane.b32.xlu0 %v10777_v55, %s12484_s22  ;;  %v10817_v55 = vpack.i.bf16 %v590_v24, %v589_v42 }
 0x11a   : > { %10793 = vrot.lane.b32.xlu1 %v10792_v13, %s12485_s25  ;;  %v949_v13 = vld [vmem:[#allocation12 + $0x50] sm:$0xff] }
 0x11c   : > { %10788 = vrot.lane.b32.xlu0 %v10787_v16, %s12484_s22  ;;  %v950_v16 = vld [vmem:[#allocation12 + $0x58] sm:$0xff] }
 0x11e   : > { %10803 = vrot.lane.b32.xlu1 %v10802_v28, %s12485_s25  ;;  %v945_v28 = vld [vmem:[#allocation12 + $0x30] sm:$0xff] }
 0x120   : > { %10798 = vrot.lane.b32.xlu0 %v10797_v40, %s12484_s22  ;;  %v943_v40 = vld [vmem:[#allocation12 + $0x20] sm:$0xff] }
 0x122   : > { %10813 = vrot.lane.b32.xlu1 %v10812_v51, %s12486_s17 }
 0x124   : > { %10808 = vrot.lane.b32.xlu0 %v10807_v52, %s12486_s17 }
 0x126   : > { %10823 = vrot.lane.b32.xlu1 %v10822_v30, %s12486_s17 }
 0x128   : > { %10818 = vrot.lane.b32.xlu0 %v10817_v55, %s12486_s17 }
 0x12a   : > { %10833 = vrot.lane.b32.xlu1 %v10832_v31, %s12486_s17 }
 0x12c   : > { %10828 = vrot.lane.b32.xlu0 %v10827_v62, %s12486_s17 }
 0x12e   : > { %10843 = vrot.lane.b32.xlu1 %v10842_v15, %s12486_s17 }
 0x130   : > { %10838 = vrot.lane.b32.xlu0 %v10837_v5, %s12486_s17 }
 0x132   : > { %1032 = vperm.xlu1 %10848, %v954_v39  }
 0x134   : > { %1027 = vperm.xlu0 %10847, %v953_v9  }
 0x136   : > { %1017 = vperm.xlu1 %10848, %v951_v50  }
 0x138   : > { %1022 = vperm.xlu0 %10847, %v952_v4  }
 0x13a   : > { %1007 = vperm.xlu1 %10848, %v949_v13  }
 0x13c   : > { %1012 = vperm.xlu0 %10847, %v950_v16  }
 0x13e   : > { %997 = vperm.xlu1 %10848, %v947_v17  }
 0x140   : > { %1002 = vperm.xlu0 %10847, %v948_v21  }
 0x142   : > { %987 = vperm.xlu1 %10848, %v945_v28  }
 0x144   : > { %992 = vperm.xlu0 %10847, %v946_v32  }
 0x146   : > { %977 = vperm.xlu1 %10848, %v943_v40   ;;  %v11173_v40 = vld [vmem:[#allocation6] ss:$20 sps:$4 sm:$0xff]  }
 0x148   : > { %982 = vperm.xlu0 %10847, %v944_v43  }
 0x14a   : > { %967 = vperm.xlu1 %10848, %v941_v44  }
 0x14c   : > { %972 = vperm.xlu0 %10847, %v942_v27  }
 0x14e   : > { %957 = vperm.xlu1 %10848, %v939_v48  }
 0x150   : > { %962 = vperm.xlu0 %10847, %v940_v35  }
 0x158   : > { %v10689_v51 = vpop.permute.xlu1 %10688 }
 0x159   : > { %v10691_v52 = vunpack.i.h.bf16 %v10689_v51  ;;  %v10690_v42 = vunpack.i.l.bf16 %v10689_v51 }
 0x15b   : > { %v914_v24 = vpack.c.bf16 %v10691_v52, %v10690_v42 }
 0x15c   : > { %v10694_v30 = vpop.permute.xlu1 %10693 }
 0x15d   : > { %v10696_v59 = vunpack.i.h.bf16 %v10694_v30  ;;  %v10695_v55 = vunpack.i.l.bf16 %v10694_v30  ;;  %9779 = vmatprep.subr.bf16.mxu0 %v914_v24 }
 0x15e   : > { %9780 = vmatpush3.bf16.msra.mxu0 %v906_v41 }
 0x15f   : > { %v913_v3 = vpack.c.bf16 %v10696_v59, %v10695_v55  ;;  %v11178_v55 = vld [vmem:[#allocation6 + $0x28] ss:$20 sps:$4 sm:$0xff]  }
 0x160   : > { %v10699_v56 = vpop.permute.xlu0 %10698 }
 0x161   : > { %v10701_v47 = vunpack.i.h.bf16 %v10699_v56  ;;  %v10700_v54 = vunpack.i.l.bf16 %v10699_v56  ;;  %9781 = vmatprep.subr.bf16.mxu0 %v913_v3  ;;  %v11179_v3 = vld [vmem:[#allocation6 + $0x54] ss:$20 sps:$4 sm:$0xff]  }
 0x162   : > { %9782 = vmatpush3.bf16.msra.mxu0 %v905_v53 }
 0x163   : > { %v912_v20 = vpack.c.bf16 %v10701_v47, %v10700_v54 }
 0x164   : > { %v10704_v61 = vpop.permute.xlu1 %10703 }
 0x165   : > { %v10706_v31 = vunpack.i.h.bf16 %v10704_v61  ;;  %v10705_v62 = vunpack.i.l.bf16 %v10704_v61  ;;  %9783 = vmatprep.subr.bf16.mxu0 %v912_v20 }
 0x166   : > { %9784 = vmatpush3.bf16.msra.mxu0 %v904_v2 }
 0x167   : > { %v911_v33 = vpack.c.bf16 %v10706_v31, %v10705_v62 }
 0x168   : > { %v10709_v34 = vpop.permute.xlu0 %10708 }
 0x169   : > { %v10711_v41 = vunpack.i.h.bf16 %v10709_v34  ;;  %v10710_v8 = vunpack.i.l.bf16 %v10709_v34  ;;  %9785 = vmatprep.subr.bf16.mxu0 %v911_v33 }
 0x16a   : > { %9786 = vmatpush3.bf16.msra.mxu0 %v903_v14 }
 0x16b   : > { %v910_v45 = vpack.c.bf16 %v10711_v41, %v10710_v8 }
 0x16c   : > { %v10714_v46 = vpop.permute.xlu1 %10713 }
 0x16d   : > { %v10716_v53 = vunpack.i.h.bf16 %v10714_v46  ;;  %v10715_v15 = vunpack.i.l.bf16 %v10714_v46  ;;  %9787 = vmatprep.subr.bf16.mxu0 %v910_v45 }
 0x16e   : > { %9788 = vmatpush3.bf16.msra.mxu0 %v902_v29 }
 0x16f   : > { %v909_v57 = vpack.c.bf16 %v10716_v53, %v10715_v15 }
 0x170   : > { %v10719_v58 = vpop.permute.xlu0 %10718  ;;  %v10724_v39 = vpop.permute.xlu1 %10723 }
 0x171   : > { %v10721_v2 = vunpack.i.h.bf16 %v10719_v58  ;;  %v10720_v5 = vunpack.i.l.bf16 %v10719_v58  ;;  %9789 = vmatprep.subr.bf16.mxu0 %v909_v57  ;;  %v10726_v7 = vunpack.i.h.bf16 %v10724_v39  ;;  %v10725_v14 = vunpack.i.l.bf16 %v10724_v39  ;;  %v11181_v58 = vld [vmem:[#allocation6 + $0x50] ss:$20 sps:$4 sm:$0xff]  }
 0x172   : > { %9790 = vmatpush3.bf16.msra.mxu0 %v901_v49 }
 0x173   : > { %v908_v6 = vpack.c.bf16 %v10721_v2, %v10720_v5  ;;  %v930_v9 = vpack.c.bf16 %v10726_v7, %v10725_v14  ;;  %v11182_v2 = vld [vmem:[#allocation6 + $0x7c] ss:$20 sps:$4 sm:$0xff]  }
 0x174   : > { %v10734_v4 = vpop.permute.xlu1 %10733 }
 0x175   : > { %9791 = vmatprep.subr.bf16.mxu0 %v908_v6  ;;  %v10736_v18 = vunpack.i.h.bf16 %v10734_v4  ;;  %v10735_v19 = vunpack.i.l.bf16 %v10734_v4  ;;  %9843 = vmatprep.subr.bf16.mxu1 %v930_v9 }
 0x176   : > { %v10729_v50 = vpop.permute.xlu0 %10728  ;;  %9792 = vmatpush3.bf16.msra.mxu0 %v900_v23 }
 0x177   : > { %v10731_v29 = vunpack.i.h.bf16 %v10729_v50  ;;  %v10730_v13 = vunpack.i.l.bf16 %v10729_v50  ;;  %v907_v16 = vpack.c.bf16 %v10736_v18, %v10735_v19 }
 0x178   : > { %v10744_v38 = vpop.permute.xlu1 %10743 }
 0x179   : > { %v922_v17 = vpack.c.bf16 %v10731_v29, %v10730_v13  ;;  %v10746_v28 = vunpack.i.h.bf16 %v10744_v38  ;;  %v10745_v32 = vunpack.i.l.bf16 %v10744_v38  ;;  %9793 = vmatprep.subr.bf16.mxu0 %v907_v16 }
 0x17a   : > { %v10739_v37 = vpop.permute.xlu0 %10738  ;;  %9794 = vmatpush3.bf16.msra.mxu0 %v899_v36 }
 0x17b   : > { %v10741_v49 = vunpack.i.h.bf16 %v10739_v37  ;;  %v10740_v21 = vunpack.i.l.bf16 %v10739_v37  ;;  %9844 = vmatpush3.bf16.msra.mxu1 %v922_v17  ;;  %v921_v23 = vpack.c.bf16 %v10746_v28, %v10745_v32 }
 0x17c   : > { %v10754_v44 = vpop.permute.xlu1 %10753 }
 0x17d   : > { %v929_v11 = vpack.c.bf16 %v10741_v49, %v10740_v21  ;;  %v10756_v35 = vunpack.i.h.bf16 %v10754_v44  ;;  %v10755_v51 = vunpack.i.l.bf16 %v10754_v44  ;;  %1276 = vmatmul.mubr.bf16.vlgmr.msra.gmra.mxu0 %v11173_v40  ;;  %v11184_v49 = vld [vmem:[#allocation6 + $0x78] ss:$20 sps:$4 sm:$0xff]  }
 0x17e   : > { %v10749_v43 = vpop.permute.xlu0 %10748  ;;  %1283 = vmatprep.mubr.bf16.mxu0 %v11176_v1  ;;  %v11188_v21 = vld [vmem:[#allocation6 + $0xa4] ss:$20 sps:$4 sm:$0xff]  }
 0x17f   : > { %v10751_v27 = vunpack.i.h.bf16 %v10749_v43  ;;  %v10750_v48 = vunpack.i.l.bf16 %v10749_v43  ;;  %9845 = vmatprep.subr.bf16.mxu1 %v929_v11  ;;  %v920_v42 = vpack.c.bf16 %v10756_v35, %v10755_v51 }
 0x180   : > { %9846 = vmatpush3.bf16.msra.mxu1 %v921_v23  ;;  %v10764_v30 = vpop.permute.xlu1 %10763 }
 0x181   : > { %v928_v52 = vpack.c.bf16 %v10751_v27, %v10750_v48  ;;  %v10766_v26 = vunpack.i.h.bf16 %v10764_v30  ;;  %v10765_v36 = vunpack.i.l.bf16 %v10764_v30  ;;  %v11185_v27 = vld [vmem:[#allocation6 + $0x8] ss:$20 sps:$4 sm:$0xff]   ;;  %v11190_v30 = vld [vmem:[#allocation6 + $0xa0] ss:$20 sps:$4 sm:$0xff]  }
 0x182   : > { %v10759_v24 = vpop.permute.xlu0 %10758  ;;  %v11191_v48 = vld [vmem:[#allocation6 + $0x34] ss:$20 sps:$4 sm:$0xff]  }
 0x183   : > { %v10761_v59 = vunpack.i.h.bf16 %v10759_v24  ;;  %v10760_v25 = vunpack.i.l.bf16 %v10759_v24  ;;  %9847 = vmatprep.subr.bf16.mxu1 %v928_v52  ;;  %v919_v47 = vpack.c.bf16 %v10766_v26, %v10765_v36 }
 0x184   : > { %9848 = vmatpush3.bf16.msra.mxu1 %v920_v42  ;;  %v10774_v20 = vpop.permute.xlu1 %10773 }
 0x185   : > { %v927_v56 = vpack.c.bf16 %v10761_v59, %v10760_v25  ;;  %v10776_v62 = vunpack.i.h.bf16 %v10774_v20  ;;  %v10775_v33 = vunpack.i.l.bf16 %v10774_v20  ;;  %1284 = vmatmul.mubr.bf16.gmra.mxu0 %v11178_v55  ;;  %v11194_v25 = vld [vmem:[#allocation6 + $0xcc] ss:$20 sps:$4 sm:$0xff]  }
 0x186   : > { %v10769_v54 = vpop.permute.xlu0 %10768  ;;  %1291 = vmatprep.mubr.bf16.mxu0 %v11179_v3  ;;  %v11193_v3 = vld [vmem:[#allocation6 + $0x30] ss:$20 sps:$4 sm:$0xff]  }
 0x187   : > { %v10771_v61 = vunpack.i.h.bf16 %v10769_v54  ;;  %v10770_v31 = vunpack.i.l.bf16 %v10769_v54  ;;  %9849 = vmatprep.subr.bf16.mxu1 %v927_v56  ;;  %v918_v41 = vpack.c.bf16 %v10776_v62, %v10775_v33  ;;  %v11200_v33 = vld [vmem:[#allocation6 + $0xf4] ss:$20 sps:$4 sm:$0xff]  }
 0x188   : > { %9850 = vmatpush3.bf16.msra.mxu1 %v919_v47  ;;  %v10784_v45 = vpop.permute.xlu1 %10783  ;;  %v11197_v47 = vld [vmem:[#allocation6 + $0x5c] ss:$20 sps:$4 sm:$0xff]  }
 0x189   : > { %v926_v34 = vpack.c.bf16 %v10771_v61, %v10770_v31  ;;  %v10786_v15 = vunpack.i.h.bf16 %v10784_v45  ;;  %v10785_v57 = vunpack.i.l.bf16 %v10784_v45  ;;  %v11196_v31 = vld [vmem:[#allocation6 + $0xc8] ss:$20 sps:$4 sm:$0xff]   ;;  %v11199_v45 = vld [vmem:[#allocation6 + $0x58] ss:$20 sps:$4 sm:$0xff]  }
 0x18a   : > { %v10779_v8 = vpop.permute.xlu0 %10778 }
 0x18b   : > { %v10781_v46 = vunpack.i.h.bf16 %v10779_v8  ;;  %v10780_v53 = vunpack.i.l.bf16 %v10779_v8  ;;  %9851 = vmatprep.subr.bf16.mxu1 %v926_v34  ;;  %v917_v39 = vpack.c.bf16 %v10786_v15, %v10785_v57 }
 0x18c   : > { %9852 = vmatpush3.bf16.msra.mxu1 %v918_v41  ;;  %v10794_v7 = vpop.permute.xlu1 %10793 }
 0x18d   : > { %v925_v5 = vpack.c.bf16 %v10781_v46, %v10780_v53  ;;  %v10796_v50 = vunpack.i.h.bf16 %v10794_v7  ;;  %v10795_v4 = vunpack.i.l.bf16 %v10794_v7  ;;  %1292 = vmatmul.mubr.bf16.gmra.mxu0 %v11181_v58  ;;  %v11203_v53 = vld [vmem:[#allocation6 + $0x84] ss:$20 sps:$4 sm:$0xff]  }
 0x18e   : > { %v10789_v6 = vpop.permute.xlu0 %10788  ;;  %1299 = vmatprep.mubr.bf16.mxu0 %v11182_v2  ;;  %v11202_v2 = vld [vmem:[#allocation6 + $0xf0] ss:$20 sps:$4 sm:$0xff]  }
 0x18f   : > { %v10791_v14 = vunpack.i.h.bf16 %v10789_v6  ;;  %v10790_v9 = vunpack.i.l.bf16 %v10789_v6  ;;  %9853 = vmatprep.subr.bf16.mxu1 %v925_v5  ;;  %v916_v19 = vpack.c.bf16 %v10796_v50, %v10795_v4  ;;  %v11209_v50 = vld [vmem:[#allocation6 + $0xac] ss:$20 sps:$4 sm:$0xff]  }
 0x190   : > { %9854 = vmatpush3.bf16.msra.mxu1 %v917_v39  ;;  %v10804_v13 = vpop.permute.xlu1 %10803  ;;  %v11206_v39 = vld [vmem:[#allocation6 + $0x11c] ss:$20 sps:$4 sm:$0xff]  }
 0x191   : > { %v924_v18 = vpack.c.bf16 %v10791_v14, %v10790_v9  ;;  %v10806_v37 = vunpack.i.h.bf16 %v10804_v13  ;;  %v10805_v38 = vunpack.i.l.bf16 %v10804_v13  ;;  %v11205_v9 = vld [vmem:[#allocation6 + $0x80] ss:$20 sps:$4 sm:$0xff]  }
 0x192   : > { %v10799_v29 = vpop.permute.xlu0 %10798  ;;  %v11214_v13 = vld [vmem:[#allocation6 + $0xd4] ss:$20 sps:$4 sm:$0xff]  }
 0x193   : > { %v10801_v16 = vunpack.i.h.bf16 %v10799_v29  ;;  %v10800_v17 = vunpack.i.l.bf16 %v10799_v29  ;;  %9855 = vmatprep.subr.bf16.mxu1 %v924_v18  ;;  %v915_v32 = vpack.c.bf16 %v10806_v37, %v10805_v38  ;;  %v11208_v18 = vld [vmem:[#allocation6 + $0x118] ss:$20 sps:$4 sm:$0xff]   ;;  %v11211_v29 = vld [vmem:[#allocation6 + $0xa8] ss:$20 sps:$4 sm:$0xff]   ;;  %v11216_v37 = vld [vmem:[#allocation6 + $0xd0] ss:$20 sps:$4 sm:$0xff]  }
 0x194   : > { %9856 = vmatpush3.bf16.msra.mxu1 %v916_v19  ;;  %v10814_v1 = vpop.permute.xlu1 %10813  ;;  %v11212_v19 = vld [vmem:[#allocation6 + $0x10] ss:$20 sps:$4 sm:$0xff]  }
 0x195   : > { %v923_v28 = vpack.c.bf16 %v10801_v16, %v10800_v17  ;;  %v10816_v43 = vunpack.i.h.bf16 %v10814_v1  ;;  %v10815_v44 = vunpack.i.l.bf16 %v10814_v1  ;;  %1300 = vmatmul.mubr.bf16.gmra.mxu0 %v11184_v49  ;;  %v11213_v16 = vld [vmem:[#allocation6 + $0x38] ss:$20 sps:$4 sm:$0xff]   ;;  %v11217_v17 = vld [vmem:[#allocation6 + $0x60] ss:$20 sps:$4 sm:$0xff]   ;;  %v11219_v38 = vld [vmem:[#allocation6 + $0xfc] ss:$20 sps:$4 sm:$0xff]  }
 0x196   : > { %v10809_v40 = vpop.permute.xlu0 %10808  ;;  %1307 = vmatprep.mubr.bf16.mxu0 %v11188_v21  ;;  %v11218_v49 = vld [vmem:[#allocation6 + $0x88] ss:$20 sps:$4 sm:$0xff]   ;;  %v11222_v21 = vld [vmem:[#allocation6 + $0xb0] ss:$20 sps:$4 sm:$0xff]   ;;  %v11227_v1 = vld [vmem:[#allocation6 + $0x100] ss:$20 sps:$4 sm:$0xff]  }
 0x197   : > { %v10811_v11 = vunpack.i.h.bf16 %v10809_v40  ;;  %v10810_v23 = vunpack.i.l.bf16 %v10809_v40  ;;  %9857 = vmatprep.subr.bf16.mxu1 %v923_v28  ;;  %v937_v24 = vpack.c.bf16 %v10816_v43, %v10815_v44  ;;  %v11221_v28 = vld [vmem:[#allocation6 + $0xf8] ss:$20 sps:$4 sm:$0xff]  }
 0x198   : > { %9858 = vmatpush3.bf16.msra.mxu1 %v915_v32  ;;  %v10824_v59 = vpop.permute.xlu1 %10823  ;;  %v11224_v32 = vld [vmem:[#allocation6 + $0x124] ss:$20 sps:$4 sm:$0xff]  }
 0x199   : > { %v938_v35 = vpack.c.bf16 %v10811_v11, %v10810_v23  ;;  %v10826_v26 = vunpack.i.h.bf16 %v10824_v59  ;;  %v10825_v36 = vunpack.i.l.bf16 %v10824_v59  ;;  %v11223_v40 = vld [vmem:[#allocation6 + $0xd8] ss:$20 sps:$4 sm:$0xff]   ;;  %v11226_v11 = vld [vmem:[#allocation6 + $0x120] ss:$20 sps:$4 sm:$0xff]   ;;  %v11228_v23 = vld [vmem:[#allocation6 + $0x128] ss:$20 sps:$4 sm:$0xff]  }
 0x19a   : > { %v10819_v51 = vpop.permute.xlu0 %10818 }
 0x19b   : > { %v10821_v52 = vunpack.i.h.bf16 %v10819_v51  ;;  %v10820_v42 = vunpack.i.l.bf16 %v10819_v51  ;;  %1373 = vmatmul.mubr.bf16.vlgmr.msra.gmra.mxu1 %v11185_v27  ;;  %10292 = vmatprep.subr.bf16.mxu0 %v938_v35  ;;  %v935_v61 = vpack.c.bf16 %v10826_v26, %v10825_v36 }
 0x19c   : > { %10293 = vmatpush3.bf16.msra.mxu0 %v938_v35  ;;  %1380 = vmatprep.mubr.bf16.mxu1 %v11191_v48  ;;  %v10834_v62 = vpop.permute.xlu1 %10833 }
 0x19d   : > { %10294 = vmatprep.subr.bf16.mxu0 %v937_v24  ;;  %1308 = vmatmul.mubr.bf16.gmra.mxu0 %v11190_v30  ;;  %v936_v55 = vpack.c.bf16 %v10821_v52, %v10820_v42  ;;  %v10836_v34 = vunpack.i.h.bf16 %v10834_v62  ;;  %v10835_v41 = vunpack.i.l.bf16 %v10834_v62 }
 0x19e   : > { %v10829_v56 = vpop.permute.xlu0 %10828  ;;  %1315 = vmatprep.mubr.bf16.mxu0 %v11194_v25 }
 0x19f   : > { %v10831_v54 = vunpack.i.h.bf16 %v10829_v56  ;;  %v10830_v20 = vunpack.i.l.bf16 %v10829_v56  ;;  %v933_v58 = vpack.c.bf16 %v10836_v34, %v10835_v41 }
 0x1a0   : > { %10295 = vmatpush3.bf16.msra.mxu0 %v937_v24  ;;  %v10844_v5 = vpop.permute.xlu1 %10843 }
 0x1a1   : > { %10296 = vmatprep.subr.bf16.mxu0 %v936_v55  ;;  %v934_v8 = vpack.c.bf16 %v10831_v54, %v10830_v20  ;;  %v10846_v6 = vunpack.i.h.bf16 %v10844_v5  ;;  %v10845_v7 = vunpack.i.l.bf16 %v10844_v5 }
 0x1a2   : > { %v10839_v46 = vpop.permute.xlu0 %10838 }
 0x1a3   : > { %1381 = vmatmul.mubr.bf16.gmra.mxu1 %v11193_v3  ;;  %v10841_v15 = vunpack.i.h.bf16 %v10839_v46  ;;  %v10840_v57 = vunpack.i.l.bf16 %v10839_v46  ;;  %v931_v4 = vpack.c.bf16 %v10846_v6, %v10845_v7 }
 0x1a4   : > { %10297 = vmatpush3.bf16.msra.mxu0 %v936_v55  ;;  %1388 = vmatprep.mubr.bf16.mxu1 %v11197_v47 }
 0x1a5   : > { %10298 = vmatprep.subr.bf16.mxu0 %v935_v61  ;;  %1316 = vmatmul.mubr.bf16.gmra.mxu0 %v11196_v31  ;;  %v932_v14 = vpack.c.bf16 %v10841_v15, %v10840_v57 }
 0x1a6   : > { %1323 = vmatprep.mubr.bf16.mxu0 %v11200_v33 }
 0x1a8   : > { %10299 = vmatpush3.bf16.msra.mxu0 %v935_v61 }
 0x1a9   : > { %10300 = vmatprep.subr.bf16.mxu0 %v934_v8 }
 0x1ab   : > { %1389 = vmatmul.mubr.bf16.gmra.mxu1 %v11199_v45 }
 0x1ac   : > { %10301 = vmatpush3.bf16.msra.mxu0 %v934_v8  ;;  %1396 = vmatprep.mubr.bf16.mxu1 %v11203_v53 }
 0x1ad   : > { %10302 = vmatprep.subr.bf16.mxu0 %v933_v58  ;;  %1324 = vmatmul.mubr.bf16.gmra.mxu0 %v11202_v2  ;;  %v13063_v43 = vpop.permute.xlu1 %1032 }
 0x1ae   : > { %1331 = vmatprep.mubr.bf16.mxu0 %v11206_v39 }
 0x1af   : > { %v13065_v44 = vpop.permute.xlu0 %1027 }
 0x1b0   : > { %10303 = vmatpush3.bf16.msra.mxu0 %v933_v58 }
 0x1b1   : > { %10304 = vmatprep.subr.bf16.mxu0 %v932_v14  ;;  %v13067_v27 = vpop.permute.xlu1 %1017 }
 0x1b3   : > { %1397 = vmatmul.mubr.bf16.gmra.mxu1 %v11205_v9  ;;  %v13069_v48 = vpop.permute.xlu0 %1022 }
 0x1b4   : > { %10305 = vmatpush3.bf16.msra.mxu0 %v932_v14  ;;  %1404 = vmatprep.mubr.bf16.mxu1 %v11209_v50 }
 0x1b5   : > { %10306 = vmatprep.subr.bf16.mxu0 %v931_v4  ;;  %1332 = vmatmul.mubr.bf16.gmra.mxu0 %v11208_v18  ;;  %v13071_v35 = vpop.permute.xlu1 %1007 }
 0x1b6   : > { %10308 = vmatprep.mubr.bf16.mxu0 %v11212_v19 }
 0x1b7   : > { %v13073_v52 = vpop.permute.xlu0 %1012 }
 0x1b8   : > { %10307 = vmatpush3.bf16.msra.mxu0 %v931_v4 }
 0x1b9   : > { %v13075_v24 = vpop.permute.xlu1 %997 }
 0x1bb   : > { %1405 = vmatmul.mubr.bf16.gmra.mxu1 %v11211_v29  ;;  %v13077_v26 = vpop.permute.xlu0 %1002 }
 0x1bc   : > { %1412 = vmatprep.mubr.bf16.mxu1 %v11214_v13 }
 0x1bd   : > { %10309 = vmatmul.mubr.bf16.vlgmr.msra.gmra.mxu0 %v11213_v16  ;;  %v13079_v55 = vpop.permute.xlu1 %987 }
 0x1be   : > { %10312 = vmatprep.mubr.bf16.mxu0 %v11217_v17 }
 0x1bf   : > { %v13081_v54 = vpop.permute.xlu0 %992 }
 0x1c0   : > { %16548 = vst [vmem:[#allocation26_spill] sm:$0xff] %v13081_v54 }
 0x1c1   : > { %v13083_v61 = vpop.permute.xlu1 %977 }
 0x1c3   : > { %1413 = vmatmul.mubr.bf16.gmra.mxu1 %v11216_v37  ;;  %v13085_v33 = vpop.permute.xlu0 %982 }
 0x1c4   : > { %1420 = vmatprep.mubr.bf16.mxu1 %v11219_v38  ;;  %16549 = vst [vmem:[#allocation27_spill] sm:$0xff] %v13085_v33 }
 0x1c5   : > { %10313 = vmatmul.mubr.bf16.gmra.mxu0 %v11218_v49  ;;  %v968_v8 = vpop.permute.xlu1 %967 }
 0x1c6   : > { %10316 = vmatprep.mubr.bf16.mxu0 %v11222_v21 }
 0x1c7   : > { %v973_v53 = vpop.permute.xlu0 %972 }
 0x1c9   : > { %v958_v57 = vpop.permute.xlu1 %957 }
 0x1cb   : > { %1421 = vmatmul.mubr.bf16.gmra.mxu1 %v11221_v28  ;;  %v963_v9 = vpop.permute.xlu0 %962 }
 0x1cc   : > { %1428 = vmatprep.mubr.bf16.mxu1 %v11224_v32 }
 0x1cd   : > { %10317 = vmatmul.mubr.bf16.gmra.mxu0 %v11223_v40 }
 0x1ce   : > { %10320 = vmatprep.mubr.bf16.mxu0 %v11227_v1 }
 0x1d3   : > { %1429 = vmatmul.mubr.bf16.gmra.mxu1 %v11226_v11 }
 0x1d5   : > { %10321 = vmatmul.mubr.bf16.gmra.mxu0 %v11228_v23 }
 0x23d   : > { %v9795_v51 = vpop.f32.mrf.mxu0 }
 0x23f   : > { %v9796_v42 = vpop.f32.mrf.mxu0 }
 0x240   : > { %v9797_v30 = vadd.f32 %v9796_v42, %v9795_v51 }
 0x241   : > { %v9798_v59 = vpop.f32.mrf.mxu0 }
 0x242   : > { %v1278_v7 = vadd.f32 %v9797_v30, %v958_v57 }
 0x243   : > { %v9799_v25 = vpop.f32.mrf.mxu0 }
 0x244   : > { %v9800_v14 = vadd.f32 %v9799_v25, %v9798_v59 }
 0x245   : > { %v9801_v36 = vpop.f32.mrf.mxu0 }
 0x246   : > { %v1281_v16 = vadd.f32 %v9800_v14, %v963_v9 }
 0x247   : > { %v9802_v3 = vpop.f32.mrf.mxu0 }
 0x248   : > { %v9803_v56 = vadd.f32 %v9802_v3, %v9801_v36 }
 0x249   : > { %v9804_v47 = vpop.f32.mrf.mxu0 }
 0x24a   : > { %v1286_v32 = vadd.f32 %v9803_v56, %v968_v8 }
 0x24b   : > { %v9805_v20 = vpop.f32.mrf.mxu0 }
 0x24c   : > { %v9806_v40 = vadd.f32 %v9805_v20, %v9804_v47 }
 0x24d   : > { %v9807_v31 = vpop.f32.mrf.mxu0 }
 0x24e   : > { %v1289_v59 = vadd.f32 %v9806_v40, %v973_v53 }
 0x24f   : > { %v9808_v62 = vpop.f32.mrf.mxu0 }
 0x250   : > { %v13087_v34 = vadd.f32 %v9808_v62, %v9807_v31 }
 0x251   : > { %v13089_v41 = vpop.f32.mrf.mxu0 }
 0x252   : > { %16550 = vst [vmem:[#allocation28_spill] sm:$0xff] %v13087_v34  ;;  %16551 = vst [vmem:[#allocation29_spill] sm:$0xff] %v13089_v41 }
 0x253   : > { %v13091_v45 = vpop.f32.mrf.mxu0 }
 0x254   : > { %16552 = vst [vmem:[#allocation30_spill] sm:$0xff] %v13091_v45 }
 0x255   : > { %v9813_v46 = vpop.f32.mrf.mxu0 }
 0x257   : > { %v9814_v15 = vpop.f32.mrf.mxu0 }
 0x258   : > { %v13093_v58 = vadd.f32 %v9814_v15, %v9813_v46 }
 0x259   : > { %v13095_v2 = vpop.f32.mrf.mxu0 }
 0x25b   : > { %v9859_v5 = vpop.f32.mrf.mxu1  ;;  %v13097_v39 = vpop.f32.mrf.mxu0 }
 0x25d   : > { %v9860_v6 = vpop.f32.mrf.mxu1  ;;  %v13099_v4 = vpop.f32.mrf.mxu0 }
 0x25e   : > { %v9861_v50 = vadd.f32 %v9860_v6, %v9859_v5 }
 0x25f   : > { %v9862_v18 = vpop.f32.mrf.mxu1  ;;  %v13103_v29 = vpop.f32.mrf.mxu0 }
 0x260   : > { %v13101_v19 = vadd.f32 %v9861_v50, %v1278_v7 }
 0x261   : > { %v9863_v13 = vpop.f32.mrf.mxu1  ;;  %v13105_v37 = vpop.f32.mrf.mxu0 }
 0x262   : > { %16553 = vst [vmem:[#allocation31_spill] sm:$0xff] %v13101_v19  ;;  %v9864_v17 = vadd.f32 %v9863_v13, %v9862_v18 }
 0x263   : > { %v9865_v38 = vpop.f32.mrf.mxu1  ;;  %v13109_v21 = vpop.f32.mrf.mxu0 }
 0x264   : > { %v13107_v49 = vadd.f32 %v9864_v17, %v1281_v16 }
 0x265   : > { %v9866_v28 = vpop.f32.mrf.mxu1  ;;  %v9825_v11 = vpop.f32.mrf.mxu0 }
 0x266   : > { %16554 = vst [vmem:[#allocation32_spill] sm:$0xff] %v13107_v49  ;;  %v9867_v1 = vadd.f32 %v9866_v28, %v9865_v38 }
 0x267   : > { %v9868_v23 = vpop.f32.mrf.mxu1  ;;  %v9826_v42 = vpop.f32.mrf.mxu0 }
 0x268   : > { %v13111_v51 = vadd.f32 %v9867_v1, %v1286_v32 }
 0x269   : > { %v9869_v30 = vpop.f32.mrf.mxu1  ;;  %v9828_v36 = vpop.f32.mrf.mxu0 }
 0x26a   : > { %16555 = vst [vmem:[#allocation33_spill] sm:$0xff] %v13111_v51  ;;  %v9870_v25 = vadd.f32 %v9869_v30, %v9868_v23 }
 0x26b   : > { %v13113_v3 = vpop.f32.mrf.mxu1  ;;  %v9829_v62 = vpop.f32.mrf.mxu0 }
 0x26c   : > { %v13115_v31 = vadd.f32 %v9870_v25, %v1289_v59 }
 0x26d   : > { %v13117_v46 = vpop.f32.mrf.mxu1  ;;  %v9831_v15 = vpop.f32.mrf.mxu0 }
 0x26e   : > { %16556 = vst [vmem:[#allocation34_spill] sm:$0xff] %v13115_v31 }
 0x26f   : > { %v13119_v56 = vpop.f32.mrf.mxu1  ;;  %v9832_v47 = vpop.f32.mrf.mxu0 }
 0x270   : > { %16557 = vst [vmem:[#allocation35_spill] sm:$0xff] %v13119_v56 }
 0x271   : > { %v13121_v20 = vpop.f32.mrf.mxu1  ;;  %v9834_v8 = vpop.f32.mrf.mxu0 }
 0x272   : > { %16558 = vst [vmem:[#allocation36_spill] sm:$0xff] %v13121_v20  ;;  %v9827_v20 = vadd.f32 %v9826_v42, %v9825_v11  ;;  %v9830_v11 = vadd.f32 %v9829_v62, %v9828_v36 }
 0x273   : > { %v13123_v57 = vpop.f32.mrf.mxu1  ;;  %v9835_v5 = vpop.f32.mrf.mxu0 }
 0x274   : > { %v9836_v56 = vadd.f32 %v9835_v5, %v9834_v8 }
 0x275   : > { %v13125_v53 = vpop.f32.mrf.mxu1  ;;  %v9837_v6 = vpop.f32.mrf.mxu0 }
 0x276   : > { %v1329_v42 = vadd.f32 %v9836_v56, %v13069_v48  ;;  %v9824_v48 = vadd.f32 %v13109_v21, %v13105_v37  ;;  %v9818_v21 = vadd.f32 %v13097_v39, %v13095_v2  ;;  %v16569_v2 = vld [vmem:[#allocation28_spill] sm:$0xff] }
 0x277   : > { %v13127_v7 = vpop.f32.mrf.mxu1  ;;  %v9838_v14 = vpop.f32.mrf.mxu0  ;;  %v1294_v39 = vadd.f32 %v16569_v2, %v13083_v61  ;;  %v16576_v61 = vld [vmem:[#allocation35_spill] sm:$0xff] }
 0x278   : > { %16559 = vst [vmem:[#allocation37_spill] sm:$0xff] %v13127_v7 }
 0x279   : > { %v13129_v9 = vpop.f32.mrf.mxu1  ;;  %v9840_v50 = vpop.f32.mrf.mxu0 }
 0x27a   : > { %16560 = vst [vmem:[#allocation38_spill] sm:$0xff] %v13129_v9 }
 0x27b   : > { %v9883_v18 = vpop.f32.mrf.mxu1  ;;  %v9841_v13 = vpop.f32.mrf.mxu0 }
 0x27c   : > { %v9842_v45 = vadd.f32 %v9841_v13, %v9840_v50 }
 0x27d   : > { %v9884_v16 = vpop.f32.mrf.mxu1  ;;  %v13133_v38 = vpop.f32.mrf.mxu0 }
 0x27e   : > { %16561 = vst [vmem:[#allocation39_spill] sm:$0xff] %v13133_v38  ;;  %v9839_v38 = vadd.f32 %v9838_v14, %v9837_v6  ;;  %v9885_v14 = vadd.f32 %v9884_v16, %v9883_v18 }
 0x27f   : > { %v13131_v17 = vpop.f32.mrf.mxu1  ;;  %v13137_v32 = vpop.f32.mrf.mxu0 }
 0x280   : > { %16562 = vst [vmem:[#allocation40_spill] sm:$0xff] %v13137_v32 }
 0x281   : > { %v13135_v28 = vpop.f32.mrf.mxu1  ;;  %v13139_v1 = vpop.f32.mrf.mxu0  ;;  %v16571_v13 = vld [vmem:[#allocation38_spill] sm:$0xff] }
 0x282   : > { %16563 = vst [vmem:[#allocation41_spill] sm:$0xff] %v13139_v1  ;;  %v9833_v1 = vadd.f32 %v9832_v47, %v9831_v15 }
 0x283   : > { %v9889_v40 = vpop.f32.mrf.mxu1  ;;  %v13141_v30 = vpop.f32.mrf.mxu0 }
 0x284   : > { %16564 = vst [vmem:[#allocation42_spill] sm:$0xff] %v13141_v30 }
 0x285   : > { %v9890_v23 = vpop.f32.mrf.mxu1  ;;  %v13143_v25 = vpop.f32.mrf.mxu0 }
 0x286   : > { %16565 = vst [vmem:[#allocation43_spill] sm:$0xff] %v13143_v25  ;;  %v9891_v41 = vadd.f32 %v9890_v23, %v9889_v40 }
 0x287   : > { %v9892_v59 = vpop.f32.mrf.mxu1  ;;  %v13145_v0 = vpop.f32.mrf.mxu0 }
 0x288   : > { %16566 = vst [vmem:[#allocation44_spill] sm:$0xff] %v13145_v0  ;;  %v1326_v0 = vadd.f32 %v9833_v1, %v13067_v27 }
 0x289   : > { %v9893_v63 = vpop.f32.mrf.mxu1  ;;  %v13147_v12 = vpop.f32.mrf.mxu0 }
 0x28a   : > { %16567 = vst [vmem:[#allocation45_spill] sm:$0xff] %v13147_v12  ;;  %v1334_v12 = vadd.f32 %v9839_v38, %v13065_v44  ;;  %v1337_v44 = vadd.f32 %v9842_v45, %v13063_v43  ;;  %v9894_v50 = vadd.f32 %v9893_v63, %v9892_v59  ;;  %v1302_v63 = vadd.f32 %v13093_v58, %v13079_v55  ;;  %v16573_v38 = vld [vmem:[#allocation30_spill] sm:$0xff] }
 0x28b   : > { %v9895_v10 = vpop.f32.mrf.mxu1  ;;  %v13149_v22 = vpop.f32.mrf.mxu0 }
 0x28c   : > { %16568 = vst [vmem:[#allocation46_spill] sm:$0xff] %v13149_v22 }
 0x28d   : > { %v9896_v60 = vpop.f32.mrf.mxu1  ;;  %v10318_v31 = vpop.f32.mrf.mxu0 }
 0x28e   : > { %v9897_v33 = vadd.f32 %v9896_v60, %v9895_v10  ;;  %v9821_v60 = vadd.f32 %v13103_v29, %v13099_v4  ;;  %v1318_v10 = vadd.f32 %v9827_v20, %v13071_v35  ;;  %v1321_v4 = vadd.f32 %v9830_v11, %v13073_v52  ;;  %v16578_v11 = vld [vmem:[#allocation27_spill] sm:$0xff] }
 0x28f   : > { %v9898_v49 = vpop.f32.mrf.mxu1  ;;  %v1503_v19 = vpop.f32.mrf.mxu0 }
 0x290   : > { %v1423_v47 = vadd.f32 %v9897_v33, %v1326_v0  ;;  %v1310_v35 = vadd.f32 %v9821_v60, %v13075_v24  ;;  %v9888_v24 = vadd.f32 %v13135_v28, %v13131_v17  ;;  %v1418_v52 = vadd.f32 %v9894_v50, %v1321_v4  ;;  %v16572_v17 = vld [vmem:[#allocation29_spill] sm:$0xff] }
 0x291   : > { %v9899_v32 = vpop.f32.mrf.mxu1  ;;  %v10319_v30 = vpop.f32.mrf.mxu0  ;;  %v9812_v28 = vadd.f32 %v16573_v38, %v16572_v17 }
 0x292   : > { %v9900_v34 = vadd.f32 %v9899_v32, %v9898_v49  ;;  %v1415_v49 = vadd.f32 %v9891_v41, %v1318_v10  ;;  %v1407_v41 = vadd.f32 %v9885_v14, %v1310_v35  ;;  %v1515_v58 = vadd.f32 %v10319_v30, %v1418_v52  ;;  %v16574_v32 = vld [vmem:[#allocation26_spill] sm:$0xff] }
 0x293   : > { %v9901_v51 = vpop.f32.mrf.mxu1  ;;  %v13151_v54 = vpop.f32.mrf.mxu0  ;;  %v1305_v40 = vadd.f32 %v9818_v21, %v16574_v32  ;;  %v16583_v35 = vld [vmem:[#allocation46_spill] sm:$0xff] }
 0x294   : > { %v1426_v33 = vadd.f32 %v9900_v34, %v1329_v42  ;;  %v1512_v29 = vadd.f32 %v10318_v31, %v1415_v49  ;;  %v9879_v34 = vadd.f32 %v13125_v53, %v13123_v57  ;;  %v1313_v31 = vadd.f32 %v9824_v48, %v13077_v26  ;;  %v16570_v26 = vld [vmem:[#allocation37_spill] sm:$0xff] }
 0x295   : > { %v9902_v25 = vpop.f32.mrf.mxu1  ;;  %v10322_v7 = vpop.f32.mrf.mxu0  ;;  %v1504_v55 = vadd.f32 %v1503_v19, %v1407_v41  ;;  %v9882_v19 = vadd.f32 %v16571_v13, %v16570_v26  ;;  %v1561_v23 = vmul.f32 0.1, %v1515_v58  ;;  %vm1545_vm7 = vcmp.gt.f32.partialorder %v1515_v58, 0.0  ;;  %v16581_v49 = vld [vmem:[#allocation33_spill] sm:$0xff] }
 0x296   : > { %v9903_v22 = vadd.f32 %v9902_v25, %v9901_v51  ;;  %v1560_v20 = vmul.f32 0.1, %v1512_v29  ;;  %v1399_v18 = vadd.f32 %v9879_v34, %v1302_v63  ;;  %vm1544_vm6 = vcmp.gt.f32.partialorder %v1512_v29, 0.0  ;;  %v16587_v63 = vld [vmem:[#allocation41_spill] sm:$0xff] }
 0x297   : > { %v9904_v9 = vpop.f32.mrf.mxu1  ;;  %v1519_v27 = vpop.f32.mrf.mxu0  ;;  %v1410_v16 = vadd.f32 %v9888_v24, %v1313_v31  ;;  %v1558_v1 = vmul.f32 0.1, %v1504_v55  ;;  %vm1542_vm8 = vcmp.gt.f32.partialorder %v1504_v55, 0.0  ;;  %v1402_v10 = vadd.f32 %v9882_v19, %v1305_v40  ;;  %v16588_v31 = vld [vmem:[#allocation32_spill] sm:$0xff]  ;;  %v16590_v40 = vld [vmem:[#allocation22_spill] sm:$0xff] }
 0x298   : > { %v1431_v15 = vadd.f32 %v9903_v22, %v1334_v12  ;;  %v1520_v6 = vadd.f32 %v1519_v27, %v1423_v47  ;;  %v1576_v25 = vsel %vm1544_vm6, %v1512_v29, %v1560_v20  ;;  %v16577_v47 = vld [vmem:[#allocation36_spill] sm:$0xff]  ;;  %v1297_v42 = vadd.f32 %v9812_v28, %v16578_v11  ;;  %v16589_v20 = vld [vmem:[#allocation42_spill] sm:$0xff] }
 0x299   : > { %v9905_v8 = vpop.f32.mrf.mxu1  ;;  %v10323_v22 = vpop.f32.mrf.mxu0  ;;  %v1507_v30 = vadd.f32 %v13151_v54, %v1410_v16  ;;  %v9876_v60 = vadd.f32 %v16577_v47, %v16576_v61  ;;  %v16579_v27 = vld [vmem:[#allocation44_spill] sm:$0xff] }
 0x29a   : > { %v1528_v5 = vadd.f32 %v10322_v7, %v1431_v15  ;;  %v9906_v51 = vadd.f32 %v9905_v8, %v9904_v9  ;;  %v1562_v45 = vmul.f32 0.1, %v1520_v6  ;;  %vm1546_vm3 = vcmp.gt.f32.partialorder %v1520_v6, 0.0 }
 0x29b   : > { %v1522_v43 = vpop.f32.mrf.mxu0  ;;  %v9873_v9 = vadd.f32 %v13117_v46, %v13113_v3  ;;  %v16575_v3 = vld [vmem:[#allocation43_spill] sm:$0xff]  ;;  %v1559_v14 = vmul.f32 0.1, %v1507_v30  ;;  %vm1543_vm9 = vcmp.gt.f32.partialorder %v1507_v30, 0.0  ;;  %v1394_v50 = vadd.f32 %v9876_v60, %v1297_v42 }
 0x29c   : > { %v1564_v0 = vmul.f32 0.1, %v1528_v5  ;;  %v1434_v12 = vadd.f32 %v9906_v51, %v1337_v44  ;;  %vm1548_vm2 = vcmp.gt.f32.partialorder %v1528_v5, 0.0  ;;  %v1523_v62 = vadd.f32 %v1522_v43, %v1426_v33 }
 0x29d   : > { %v1578_v57 = vsel %vm1546_vm3, %v1520_v6, %v1562_v45  ;;  %v1496_v46 = vadd.f32 %v16575_v3, %v1399_v18  ;;  %v1391_v15 = vadd.f32 %v9873_v9, %v1294_v39  ;;  %v1577_v51 = vsel %vm1545_vm7, %v1515_v58, %v1561_v23  ;;  %v16584_v45 = vld [vmem:[#allocation31_spill] sm:$0xff] }
 0x29e   : > { %v1531_v36 = vadd.f32 %v10323_v22, %v1434_v12  ;;  %v1580_v56 = vsel %vm1548_vm2, %v1528_v5, %v1564_v0  ;;  %v1563_v53 = vmul.f32 0.1, %v1523_v62  ;;  %vm1547_vm5 = vcmp.gt.f32.partialorder %v1523_v62, 0.0  ;;  %v16580_v5 = vld [vmem:[#allocation45_spill] sm:$0xff]  ;;  %v16582_v22 = vld [vmem:[#allocation39_spill] sm:$0xff] }
 0x29f   : > { %1626 = vrot.lane.b32.xlu1 %v1580_v56, %s12479_s26  ;;  %v1556_v8 = vmul.f32 0.1, %v1496_v46  ;;  %v1488_v44 = vadd.f32 %v16579_v27, %v1391_v15  ;;  %v1499_v54 = vadd.f32 %v16580_v5, %v1402_v10  ;;  %v1574_v6 = vsel %vm1542_vm8, %v1504_v55, %v1558_v1  ;;  %v16586_v56 = vld [vmem:[#allocation34_spill] sm:$0xff] }
 0x2a0   : > { %v1565_v37 = vmul.f32 0.1, %v1531_v36  ;;  %vm1549_vm4 = vcmp.gt.f32.partialorder %v1531_v36, 0.0  ;;  %v1579_v59 = vsel %vm1547_vm5, %v1523_v62, %v1563_v53  ;;  %vm1540_vm10 = vcmp.gt.f32.partialorder %v1496_v46, 0.0 }
 0x2a1   : > { %v1480_v0 = vadd.f32 %v16582_v22, %v16581_v49  ;;  %v1554_v12 = vmul.f32 0.1, %v1488_v44  ;;  %v1557_v33 = vmul.f32 0.1, %v1499_v54  ;;  %v1491_v48 = vadd.f32 %v16583_v35, %v1394_v50 }
 0x2a2   : > { %v1581_v7 = vsel %vm1549_vm4, %v1531_v36, %v1565_v37  ;;  %v1575_v4 = vsel %vm1543_vm9, %v1507_v30, %v1559_v14  ;;  %v1572_v29 = vsel %vm1540_vm10, %v1496_v46, %v1556_v8  ;;  %vm1541_vm11 = vcmp.gt.f32.partialorder %v1499_v54, 0.0  ;;  %v16585_v36 = vld [vmem:[#allocation40_spill] sm:$0xff] }
 0x2a3   : > { %1628 = vrot.lane.b32.xlu0 %v1581_v7, %s12479_s26  ;;  %1622 = vrot.lane.b32.xlu1 %v1578_v57, %s12479_s26  ;;  %vm1538_vm12 = vcmp.gt.f32.partialorder %v1488_v44, 0.0  ;;  %v1552_v43 = vmul.f32 0.1, %v1480_v0  ;;  %v1472_v62 = vadd.f32 %v16585_v36, %v16584_v45  ;;  %v1483_v34 = vadd.f32 %v16587_v63, %v16586_v56 }
 0x2a4   : > { %v1573_v41 = vsel %vm1541_vm11, %v1499_v54, %v1557_v33  ;;  %v1570_v24 = vsel %vm1538_vm12, %v1488_v44, %v1554_v12  ;;  %v1555_v52 = vmul.f32 0.1, %v1491_v48  ;;  %vm1539_vm13 = vcmp.gt.f32.partialorder %v1491_v48, 0.0 }
 0x2a5   : > { %vm1536_vm14 = vcmp.gt.f32.partialorder %v1480_v0, 0.0  ;;  %v1550_v37 = vmul.f32 0.1, %v1472_v62  ;;  %v1553_v21 = vmul.f32 0.1, %v1483_v34  ;;  %v1475_v55 = vadd.f32 %v16589_v20, %v16588_v31 }
 0x2a6   : > { %v1571_v58 = vsel %vm1539_vm13, %v1491_v48, %v1555_v52  ;;  %v1568_v7 = vsel %vm1536_vm14, %v1480_v0, %v1552_v43  ;;  %vm1537_vm15 = vcmp.gt.f32.partialorder %v1483_v34, 0.0  ;;  %vm1534_vm2 = vcmp.gt.f32.partialorder %v1472_v62, 0.0 }
 0x2a7   : > { %1624 = vrot.lane.b32.xlu0 %v1579_v59, %s12479_s26  ;;  %1618 = vrot.lane.b32.xlu1 %v1576_v25, %s12479_s26  ;;  %v1569_v57 = vsel %vm1537_vm15, %v1483_v34, %v1553_v21  ;;  %v1566_v53 = vsel %vm1534_vm2, %v1472_v62, %v1550_v37  ;;  %v1551_v9 = vmul.f32 0.1, %v1475_v55  ;;  %vm1535_vm3 = vcmp.gt.f32.partialorder %v1475_v55, 0.0 }
 0x2a9   : > { %v1567_v18 = vsel %vm1535_vm3, %v1475_v55, %v1551_v9 }
 0x2ab   : > { %1620 = vrot.lane.b32.xlu0 %v1577_v51, %s12479_s26  ;;  %1614 = vrot.lane.b32.xlu1 %v1574_v6, %s12479_s26 }
 0x2af   : > { %1616 = vrot.lane.b32.xlu0 %v1575_v4, %s12479_s26  ;;  %1610 = vrot.lane.b32.xlu1 %v1572_v29, %s12479_s26 }
 0x2b3   : > { %1612 = vrot.lane.b32.xlu0 %v1573_v41, %s12479_s26  ;;  %1606 = vrot.lane.b32.xlu1 %v1570_v24, %s12479_s26 }
 0x2b7   : > { %1608 = vrot.lane.b32.xlu0 %v1571_v58, %s12479_s26  ;;  %1602 = vrot.lane.b32.xlu1 %v1568_v7, %s12479_s26  ;;  %v16591_v7 = vld [vmem:[#allocation23_spill] sm:$0xff] }
 0x2bb   : > { %1604 = vrot.lane.b32.xlu0 %v1569_v57, %s12479_s26  ;;  %1598 = vrot.lane.b32.xlu1 %v1566_v53, %s12479_s26 }
 0x2bf   : > { %1600 = vrot.lane.b32.xlu0 %v1567_v18, %s12479_s26 }
 0x311   : > { %v1627_v2 = vpop.permute.xlu1 %1626 }
 0x312   : > { %v1660_v39 = vsel %vm465_vm0, 0.0, %v1627_v2  ;;  %v16592_v2 = vld [vmem:[#allocation24_spill] sm:$0xff] }
 0x313   : > { %v13216_v19 = vsel %vm482_vm1, %v1660_v39, 0.0 }
 0x314   : > { %v1708_v3 = vmul.f32 %v13216_v19, %v16590_v40 }
 0x315   : > { %v1629_v26 = vpop.permute.xlu0 %1628  ;;  %v1623_v13 = vpop.permute.xlu1 %1622 }
 0x316   : > { %v1661_v16 = vsel %vm465_vm0, 0.0, %v1629_v26  ;;  %v1658_v38 = vsel %vm465_vm0, 0.0, %v1623_v13  ;;  %v12145_v26 = vld [vmem:[#allocation14 + $0x60] ss:$0 sm:$0xff] }
 0x317   : > { %v13220_v17 = vsel %vm482_vm1, %v1661_v16, 0.0  ;;  %v13228_v1 = vsel %vm482_vm1, %v1658_v38, 0.0  ;;  %v13305_v13 = vmul.f32 %v12145_v26, %v13216_v19  ;;  %v1740_v38 = vmul.f32 %v13216_v19, %v16591_v7 }
 0x318   : > { %v1709_v46 = vmul.f32 %v13220_v17, %v16590_v40  ;;  %v1706_v47 = vmul.f32 %v13228_v1, %v16590_v40  ;;  %v1741_v57 = vmul.f32 %v13220_v17, %v16591_v7  ;;  %v1725_v39 = vmul.f32 %v13220_v17, %v16592_v2 }
 0x319   : > { %v1625_v28 = vpop.permute.xlu0 %1624  ;;  %v1619_v32 = vpop.permute.xlu1 %1618 }
 0x31a   : > { %v1659_v23 = vsel %vm465_vm0, 0.0, %v1625_v28  ;;  %v1656_v59 = vsel %vm465_vm0, 0.0, %v1619_v32  ;;  %v10849_v25 = vpack.i.bf16 %v1709_v46, %v1708_v3  ;;  %v1724_v28 = vmul.f32 %v13216_v19, %v16592_v2 }
 0x31b   : > { %v13232_v30 = vsel %vm482_vm1, %v1659_v23, 0.0  ;;  %v13241_v10 = vsel %vm482_vm1, %v1656_v59, 0.0  ;;  %v13312_v32 = vmul.f32 %v12145_v26, %v13220_v17  ;;  %v13318_v59 = vmul.f32 %v12145_v26, %v13228_v1 }
 0x31c   : > { %10850 = vrot.lane.b32.xlu1 %v10849_v25, %s12483_s21  ;;  %v1707_v60 = vmul.f32 %v13232_v30, %v16590_v40  ;;  %v1704_v5 = vmul.f32 %v13241_v10, %v16590_v40 }
 0x31d   : > { %v1621_v15 = vpop.permute.xlu0 %1620  ;;  %v1615_v61 = vpop.permute.xlu1 %1614 }
 0x31e   : > { %v1657_v11 = vsel %vm465_vm0, 0.0, %v1621_v15  ;;  %v10854_v8 = vpack.i.bf16 %v1707_v60, %v1706_v47  ;;  %v1654_v51 = vsel %vm465_vm0, 0.0, %v1615_v61  ;;  %v13329_v47 = vmul.f32 %v12145_v26, %v13232_v30 }
 0x31f   : > { %v13245_v42 = vsel %vm482_vm1, %v1657_v11, 0.0  ;;  %v13258_v49 = vsel %vm482_vm1, %v1654_v51, 0.0  ;;  %v13332_v60 = vmul.f32 %v12145_v26, %v13241_v10  ;;  %v10884_v11 = vpack.i.bf16 %v1741_v57, %v1740_v38  ;;  %v11231_v51 = vld [vmem:[#allocation6 + $0x144] ss:$20 sps:$4 sm:$0xff]  }
 0x320   : > { %10855 = vrot.lane.b32.xlu0 %v10854_v8, %s12483_s21  ;;  %v1705_v54 = vmul.f32 %v13245_v42, %v16590_v40  ;;  %v1702_v4 = vmul.f32 %v13258_v49, %v16590_v40  ;;  %v10889_v8 = vpack.i.bf16 %v1725_v39, %v1724_v28  ;;  %2406 = vmatprep.mubr.bf16.mxu1 %v11231_v51 }
 0x321   : > { %v1617_v27 = vpop.permute.xlu0 %1616  ;;  %v1611_v44 = vpop.permute.xlu1 %1610  ;;  %v1737_v39 = vmul.f32 %v13245_v42, %v16591_v7  ;;  %v1736_v38 = vmul.f32 %v13241_v10, %v16591_v7  ;;  %v1720_v28 = vmul.f32 %v13241_v10, %v16592_v2 }
 0x322   : > { %v1655_v6 = vsel %vm465_vm0, 0.0, %v1617_v27  ;;  %v10859_v50 = vpack.i.bf16 %v1705_v54, %v1704_v5  ;;  %v1652_v12 = vsel %vm465_vm0, 0.0, %v1611_v44  ;;  %v13336_v27 = vmul.f32 %v12145_v26, %v13245_v42 }
 0x323   : > { %v13255_v14 = vsel %vm482_vm1, %v1655_v6, 0.0  ;;  %v13271_v29 = vsel %vm482_vm1, %v1652_v12, 0.0  ;;  %v13355_v12 = vmul.f32 %v12145_v26, %v13258_v49 }
 0x324   : > { %10860 = vrot.lane.b32.xlu1 %v10859_v50, %s12483_s21  ;;  %v1703_v35 = vmul.f32 %v13255_v14, %v16590_v40  ;;  %v1700_v41 = vmul.f32 %v13271_v29, %v16590_v40  ;;  %v13339_v44 = vmul.f32 %v12145_v26, %v13255_v14 }
 0x325   : > { %v1613_v22 = vpop.permute.xlu0 %1612  ;;  %v1607_v0 = vpop.permute.xlu1 %1606 }
 0x326   : > { %v1653_v33 = vsel %vm465_vm0, 0.0, %v1613_v22  ;;  %v1650_v36 = vsel %vm465_vm0, 0.0, %v1607_v0  ;;  %v10864_v62 = vpack.i.bf16 %v1703_v35, %v1702_v4  ;;  %v1739_v35 = vmul.f32 %v13232_v30, %v16591_v7 }
 0x327   : > { %v13266_v48 = vsel %vm482_vm1, %v1653_v33, 0.0  ;;  %v13284_v24 = vsel %vm482_vm1, %v1650_v36, 0.0  ;;  %v1723_v4 = vmul.f32 %v13232_v30, %v16592_v2 }
 0x328   : > { %v1701_v63 = vmul.f32 %v13266_v48, %v16590_v40  ;;  %10865 = vrot.lane.b32.xlu0 %v10864_v62, %s12483_s21  ;;  %v1698_v18 = vmul.f32 %v13284_v24, %v16590_v40  ;;  %v13344_v6 = vmul.f32 %v12145_v26, %v13266_v48  ;;  %v1717_v51 = vmul.f32 %v13266_v48, %v16592_v2 }
 0x329   : > { %v1609_v43 = vpop.permute.xlu0 %1608  ;;  %v1603_v45 = vpop.permute.xlu1 %1602 }
 0x32a   : > { %v1651_v56 = vsel %vm465_vm0, 0.0, %v1609_v43  ;;  %v1648_v52 = vsel %vm465_vm0, 0.0, %v1603_v45  ;;  %v10869_v31 = vpack.i.bf16 %v1701_v63, %v1700_v41  ;;  %v13366_v43 = vmul.f32 %v12145_v26, %v13271_v29 }
 0x32b   : > { %v13278_v34 = vsel %vm482_vm1, %v1651_v56, 0.0  ;;  %v13296_v53 = vsel %vm482_vm1, %v1648_v52, 0.0  ;;  %v13369_v45 = vmul.f32 %v12145_v26, %v13284_v24  ;;  %v2069_v63 = vpack.c.bf16 %v13312_v32, %v13305_v13 }
 0x32c   : > { %v1699_v55 = vmul.f32 %v13278_v34, %v16590_v40  ;;  %10870 = vrot.lane.b32.xlu1 %v10869_v31, %s12483_s21  ;;  %v1696_v61 = vmul.f32 %v13296_v53, %v16590_v40  ;;  %v13347_v50 = vmul.f32 %v12145_v26, %v13278_v34  ;;  %v13372_v36 = vmul.f32 %v12145_v26, %v13296_v53 }
 0x32d   : > { %v1605_v37 = vpop.permute.xlu0 %1604  ;;  %v1599_v21 = vpop.permute.xlu1 %1598  ;;  %v2068_v41 = vpack.c.bf16 %v13329_v47, %v13318_v59  ;;  %v2067_v52 = vpack.c.bf16 %v13336_v27, %v13332_v60 }
 0x32e   : > { %v1649_v20 = vsel %vm465_vm0, 0.0, %v1605_v37  ;;  %v1646_v9 = vsel %vm465_vm0, 0.0, %v1599_v21  ;;  %v10874_v3 = vpack.i.bf16 %v1699_v55, %v1698_v18  ;;  %v2066_v37 = vpack.c.bf16 %v13339_v44, %v13355_v12 }
 0x32f   : > { %v13291_v58 = vsel %vm482_vm1, %v1649_v20, 0.0  ;;  %v13321_v25 = vsel %vm482_vm1, %v1646_v9, 0.0  ;;  %v2065_v21 = vpack.c.bf16 %v13344_v6, %v13366_v43  ;;  %v2064_v31 = vpack.c.bf16 %v13347_v50, %v13369_v45 }
 0x330   : > { %v1697_v23 = vmul.f32 %v13291_v58, %v16590_v40  ;;  %10875 = vrot.lane.b32.xlu0 %v10874_v3, %s12483_s21  ;;  %v13350_v22 = vmul.f32 %v12145_v26, %v13291_v58  ;;  %v1694_v0 = vmul.f32 %v13321_v25, %v16590_v40  ;;  %v13376_v56 = vmul.f32 %v12145_v26, %v13321_v25 }
 0x331   : > { %v1601_v16 = vpop.permute.xlu0 %1600  ;;  %v1738_v55 = vmul.f32 %v13228_v1, %v16591_v7  ;;  %v1722_v9 = vmul.f32 %v13228_v1, %v16592_v2  ;;  %v1735_v3 = vmul.f32 %v13255_v14, %v16591_v7 }
 0x332   : > { %v1647_v46 = vsel %vm465_vm0, 0.0, %v1601_v16  ;;  %v10879_v5 = vpack.i.bf16 %v1697_v23, %v1696_v61  ;;  %v2063_v20 = vpack.c.bf16 %v13350_v22, %v13372_v36  ;;  %v1721_v16 = vmul.f32 %v13245_v42, %v16592_v2 }
 0x333   : > { %v13324_v15 = vsel %vm482_vm1, %v1647_v46, 0.0  ;;  %v10899_v18 = vpack.i.bf16 %v1739_v35, %v1738_v55  ;;  %v10904_v46 = vpack.i.bf16 %v1737_v39, %v1736_v38  ;;  %v1719_v23 = vmul.f32 %v13255_v14, %v16592_v2 }
 0x334   : > { %v1695_v54 = vmul.f32 %v13324_v15, %v16590_v40  ;;  %v13358_v33 = vmul.f32 %v12145_v26, %v13324_v15  ;;  %10880 = vrot.lane.b32.xlu1 %v10879_v5, %s12483_s21  ;;  %10885 = vrot.lane.b32.xlu0 %v10884_v11, %s12484_s22  ;;  %v10909_v26 = vpack.i.bf16 %v1723_v4, %v1722_v9 }
 0x335   : > { %v10914_v61 = vpack.i.bf16 %v1721_v16, %v1720_v28  ;;  %v1734_v11 = vmul.f32 %v13258_v49, %v16591_v7  ;;  %v1733_v5 = vmul.f32 %v13266_v48, %v16591_v7  ;;  %v1732_v35 = vmul.f32 %v13271_v29, %v16591_v7 }
 0x336   : > { %v10894_v62 = vpack.i.bf16 %v1695_v54, %v1694_v0  ;;  %v2062_v57 = vpack.c.bf16 %v13358_v33, %v13376_v56  ;;  %v1716_v4 = vmul.f32 %v13271_v29, %v16592_v2  ;;  %v1715_v9 = vmul.f32 %v13278_v34, %v16592_v2 }
 0x337   : > { %v10919_v54 = vpack.i.bf16 %v1735_v3, %v1734_v11  ;;  %v10929_v55 = vpack.i.bf16 %v1733_v5, %v1732_v35  ;;  %v1730_v39 = vmul.f32 %v13284_v24, %v16591_v7  ;;  %v1729_v16 = vmul.f32 %v13291_v58, %v16591_v7  ;;  %v16593_v35 = vld [vmem:[#allocation25_spill] sm:$0xff] }
 0x338   : > { %10890 = vrot.lane.b32.xlu1 %v10889_v8, %s12485_s25  ;;  %10895 = vrot.lane.b32.xlu0 %v10894_v62, %s12483_s21  ;;  %v1718_v8 = vmul.f32 %v13258_v49, %v16592_v2  ;;  %v1731_v62 = vmul.f32 %v13278_v34, %v16591_v7  ;;  %v1713_v28 = vmul.f32 %v13291_v58, %v16592_v2 }
 0x33a   : > { %v10924_v0 = vpack.i.bf16 %v1719_v23, %v1718_v8  ;;  %v10939_v38 = vpack.i.bf16 %v1731_v62, %v1730_v39  ;;  %v1712_v23 = vmul.f32 %v13296_v53, %v16592_v2  ;;  %v1711_v8 = vmul.f32 %v13324_v15, %v16592_v2 }
 0x33b   : > { %v1754_v39 = vmul.f32 %v13228_v1, %v16593_v35  ;;  %v1749_v1 = vmul.f32 %v13266_v48, %v16593_v35  ;;  %v1743_v48 = vmul.f32 %v13324_v15, %v16593_v35 }
 0x33c   : > { %10900 = vrot.lane.b32.xlu1 %v10899_v18, %s12484_s22  ;;  %10910 = vrot.lane.b32.xlu0 %v10909_v26, %s12485_s25  ;;  %v10934_v18 = vpack.i.bf16 %v1717_v51, %v1716_v4  ;;  %v1714_v26 = vmul.f32 %v13284_v24, %v16592_v2  ;;  %v10954_v5 = vpack.i.bf16 %v1713_v28, %v1712_v23 }
 0x33d   : > { %v1726_v51 = vmul.f32 %v13321_v25, %v16591_v7  ;;  %v1757_v4 = vmul.f32 %v13220_v17, %v16593_v35  ;;  %v1751_v17 = vmul.f32 %v13255_v14, %v16593_v35  ;;  %v1748_v14 = vmul.f32 %v13271_v29, %v16593_v35 }
 0x33e   : > { %v10944_v3 = vpack.i.bf16 %v1715_v9, %v1714_v26  ;;  %v1753_v26 = vmul.f32 %v13245_v42, %v16593_v35  ;;  %v1747_v42 = vmul.f32 %v13278_v34, %v16593_v35  ;;  %v12488_v34 = vmov 1  }
 0x33f   : > { %11009 = vset.pattern.permute.xlu1 %v12488_v34  ;;  %11010 = vset.pattern.permute.xlu0 %v12488_v34  ;;  %v1744_v29 = vmul.f32 %v13296_v53, %v16593_v35 }
 0x340   : > { %10905 = vrot.lane.b32.xlu1 %v10904_v46, %s12484_s22  ;;  %10915 = vrot.lane.b32.xlu0 %v10914_v61, %s12485_s25  ;;  %v1728_v46 = vmul.f32 %v13296_v53, %v16591_v7  ;;  %v1727_v61 = vmul.f32 %v13324_v15, %v16591_v7  ;;  %v12146_v15 = vld [vmem:[#allocation12 + $0x70] sm:$0xff] }
 0x341   : > { %v12149_v53 = vld [vmem:[#allocation12 + $0x50] sm:$0xff] }
 0x342   : > { %v10949_v11 = vpack.i.bf16 %v1729_v16, %v1728_v46  ;;  %v10959_v62 = vpack.i.bf16 %v1727_v61, %v1726_v51  ;;  %v10989_v46 = vpack.i.bf16 %v1749_v1, %v1748_v14  ;;  %v12153_v51 = vld [vmem:[#allocation12 + $0x30] sm:$0xff] }
 0x344   : > { %10920 = vrot.lane.b32.xlu1 %v10919_v54, %s12484_s22  ;;  %10925 = vrot.lane.b32.xlu0 %v10924_v0, %s12485_s25  ;;  %v11243_v54 = vld [vmem:[#allocation6 + $0x14c] ss:$20 sps:$4 sm:$0xff]   ;;  %v1710_v0 = vmul.f32 %v13321_v25, %v16592_v2 }
 0x345   : > { %2503 = vmatprep.mubr.bf16.mxu0 %v11243_v54  ;;  %v12151_v54 = vld [vmem:[#allocation12 + $0x40] sm:$0xff] }
 0x346   : > { %v10964_v9 = vpack.i.bf16 %v1711_v8, %v1710_v0  ;;  %v12148_v8 = vld [vmem:[#allocation12 + $0x60] sm:$0xff]  ;;  %v12154_v0 = vld [vmem:[#allocation12 + $0x48] sm:$0xff] }
 0x348   : > { %10930 = vrot.lane.b32.xlu1 %v10929_v55, %s12484_s22  ;;  %10935 = vrot.lane.b32.xlu0 %v10934_v18, %s12485_s25  ;;  %v1755_v55 = vmul.f32 %v13232_v30, %v16593_v35  ;;  %v1756_v18 = vmul.f32 %v13216_v19, %v16593_v35  ;;  %v1752_v30 = vmul.f32 %v13241_v10, %v16593_v35 }
 0x349   : > { %v1750_v19 = vmul.f32 %v13258_v49, %v16593_v35  ;;  %v1746_v10 = vmul.f32 %v13284_v24, %v16593_v35  ;;  %v1745_v49 = vmul.f32 %v13291_v58, %v16593_v35  ;;  %v1742_v24 = vmul.f32 %v13321_v25, %v16593_v35  ;;  %v12152_v25 = vld [vmem:[#allocation12 + $0x58] sm:$0xff] }
 0x34a   : > { %v10969_v16 = vpack.i.bf16 %v1757_v4, %v1756_v18  ;;  %v10979_v28 = vpack.i.bf16 %v1753_v26, %v1752_v30  ;;  %v12155_v4 = vld [vmem:[#allocation12 + $0x20] sm:$0xff]  ;;  %v12161_v26 = vld [vmem:[#allocation12 + $0x8] sm:$0xff] }
 0x34b   : > { %v10994_v23 = vpack.i.bf16 %v1747_v42, %v1746_v10  ;;  %v10999_v61 = vpack.i.bf16 %v1745_v49, %v1744_v29  ;;  %v11004_v58 = vpack.i.bf16 %v1743_v48, %v1742_v24  ;;  %v12159_v18 = vld [vmem:[#allocation12] sm:$0xff] }
 0x34c   : > { %10940 = vrot.lane.b32.xlu1 %v10939_v38, %s12484_s22  ;;  %10945 = vrot.lane.b32.xlu0 %v10944_v3, %s12485_s25  ;;  %v10974_v38 = vpack.i.bf16 %v1755_v55, %v1754_v39  ;;  %v10984_v3 = vpack.i.bf16 %v1751_v17, %v1750_v19  ;;  %v12157_v55 = vld [vmem:[#allocation12 + $0x10] sm:$0xff]  ;;  %v12160_v39 = vld [vmem:[#allocation12 + $0x18] sm:$0xff] }
 0x350   : > { %10950 = vrot.lane.b32.xlu1 %v10949_v11, %s12484_s22  ;;  %10955 = vrot.lane.b32.xlu0 %v10954_v5, %s12485_s25  ;;  %v12147_v11 = vld [vmem:[#allocation12 + $0x78] sm:$0xff]  ;;  %v12150_v5 = vld [vmem:[#allocation12 + $0x68] sm:$0xff] }
 0x354   : > { %10960 = vrot.lane.b32.xlu1 %v10959_v62, %s12484_s22  ;;  %10965 = vrot.lane.b32.xlu0 %v10964_v9, %s12485_s25  ;;  %v12156_v62 = vld [vmem:[#allocation12 + $0x38] sm:$0xff]  ;;  %v12158_v9 = vld [vmem:[#allocation12 + $0x28] sm:$0xff] }
 0x358   : > { %10970 = vrot.lane.b32.xlu1 %v10969_v16, %s12486_s17  ;;  %10975 = vrot.lane.b32.xlu0 %v10974_v38, %s12486_s17 }
 0x35c   : > { %10980 = vrot.lane.b32.xlu1 %v10979_v28, %s12486_s17  ;;  %10985 = vrot.lane.b32.xlu0 %v10984_v3, %s12486_s17 }
 0x360   : > { %10990 = vrot.lane.b32.xlu1 %v10989_v46, %s12486_s17  ;;  %10995 = vrot.lane.b32.xlu0 %v10994_v23, %s12486_s17 }
 0x364   : > { %11000 = vrot.lane.b32.xlu1 %v10999_v61, %s12486_s17  ;;  %11005 = vrot.lane.b32.xlu0 %v11004_v58, %s12486_s17 }
 0x368   : > { %2159 = vperm.xlu1 %11009, %v12146_v15   ;;  %2163 = vperm.xlu0 %11010, %v12147_v11  }
 0x36c   : > { %2151 = vperm.xlu1 %11009, %v12148_v8   ;;  %2143 = vperm.xlu0 %11010, %v12149_v53  }
 0x370   : > { %2155 = vperm.xlu1 %11009, %v12150_v5   ;;  %2135 = vperm.xlu0 %11010, %v12151_v54  }
 0x374   : > { %2147 = vperm.xlu1 %11009, %v12152_v25   ;;  %2127 = vperm.xlu0 %11010, %v12153_v51  }
 0x378   : > { %2139 = vperm.xlu1 %11009, %v12154_v0   ;;  %2119 = vperm.xlu0 %11010, %v12155_v4   ;;  %v11229_v0 = vld [vmem:[#allocation6 + $0x140] ss:$20 sps:$4 sm:$0xff]  }
 0x37c   : > { %2131 = vperm.xlu1 %11009, %v12156_v62   ;;  %2111 = vperm.xlu0 %11010, %v12157_v55   ;;  %v11232_v62 = vld [vmem:[#allocation6 + $0x16c] ss:$20 sps:$4 sm:$0xff]  }
 0x380   : > { %2123 = vperm.xlu1 %11009, %v12158_v9   ;;  %2103 = vperm.xlu0 %11010, %v12159_v18  }
 0x384   : > { %2115 = vperm.xlu1 %11009, %v12160_v39  }
 0x388   : > { %2107 = vperm.xlu1 %11009, %v12161_v26  }
 0x38e   : > { %v10851_v16 = vpop.permute.xlu1 %10850 }
 0x38f   : > { %v10853_v17 = vunpack.i.h.bf16 %v10851_v16  ;;  %v10852_v38 = vunpack.i.l.bf16 %v10851_v16 }
 0x391   : > { %v2077_v30 = vpack.c.bf16 %v10853_v17, %v10852_v38 }
 0x392   : > { %v10856_v19 = vpop.permute.xlu0 %10855 }
 0x393   : > { %v10858_v1 = vunpack.i.h.bf16 %v10856_v19  ;;  %v10857_v28 = vunpack.i.l.bf16 %v10856_v19  ;;  %9923 = vmatprep.subr.bf16.mxu1 %v2077_v30  ;;  %v11234_v19 = vld [vmem:[#allocation6 + $0x168] ss:$20 sps:$4 sm:$0xff]  }
 0x394   : > { %9924 = vmatpush3.bf16.msra.mxu1 %v2069_v63 }
 0x395   : > { %v2076_v42 = vpack.c.bf16 %v10858_v1, %v10857_v28  ;;  %v11235_v28 = vld [vmem:[#allocation6 + $0x194] ss:$20 sps:$4 sm:$0xff]  }
 0x396   : > { %v10861_v3 = vpop.permute.xlu1 %10860 }
 0x397   : > { %v10863_v14 = vunpack.i.h.bf16 %v10861_v3  ;;  %v10862_v10 = vunpack.i.l.bf16 %v10861_v3  ;;  %9925 = vmatprep.subr.bf16.mxu1 %v2076_v42 }
 0x398   : > { %9926 = vmatpush3.bf16.msra.mxu1 %v2068_v41 }
 0x399   : > { %v2075_v49 = vpack.c.bf16 %v10863_v14, %v10862_v10 }
 0x39a   : > { %v10866_v46 = vpop.permute.xlu0 %10865 }
 0x39b   : > { %9927 = vmatprep.subr.bf16.mxu1 %v2075_v49  ;;  %v10868_v48 = vunpack.i.h.bf16 %v10866_v46  ;;  %v10867_v23 = vunpack.i.l.bf16 %v10866_v46 }
 0x39c   : > { %9928 = vmatpush3.bf16.msra.mxu1 %v2067_v52 }
 0x39d   : > { %v2074_v13 = vpack.c.bf16 %v10868_v48, %v10867_v23 }
 0x39e   : > { %v10871_v32 = vpop.permute.xlu1 %10870 }
 0x39f   : > { %v10873_v63 = vunpack.i.h.bf16 %v10871_v32  ;;  %v10872_v34 = vunpack.i.l.bf16 %v10871_v32  ;;  %9929 = vmatprep.subr.bf16.mxu1 %v2074_v13 }
 0x3a0   : > { %9930 = vmatpush3.bf16.msra.mxu1 %v2066_v37 }
 0x3a1   : > { %v2073_v59 = vpack.c.bf16 %v10873_v63, %v10872_v34 }
 0x3a2   : > { %v10876_v47 = vpop.permute.xlu0 %10875 }
 0x3a3   : > { %v10878_v41 = vunpack.i.h.bf16 %v10876_v47  ;;  %v10877_v29 = vunpack.i.l.bf16 %v10876_v47  ;;  %9931 = vmatprep.subr.bf16.mxu1 %v2073_v59 }
 0x3a4   : > { %9932 = vmatpush3.bf16.msra.mxu1 %v2065_v21 }
 0x3a5   : > { %v2072_v27 = vpack.c.bf16 %v10878_v41, %v10877_v29  ;;  %v11237_v29 = vld [vmem:[#allocation6 + $0x190] ss:$20 sps:$4 sm:$0xff]  }
 0x3a6   : > { %v10881_v60 = vpop.permute.xlu1 %10880  ;;  %v10886_v52 = vpop.permute.xlu0 %10885 }
 0x3a7   : > { %v10883_v24 = vunpack.i.h.bf16 %v10881_v60  ;;  %v10882_v61 = vunpack.i.l.bf16 %v10881_v60  ;;  %v10888_v58 = vunpack.i.h.bf16 %v10886_v52  ;;  %v10887_v15 = vunpack.i.l.bf16 %v10886_v52  ;;  %9933 = vmatprep.subr.bf16.mxu1 %v2072_v27  ;;  %v11238_v27 = vld [vmem:[#allocation6 + $0x1bc] ss:$20 sps:$4 sm:$0xff]  }
 0x3a8   : > { %9934 = vmatpush3.bf16.msra.mxu1 %v2064_v31 }
 0x3a9   : > { %v2071_v44 = vpack.c.bf16 %v10883_v24, %v10882_v61  ;;  %v2093_v37 = vpack.c.bf16 %v10888_v58, %v10887_v15 }
 0x3aa   : > { %v10891_v12 = vpop.permute.xlu1 %10890  ;;  %v10896_v11 = vpop.permute.xlu0 %10895 }
 0x3ab   : > { %v10893_v8 = vunpack.i.h.bf16 %v10891_v12  ;;  %v10892_v53 = vunpack.i.l.bf16 %v10891_v12  ;;  %9935 = vmatprep.subr.bf16.mxu1 %v2071_v44  ;;  %v10898_v6 = vunpack.i.h.bf16 %v10896_v11  ;;  %v10897_v43 = vunpack.i.l.bf16 %v10896_v11  ;;  %9987 = vmatprep.subr.bf16.mxu0 %v2093_v37 }
 0x3ac   : > { %9936 = vmatpush3.bf16.msra.mxu1 %v2063_v20 }
 0x3ad   : > { %v2085_v21 = vpack.c.bf16 %v10893_v8, %v10892_v53  ;;  %v2070_v54 = vpack.c.bf16 %v10898_v6, %v10897_v43 }
 0x3ae   : > { %v10901_v5 = vpop.permute.xlu1 %10900  ;;  %v10911_v25 = vpop.permute.xlu0 %10910 }
 0x3af   : > { %v10903_v50 = vunpack.i.h.bf16 %v10901_v5  ;;  %v10902_v45 = vunpack.i.l.bf16 %v10901_v5  ;;  %9988 = vmatpush3.bf16.msra.mxu0 %v2085_v21  ;;  %v10913_v31 = vunpack.i.h.bf16 %v10911_v25  ;;  %v10912_v51 = vunpack.i.l.bf16 %v10911_v25  ;;  %9937 = vmatprep.subr.bf16.mxu1 %v2070_v54  ;;  %v11240_v54 = vld [vmem:[#allocation6 + $0x1b8] ss:$20 sps:$4 sm:$0xff]  }
 0x3b0   : > { %9938 = vmatpush3.bf16.msra.mxu1 %v2062_v57 }
 0x3b1   : > { %v2092_v4 = vpack.c.bf16 %v10903_v50, %v10902_v45  ;;  %v2084_v55 = vpack.c.bf16 %v10913_v31, %v10912_v51  ;;  %v11244_v50 = vld [vmem:[#allocation6 + $0x1e4] ss:$20 sps:$4 sm:$0xff]  }
 0x3b2   : > { %v10906_v9 = vpop.permute.xlu1 %10905  ;;  %v10916_v22 = vpop.permute.xlu0 %10915 }
 0x3b3   : > { %v10908_v36 = vunpack.i.h.bf16 %v10906_v9  ;;  %v10907_v20 = vunpack.i.l.bf16 %v10906_v9  ;;  %9989 = vmatprep.subr.bf16.mxu0 %v2092_v4  ;;  %v10918_v18 = vunpack.i.h.bf16 %v10916_v22  ;;  %v10917_v39 = vunpack.i.l.bf16 %v10916_v22  ;;  %2407 = vmatmul.mubr.bf16.vlgmr.msra.gmra.mxu1 %v11229_v0  ;;  %v11247_v22 = vld [vmem:[#allocation6 + $0x174] ss:$20 sps:$4 sm:$0xff]  }
 0x3b4   : > { %9990 = vmatpush3.bf16.msra.mxu0 %v2084_v55  ;;  %2414 = vmatprep.mubr.bf16.mxu1 %v11232_v62  ;;  %v11241_v62 = vld [vmem:[#allocation6 + $0x148] ss:$20 sps:$4 sm:$0xff]  }
 0x3b5   : > { %v2091_v26 = vpack.c.bf16 %v10908_v36, %v10907_v20  ;;  %v2083_v16 = vpack.c.bf16 %v10918_v18, %v10917_v39 }
 0x3b6   : > { %v10921_v17 = vpop.permute.xlu1 %10920  ;;  %v10926_v38 = vpop.permute.xlu0 %10925 }
 0x3b7   : > { %v10923_v30 = vunpack.i.h.bf16 %v10921_v17  ;;  %v10922_v33 = vunpack.i.l.bf16 %v10921_v17  ;;  %9991 = vmatprep.subr.bf16.mxu0 %v2091_v26  ;;  %v10928_v56 = vunpack.i.h.bf16 %v10926_v38  ;;  %v10927_v57 = vunpack.i.l.bf16 %v10926_v38  ;;  %v11250_v38 = vld [vmem:[#allocation6 + $0x20c] ss:$20 sps:$4 sm:$0xff]  }
 0x3b8   : > { %9992 = vmatpush3.bf16.msra.mxu0 %v2083_v16  ;;  %v11246_v16 = vld [vmem:[#allocation6 + $0x1e0] ss:$20 sps:$4 sm:$0xff]  }
 0x3b9   : > { %v2090_v1 = vpack.c.bf16 %v10923_v30, %v10922_v33  ;;  %v2082_v42 = vpack.c.bf16 %v10928_v56, %v10927_v57  ;;  %v11249_v30 = vld [vmem:[#allocation6 + $0x170] ss:$20 sps:$4 sm:$0xff]  }
 0x3ba   : > { %v10931_v3 = vpop.permute.xlu1 %10930  ;;  %v10936_v14 = vpop.permute.xlu0 %10935 }
 0x3bb   : > { %v10933_v10 = vunpack.i.h.bf16 %v10931_v3  ;;  %v10932_v49 = vunpack.i.l.bf16 %v10931_v3  ;;  %9993 = vmatprep.subr.bf16.mxu0 %v2090_v1  ;;  %v10938_v46 = vunpack.i.h.bf16 %v10936_v14  ;;  %v10937_v48 = vunpack.i.l.bf16 %v10936_v14  ;;  %2415 = vmatmul.mubr.bf16.gmra.mxu1 %v11234_v19  ;;  %v11253_v19 = vld [vmem:[#allocation6 + $0x19c] ss:$20 sps:$4 sm:$0xff]  }
 0x3bc   : > { %9994 = vmatpush3.bf16.msra.mxu0 %v2082_v42  ;;  %2422 = vmatprep.mubr.bf16.mxu1 %v11235_v28  ;;  %v11252_v14 = vld [vmem:[#allocation6 + $0x208] ss:$20 sps:$4 sm:$0xff]  }
 0x3bd   : > { %v2089_v23 = vpack.c.bf16 %v10933_v10, %v10932_v49  ;;  %v2081_v13 = vpack.c.bf16 %v10938_v46, %v10937_v48  ;;  %v11256_v49 = vld [vmem:[#allocation6 + $0x234] ss:$20 sps:$4 sm:$0xff]   ;;  %v11255_v46 = vld [vmem:[#allocation6 + $0x198] ss:$20 sps:$4 sm:$0xff]  }
 0x3be   : > { %v10941_v32 = vpop.permute.xlu1 %10940  ;;  %v10946_v63 = vpop.permute.xlu0 %10945 }
 0x3bf   : > { %v10943_v34 = vunpack.i.h.bf16 %v10941_v32  ;;  %v10942_v59 = vunpack.i.l.bf16 %v10941_v32  ;;  %9995 = vmatprep.subr.bf16.mxu0 %v2089_v23  ;;  %v10948_v47 = vunpack.i.h.bf16 %v10946_v63  ;;  %v10947_v41 = vunpack.i.l.bf16 %v10946_v63  ;;  %v11259_v32 = vld [vmem:[#allocation6 + $0x1c4] ss:$20 sps:$4 sm:$0xff]  }
 0x3c0   : > { %9996 = vmatpush3.bf16.msra.mxu0 %v2081_v13 }
 0x3c1   : > { %v2088_v60 = vpack.c.bf16 %v10943_v34, %v10942_v59  ;;  %v2080_v52 = vpack.c.bf16 %v10948_v47, %v10947_v41  ;;  %v11258_v41 = vld [vmem:[#allocation6 + $0x230] ss:$20 sps:$4 sm:$0xff]  }
 0x3c2   : > { %v10951_v24 = vpop.permute.xlu1 %10950  ;;  %v10956_v61 = vpop.permute.xlu0 %10955 }
 0x3c3   : > { %v10953_v58 = vunpack.i.h.bf16 %v10951_v24  ;;  %v10952_v15 = vunpack.i.l.bf16 %v10951_v24  ;;  %9997 = vmatprep.subr.bf16.mxu0 %v2088_v60  ;;  %v10958_v44 = vunpack.i.h.bf16 %v10956_v61  ;;  %v10957_v12 = vunpack.i.l.bf16 %v10956_v61  ;;  %2423 = vmatmul.mubr.bf16.gmra.mxu1 %v11237_v29  ;;  %v11262_v60 = vld [vmem:[#allocation6 + $0x25c] ss:$20 sps:$4 sm:$0xff]  }
 0x3c4   : > { %9998 = vmatpush3.bf16.msra.mxu0 %v2080_v52  ;;  %2430 = vmatprep.mubr.bf16.mxu1 %v11238_v27  ;;  %v11261_v27 = vld [vmem:[#allocation6 + $0x1c0] ss:$20 sps:$4 sm:$0xff]  }
 0x3c5   : > { %v2087_v37 = vpack.c.bf16 %v10953_v58, %v10952_v15  ;;  %v2079_v11 = vpack.c.bf16 %v10958_v44, %v10957_v12  ;;  %v11265_v58 = vld [vmem:[#allocation6 + $0x1ec] ss:$20 sps:$4 sm:$0xff]   ;;  %v11268_v12 = vld [vmem:[#allocation6 + $0x150] ss:$20 sps:$4 sm:$0xff]  }
 0x3c6   : > { %v10961_v8 = vpop.permute.xlu1 %10960  ;;  %v10966_v53 = vpop.permute.xlu0 %10965  ;;  %v11264_v44 = vld [vmem:[#allocation6 + $0x258] ss:$20 sps:$4 sm:$0xff]  }
 0x3c7   : > { %v10963_v6 = vunpack.i.h.bf16 %v10961_v8  ;;  %v10962_v43 = vunpack.i.l.bf16 %v10961_v8  ;;  %9999 = vmatprep.subr.bf16.mxu0 %v2087_v37  ;;  %v10968_v21 = vunpack.i.h.bf16 %v10966_v53  ;;  %v10967_v5 = vunpack.i.l.bf16 %v10966_v53  ;;  %v11267_v37 = vld [vmem:[#allocation6 + $0x1e8] ss:$20 sps:$4 sm:$0xff]   ;;  %v11269_v8 = vld [vmem:[#allocation6 + $0x178] ss:$20 sps:$4 sm:$0xff]   ;;  %v11273_v53 = vld [vmem:[#allocation6 + $0x1a0] ss:$20 sps:$4 sm:$0xff]  }
 0x3c8   : > { %10000 = vmatpush3.bf16.msra.mxu0 %v2079_v11  ;;  %v11270_v11 = vld [vmem:[#allocation6 + $0x214] ss:$20 sps:$4 sm:$0xff]  }
 0x3c9   : > { %v2086_v25 = vpack.c.bf16 %v10963_v6, %v10962_v43  ;;  %v2078_v45 = vpack.c.bf16 %v10968_v21, %v10967_v5  ;;  %v11272_v6 = vld [vmem:[#allocation6 + $0x210] ss:$20 sps:$4 sm:$0xff]   ;;  %v11274_v21 = vld [vmem:[#allocation6 + $0x1c8] ss:$20 sps:$4 sm:$0xff]  }
 0x3ca   : > { %v10971_v31 = vpop.permute.xlu1 %10970  ;;  %v10976_v51 = vpop.permute.xlu0 %10975  ;;  %v11275_v43 = vld [vmem:[#allocation6 + $0x23c] ss:$20 sps:$4 sm:$0xff]  }
 0x3cb   : > { %v10973_v0 = vunpack.i.h.bf16 %v10971_v31  ;;  %v10972_v4 = vunpack.i.l.bf16 %v10971_v31  ;;  %10001 = vmatprep.subr.bf16.mxu0 %v2086_v25  ;;  %v10978_v55 = vunpack.i.h.bf16 %v10976_v51  ;;  %v10977_v9 = vunpack.i.l.bf16 %v10976_v51  ;;  %2431 = vmatmul.mubr.bf16.gmra.mxu1 %v11240_v54  ;;  %v11278_v5 = vld [vmem:[#allocation6 + $0x1f0] ss:$20 sps:$4 sm:$0xff]   ;;  %v11277_v54 = vld [vmem:[#allocation6 + $0x238] ss:$20 sps:$4 sm:$0xff]   ;;  %v11282_v31 = vld [vmem:[#allocation6 + $0x260] ss:$20 sps:$4 sm:$0xff]  }
 0x3cc   : > { %10002 = vmatpush3.bf16.msra.mxu0 %v2078_v45  ;;  %2438 = vmatprep.mubr.bf16.mxu1 %v11244_v50  ;;  %v11280_v25 = vld [vmem:[#allocation6 + $0x264] ss:$20 sps:$4 sm:$0xff]   ;;  %v11283_v45 = vld [vmem:[#allocation6 + $0x240] ss:$20 sps:$4 sm:$0xff]   ;;  %v11284_v51 = vld [vmem:[#allocation6 + $0x268] ss:$20 sps:$4 sm:$0xff]  }
 0x3cd   : > { %v2101_v36 = vpack.c.bf16 %v10973_v0, %v10972_v4  ;;  %v2100_v18 = vpack.c.bf16 %v10978_v55, %v10977_v9  ;;  %v11279_v50 = vld [vmem:[#allocation6 + $0x218] ss:$20 sps:$4 sm:$0xff]  }
 0x3ce   : > { %v10981_v20 = vpop.permute.xlu1 %10980  ;;  %v10986_v17 = vpop.permute.xlu0 %10985 }
 0x3cf   : > { %2504 = vmatmul.mubr.bf16.vlgmr.msra.gmra.mxu0 %v11241_v62  ;;  %10324 = vmatprep.subr.bf16.mxu1 %v2101_v36  ;;  %v10983_v39 = vunpack.i.h.bf16 %v10981_v20  ;;  %v10982_v26 = vunpack.i.l.bf16 %v10981_v20  ;;  %v10988_v33 = vunpack.i.h.bf16 %v10986_v17  ;;  %v10987_v56 = vunpack.i.l.bf16 %v10986_v17 }
 0x3d0   : > { %10325 = vmatpush3.bf16.msra.mxu1 %v2101_v36  ;;  %2511 = vmatprep.mubr.bf16.mxu0 %v11247_v22 }
 0x3d1   : > { %10326 = vmatprep.subr.bf16.mxu1 %v2100_v18  ;;  %v2099_v57 = vpack.c.bf16 %v10983_v39, %v10982_v26  ;;  %v2098_v28 = vpack.c.bf16 %v10988_v33, %v10987_v56 }
 0x3d2   : > { %v10991_v1 = vpop.permute.xlu1 %10990  ;;  %v10996_v10 = vpop.permute.xlu0 %10995 }
 0x3d3   : > { %2439 = vmatmul.mubr.bf16.gmra.mxu1 %v11246_v16  ;;  %v10993_v42 = vunpack.i.h.bf16 %v10991_v1  ;;  %v10992_v3 = vunpack.i.l.bf16 %v10991_v1  ;;  %v10998_v48 = vunpack.i.h.bf16 %v10996_v10  ;;  %v10997_v23 = vunpack.i.l.bf16 %v10996_v10 }
 0x3d4   : > { %10327 = vmatpush3.bf16.msra.mxu1 %v2100_v18  ;;  %2446 = vmatprep.mubr.bf16.mxu1 %v11250_v38 }
 0x3d5   : > { %10328 = vmatprep.subr.bf16.mxu1 %v2099_v57  ;;  %v2097_v13 = vpack.c.bf16 %v10993_v42, %v10992_v3  ;;  %v2096_v34 = vpack.c.bf16 %v10998_v48, %v10997_v23 }
 0x3d6   : > { %v11001_v63 = vpop.permute.xlu1 %11000  ;;  %v11006_v29 = vpop.permute.xlu0 %11005 }
 0x3d7   : > { %2512 = vmatmul.mubr.bf16.gmra.mxu0 %v11249_v30  ;;  %v11003_v59 = vunpack.i.h.bf16 %v11001_v63  ;;  %v11002_v47 = vunpack.i.l.bf16 %v11001_v63  ;;  %v11008_v52 = vunpack.i.h.bf16 %v11006_v29  ;;  %v11007_v24 = vunpack.i.l.bf16 %v11006_v29 }
 0x3d8   : > { %2519 = vmatprep.mubr.bf16.mxu0 %v11253_v19  ;;  %10329 = vmatpush3.bf16.msra.mxu1 %v2099_v57 }
 0x3d9   : > { %10330 = vmatprep.subr.bf16.mxu1 %v2098_v28  ;;  %v2095_v61 = vpack.c.bf16 %v11003_v59, %v11002_v47  ;;  %v2094_v15 = vpack.c.bf16 %v11008_v52, %v11007_v24 }
 0x3db   : > { %2447 = vmatmul.mubr.bf16.gmra.mxu1 %v11252_v14 }
 0x3dc   : > { %10331 = vmatpush3.bf16.msra.mxu1 %v2098_v28  ;;  %2454 = vmatprep.mubr.bf16.mxu1 %v11256_v49 }
 0x3dd   : > { %10332 = vmatprep.subr.bf16.mxu1 %v2097_v13 }
 0x3df   : > { %2520 = vmatmul.mubr.bf16.gmra.mxu0 %v11255_v46 }
 0x3e0   : > { %2527 = vmatprep.mubr.bf16.mxu0 %v11259_v32  ;;  %10333 = vmatpush3.bf16.msra.mxu1 %v2097_v13 }
 0x3e1   : > { %10334 = vmatprep.subr.bf16.mxu1 %v2096_v34 }
 0x3e3   : > { %2455 = vmatmul.mubr.bf16.gmra.mxu1 %v11258_v41  ;;  %v13526_v0 = vpop.permute.xlu1 %2159  ;;  %v13530_v62 = vpop.permute.xlu0 %2163 }
 0x3e4   : > { %10335 = vmatpush3.bf16.msra.mxu1 %v2096_v34  ;;  %2462 = vmatprep.mubr.bf16.mxu1 %v11262_v60 }
 0x3e5   : > { %10336 = vmatprep.subr.bf16.mxu1 %v2095_v61 }
 0x3e7   : > { %2528 = vmatmul.mubr.bf16.gmra.mxu0 %v11261_v27  ;;  %v13528_v4 = vpop.permute.xlu1 %2151  ;;  %v13534_v9 = vpop.permute.xlu0 %2143 }
 0x3e8   : > { %2535 = vmatprep.mubr.bf16.mxu0 %v11265_v58  ;;  %10337 = vmatpush3.bf16.msra.mxu1 %v2095_v61 }
 0x3e9   : > { %10338 = vmatprep.subr.bf16.mxu1 %v2094_v15 }
 0x3eb   : > { %2463 = vmatmul.mubr.bf16.gmra.mxu1 %v11264_v44  ;;  %v13532_v55 = vpop.permute.xlu1 %2155  ;;  %v13538_v18 = vpop.permute.xlu0 %2135 }
 0x3ec   : > { %10339 = vmatpush3.bf16.msra.mxu1 %v2094_v15  ;;  %10340 = vmatprep.mubr.bf16.mxu1 %v11268_v12 }
 0x3ef   : > { %2536 = vmatmul.mubr.bf16.gmra.mxu0 %v11267_v37  ;;  %v13536_v36 = vpop.permute.xlu1 %2147  ;;  %v13542_v30 = vpop.permute.xlu0 %2127 }
 0x3f0   : > { %2543 = vmatprep.mubr.bf16.mxu0 %v11270_v11 }
 0x3f3   : > { %10341 = vmatmul.mubr.bf16.vlgmr.msra.gmra.mxu1 %v11269_v8  ;;  %v13540_v17 = vpop.permute.xlu1 %2139  ;;  %v13546_v28 = vpop.permute.xlu0 %2119 }
 0x3f4   : > { %10344 = vmatprep.mubr.bf16.mxu1 %v11273_v53 }
 0x3f7   : > { %2544 = vmatmul.mubr.bf16.gmra.mxu0 %v11272_v6  ;;  %v13544_v19 = vpop.permute.xlu1 %2131  ;;  %v2112_v46 = vpop.permute.xlu0 %2111 }
 0x3f8   : > { %2551 = vmatprep.mubr.bf16.mxu0 %v11275_v43  ;;  %16594 = vst [vmem:[#allocation28_spill] sm:$0xff] %v13544_v19 }
 0x3fb   : > { %10345 = vmatmul.mubr.bf16.gmra.mxu1 %v11274_v21  ;;  %v13548_v14 = vpop.permute.xlu1 %2123  ;;  %v2104_v63 = vpop.permute.xlu0 %2103 }
 0x3fc   : > { %10348 = vmatprep.mubr.bf16.mxu1 %v11278_v5  ;;  %16595 = vst [vmem:[#allocation37_spill] sm:$0xff] %v13548_v14 }
 0x3ff   : > { %2552 = vmatmul.mubr.bf16.gmra.mxu0 %v11277_v54  ;;  %v2116_v13 = vpop.permute.xlu1 %2115 }
 0x400   : > { %2559 = vmatprep.mubr.bf16.mxu0 %v11280_v25 }
 0x403   : > { %10349 = vmatmul.mubr.bf16.gmra.mxu1 %v11279_v50  ;;  %v2108_v24 = vpop.permute.xlu1 %2107 }
 0x404   : > { %10352 = vmatprep.mubr.bf16.mxu1 %v11283_v45 }
 0x407   : > { %2560 = vmatmul.mubr.bf16.gmra.mxu0 %v11282_v31 }
 0x40b   : > { %10353 = vmatmul.mubr.bf16.gmra.mxu1 %v11284_v51 }
 0x473   : > { %v9939_v22 = vpop.f32.mrf.mxu1 }
 0x475   : > { %v9940_v20 = vpop.f32.mrf.mxu1 }
 0x476   : > { %v9941_v39 = vadd.f32 %v9940_v20, %v9939_v22 }
 0x477   : > { %v9942_v26 = vpop.f32.mrf.mxu1 }
 0x478   : > { %v2409_v29 = vadd.f32 %v9941_v39, %v2104_v63 }
 0x479   : > { %v9943_v16 = vpop.f32.mrf.mxu1 }
 0x47a   : > { %v9944_v60 = vadd.f32 %v9943_v16, %v9942_v26 }
 0x47b   : > { %v9945_v38 = vpop.f32.mrf.mxu1 }
 0x47c   : > { %v2412_v12 = vadd.f32 %v9944_v60, %v2108_v24 }
 0x47d   : > { %v9946_v33 = vpop.f32.mrf.mxu1 }
 0x47e   : > { %v9947_v56 = vadd.f32 %v9946_v33, %v9945_v38 }
 0x47f   : > { %v9948_v57 = vpop.f32.mrf.mxu1 }
 0x480   : > { %v2417_v21 = vadd.f32 %v9947_v56, %v2112_v46 }
 0x481   : > { %v9949_v1 = vpop.f32.mrf.mxu1 }
 0x482   : > { %v9950_v5 = vadd.f32 %v9949_v1, %v9948_v57 }
 0x483   : > { %v9951_v42 = vpop.f32.mrf.mxu1 }
 0x484   : > { %v2420_v22 = vadd.f32 %v9950_v5, %v2116_v13 }
 0x485   : > { %v9952_v3 = vpop.f32.mrf.mxu1 }
 0x486   : > { %v13550_v10 = vadd.f32 %v9952_v3, %v9951_v42 }
 0x487   : > { %v13552_v49 = vpop.f32.mrf.mxu1 }
 0x488   : > { %16596 = vst [vmem:[#allocation38_spill] sm:$0xff] %v13552_v49 }
 0x489   : > { %v13554_v48 = vpop.f32.mrf.mxu1 }
 0x48a   : > { %16597 = vst [vmem:[#allocation29_spill] sm:$0xff] %v13554_v48 }
 0x48b   : > { %v9957_v23 = vpop.f32.mrf.mxu1 }
 0x48d   : > { %v9958_v32 = vpop.f32.mrf.mxu1 }
 0x48e   : > { %v13556_v34 = vadd.f32 %v9958_v32, %v9957_v23 }
 0x48f   : > { %v10003_v59 = vpop.f32.mrf.mxu0  ;;  %v13558_v47 = vpop.f32.mrf.mxu1 }
 0x491   : > { %v10004_v41 = vpop.f32.mrf.mxu0  ;;  %v13560_v27 = vpop.f32.mrf.mxu1 }
 0x492   : > { %v10005_v52 = vadd.f32 %v10004_v41, %v10003_v59 }
 0x493   : > { %v10006_v61 = vpop.f32.mrf.mxu0  ;;  %v13562_v58 = vpop.f32.mrf.mxu1 }
 0x494   : > { %v13564_v15 = vadd.f32 %v10005_v52, %v2409_v29 }
 0x495   : > { %v10007_v44 = vpop.f32.mrf.mxu0  ;;  %v13566_v37 = vpop.f32.mrf.mxu1 }
 0x496   : > { %16598 = vst [vmem:[#allocation30_spill] sm:$0xff] %v13564_v15  ;;  %v10008_v11 = vadd.f32 %v10007_v44, %v10006_v61 }
 0x497   : > { %v10009_v8 = vpop.f32.mrf.mxu0  ;;  %v13568_v53 = vpop.f32.mrf.mxu1 }
 0x498   : > { %v13570_v6 = vadd.f32 %v10008_v11, %v2412_v12 }
 0x499   : > { %v10010_v43 = vpop.f32.mrf.mxu0  ;;  %v13572_v54 = vpop.f32.mrf.mxu1 }
 0x49a   : > { %16599 = vst [vmem:[#allocation26_spill] sm:$0xff] %v13570_v6  ;;  %v10011_v25 = vadd.f32 %v10010_v43, %v10009_v8 }
 0x49b   : > { %v10012_v50 = vpop.f32.mrf.mxu0  ;;  %v9969_v45 = vpop.f32.mrf.mxu1 }
 0x49c   : > { %v13574_v31 = vadd.f32 %v10011_v25, %v2417_v21 }
 0x49d   : > { %v10013_v51 = vpop.f32.mrf.mxu0  ;;  %v9970_v20 = vpop.f32.mrf.mxu1 }
 0x49e   : > { %16600 = vst [vmem:[#allocation43_spill] sm:$0xff] %v13574_v31  ;;  %v10014_v39 = vadd.f32 %v10013_v51, %v10012_v50  ;;  %v9971_v14 = vadd.f32 %v9970_v20, %v9969_v45 }
 0x49f   : > { %v13576_v26 = vpop.f32.mrf.mxu0  ;;  %v13578_v16 = vpop.f32.mrf.mxu1 }
 0x4a0   : > { %v13580_v38 = vadd.f32 %v10014_v39, %v2420_v22 }
 0x4a1   : > { %v13582_v33 = vpop.f32.mrf.mxu0  ;;  %v9973_v56 = vpop.f32.mrf.mxu1 }
 0x4a2   : > { %16601 = vst [vmem:[#allocation35_spill] sm:$0xff] %v13580_v38 }
 0x4a3   : > { %v13584_v57 = vpop.f32.mrf.mxu0  ;;  %v9975_v1 = vpop.f32.mrf.mxu1 }
 0x4a4   : > { %16602 = vst [vmem:[#allocation36_spill] sm:$0xff] %v13584_v57 }
 0x4a5   : > { %v13586_v42 = vpop.f32.mrf.mxu0  ;;  %v9976_v3 = vpop.f32.mrf.mxu1 }
 0x4a6   : > { %16603 = vst [vmem:[#allocation27_spill] sm:$0xff] %v13586_v42 }
 0x4a7   : > { %v13588_v46 = vpop.f32.mrf.mxu0  ;;  %v9978_v23 = vpop.f32.mrf.mxu1 }
 0x4a9   : > { %v13590_v13 = vpop.f32.mrf.mxu0  ;;  %v9979_v32 = vpop.f32.mrf.mxu1 }
 0x4ab   : > { %v13592_v63 = vpop.f32.mrf.mxu0  ;;  %v9981_v59 = vpop.f32.mrf.mxu1 }
 0x4ad   : > { %v13594_v41 = vpop.f32.mrf.mxu0  ;;  %v9982_v29 = vpop.f32.mrf.mxu1 }
 0x4ae   : > { %16604 = vst [vmem:[#allocation44_spill] sm:$0xff] %v13594_v41  ;;  %v9983_v15 = vadd.f32 %v9982_v29, %v9981_v59  ;;  %v2433_v59 = vadd.f32 %v13556_v34, %v13542_v30 }
 0x4af   : > { %v10027_v60 = vpop.f32.mrf.mxu0  ;;  %v9984_v52 = vpop.f32.mrf.mxu1 }
 0x4b1   : > { %v10028_v24 = vpop.f32.mrf.mxu0  ;;  %v9985_v61 = vpop.f32.mrf.mxu1 }
 0x4b2   : > { %v10029_v30 = vadd.f32 %v10028_v24, %v10027_v60 }
 0x4b3   : > { %v13596_v44 = vpop.f32.mrf.mxu0  ;;  %v13598_v12 = vpop.f32.mrf.mxu1 }
 0x4b4   : > { %16605 = vst [vmem:[#allocation45_spill] sm:$0xff] %v13598_v12  ;;  %v9977_v12 = vadd.f32 %v9976_v3, %v9975_v1 }
 0x4b5   : > { %v13600_v11 = vpop.f32.mrf.mxu0  ;;  %v13602_v8 = vpop.f32.mrf.mxu1 }
 0x4b6   : > { %16606 = vst [vmem:[#allocation33_spill] sm:$0xff] %v13602_v8 }
 0x4b7   : > { %v10033_v43 = vpop.f32.mrf.mxu0  ;;  %v13604_v21 = vpop.f32.mrf.mxu1 }
 0x4b8   : > { %16607 = vst [vmem:[#allocation39_spill] sm:$0xff] %v13604_v21 }
 0x4b9   : > { %v10034_v5 = vpop.f32.mrf.mxu0  ;;  %v13606_v25 = vpop.f32.mrf.mxu1 }
 0x4ba   : > { %16608 = vst [vmem:[#allocation46_spill] sm:$0xff] %v13606_v25  ;;  %v10035_v49 = vadd.f32 %v10034_v5, %v10033_v43 }
 0x4bb   : > { %v10036_v50 = vpop.f32.mrf.mxu0  ;;  %v13608_v51 = vpop.f32.mrf.mxu1 }
 0x4bc   : > { %16609 = vst [vmem:[#allocation31_spill] sm:$0xff] %v13608_v51  ;;  %v2465_v51 = vadd.f32 %v9983_v15, %v13526_v0 }
 0x4bd   : > { %v10037_v22 = vpop.f32.mrf.mxu0  ;;  %v13610_v39 = vpop.f32.mrf.mxu1 }
 0x4be   : > { %16610 = vst [vmem:[#allocation40_spill] sm:$0xff] %v13610_v39  ;;  %v9986_v39 = vadd.f32 %v9985_v61, %v9984_v52  ;;  %v10038_v29 = vadd.f32 %v10037_v22, %v10036_v50 }
 0x4bf   : > { %v10039_v35 = vpop.f32.mrf.mxu0  ;;  %v13612_v2 = vpop.f32.mrf.mxu1 }
 0x4c0   : > { %16611 = vst [vmem:[#allocation34_spill] sm:$0xff] %v13612_v2  ;;  %v2457_v2 = vadd.f32 %v9977_v12, %v13528_v4  ;;  %v2468_v4 = vadd.f32 %v9986_v39, %v13530_v62 }
 0x4c1   : > { %v10040_v7 = vpop.f32.mrf.mxu0  ;;  %v13614_v40 = vpop.f32.mrf.mxu1 }
 0x4c2   : > { %16612 = vst [vmem:[#allocation41_spill] sm:$0xff] %v13614_v40  ;;  %v10041_v42 = vadd.f32 %v10040_v7, %v10039_v35  ;;  %v9980_v40 = vadd.f32 %v9979_v32, %v9978_v23  ;;  %v9965_v7 = vadd.f32 %v13566_v37, %v13562_v58  ;;  %v2449_v35 = vadd.f32 %v9971_v14, %v13534_v9 }
 0x4c3   : > { %v10042_v6 = vpop.f32.mrf.mxu0  ;;  %v10350_v38 = vpop.f32.mrf.mxu1 }
 0x4c4   : > { %v2554_v45 = vadd.f32 %v10041_v42, %v2457_v2  ;;  %v2460_v32 = vadd.f32 %v9980_v40, %v13532_v55  ;;  %v2441_v14 = vadd.f32 %v9965_v7, %v13538_v18  ;;  %v9968_v2 = vadd.f32 %v13572_v54, %v13568_v53 }
 0x4c5   : > { %v10043_v8 = vpop.f32.mrf.mxu0  ;;  %v2634_v21 = vpop.f32.mrf.mxu1  ;;  %v10032_v18 = vadd.f32 %v13600_v11, %v13596_v44  ;;  %v16614_v11 = vld [vmem:[#allocation38_spill] sm:$0xff] }
 0x4c6   : > { %v10044_v0 = vadd.f32 %v10043_v8, %v10042_v6  ;;  %v10017_v8 = vadd.f32 %v13582_v33, %v13576_v26  ;;  %v16617_v26 = vld [vmem:[#allocation31_spill] sm:$0xff] }
 0x4c7   : > { %v10045_v31 = vpop.f32.mrf.mxu0  ;;  %v10351_v25 = vpop.f32.mrf.mxu1 }
 0x4c8   : > { %v2557_v62 = vadd.f32 %v10044_v0, %v2460_v32 }
 0x4c9   : > { %v10046_v57 = vpop.f32.mrf.mxu0  ;;  %v13617_v48 = vpop.f32.mrf.mxu1 }
 0x4ca   : > { %v10047_v19 = vadd.f32 %v10046_v57, %v10045_v31  ;;  %v9974_v31 = vadd.f32 %v9973_v56, %v13578_v16 }
 0x4cb   : > { %v10048_v41 = vpop.f32.mrf.mxu0  ;;  %v10354_v3 = vpop.f32.mrf.mxu1 }
 0x4cc   : > { %v2562_v1 = vadd.f32 %v10047_v19, %v2465_v51  ;;  %v2546_v19 = vadd.f32 %v10035_v49, %v2449_v35  ;;  %v2452_v16 = vadd.f32 %v9974_v31, %v13536_v36  ;;  %v10023_v49 = vadd.f32 %v13590_v13, %v13588_v46  ;;  %v16620_v35 = vld [vmem:[#allocation37_spill] sm:$0xff] }
 0x4cd   : > { %v10049_v15 = vpop.f32.mrf.mxu0  ;;  %v2650_v23 = vpop.f32.mrf.mxu1  ;;  %v9962_v36 = vadd.f32 %v13560_v27, %v13558_v47  ;;  %v2425_v47 = vadd.f32 %v13550_v10, %v13546_v28  ;;  %v16618_v28 = vld [vmem:[#allocation36_spill] sm:$0xff]  ;;  %v16619_v10 = vld [vmem:[#allocation27_spill] sm:$0xff] }
 0x4ce   : > { %v2659_v20 = vadd.f32 %v10354_v3, %v2562_v1  ;;  %v10050_v57 = vadd.f32 %v10049_v15, %v10048_v41  ;;  %v2651_v34 = vadd.f32 %v2650_v23, %v2554_v45  ;;  %v2643_v6 = vadd.f32 %v10350_v38, %v2546_v19  ;;  %v16621_v45 = vld [vmem:[#allocation40_spill] sm:$0xff]  ;;  %v16624_v19 = vld [vmem:[#allocation45_spill] sm:$0xff] }
 0x4cf   : > { %v10355_v9 = vpop.f32.mrf.mxu1  ;;  %v2538_v41 = vadd.f32 %v10029_v30, %v2441_v14  ;;  %v2549_v53 = vadd.f32 %v10038_v29, %v2452_v16  ;;  %v2444_v38 = vadd.f32 %v9968_v2, %v13540_v17  ;;  %v2530_v43 = vadd.f32 %v10023_v49, %v2433_v59  ;;  %v16613_v17 = vld [vmem:[#allocation44_spill] sm:$0xff]  ;;  %v16623_v30 = vld [vmem:[#allocation43_spill] sm:$0xff]  ;;  %v16627_v16 = vld [vmem:[#allocation33_spill] sm:$0xff] }
 0x4d0   : > { %vm2679_vm4 = vcmp.gt.f32.partialorder %v2659_v20, 0.0  ;;  %v2695_v58 = vmul.f32 0.1, %v2659_v20  ;;  %v2565_v37 = vadd.f32 %v10050_v57, %v2468_v4  ;;  %v2693_v56 = vmul.f32 0.1, %v2651_v34  ;;  %v16622_v4 = vld [vmem:[#allocation34_spill] sm:$0xff] }
 0x4d1   : > { %v2653_v40 = vpop.f32.mrf.mxu1  ;;  %vm2677_vm5 = vcmp.gt.f32.partialorder %v2651_v34, 0.0  ;;  %v2691_v52 = vmul.f32 0.1, %v2643_v6  ;;  %v2635_v24 = vadd.f32 %v2634_v21, %v2538_v41  ;;  %v2646_v61 = vadd.f32 %v10351_v25, %v2549_v53  ;;  %v16615_v21 = vld [vmem:[#allocation29_spill] sm:$0xff]  ;;  %v16616_v25 = vld [vmem:[#allocation28_spill] sm:$0xff] }
 0x4d2   : > { %v2662_v42 = vadd.f32 %v10355_v9, %v2565_v37  ;;  %v2711_v55 = vsel %vm2679_vm4, %v2659_v20, %v2695_v58  ;;  %v2654_v60 = vadd.f32 %v2653_v40, %v2557_v62  ;;  %v2709_v12 = vsel %vm2677_vm5, %v2651_v34, %v2693_v56  ;;  %v16625_v37 = vld [vmem:[#allocation41_spill] sm:$0xff]  ;;  %v16626_v62 = vld [vmem:[#allocation30_spill] sm:$0xff]  ;;  %v16629_v40 = vld [vmem:[#allocation39_spill] sm:$0xff] }
 0x4d3   : > { %2757 = vrot.lane.b32.xlu0 %v2711_v55, %s12479_s26  ;;  %vm2675_vm7 = vcmp.gt.f32.partialorder %v2643_v6, 0.0  ;;  %v10026_v27 = vadd.f32 %v16613_v17, %v13592_v63  ;;  %v2541_v44 = vadd.f32 %v10032_v18, %v2444_v38  ;;  %v9956_v5 = vadd.f32 %v16615_v21, %v16614_v11 }
 0x4d4   : > { %vm2680_vm6 = vcmp.gt.f32.partialorder %v2662_v42, 0.0  ;;  %v2696_v54 = vmul.f32 0.1, %v2662_v42  ;;  %v2694_v46 = vmul.f32 0.1, %v2654_v60  ;;  %vm2678_vm8 = vcmp.gt.f32.partialorder %v2654_v60, 0.0 }
 0x4d5   : > { %v2436_v50 = vadd.f32 %v9962_v36, %v16616_v25  ;;  %v2627_v33 = vadd.f32 %v16617_v26, %v2530_v43  ;;  %v2689_v51 = vmul.f32 0.1, %v2635_v24  ;;  %v2692_v22 = vmul.f32 0.1, %v2646_v61  ;;  %v16631_v36 = vld [vmem:[#allocation46_spill] sm:$0xff] }
 0x4d6   : > { %v2712_v13 = vsel %vm2680_vm6, %v2662_v42, %v2696_v54  ;;  %v2638_v39 = vadd.f32 %v13617_v48, %v2541_v44  ;;  %v2710_v59 = vsel %vm2678_vm8, %v2654_v60, %v2694_v46  ;;  %v2707_v1 = vsel %vm2675_vm7, %v2643_v6, %v2691_v52  ;;  %v16628_v42 = vld [vmem:[#allocation35_spill] sm:$0xff]  ;;  %v16630_v54 = vld [vmem:[#allocation26_spill] sm:$0xff] }
 0x4d7   : > { %2759 = vrot.lane.b32.xlu1 %v2712_v13, %s12479_s26  ;;  %2753 = vrot.lane.b32.xlu0 %v2709_v12, %s12479_s26  ;;  %v2522_v3 = vadd.f32 %v10017_v8, %v2425_v47  ;;  %vm2673_vm9 = vcmp.gt.f32.partialorder %v2635_v24, 0.0  ;;  %vm2676_vm10 = vcmp.gt.f32.partialorder %v2646_v61, 0.0  ;;  %v10020_v63 = vadd.f32 %v16619_v10, %v16618_v28 }
 0x4d8   : > { %v2533_v7 = vadd.f32 %v10026_v27, %v2436_v50  ;;  %v2428_v0 = vadd.f32 %v9956_v5, %v16620_v35  ;;  %v2687_v15 = vmul.f32 0.1, %v2627_v33  ;;  %v2690_v20 = vmul.f32 0.1, %v2638_v39  ;;  %v16632_v5 = vld [vmem:[#allocation22_spill] sm:$0xff] }
 0x4d9   : > { %v2619_v31 = vadd.f32 %v16621_v45, %v2522_v3  ;;  %v2708_v57 = vsel %vm2676_vm10, %v2646_v61, %v2692_v22  ;;  %v2705_v23 = vsel %vm2673_vm9, %v2635_v24, %v2689_v51  ;;  %vm2671_vm11 = vcmp.gt.f32.partialorder %v2627_v33, 0.0 }
 0x4da   : > { %v2630_v48 = vadd.f32 %v16622_v4, %v2533_v7  ;;  %vm2674_vm12 = vcmp.gt.f32.partialorder %v2638_v39, 0.0  ;;  %v2525_v32 = vadd.f32 %v10020_v63, %v2428_v0  ;;  %v2611_v34 = vadd.f32 %v16624_v19, %v16623_v30 }
 0x4db   : > { %2755 = vrot.lane.b32.xlu1 %v2710_v59, %s12479_s26  ;;  %2749 = vrot.lane.b32.xlu0 %v2707_v1, %s12479_s26  ;;  %v2685_v29 = vmul.f32 0.1, %v2619_v31  ;;  %v2706_v14 = vsel %vm2674_vm12, %v2638_v39, %v2690_v20  ;;  %v2703_v2 = vsel %vm2671_vm11, %v2627_v33, %v2687_v15  ;;  %vm2669_vm13 = vcmp.gt.f32.partialorder %v2619_v31, 0.0 }
 0x4dc   : > { %v2688_v58 = vmul.f32 0.1, %v2630_v48  ;;  %v2622_v9 = vadd.f32 %v16625_v37, %v2525_v32  ;;  %vm2672_vm14 = vcmp.gt.f32.partialorder %v2630_v48, 0.0  ;;  %v2683_v6 = vmul.f32 0.1, %v2611_v34 }
 0x4dd   : > { %v2603_v56 = vadd.f32 %v16627_v16, %v16626_v62  ;;  %v2614_v55 = vadd.f32 %v16629_v40, %v16628_v42  ;;  %v2701_v60 = vsel %vm2669_vm13, %v2619_v31, %v2685_v29  ;;  %vm2667_vm15 = vcmp.gt.f32.partialorder %v2611_v34, 0.0 }
 0x4de   : > { %v2686_v49 = vmul.f32 0.1, %v2622_v9  ;;  %v2704_v41 = vsel %vm2672_vm14, %v2630_v48, %v2688_v58  ;;  %vm2670_vm2 = vcmp.gt.f32.partialorder %v2622_v9, 0.0  ;;  %v2606_v38 = vadd.f32 %v16631_v36, %v16630_v54 }
 0x4df   : > { %2751 = vrot.lane.b32.xlu1 %v2708_v57, %s12479_s26  ;;  %2745 = vrot.lane.b32.xlu0 %v2705_v23, %s12479_s26  ;;  %v2681_v18 = vmul.f32 0.1, %v2603_v56  ;;  %v2684_v53 = vmul.f32 0.1, %v2614_v55  ;;  %v2699_v24 = vsel %vm2667_vm15, %v2611_v34, %v2683_v6  ;;  %vm2665_vm3 = vcmp.gt.f32.partialorder %v2603_v56, 0.0 }
 0x4e0   : > { %v2702_v52 = vsel %vm2670_vm2, %v2622_v9, %v2686_v49  ;;  %vm2668_vm4 = vcmp.gt.f32.partialorder %v2614_v55, 0.0  ;;  %v2682_v61 = vmul.f32 0.1, %v2606_v38  ;;  %vm2666_vm5 = vcmp.gt.f32.partialorder %v2606_v38, 0.0 }
 0x4e1   : > { %v2700_v46 = vsel %vm2668_vm4, %v2614_v55, %v2684_v53  ;;  %v2697_v13 = vsel %vm2665_vm3, %v2603_v56, %v2681_v18  ;;  %vm4063_vm6 = vcmask 261120  }
 0x4e2   : > { %v2698_v12 = vsel %vm2666_vm5, %v2606_v38, %v2682_v61 }
 0x4e3   : > { %2747 = vrot.lane.b32.xlu1 %v2706_v14, %s12479_s26  ;;  %2741 = vrot.lane.b32.xlu0 %v2703_v2, %s12479_s26 }
 0x4e7   : > { %2743 = vrot.lane.b32.xlu1 %v2704_v41, %s12479_s26  ;;  %2737 = vrot.lane.b32.xlu0 %v2701_v60, %s12479_s26 }
 0x4eb   : > { %2739 = vrot.lane.b32.xlu1 %v2702_v52, %s12479_s26  ;;  %2733 = vrot.lane.b32.xlu0 %v2699_v24, %s12479_s26 }
 0x4ef   : > { %2735 = vrot.lane.b32.xlu1 %v2700_v46, %s12479_s26  ;;  %2729 = vrot.lane.b32.xlu0 %v2697_v13, %s12479_s26  ;;  %v16633_v46 = vld [vmem:[#allocation23_spill] sm:$0xff] }
 0x4f3   : > { %2731 = vrot.lane.b32.xlu1 %v2698_v12, %s12479_s26 }
 0x545   : > { %v2758_v8 = vpop.permute.xlu0 %2757 }
 0x546   : > { %v2791_v43 = vsel %vm465_vm0, 0.0, %v2758_v8 }
 0x547   : > { %v13682_v27 = vsel %vm482_vm1, %v2791_v43, 0.0 }
 0x548   : > { %v2839_v50 = vmul.f32 %v13682_v27, %v16632_v5 }
 0x549   : > { %v2760_v47 = vpop.permute.xlu1 %2759  ;;  %v2754_v17 = vpop.permute.xlu0 %2753 }
 0x54a   : > { %v2792_v44 = vsel %vm465_vm0, 0.0, %v2760_v47  ;;  %v2789_v21 = vsel %vm465_vm0, 0.0, %v2754_v17  ;;  %v12162_v17 = vld [vmem:[#allocation14 + $0x60] ss:$0 sm:$0xff] }
 0x54b   : > { %v13686_v11 = vsel %vm482_vm1, %v2792_v44, 0.0  ;;  %v13694_v51 = vsel %vm482_vm1, %v2789_v21, 0.0  ;;  %v13773_v44 = vmul.f32 %v12162_v17, %v13682_v27  ;;  %v2871_v21 = vmul.f32 %v13682_v27, %v16633_v46 }
 0x54c   : > { %v2840_v25 = vmul.f32 %v13686_v11, %v16632_v5  ;;  %v2837_v28 = vmul.f32 %v13694_v51, %v16632_v5  ;;  %v2872_v13 = vmul.f32 %v13686_v11, %v16633_v46 }
 0x54d   : > { %v2756_v26 = vpop.permute.xlu1 %2755  ;;  %v2750_v33 = vpop.permute.xlu0 %2749 }
 0x54e   : > { %v2790_v22 = vsel %vm465_vm0, 0.0, %v2756_v26  ;;  %v2787_v59 = vsel %vm465_vm0, 0.0, %v2750_v33  ;;  %v11011_v1 = vpack.i.bf16 %v2840_v25, %v2839_v50  ;;  %v16634_v25 = vld [vmem:[#allocation24_spill] sm:$0xff] }
 0x54f   : > { %v13698_v39 = vsel %vm482_vm1, %v2790_v22, 0.0  ;;  %v13707_v7 = vsel %vm482_vm1, %v2787_v59, 0.0  ;;  %v2856_v50 = vmul.f32 %v13686_v11, %v16634_v25  ;;  %v11287_v22 = vld [vmem:[#allocation6 + $0x284] ss:$20 sps:$4 sm:$0xff]   ;;  %v2855_v59 = vmul.f32 %v13682_v27, %v16634_v25 }
 0x550   : > { %v2838_v3 = vmul.f32 %v13698_v39, %v16632_v5  ;;  %11012 = vrot.lane.b32.xlu0 %v11011_v1, %s12483_s21  ;;  %v2835_v4 = vmul.f32 %v13707_v7, %v16632_v5  ;;  %v13786_v1 = vmul.f32 %v12162_v17, %v13686_v11  ;;  %3537 = vmatprep.mubr.bf16.mxu0 %v11287_v22 }
 0x551   : > { %v2752_v10 = vpop.permute.xlu1 %2751  ;;  %v2746_v63 = vpop.permute.xlu0 %2745 }
 0x552   : > { %v2788_v35 = vsel %vm465_vm0, 0.0, %v2752_v10  ;;  %v2785_v15 = vsel %vm465_vm0, 0.0, %v2746_v63  ;;  %v11016_v45 = vpack.i.bf16 %v2838_v3, %v2837_v28  ;;  %v16635_v10 = vld [vmem:[#allocation25_spill] sm:$0xff] }
 0x553   : > { %v13711_v0 = vsel %vm482_vm1, %v2788_v35, 0.0  ;;  %v13720_v57 = vsel %vm482_vm1, %v2785_v15, 0.0  ;;  %v2888_v63 = vmul.f32 %v13686_v11, %v16635_v10  ;;  %v13792_v35 = vmul.f32 %v12162_v17, %v13694_v51 }
 0x554   : > { %v2836_v31 = vmul.f32 %v13711_v0, %v16632_v5  ;;  %11017 = vrot.lane.b32.xlu1 %v11016_v45, %s12483_s21  ;;  %v2833_v29 = vmul.f32 %v13720_v57, %v16632_v5  ;;  %v11051_v45 = vpack.i.bf16 %v2872_v13, %v2871_v21  ;;  %v2887_v13 = vmul.f32 %v13682_v27, %v16635_v10 }
 0x555   : > { %v2748_v48 = vpop.permute.xlu1 %2747  ;;  %v2742_v20 = vpop.permute.xlu0 %2741  ;;  %v2867_v27 = vmul.f32 %v13707_v7, %v16633_v46  ;;  %v2852_v22 = vmul.f32 %v13711_v0, %v16634_v25 }
 0x556   : > { %v2786_v23 = vsel %vm465_vm0, 0.0, %v2748_v48  ;;  %v2783_v30 = vsel %vm465_vm0, 0.0, %v2742_v20  ;;  %v11021_v19 = vpack.i.bf16 %v2836_v31, %v2835_v4  ;;  %v13798_v31 = vmul.f32 %v12162_v17, %v13698_v39 }
 0x557   : > { %v13724_v32 = vsel %vm482_vm1, %v2786_v23, 0.0  ;;  %v13733_v9 = vsel %vm482_vm1, %v2783_v30, 0.0  ;;  %v13808_v20 = vmul.f32 %v12162_v17, %v13707_v7  ;;  %v13811_v23 = vmul.f32 %v12162_v17, %v13711_v0 }
 0x558   : > { %v2834_v34 = vmul.f32 %v13724_v32, %v16632_v5  ;;  %11022 = vrot.lane.b32.xlu0 %v11021_v19, %s12483_s21  ;;  %v2831_v56 = vmul.f32 %v13733_v9, %v16632_v5  ;;  %v2866_v4 = vmul.f32 %v13724_v32, %v16633_v46  ;;  %v2865_v30 = vmul.f32 %v13720_v57, %v16633_v46 }
 0x559   : > { %v2744_v58 = vpop.permute.xlu1 %2743  ;;  %v2738_v37 = vpop.permute.xlu0 %2737  ;;  %v11056_v19 = vpack.i.bf16 %v2856_v50, %v2855_v59  ;;  %v11061_v21 = vpack.i.bf16 %v2888_v63, %v2887_v13  ;;  %v2869_v50 = vmul.f32 %v13694_v51, %v16633_v46  ;;  %v2851_v63 = vmul.f32 %v13707_v7, %v16634_v25 }
 0x55a   : > { %v2784_v14 = vsel %vm465_vm0, 0.0, %v2744_v58  ;;  %v2781_v6 = vsel %vm465_vm0, 0.0, %v2738_v37  ;;  %v11026_v62 = vpack.i.bf16 %v2834_v34, %v2833_v29  ;;  %v13816_v34 = vmul.f32 %v12162_v17, %v13724_v32 }
 0x55b   : > { %v13737_v2 = vsel %vm482_vm1, %v2784_v14, 0.0  ;;  %v13746_v55 = vsel %vm482_vm1, %v2781_v6, 0.0  ;;  %v13825_v37 = vmul.f32 %v12162_v17, %v13720_v57  ;;  %v2850_v14 = vmul.f32 %v13724_v32, %v16634_v25 }
 0x55c   : > { %v2832_v16 = vmul.f32 %v13737_v2, %v16632_v5  ;;  %11027 = vrot.lane.b32.xlu1 %v11026_v62, %s12483_s21  ;;  %v2829_v54 = vmul.f32 %v13746_v55, %v16632_v5  ;;  %v13819_v29 = vmul.f32 %v12162_v17, %v13737_v2 }
 0x55d   : > { %v2740_v42 = vpop.permute.xlu1 %2739  ;;  %v2734_v40 = vpop.permute.xlu0 %2733 }
 0x55e   : > { %v2782_v49 = vsel %vm465_vm0, 0.0, %v2740_v42  ;;  %v2779_v41 = vsel %vm465_vm0, 0.0, %v2734_v40  ;;  %v11031_v18 = vpack.i.bf16 %v2832_v16, %v2831_v56  ;;  %v13836_v16 = vmul.f32 %v12162_v17, %v13733_v9 }
 0x55f   : > { %v13751_v60 = vsel %vm482_vm1, %v2782_v49, 0.0  ;;  %v13758_v36 = vsel %vm482_vm1, %v2779_v41, 0.0  ;;  %v13839_v56 = vmul.f32 %v12162_v17, %v13746_v55  ;;  %v11076_v42 = vpack.i.bf16 %v2866_v4, %v2865_v30 }
 0x560   : > { %v2830_v53 = vmul.f32 %v13751_v60, %v16632_v5  ;;  %11032 = vrot.lane.b32.xlu0 %v11031_v18, %s12483_s21  ;;  %v2827_v43 = vmul.f32 %v13758_v36, %v16632_v5  ;;  %v13844_v40 = vmul.f32 %v12162_v17, %v13758_v36  ;;  %v3200_v41 = vpack.c.bf16 %v13786_v1, %v13773_v44 }
 0x561   : > { %v2736_v38 = vpop.permute.xlu1 %2735  ;;  %v2730_v52 = vpop.permute.xlu0 %2729  ;;  %v3199_v18 = vpack.c.bf16 %v13798_v31, %v13792_v35  ;;  %v2884_v4 = vmul.f32 %v13711_v0, %v16635_v10  ;;  %v2885_v30 = vmul.f32 %v13694_v51, %v16635_v10  ;;  %v12167_v31 = vld [vmem:[#allocation12 + $0x28] sm:$0xff] }
 0x562   : > { %v2780_v24 = vsel %vm465_vm0, 0.0, %v2736_v38  ;;  %v2777_v61 = vsel %vm465_vm0, 0.0, %v2730_v52  ;;  %v11036_v8 = vpack.i.bf16 %v2830_v53, %v2829_v54  ;;  %v3198_v53 = vpack.c.bf16 %v13811_v23, %v13808_v20  ;;  %v12169_v23 = vld [vmem:[#allocation12 + $0x38] sm:$0xff] }
 0x563   : > { %v13766_v12 = vsel %vm482_vm1, %v2780_v24, 0.0  ;;  %v13780_v26 = vsel %vm482_vm1, %v2777_v61, 0.0  ;;  %v3197_v54 = vpack.c.bf16 %v13816_v34, %v13825_v37  ;;  %v3196_v38 = vpack.c.bf16 %v13819_v29, %v13836_v16  ;;  %v12171_v37 = vld [vmem:[#allocation12 + $0x48] sm:$0xff] }
 0x564   : > { %v2828_v47 = vmul.f32 %v13766_v12, %v16632_v5  ;;  %11037 = vrot.lane.b32.xlu1 %v11036_v8, %s12483_s21  ;;  %v2825_v48 = vmul.f32 %v13780_v26, %v16632_v5  ;;  %v13830_v6 = vmul.f32 %v12162_v17, %v13766_v12  ;;  %v13847_v49 = vmul.f32 %v12162_v17, %v13780_v26 }
 0x565   : > { %v2732_v33 = vpop.permute.xlu1 %2731  ;;  %v2849_v8 = vmul.f32 %v13720_v57, %v16634_v25 }
 0x566   : > { %v2778_v3 = vsel %vm465_vm0, 0.0, %v2732_v33  ;;  %v11041_v28 = vpack.i.bf16 %v2828_v47, %v2827_v43  ;;  %v3194_v24 = vpack.c.bf16 %v13830_v6, %v13844_v40  ;;  %v2870_v43 = vmul.f32 %v13698_v39, %v16633_v46  ;;  %v12176_v6 = vld [vmem:[#allocation12 + $0x60] sm:$0xff] }
 0x567   : > { %v13795_v15 = vsel %vm482_vm1, %v2778_v3, 0.0  ;;  %v2868_v47 = vmul.f32 %v13711_v0, %v16633_v46  ;;  %v2854_v33 = vmul.f32 %v13698_v39, %v16634_v25 }
 0x568   : > { %v2826_v11 = vmul.f32 %v13795_v15, %v16632_v5  ;;  %11042 = vrot.lane.b32.xlu0 %v11041_v28, %s12483_s21  ;;  %v13822_v5 = vmul.f32 %v12162_v17, %v13751_v60  ;;  %v13833_v62 = vmul.f32 %v12162_v17, %v13795_v15  ;;  %v11086_v17 = vpack.i.bf16 %v2850_v14, %v2849_v8 }
 0x569   : > { %v11096_v59 = vpack.i.bf16 %v2870_v43, %v2869_v50  ;;  %v11066_v3 = vpack.i.bf16 %v2868_v47, %v2867_v27  ;;  %v2853_v28 = vmul.f32 %v13694_v51, %v16634_v25  ;;  %v2863_v51 = vmul.f32 %v13733_v9, %v16633_v46 }
 0x56a   : > { %v11046_v58 = vpack.i.bf16 %v2826_v11, %v2825_v48  ;;  %v3195_v52 = vpack.c.bf16 %v13822_v5, %v13839_v56  ;;  %v3193_v61 = vpack.c.bf16 %v13833_v62, %v13847_v49  ;;  %v11071_v11 = vpack.i.bf16 %v2852_v22, %v2851_v63  ;;  %v11290_v49 = vld [vmem:[#allocation6 + $0x2a8] ss:$20 sps:$4 sm:$0xff]  }
 0x56b   : > { %v11101_v48 = vpack.i.bf16 %v2854_v33, %v2853_v28  ;;  %v2847_v43 = vmul.f32 %v13733_v9, %v16634_v25  ;;  %v2880_v47 = vmul.f32 %v13737_v2, %v16635_v10  ;;  %v2879_v27 = vmul.f32 %v13733_v9, %v16635_v10 }
 0x56c   : > { %11052 = vrot.lane.b32.xlu0 %v11051_v45, %s12484_s22  ;;  %11047 = vrot.lane.b32.xlu1 %v11046_v58, %s12483_s21  ;;  %v2886_v45 = vmul.f32 %v13698_v39, %v16635_v10  ;;  %v2882_v58 = vmul.f32 %v13724_v32, %v16635_v10  ;;  %v2864_v39 = vmul.f32 %v13737_v2, %v16633_v46 }
 0x56d   : > { %v2862_v32 = vmul.f32 %v13751_v60, %v16633_v46  ;;  %v2845_v33 = vmul.f32 %v13746_v55, %v16634_v25  ;;  %v2878_v22 = vmul.f32 %v13751_v60, %v16635_v10  ;;  %v2877_v28 = vmul.f32 %v13746_v55, %v16635_v10 }
 0x56e   : > { %v11106_v14 = vpack.i.bf16 %v2886_v45, %v2885_v30  ;;  %v11091_v8 = vpack.i.bf16 %v2864_v39, %v2863_v51  ;;  %v2859_v9 = vmul.f32 %v13758_v36, %v16633_v46  ;;  %v2844_v63 = vmul.f32 %v13766_v12, %v16634_v25  ;;  %v11305_v39 = vld [vmem:[#allocation6 + $0x28c] ss:$20 sps:$4 sm:$0xff]  }
 0x56f   : > { %v11141_v45 = vpack.i.bf16 %v2878_v22, %v2877_v28  ;;  %v2842_v30 = vmul.f32 %v13795_v15, %v16634_v25  ;;  %3634 = vmatprep.mubr.bf16.mxu1 %v11305_v39  ;;  %v2873_v51 = vmul.f32 %v13780_v26, %v16635_v10  ;;  %v12166_v22 = vld [vmem:[#allocation12 + $0x10] sm:$0xff] }
 0x570   : > { %11077 = vrot.lane.b32.xlu0 %v11076_v42, %s12484_s22  ;;  %11057 = vrot.lane.b32.xlu1 %v11056_v19, %s12485_s25  ;;  %v2883_v19 = vmul.f32 %v13707_v7, %v16635_v10  ;;  %v2881_v42 = vmul.f32 %v13720_v57, %v16635_v10  ;;  %v2848_v7 = vmul.f32 %v13737_v2, %v16634_v25 }
 0x571   : > { %v2861_v57 = vmul.f32 %v13746_v55, %v16633_v46  ;;  %v2860_v2 = vmul.f32 %v13766_v12, %v16633_v46  ;;  %v2857_v55 = vmul.f32 %v13780_v26, %v16633_v46 }
 0x572   : > { %v11081_v0 = vpack.i.bf16 %v2884_v4, %v2883_v19  ;;  %v11111_v13 = vpack.i.bf16 %v2882_v58, %v2881_v42  ;;  %v11116_v50 = vpack.i.bf16 %v2848_v7, %v2847_v43 }
 0x573   : > { %v11136_v4 = vpack.i.bf16 %v2860_v2, %v2859_v9 }
 0x574   : > { %11087 = vrot.lane.b32.xlu0 %v11086_v17, %s12485_s25  ;;  %11062 = vrot.lane.b32.xlu1 %v11061_v21, %s12486_s17  ;;  %v2846_v17 = vmul.f32 %v13751_v60, %v16634_v25  ;;  %v11121_v21 = vpack.i.bf16 %v2862_v32, %v2861_v57  ;;  %v2858_v60 = vmul.f32 %v13795_v15, %v16633_v46 }
 0x575   : > { %v2874_v46 = vmul.f32 %v13795_v15, %v16635_v10  ;;  %v12489_v15 = vmov 2  }
 0x576   : > { %v11151_v19 = vpack.i.bf16 %v2858_v60, %v2857_v55  ;;  %11172 = vset.pattern.permute.xlu1 %v12489_v15  ;;  %11171 = vset.pattern.permute.xlu0 %v12489_v15 }
 0x578   : > { %11097 = vrot.lane.b32.xlu0 %v11096_v59, %s12484_s22  ;;  %11067 = vrot.lane.b32.xlu1 %v11066_v3, %s12484_s22  ;;  %v11131_v59 = vpack.i.bf16 %v2846_v17, %v2845_v33  ;;  %v11126_v3 = vpack.i.bf16 %v2880_v47, %v2879_v27 }
 0x57c   : > { %11102 = vrot.lane.b32.xlu0 %v11101_v48, %s12485_s25  ;;  %11072 = vrot.lane.b32.xlu1 %v11071_v11, %s12485_s25  ;;  %v2843_v48 = vmul.f32 %v13758_v36, %v16634_v25  ;;  %v2876_v11 = vmul.f32 %v13766_v12, %v16635_v10 }
 0x57e   : > { %v11146_v58 = vpack.i.bf16 %v2844_v63, %v2843_v48  ;;  %v12172_v48 = vld [vmem:[#allocation12 + $0x40] sm:$0xff] }
 0x580   : > { %11107 = vrot.lane.b32.xlu0 %v11106_v14, %s12486_s17  ;;  %11082 = vrot.lane.b32.xlu1 %v11081_v0, %s12486_s17  ;;  %v2875_v14 = vmul.f32 %v13758_v36, %v16635_v10  ;;  %v2841_v0 = vmul.f32 %v13780_v26, %v16634_v25  ;;  %v11166_v36 = vpack.i.bf16 %v2874_v46, %v2873_v51  ;;  %v11285_v46 = vld [vmem:[#allocation6 + $0x280] ss:$20 sps:$4 sm:$0xff]  }
 0x581   : > { %v11288_v51 = vld [vmem:[#allocation6 + $0x2ac] ss:$20 sps:$4 sm:$0xff]  }
 0x582   : > { %v11161_v12 = vpack.i.bf16 %v2842_v30, %v2841_v0  ;;  %v11156_v42 = vpack.i.bf16 %v2876_v11, %v2875_v14  ;;  %v12174_v14 = vld [vmem:[#allocation12 + $0x50] sm:$0xff] }
 0x584   : > { %11112 = vrot.lane.b32.xlu0 %v11111_v13, %s12486_s17  ;;  %11092 = vrot.lane.b32.xlu1 %v11091_v8, %s12484_s22 }
 0x588   : > { %11122 = vrot.lane.b32.xlu0 %v11121_v21, %s12484_s22  ;;  %11117 = vrot.lane.b32.xlu1 %v11116_v50, %s12485_s25  ;;  %v12163_v21 = vld [vmem:[#allocation12] sm:$0xff]  ;;  %v12164_v50 = vld [vmem:[#allocation12 + $0x8] sm:$0xff] }
 0x58c   : > { %11132 = vrot.lane.b32.xlu0 %v11131_v59, %s12485_s25  ;;  %11127 = vrot.lane.b32.xlu1 %v11126_v3, %s12486_s17 }
 0x590   : > { %11142 = vrot.lane.b32.xlu0 %v11141_v45, %s12486_s17  ;;  %11137 = vrot.lane.b32.xlu1 %v11136_v4, %s12484_s22 }
 0x594   : > { %11152 = vrot.lane.b32.xlu0 %v11151_v19, %s12484_s22  ;;  %11147 = vrot.lane.b32.xlu1 %v11146_v58, %s12485_s25  ;;  %v12173_v19 = vld [vmem:[#allocation12 + $0x58] sm:$0xff] }
 0x598   : > { %11162 = vrot.lane.b32.xlu0 %v11161_v12, %s12485_s25  ;;  %11157 = vrot.lane.b32.xlu1 %v11156_v42, %s12486_s17  ;;  %v12175_v12 = vld [vmem:[#allocation12 + $0x68] sm:$0xff] }
 0x59c   : > { %11167 = vrot.lane.b32.xlu1 %v11166_v36, %s12486_s17  ;;  %3234 = vperm.xlu0 %11171, %v12163_v21  }
 0x5a0   : > { %3238 = vperm.xlu1 %11172, %v12164_v50  }
 0x5a4   : > { %3242 = vperm.xlu1 %11172, %v12166_v22  }
 0x5c2   : > { %v11013_v25 = vpop.permute.xlu0 %11012 }
 0x5c3   : > { %v11015_v7 = vunpack.i.h.bf16 %v11013_v25  ;;  %v11014_v32 = vunpack.i.l.bf16 %v11013_v25 }
 0x5c5   : > { %v3208_v13 = vpack.c.bf16 %v11015_v7, %v11014_v32  ;;  %v12177_v7 = vld [vmem:[#allocation12 + $0x78] sm:$0xff] }
 0x5c6   : > { %v11018_v8 = vpop.permute.xlu1 %11017 }
 0x5c7   : > { %v11020_v43 = vunpack.i.h.bf16 %v11018_v8  ;;  %v11019_v57 = vunpack.i.l.bf16 %v11018_v8  ;;  %10067 = vmatprep.subr.bf16.mxu0 %v3208_v13  ;;  %v12178_v13 = vld [vmem:[#allocation12 + $0x70] sm:$0xff] }
 0x5c8   : > { %10068 = vmatpush3.bf16.msra.mxu0 %v3200_v41  ;;  %v12165_v41 = vld [vmem:[#allocation12 + $0x18] sm:$0xff] }
 0x5c9   : > { %v3207_v26 = vpack.c.bf16 %v11020_v43, %v11019_v57  ;;  %3246 = vperm.xlu0 %11171, %v12165_v41  }
 0x5ca   : > { %v11023_v10 = vpop.permute.xlu0 %11022 }
 0x5cb   : > { %v11025_v47 = vunpack.i.h.bf16 %v11023_v10  ;;  %v11024_v17 = vunpack.i.l.bf16 %v11023_v10  ;;  %10069 = vmatprep.subr.bf16.mxu0 %v3207_v26  ;;  %v11291_v26 = vld [vmem:[#allocation6 + $0x2d4] ss:$20 sps:$4 sm:$0xff]  }
 0x5cc   : > { %10070 = vmatpush3.bf16.msra.mxu0 %v3199_v18  ;;  %v12168_v18 = vld [vmem:[#allocation12 + $0x20] sm:$0xff] }
 0x5cd   : > { %v3206_v27 = vpack.c.bf16 %v11025_v47, %v11024_v17  ;;  %3254 = vperm.xlu0 %11171, %v12167_v31   ;;  %3250 = vperm.xlu1 %11172, %v12168_v18  }
 0x5ce   : > { %v11028_v33 = vpop.permute.xlu1 %11027 }
 0x5cf   : > { %v11030_v44 = vunpack.i.h.bf16 %v11028_v33  ;;  %v11029_v1 = vunpack.i.l.bf16 %v11028_v33  ;;  %10071 = vmatprep.subr.bf16.mxu0 %v3206_v27 }
 0x5d0   : > { %10072 = vmatpush3.bf16.msra.mxu0 %v3198_v53  ;;  %v12170_v53 = vld [vmem:[#allocation12 + $0x30] sm:$0xff] }
 0x5d1   : > { %v3205_v2 = vpack.c.bf16 %v11030_v44, %v11029_v1  ;;  %3262 = vperm.xlu0 %11171, %v12169_v23   ;;  %3258 = vperm.xlu1 %11172, %v12170_v53   ;;  %v11294_v53 = vld [vmem:[#allocation6 + $0x2fc] ss:$20 sps:$4 sm:$0xff]  }
 0x5d2   : > { %v11033_v59 = vpop.permute.xlu0 %11032 }
 0x5d3   : > { %v11035_v3 = vunpack.i.h.bf16 %v11033_v59  ;;  %v11034_v35 = vunpack.i.l.bf16 %v11033_v59  ;;  %10073 = vmatprep.subr.bf16.mxu0 %v3205_v2 }
 0x5d4   : > { %10074 = vmatpush3.bf16.msra.mxu0 %v3197_v54 }
 0x5d5   : > { %v3204_v28 = vpack.c.bf16 %v11035_v3, %v11034_v35  ;;  %3270 = vperm.xlu0 %11171, %v12171_v37   ;;  %3266 = vperm.xlu1 %11172, %v12172_v48  }
 0x5d6   : > { %v11038_v9 = vpop.permute.xlu1 %11037 }
 0x5d7   : > { %v11040_v63 = vunpack.i.h.bf16 %v11038_v9  ;;  %v11039_v20 = vunpack.i.l.bf16 %v11038_v9  ;;  %10075 = vmatprep.subr.bf16.mxu0 %v3204_v28  ;;  %v11293_v28 = vld [vmem:[#allocation6 + $0x2d0] ss:$20 sps:$4 sm:$0xff]  }
 0x5d8   : > { %10076 = vmatpush3.bf16.msra.mxu0 %v3196_v38 }
 0x5d9   : > { %v3203_v60 = vpack.c.bf16 %v11040_v63, %v11039_v20  ;;  %3278 = vperm.xlu0 %11171, %v12173_v19   ;;  %3274 = vperm.xlu1 %11172, %v12174_v14  }
 0x5da   : > { %v11043_v45 = vpop.permute.xlu0 %11042 }
 0x5db   : > { %v11045_v4 = vunpack.i.h.bf16 %v11043_v45  ;;  %v11044_v34 = vunpack.i.l.bf16 %v11043_v45  ;;  %10077 = vmatprep.subr.bf16.mxu0 %v3203_v60 }
 0x5dc   : > { %10078 = vmatpush3.bf16.msra.mxu0 %v3195_v52 }
 0x5dd   : > { %v3202_v54 = vpack.c.bf16 %v11045_v4, %v11044_v34  ;;  %3286 = vperm.xlu0 %11171, %v12175_v12   ;;  %3282 = vperm.xlu1 %11172, %v12176_v6  }
 0x5de   : > { %v11048_v55 = vpop.permute.xlu1 %11047  ;;  %v11053_v11 = vpop.permute.xlu0 %11052 }
 0x5df   : > { %v11050_v29 = vunpack.i.h.bf16 %v11048_v55  ;;  %v11049_v16 = vunpack.i.l.bf16 %v11048_v55  ;;  %v11055_v38 = vunpack.i.h.bf16 %v11053_v11  ;;  %v11054_v30 = vunpack.i.l.bf16 %v11053_v11  ;;  %10079 = vmatprep.subr.bf16.mxu0 %v3202_v54 }
 0x5e0   : > { %10080 = vmatpush3.bf16.msra.mxu0 %v3194_v24 }
 0x5e1   : > { %v3201_v58 = vpack.c.bf16 %v11050_v29, %v11049_v16  ;;  %v3224_v39 = vpack.c.bf16 %v11055_v38, %v11054_v30  ;;  %3294 = vperm.xlu0 %11171, %v12177_v7   ;;  %3290 = vperm.xlu1 %11172, %v12178_v13  }
 0x5e2   : > { %v11058_v5 = vpop.permute.xlu1 %11057  ;;  %v13989_v56 = vpop.permute.xlu0 %11077 }
 0x5e3   : > { %v11060_v52 = vunpack.i.h.bf16 %v11058_v5  ;;  %v11059_v0 = vunpack.i.l.bf16 %v11058_v5  ;;  %10081 = vmatprep.subr.bf16.mxu0 %v3201_v58  ;;  %10131 = vmatprep.subr.bf16.mxu1 %v3224_v39  ;;  %v11080_v1 = vunpack.i.h.bf16 %v13989_v56  ;;  %v11079_v41 = vunpack.i.l.bf16 %v13989_v56  ;;  %v11296_v5 = vld [vmem:[#allocation6 + $0x2f8] ss:$20 sps:$4 sm:$0xff]  }
 0x5e4   : > { %10082 = vmatpush3.bf16.msra.mxu0 %v3193_v61 }
 0x5e5   : > { %v3216_v42 = vpack.c.bf16 %v11060_v52, %v11059_v0  ;;  %v3221_v60 = vpack.c.bf16 %v11080_v1, %v11079_v41  ;;  %v11297_v0 = vld [vmem:[#allocation6 + $0x324] ss:$20 sps:$4 sm:$0xff]  }
 0x5e6   : > { %v11063_v40 = vpop.permute.xlu1 %11062  ;;  %v11088_v24 = vpop.permute.xlu0 %11087 }
 0x5e7   : > { %v11065_v36 = vunpack.i.h.bf16 %v11063_v40  ;;  %v11064_v25 = vunpack.i.l.bf16 %v11063_v40  ;;  %10132 = vmatpush3.bf16.msra.mxu1 %v3216_v42  ;;  %3538 = vmatmul.mubr.bf16.vlgmr.msra.gmra.mxu0 %v11285_v46  ;;  %v11090_v9 = vunpack.i.h.bf16 %v11088_v24  ;;  %v11089_v63 = vunpack.i.l.bf16 %v11088_v24 }
 0x5e8   : > { %3545 = vmatprep.mubr.bf16.mxu0 %v11288_v51 }
 0x5e9   : > { %v3232_v32 = vpack.c.bf16 %v11065_v36, %v11064_v25  ;;  %v3213_v11 = vpack.c.bf16 %v11090_v9, %v11089_v63 }
 0x5ea   : > { %v11068_v8 = vpop.permute.xlu1 %11067  ;;  %v11098_v43 = vpop.permute.xlu0 %11097 }
 0x5eb   : > { %v11100_v57 = vunpack.i.h.bf16 %v11098_v43  ;;  %v11099_v62 = vunpack.i.l.bf16 %v11098_v43  ;;  %10356 = vmatprep.subr.bf16.mxu0 %v3232_v32  ;;  %v11070_v10 = vunpack.i.h.bf16 %v11068_v8  ;;  %v11069_v15 = vunpack.i.l.bf16 %v11068_v8 }
 0x5ec   : > { %10357 = vmatpush3.bf16.msra.mxu0 %v3232_v32 }
 0x5ed   : > { %v3223_v61 = vpack.c.bf16 %v11100_v57, %v11099_v62  ;;  %v3222_v22 = vpack.c.bf16 %v11070_v10, %v11069_v15  ;;  %v11299_v57 = vld [vmem:[#allocation6 + $0x320] ss:$20 sps:$4 sm:$0xff]  }
 0x5ee   : > { %v11073_v47 = vpop.permute.xlu1 %11072  ;;  %v11103_v17 = vpop.permute.xlu0 %11102 }
 0x5ef   : > { %v11105_v21 = vunpack.i.h.bf16 %v11103_v17  ;;  %v11104_v50 = vunpack.i.l.bf16 %v11103_v17  ;;  %10133 = vmatprep.subr.bf16.mxu1 %v3223_v61  ;;  %3546 = vmatmul.mubr.bf16.gmra.mxu0 %v11290_v49  ;;  %v11075_v27 = vunpack.i.h.bf16 %v11073_v47  ;;  %v11074_v33 = vunpack.i.l.bf16 %v11073_v47  ;;  %v11300_v61 = vld [vmem:[#allocation6 + $0x34c] ss:$20 sps:$4 sm:$0xff]  }
 0x5f0   : > { %3553 = vmatprep.mubr.bf16.mxu0 %v11291_v26 }
 0x5f1   : > { %v3215_v44 = vpack.c.bf16 %v11105_v21, %v11104_v50  ;;  %v3214_v20 = vpack.c.bf16 %v11075_v27, %v11074_v33 }
 0x5f2   : > { %v11083_v2 = vpop.permute.xlu1 %11082  ;;  %v11108_v59 = vpop.permute.xlu0 %11107 }
 0x5f3   : > { %v11110_v3 = vunpack.i.h.bf16 %v11108_v59  ;;  %v11109_v35 = vunpack.i.l.bf16 %v11108_v59  ;;  %10134 = vmatpush3.bf16.msra.mxu1 %v3215_v44  ;;  %v11085_v31 = vunpack.i.h.bf16 %v11083_v2  ;;  %v11084_v18 = vunpack.i.l.bf16 %v11083_v2  ;;  %v11302_v59 = vld [vmem:[#allocation6 + $0x348] ss:$20 sps:$4 sm:$0xff]  }
 0x5f4   : > { %10135 = vmatprep.subr.bf16.mxu1 %v3222_v22 }
 0x5f5   : > { %v3231_v23 = vpack.c.bf16 %v11110_v3, %v11109_v35  ;;  %v3230_v54 = vpack.c.bf16 %v11085_v31, %v11084_v18  ;;  %v11306_v31 = vld [vmem:[#allocation6 + $0x374] ss:$20 sps:$4 sm:$0xff]  }
 0x5f6   : > { %v11093_v45 = vpop.permute.xlu1 %11092  ;;  %v11113_v4 = vpop.permute.xlu0 %11112 }
 0x5f7   : > { %v11095_v34 = vunpack.i.h.bf16 %v11093_v45  ;;  %v11094_v37 = vunpack.i.l.bf16 %v11093_v45  ;;  %10136 = vmatpush3.bf16.msra.mxu1 %v3214_v20  ;;  %10358 = vmatprep.subr.bf16.mxu0 %v3231_v23  ;;  %v11115_v48 = vunpack.i.h.bf16 %v11113_v4  ;;  %v11114_v55 = vunpack.i.l.bf16 %v11113_v4  ;;  %v11309_v20 = vld [vmem:[#allocation6 + $0x2b4] ss:$20 sps:$4 sm:$0xff]   ;;  %v11311_v45 = vld [vmem:[#allocation6 + $0x2b0] ss:$20 sps:$4 sm:$0xff]  }
 0x5f8   : > { %3554 = vmatmul.mubr.bf16.gmra.mxu0 %v11293_v28  ;;  %10137 = vmatprep.subr.bf16.mxu1 %v3221_v60  ;;  %v11303_v28 = vld [vmem:[#allocation6 + $0x288] ss:$20 sps:$4 sm:$0xff]  }
 0x5f9   : > { %v3220_v29 = vpack.c.bf16 %v11095_v34, %v11094_v37  ;;  %10359 = vmatpush3.bf16.msra.mxu0 %v3231_v23  ;;  %3561 = vmatprep.mubr.bf16.mxu0 %v11294_v53  ;;  %v3229_v14 = vpack.c.bf16 %v11115_v48, %v11114_v55  ;;  %v11308_v53 = vld [vmem:[#allocation6 + $0x370] ss:$20 sps:$4 sm:$0xff]   ;;  %v11314_v34 = vld [vmem:[#allocation6 + $0x398] ss:$20 sps:$4 sm:$0xff]  }
 0x5fa   : > { %10360 = vmatprep.subr.bf16.mxu0 %v3230_v54  ;;  %v11118_v16 = vpop.permute.xlu1 %11117  ;;  %v11123_v38 = vpop.permute.xlu0 %11122  ;;  %v11312_v60 = vld [vmem:[#allocation6 + $0x39c] ss:$20 sps:$4 sm:$0xff]   ;;  %v11320_v48 = vld [vmem:[#allocation6 + $0x304] ss:$20 sps:$4 sm:$0xff]  }
 0x5fb   : > { %v11120_v30 = vunpack.i.h.bf16 %v11118_v16  ;;  %v11119_v19 = vunpack.i.l.bf16 %v11118_v16  ;;  %v11125_v58 = vunpack.i.h.bf16 %v11123_v38  ;;  %v11124_v39 = vunpack.i.l.bf16 %v11123_v38  ;;  %10138 = vmatpush3.bf16.msra.mxu1 %v3213_v11  ;;  %v11315_v4 = vld [vmem:[#allocation6 + $0x2dc] ss:$20 sps:$4 sm:$0xff]   ;;  %v11319_v55 = vld [vmem:[#allocation6 + $0x2b8] ss:$20 sps:$4 sm:$0xff]   ;;  %v11323_v11 = vld [vmem:[#allocation6 + $0x2e0] ss:$20 sps:$4 sm:$0xff]  }
 0x5fc   : > { %10139 = vmatprep.subr.bf16.mxu1 %v3220_v29  ;;  %v11318_v37 = vld [vmem:[#allocation6 + $0x290] ss:$20 sps:$4 sm:$0xff]   ;;  %v11322_v29 = vld [vmem:[#allocation6 + $0x300] ss:$20 sps:$4 sm:$0xff]   ;;  %v11324_v38 = vld [vmem:[#allocation6 + $0x308] ss:$20 sps:$4 sm:$0xff]  }
 0x5fd   : > { %v3212_v56 = vpack.c.bf16 %v11120_v30, %v11119_v19  ;;  %v3219_v52 = vpack.c.bf16 %v11125_v58, %v11124_v39  ;;  %10361 = vmatpush3.bf16.msra.mxu0 %v3230_v54  ;;  %v11317_v54 = vld [vmem:[#allocation6 + $0x2d8] ss:$20 sps:$4 sm:$0xff]   ;;  %v11328_v30 = vld [vmem:[#allocation6 + $0x330] ss:$20 sps:$4 sm:$0xff]   ;;  %v11327_v19 = vld [vmem:[#allocation6 + $0x328] ss:$20 sps:$4 sm:$0xff]  }
 0x5fe   : > { %10362 = vmatprep.subr.bf16.mxu0 %v3229_v14  ;;  %v11128_v46 = vpop.permute.xlu1 %11127  ;;  %v11133_v12 = vpop.permute.xlu0 %11132  ;;  %v11325_v16 = vld [vmem:[#allocation6 + $0x32c] ss:$20 sps:$4 sm:$0xff]   ;;  %v11330_v58 = vld [vmem:[#allocation6 + $0x354] ss:$20 sps:$4 sm:$0xff]  }
 0x5ff   : > { %v11130_v42 = vunpack.i.h.bf16 %v11128_v46  ;;  %v11129_v51 = vunpack.i.l.bf16 %v11128_v46  ;;  %v11135_v6 = vunpack.i.h.bf16 %v11133_v12  ;;  %v11134_v40 = vunpack.i.l.bf16 %v11133_v12  ;;  %10140 = vmatpush3.bf16.msra.mxu1 %v3212_v56  ;;  %v11329_v39 = vld [vmem:[#allocation6 + $0x358] ss:$20 sps:$4 sm:$0xff]   ;;  %v11333_v56 = vld [vmem:[#allocation6 + $0x37c] ss:$20 sps:$4 sm:$0xff]  }
 0x600   : > { %3562 = vmatmul.mubr.bf16.gmra.mxu0 %v11296_v5  ;;  %10141 = vmatprep.subr.bf16.mxu1 %v3219_v52  ;;  %v11332_v5 = vld [vmem:[#allocation6 + $0x350] ss:$20 sps:$4 sm:$0xff]   ;;  %v11337_v52 = vld [vmem:[#allocation6 + $0x3a8] ss:$20 sps:$4 sm:$0xff]   ;;  %v16636_v12 = vmov 0  }
 0x601   : > { %v3228_v24 = vpack.c.bf16 %v11130_v42, %v11129_v51  ;;  %v3211_v36 = vpack.c.bf16 %v11135_v6, %v11134_v40  ;;  %10363 = vmatpush3.bf16.msra.mxu0 %v3229_v14  ;;  %3569 = vmatprep.mubr.bf16.mxu0 %v11297_v0  ;;  %v11336_v14 = vld [vmem:[#allocation6 + $0x380] ss:$20 sps:$4 sm:$0xff]   ;;  %v11335_v0 = vld [vmem:[#allocation6 + $0x378] ss:$20 sps:$4 sm:$0xff]  }
 0x602   : > { %v11138_v25 = vpop.permute.xlu1 %11137  ;;  %v11143_v7 = vpop.permute.xlu0 %11142  ;;  %v11338_v46 = vld [vmem:[#allocation6 + $0x3a4] ss:$20 sps:$4 sm:$0xff]   ;;  %v11340_v42 = vld [vmem:[#allocation6 + $0x3a0] ss:$20 sps:$4 sm:$0xff]   ;;  %v11343_v6 = vld [vmem:[%s16470_s2 + $0x64] ss:$48 sps:$4 sm:$0xff]  }
 0x603   : > { %v11140_v32 = vunpack.i.h.bf16 %v11138_v25  ;;  %v11139_v13 = vunpack.i.l.bf16 %v11138_v25  ;;  %v11145_v8 = vunpack.i.h.bf16 %v11143_v7  ;;  %v11144_v43 = vunpack.i.l.bf16 %v11143_v7  ;;  %10142 = vmatpush3.bf16.msra.mxu1 %v3211_v36  ;;  %10364 = vmatprep.subr.bf16.mxu0 %v3228_v24  ;;  %v11341_v51 = vld [vmem:[%s16470_s2 + $0x60] ss:$48 sps:$4 sm:$0xff]   ;;  %v11344_v40 = vld [vmem:[%s16470_s2 + $0x68] ss:$48 sps:$4 sm:$0xff]   ;;  %v11349_v25 = vld [vmem:[%s16470_s2 + $0x4] ss:$48 sps:$4 sm:$0xff]  }
 0x604   : > { %v11347_v36 = vld [vmem:[%s16470_s2] ss:$48 sps:$4 sm:$0xff]   ;;  %v11350_v7 = vld [vmem:[%s16470_s2 + $0x8] ss:$48 sps:$4 sm:$0xff]  }
 0x605   : > { %v3218_v62 = vpack.c.bf16 %v11140_v32, %v11139_v13  ;;  %v3227_v49 = vpack.c.bf16 %v11145_v8, %v11144_v43  ;;  %10365 = vmatpush3.bf16.msra.mxu0 %v3228_v24  ;;  %v11346_v24 = vld [vmem:[%s16470_s2 + $0x6c] ss:$48 sps:$4 sm:$0xff]   ;;  %v11355_v13 = vld [vmem:[%s16470_s2 + $0x74] ss:$48 sps:$4 sm:$0xff]  }
 0x606   : > { %v11148_v26 = vpop.permute.xlu1 %11147  ;;  %v11153_v10 = vpop.permute.xlu0 %11152  ;;  %v11352_v32 = vld [vmem:[%s16470_s2 + $0xc] ss:$48 sps:$4 sm:$0xff]  }
 0x607   : > { %v11150_v15 = vunpack.i.h.bf16 %v11148_v26  ;;  %v11149_v47 = vunpack.i.l.bf16 %v11148_v26  ;;  %v11155_v17 = vunpack.i.h.bf16 %v11153_v10  ;;  %v11154_v21 = vunpack.i.l.bf16 %v11153_v10  ;;  %10143 = vmatprep.subr.bf16.mxu1 %v3218_v62  ;;  %10366 = vmatprep.subr.bf16.mxu0 %v3227_v49 }
 0x608   : > { %3570 = vmatmul.mubr.bf16.gmra.mxu0 %v11299_v57 }
 0x609   : > { %v3210_v50 = vpack.c.bf16 %v11150_v15, %v11149_v47  ;;  %v3217_v27 = vpack.c.bf16 %v11155_v17, %v11154_v21  ;;  %10367 = vmatpush3.bf16.msra.mxu0 %v3227_v49  ;;  %3577 = vmatprep.mubr.bf16.mxu0 %v11300_v61  ;;  %v11358_v49 = vld [vmem:[%s16470_s2 + $0x7c] ss:$48 sps:$4 sm:$0xff]  }
 0x60a   : > { %v11158_v33 = vpop.permute.xlu1 %11157  ;;  %v11163_v44 = vpop.permute.xlu0 %11162 }
 0x60b   : > { %v11160_v1 = vunpack.i.h.bf16 %v11158_v33  ;;  %v11159_v41 = vunpack.i.l.bf16 %v11158_v33  ;;  %v11165_v22 = vunpack.i.h.bf16 %v11163_v44  ;;  %v11164_v2 = vunpack.i.l.bf16 %v11163_v44  ;;  %10144 = vmatpush3.bf16.msra.mxu1 %v3210_v50 }
 0x60c   : > { %10145 = vmatprep.subr.bf16.mxu1 %v3217_v27 }
 0x60d   : > { %v3226_v3 = vpack.c.bf16 %v11160_v1, %v11159_v41  ;;  %v3209_v35 = vpack.c.bf16 %v11165_v22, %v11164_v2 }
 0x60e   : > { %v11168_v18 = vpop.permute.xlu1 %11167 }
 0x60f   : > { %v11170_v9 = vunpack.i.h.bf16 %v11168_v18  ;;  %v11169_v63 = vunpack.i.l.bf16 %v11168_v18  ;;  %10146 = vmatpush3.bf16.msra.mxu1 %v3209_v35  ;;  %10368 = vmatprep.subr.bf16.mxu0 %v3226_v3 }
 0x610   : > { %3578 = vmatmul.mubr.bf16.gmra.mxu0 %v11302_v59  ;;  %4100 = vmatprep.subr.bf16.mxu1 %v11343_v6 }
 0x611   : > { %v3225_v23 = vpack.c.bf16 %v11170_v9, %v11169_v63  ;;  %10369 = vmatpush3.bf16.msra.mxu0 %v3226_v3  ;;  %3585 = vmatprep.mubr.bf16.mxu0 %v11306_v31 }
 0x612   : > { %3635 = vmatmul.mubr.bf16.vlgmr.msra.gmra.mxu1 %v11303_v28 }
 0x613   : > { %10370 = vmatprep.subr.bf16.mxu0 %v3225_v23  ;;  %3642 = vmatprep.mubr.bf16.mxu1 %v11309_v20 }
 0x614   : > { %4101 = vmatpush1.bf16.msra.mxu1 %v11341_v51 }
 0x615   : > { %10371 = vmatpush3.bf16.msra.mxu0 %v3225_v23  ;;  %4102 = vmatprep.subr.bf16.mxu1 %v11349_v25 }
 0x616   : > { %4213 = vmatprep.subr.bf16.mxu0 %v11346_v24 }
 0x618   : > { %3586 = vmatmul.mubr.bf16.gmra.mxu0 %v11308_v53  ;;  %4103 = vmatpush1.bf16.msra.mxu1 %v11347_v36 }
 0x619   : > { %3593 = vmatprep.mubr.bf16.mxu0 %v11312_v60  ;;  %4326 = vmatprep.subr.bf16.mxu1 %v11355_v13 }
 0x61a   : > { %3643 = vmatmul.mubr.bf16.gmra.mxu1 %v11311_v45 }
 0x61b   : > { %3650 = vmatprep.mubr.bf16.mxu1 %v11315_v4 }
 0x620   : > { %3594 = vmatmul.mubr.bf16.gmra.mxu0 %v11314_v34 }
 0x621   : > { %10372 = vmatprep.mubr.bf16.mxu0 %v11318_v37 }
 0x622   : > { %3651 = vmatmul.mubr.bf16.gmra.mxu1 %v11317_v54 }
 0x623   : > { %3658 = vmatprep.mubr.bf16.mxu1 %v11320_v48 }
 0x628   : > { %10373 = vmatmul.mubr.bf16.vlgmr.msra.gmra.mxu0 %v11319_v55 }
 0x629   : > { %10376 = vmatprep.mubr.bf16.mxu0 %v11323_v11  ;;  %4214 = vmatpush1.bf16.msra.mxu0 %v11344_v40 }
 0x62a   : > { %3659 = vmatmul.mubr.bf16.gmra.mxu1 %v11322_v29  ;;  %4215 = vmatprep.subr.bf16.mxu0 %v11352_v32 }
 0x62b   : > { %3666 = vmatprep.mubr.bf16.mxu1 %v11325_v16  ;;  %v3235_v16 = vpop.permute.xlu0 %3234 }
 0x62d   : > { %4216 = vmatpush1.bf16.msra.mxu0 %v11350_v7 }
 0x62e   : > { %4439 = vmatprep.subr.bf16.mxu0 %v11358_v49 }
 0x630   : > { %10377 = vmatmul.mubr.bf16.gmra.mxu0 %v11324_v38 }
 0x631   : > { %10380 = vmatprep.mubr.bf16.mxu0 %v11328_v30 }
 0x632   : > { %3667 = vmatmul.mubr.bf16.gmra.mxu1 %v11327_v19  ;;  %v3239_v19 = vpop.permute.xlu1 %3238 }
 0x633   : > { %3674 = vmatprep.mubr.bf16.mxu1 %v11330_v58 }
 0x636   : > { %v3243_v7 = vpop.permute.xlu1 %3242 }
 0x638   : > { %10381 = vmatmul.mubr.bf16.gmra.mxu0 %v11329_v39 }
 0x639   : > { %10384 = vmatprep.mubr.bf16.mxu0 %v11336_v14 }
 0x63a   : > { %3675 = vmatmul.mubr.bf16.gmra.mxu1 %v11332_v5 }
 0x63b   : > { %3682 = vmatprep.mubr.bf16.mxu1 %v11333_v56 }
 0x640   : > { %10385 = vmatmul.mubr.bf16.gmra.mxu0 %v11337_v52 }
 0x641   : > { %4233 = vmatprep.mubr.bf16.mxu0 %v16636_v12 }
 0x642   : > { %3683 = vmatmul.mubr.bf16.gmra.mxu1 %v11335_v0 }
 0x643   : > { %3690 = vmatprep.mubr.bf16.mxu1 %v11338_v46 }
 0x64a   : > { %3691 = vmatmul.mubr.bf16.gmra.mxu1 %v11340_v42  ;;  %v3247_v42 = vpop.permute.xlu0 %3246 }
 0x64b   : > { %4120 = vmatprep.mubr.bf16.mxu1 %v16636_v12 }
 0x6a7   : > { %v10083_v8 = vpop.f32.mrf.mxu0 }
 0x6a9   : > { %v10084_v43 = vpop.f32.mrf.mxu0 }
 0x6aa   : > { %v10085_v29 = vadd.f32 %v10084_v43, %v10083_v8 }
 0x6ab   : > { %v10086_v57 = vpop.f32.mrf.mxu0 }
 0x6ac   : > { %v3540_v56 = vadd.f32 %v10085_v29, %v3235_v16 }
 0x6ad   : > { %v10087_v62 = vpop.f32.mrf.mxu0 }
 0x6ae   : > { %v10088_v5 = vadd.f32 %v10087_v62, %v10086_v57 }
 0x6af   : > { %v10089_v61 = vpop.f32.mrf.mxu0 }
 0x6b0   : > { %v3543_v25 = vadd.f32 %v10088_v5, %v3239_v19  ;;  %v3251_v5 = vpop.permute.xlu1 %3250 }
 0x6b1   : > { %v10090_v26 = vpop.f32.mrf.mxu0 }
 0x6b2   : > { %v10091_v36 = vadd.f32 %v10090_v26, %v10089_v61 }
 0x6b3   : > { %v10092_v10 = vpop.f32.mrf.mxu0 }
 0x6b5   : > { %v10093_v15 = vpop.f32.mrf.mxu0 }
 0x6b6   : > { %v10094_v46 = vadd.f32 %v10093_v15, %v10092_v10  ;;  %v3548_v10 = vadd.f32 %v10091_v36, %v3243_v7 }
 0x6b8   : > { %v14028_v47 = vpop.f32.mrf.mxu0  ;;  %v3551_v49 = vadd.f32 %v10094_v46, %v3247_v42 }
 0x6ba   : > { %v14030_v17 = vpop.f32.mrf.mxu0 }
 0x6bc   : > { %v14032_v21 = vpop.f32.mrf.mxu0 }
 0x6be   : > { %v10099_v50 = vpop.f32.mrf.mxu0 }
 0x6bf   : > { %v10100_v29 = vadd.f32 %v10099_v50, %v14032_v21 }
 0x6c0   : > { %v14034_v27 = vpop.f32.mrf.mxu0 }
 0x6c2   : > { %v14036_v33 = vpop.f32.mrf.mxu0 }
 0x6c4   : > { %v14038_v44 = vpop.f32.mrf.mxu0 }
 0x6c6   : > { %v14040_v1 = vpop.f32.mrf.mxu0 }
 0x6c7   : > { %v10106_v7 = vadd.f32 %v14040_v1, %v14038_v44  ;;  %v11362_v44 = vld [vmem:[%s16470_s2 + $0x18] ss:$48 sps:$4 sm:$0xff]   ;;  %v3259_v1 = vpop.permute.xlu1 %3258 }
 0x6c8   : > { %v14042_v41 = vpop.f32.mrf.mxu0 }
 0x6ca   : > { %v14044_v22 = vpop.f32.mrf.mxu0 }
 0x6cc   : > { %v14046_v2 = vpop.f32.mrf.mxu0 }
 0x6ce   : > { %v14048_v59 = vpop.f32.mrf.mxu0 }
 0x6d0   : > { %v14050_v3 = vpop.f32.mrf.mxu0 }
 0x6d2   : > { %v14052_v35 = vpop.f32.mrf.mxu0  ;;  %v10147_v31 = vpop.f32.mrf.mxu1 }
 0x6d4   : > { %v14054_v18 = vpop.f32.mrf.mxu0  ;;  %v10148_v28 = vpop.f32.mrf.mxu1 }
 0x6d5   : > { %v10149_v58 = vadd.f32 %v10148_v28, %v10147_v31 }
 0x6d6   : > { %v14056_v9 = vpop.f32.mrf.mxu0  ;;  %v10150_v63 = vpop.f32.mrf.mxu1 }
 0x6d7   : > { %v3637_v6 = vadd.f32 %v10149_v58, %v3540_v56 }
 0x6d8   : > { %v14058_v20 = vpop.f32.mrf.mxu0  ;;  %v10151_v23 = vpop.f32.mrf.mxu1 }
 0x6d9   : > { %v10152_v51 = vadd.f32 %v10151_v23, %v10150_v63 }
 0x6da   : > { %v14060_v53 = vpop.f32.mrf.mxu0  ;;  %v10153_v60 = vpop.f32.mrf.mxu1 }
 0x6db   : > { %v3640_v62 = vadd.f32 %v10152_v51, %v3543_v25 }
 0x6dc   : > { %v14062_v45 = vpop.f32.mrf.mxu0  ;;  %v10154_v4 = vpop.f32.mrf.mxu1 }
 0x6dd   : > { %v10155_v57 = vadd.f32 %v10154_v4, %v10153_v60  ;;  %v10097_v60 = vadd.f32 %v14030_v17, %v14028_v47  ;;  %v11353_v47 = vld [vmem:[%s16470_s2 + $0x70] ss:$48 sps:$4 sm:$0xff]   ;;  %v11356_v17 = vld [vmem:[%s16470_s2 + $0x78] ss:$48 sps:$4 sm:$0xff]  }
 0x6de   : > { %v14064_v34 = vpop.f32.mrf.mxu0  ;;  %v10156_v37 = vpop.f32.mrf.mxu1 }
 0x6e0   : > { %v14066_v54 = vpop.f32.mrf.mxu0  ;;  %v10157_v48 = vpop.f32.mrf.mxu1 }
 0x6e1   : > { %v10158_v32 = vadd.f32 %v10157_v48, %v10156_v37  ;;  %v3255_v37 = vpop.permute.xlu0 %3254  ;;  %v3645_v48 = vadd.f32 %v10155_v57, %v3548_v10 }
 0x6e2   : > { %v14068_v55 = vpop.f32.mrf.mxu0  ;;  %v10159_v11 = vpop.f32.mrf.mxu1  ;;  %v3559_v36 = vadd.f32 %v10100_v29, %v3255_v37 }
 0x6e3   : > { %v3648_v63 = vadd.f32 %v10158_v32, %v3551_v49 }
 0x6e4   : > { %v14070_v38 = vpop.f32.mrf.mxu0  ;;  %v10160_v30 = vpop.f32.mrf.mxu1 }
 0x6e5   : > { %v10161_v42 = vadd.f32 %v10160_v30, %v10159_v11  ;;  %v11361_v11 = vld [vmem:[%s16470_s2 + $0x14] ss:$48 sps:$4 sm:$0xff]   ;;  %v11364_v30 = vld [vmem:[%s16470_s2 + $0x1c] ss:$48 sps:$4 sm:$0xff]   ;;  %v3263_v49 = vpop.permute.xlu0 %3262 }
 0x6e6   : > { %v14072_v39 = vpop.f32.mrf.mxu0  ;;  %v10162_v14 = vpop.f32.mrf.mxu1  ;;  %v3567_v37 = vadd.f32 %v10106_v7, %v3263_v49 }
 0x6e8   : > { %v10374_v52 = vpop.f32.mrf.mxu0  ;;  %v10163_v0 = vpop.f32.mrf.mxu1 }
 0x6e9   : > { %v3742_v56 = vadd.f32 %v10374_v52, %v3645_v48  ;;  %v10164_v46 = vadd.f32 %v10163_v0, %v10162_v14  ;;  %v3556_v14 = vadd.f32 %v10097_v60, %v3251_v5 }
 0x6ea   : > { %v3733_v40 = vpop.f32.mrf.mxu0  ;;  %v14074_v24 = vpop.f32.mrf.mxu1 }
 0x6eb   : > { %v3734_v13 = vadd.f32 %v3733_v40, %v3637_v6  ;;  %v3814_v32 = vmul.f32 0.1, %v3742_v56  ;;  %vm3798_vm8 = vcmp.gt.f32.partialorder %v3742_v56, 0.0  ;;  %v3653_v57 = vadd.f32 %v10161_v42, %v3556_v14 }
 0x6ec   : > { %v10375_v8 = vpop.f32.mrf.mxu0  ;;  %v14076_v43 = vpop.f32.mrf.mxu1 }
 0x6ed   : > { %v3812_v15 = vmul.f32 0.1, %v3734_v13  ;;  %vm3796_vm0 = vcmp.gt.f32.partialorder %v3734_v13, 0.0  ;;  %v3745_v16 = vadd.f32 %v10375_v8, %v3648_v63  ;;  %v10103_v8 = vadd.f32 %v14036_v33, %v14034_v27  ;;  %v11367_v27 = vld [vmem:[%s16470_s2 + $0x84] ss:$48 sps:$4 sm:$0xff]  }
 0x6ee   : > { %v3736_v31 = vpop.f32.mrf.mxu0  ;;  %v10168_v28 = vpop.f32.mrf.mxu1  ;;  %v11370_v33 = vld [vmem:[%s16470_s2 + $0x8c] ss:$48 sps:$4 sm:$0xff]   ;;  %v3830_v48 = vsel %vm3798_vm8, %v3742_v56, %v3814_v32 }
 0x6ef   : > { %v3737_v23 = vadd.f32 %v3736_v31, %v3640_v62  ;;  %v3828_v21 = vsel %vm3796_vm0, %v3734_v13, %v3812_v15  ;;  %v3815_v52 = vmul.f32 0.1, %v3745_v16  ;;  %vm3799_vm7 = vcmp.gt.f32.partialorder %v3745_v16, 0.0  ;;  %v11359_v31 = vld [vmem:[%s16470_s2 + $0x10] ss:$48 sps:$4 sm:$0xff]  }
 0x6f0   : > { %v14079_v61 = vpop.f32.mrf.mxu0  ;;  %v10169_v26 = vpop.f32.mrf.mxu1  ;;  %v3656_v13 = vadd.f32 %v10164_v46, %v3559_v36  ;;  %v3564_v60 = vadd.f32 %v10103_v8, %v3259_v1 }
 0x6f1   : > { %vm3797_vm1 = vcmp.gt.f32.partialorder %v3737_v23, 0.0  ;;  %v3813_v19 = vmul.f32 0.1, %v3737_v23  ;;  %v3831_v10 = vsel %vm3799_vm7, %v3745_v16, %v3815_v52  ;;  %v10170_v15 = vadd.f32 %v10169_v26, %v10168_v28 }
 0x6f2   : > { %v3749_v4 = vpop.f32.mrf.mxu0  ;;  %v14083_v58 = vpop.f32.mrf.mxu1  ;;  %v10167_v28 = vadd.f32 %v14076_v43, %v14074_v24  ;;  %v14133_v16 = vpack.c.bf16 %v3831_v10, %v3830_v48  ;;  %v10112_v43 = vadd.f32 %v14048_v59, %v14046_v2 }
 0x6f3   : > { %v3829_v50 = vsel %vm3797_vm1, %v3737_v23, %v3813_v19  ;;  %v3750_v26 = vadd.f32 %v3749_v4, %v3653_v57  ;;  %v3664_v5 = vadd.f32 %v10170_v15, %v3567_v37 }
 0x6f4   : > { %v14085_v51 = vpack.c.bf16 %v3829_v50, %v3828_v21  ;;  %v14087_v6 = vpop.f32.mrf.mxu0  ;;  %v14089_v40 = vpop.f32.mrf.mxu1  ;;  %v3661_v4 = vadd.f32 %v10167_v28, %v3564_v60 }
 0x6f5   : > { %v3816_v56 = vmul.f32 0.1, %v3750_v26  ;;  %v3271_v50 = vpop.permute.xlu0 %3270  ;;  %vm3800_vm10 = vcmp.gt.f32.partialorder %v3750_v26, 0.0  ;;  %v3761_v36 = vadd.f32 %v14087_v6, %v3664_v5  ;;  %v10173_v7 = vadd.f32 %v14089_v40, %v14083_v58 }
 0x6f6   : > { %v3752_v0 = vpop.f32.mrf.mxu0  ;;  %9504 = vmatmul.mubr.msk.bf16.vlgmr.msra.gmra.mxu1 %vm4063_vm6, %v14085_v51  ;;  %9512 = vmatmul.mubr.msk.bf16.vlgmr.msra.gmra.mxu0 %vm4063_vm6, %v14085_v51  ;;  %v10174_v25 = vpop.f32.mrf.mxu1  ;;  %v3575_v59 = vadd.f32 %v10112_v43, %v3271_v50  ;;  %v3758_v14 = vadd.f32 %v14079_v61, %v3661_v4  ;;  %v10118_v61 = vadd.f32 %v14056_v9, %v14054_v18 }
 0x6f7   : > { %4130 = vmatprep.mubr.bf16.mxu1 %v16636_v12  ;;  %4243 = vmatprep.mubr.bf16.mxu0 %v16636_v12  ;;  %v3753_v63 = vadd.f32 %v3752_v0, %v3656_v13  ;;  %v3832_v0 = vsel %vm3800_vm10, %v3750_v26, %v3816_v56  ;;  %vm3803_vm11 = vcmp.gt.f32.partialorder %v3761_v36, 0.0 }
 0x6f8   : > { %v10175_v62 = vpop.f32.mrf.mxu1  ;;  %4327 = vmatpush1.bf16.msra.mxu1 %v11353_v47  ;;  %4440 = vmatpush1.bf16.msra.mxu0 %v11356_v17  ;;  %v14126_v23 = vpop.f32.mrf.mxu0  ;;  %v10109_v47 = vadd.f32 %v14044_v22, %v14042_v41  ;;  %v3819_v41 = vmul.f32 0.1, %v3761_v36  ;;  %v3818_v49 = vmul.f32 0.1, %v3758_v14  ;;  %vm3802_vm12 = vcmp.gt.f32.partialorder %v3758_v14, 0.0 }
 0x6f9   : > { %4328 = vmatprep.subr.bf16.mxu1 %v11361_v11  ;;  %4441 = vmatprep.subr.bf16.mxu0 %v11364_v30  ;;  %v3817_v46 = vmul.f32 0.1, %v3753_v63  ;;  %vm3801_vm9 = vcmp.gt.f32.partialorder %v3753_v63, 0.0  ;;  %v3267_v17 = vpop.permute.xlu1 %3266  ;;  %v10176_v11 = vadd.f32 %v10175_v62, %v10174_v25  ;;  %v3279_v40 = vpop.permute.xlu0 %3278  ;;  %v10115_v62 = vadd.f32 %v14052_v35, %v14050_v3 }
 0x6fa   : > { %v14128_v29 = vpop.f32.mrf.mxu1  ;;  %v3765_v21 = vpop.f32.mrf.mxu0  ;;  %v3572_v8 = vadd.f32 %v10109_v47, %v3267_v17  ;;  %v3834_v18 = vsel %vm3802_vm12, %v3758_v14, %v3818_v49  ;;  %v3583_v9 = vadd.f32 %v10118_v61, %v3279_v40  ;;  %v10124_v35 = vadd.f32 %v14064_v34, %v14062_v45 }
 0x6fb   : > { %v3833_v52 = vsel %vm3801_vm9, %v3753_v63, %v3817_v46  ;;  %v3672_v22 = vadd.f32 %v10176_v11, %v3575_v59 }
 0x6fc   : > { %v10178_v19 = vpop.f32.mrf.mxu1  ;;  %4329 = vmatpush1.bf16.msra.mxu1 %v11359_v31  ;;  %4442 = vmatpush1.bf16.msra.mxu0 %v11362_v44  ;;  %v10383_v30 = vpop.f32.mrf.mxu0  ;;  %v14150_v32 = vpack.c.bf16 %v3833_v52, %v3832_v0  ;;  %v3669_v58 = vadd.f32 %v10173_v7, %v3572_v8  ;;  %v3835_v44 = vsel %vm3803_vm11, %v3761_v36, %v3819_v41 }
 0x6fd   : > { %4552 = vmatprep.subr.bf16.mxu1 %v11367_v27  ;;  %4665 = vmatprep.subr.bf16.mxu0 %v11370_v33  ;;  %v3275_v31 = vpop.permute.xlu1 %3274  ;;  %v10179_v33 = vadd.f32 %v10178_v19, %v14128_v29  ;;  %v14165_v37 = vpack.c.bf16 %v3835_v44, %v3834_v18  ;;  %v3287_v29 = vpop.permute.xlu0 %3286  ;;  %v10121_v19 = vadd.f32 %v14060_v53, %v14058_v20 }
 0x6fe   : > { %9505 = vmatmul.mubr.msk.bf16.gmra.mxu1 %vm4063_vm6, %v14133_v16  ;;  %9513 = vmatmul.mubr.msk.bf16.gmra.mxu0 %vm4063_vm6, %v14133_v16  ;;  %v10180_v24 = vpop.f32.mrf.mxu1  ;;  %v3768_v6 = vpop.f32.mrf.mxu0  ;;  %v3766_v27 = vadd.f32 %v3765_v21, %v3669_v58  ;;  %v3580_v48 = vadd.f32 %v10115_v62, %v3275_v31  ;;  %v3591_v47 = vadd.f32 %v10124_v35, %v3287_v29  ;;  %v14289_v35 = vld [vmem:[#allocation9 + $0x94] ss:$12 sps:$4 sm:$0xff]   ;;  %v14304_v29 = vld [vmem:[#allocation9 + $0x7c] ss:$12 sps:$4 sm:$0xff]  }
 0x6ff   : > { %4140 = vmatprep.mubr.bf16.mxu1 %v16636_v12  ;;  %4253 = vmatprep.mubr.bf16.mxu0 %v16636_v12  ;;  %v3769_v1 = vadd.f32 %v3768_v6, %v3672_v22  ;;  %v10130_v20 = vadd.f32 %v14072_v39, %v14070_v38 }
 0x700   : > { %v10181_v42 = vpop.f32.mrf.mxu1  ;;  %v14162_v15 = vpop.f32.mrf.mxu0  ;;  %v3820_v5 = vmul.f32 0.1, %v3766_v27  ;;  %v3677_v46 = vadd.f32 %v10179_v33, %v3580_v48  ;;  %vm3804_vm14 = vcmp.gt.f32.partialorder %v3766_v27, 0.0  ;;  %v11376_v33 = vld [vmem:[%s16470_s2 + $0x2c] ss:$48 sps:$4 sm:$0xff]  }
 0x701   : > { %v10182_v10 = vadd.f32 %v10181_v42, %v10180_v24  ;;  %v3821_v28 = vmul.f32 0.1, %v3769_v1  ;;  %vm3805_vm13 = vcmp.gt.f32.partialorder %v3769_v1, 0.0  ;;  %v3283_v21 = vpop.permute.xlu1 %3282  ;;  %v11371_v48 = vld [vmem:[%s16470_s2 + $0x20] ss:$48 sps:$4 sm:$0xff]  }
 0x702   : > { %v10183_v2 = vpop.f32.mrf.mxu1  ;;  %v3781_v60 = vpop.f32.mrf.mxu0  ;;  %v3836_v42 = vsel %vm3804_vm14, %v3766_v27, %v3820_v5  ;;  %v3774_v45 = vadd.f32 %v14126_v23, %v3677_v46  ;;  %v3588_v36 = vadd.f32 %v10121_v19, %v3283_v21  ;;  %v11373_v27 = vld [vmem:[%s16470_s2 + $0x24] ss:$48 sps:$4 sm:$0xff]   ;;  %v14291_v5 = vld [vmem:[#allocation9 + $0x98] ss:$12 sps:$4 sm:$0xff]  }
 0x703   : > { %v3680_v26 = vadd.f32 %v10182_v10, %v3583_v9  ;;  %v3837_v24 = vsel %vm3805_vm13, %v3769_v1, %v3821_v28  ;;  %v11368_v9 = vld [vmem:[%s16470_s2 + $0x88] ss:$48 sps:$4 sm:$0xff]  }
 0x704   : > { %v10184_v13 = vpop.f32.mrf.mxu1  ;;  %v10387_v56 = vpop.f32.mrf.mxu0  ;;  %v14178_v17 = vpack.c.bf16 %v3837_v24, %v3836_v42  ;;  %v3822_v53 = vmul.f32 0.1, %v3774_v45  ;;  %vm3806_vm2 = vcmp.gt.f32.partialorder %v3774_v45, 0.0  ;;  %v11374_v28 = vld [vmem:[%s16470_s2 + $0x28] ss:$48 sps:$4 sm:$0xff]  }
 0x705   : > { %v3777_v43 = vadd.f32 %v10383_v30, %v3680_v26  ;;  %v10185_v34 = vadd.f32 %v10184_v13, %v10183_v2  ;;  %v3295_v30 = vpop.permute.xlu0 %3294  ;;  %v10127_v2 = vadd.f32 %v14068_v55, %v14066_v54  ;;  %v3291_v8 = vpop.permute.xlu1 %3290  ;;  %v14239_v26 = vld [vmem:[#allocation9 + $0xac] ss:$12 sps:$4 sm:$0xff]   ;;  %v14300_v46 = vld [vmem:[#allocation9 + $0x90] ss:$12 sps:$4 sm:$0xff]   ;;  %v14317_v24 = vld [vmem:[#allocation9 + $0x68] ss:$12 sps:$4 sm:$0xff]  }
 0x706   : > { %9506 = vmatmul.mubr.msk.bf16.gmra.mxu1 %vm4063_vm6, %v14150_v32  ;;  %9514 = vmatmul.mubr.msk.bf16.gmra.mxu0 %vm4063_vm6, %v14150_v32  ;;  %v10186_v25 = vpop.f32.mrf.mxu1  ;;  %v3784_v59 = vpop.f32.mrf.mxu0  ;;  %v3838_v41 = vsel %vm3806_vm2, %v3774_v45, %v3822_v53  ;;  %v3599_v22 = vadd.f32 %v10130_v20, %v3295_v30  ;;  %v14307_v19 = vld [vmem:[#allocation9 + $0x80] ss:$12 sps:$4 sm:$0xff]   ;;  %v14314_v21 = vld [vmem:[#allocation9 + $0x64] ss:$12 sps:$4 sm:$0xff]   ;;  %v14356_v45 = vld [vmem:[#allocation9 + $0x1c] ss:$12 sps:$4 sm:$0xff]  }
 0x707   : > { %4150 = vmatprep.mubr.bf16.mxu1 %v16636_v12  ;;  %4263 = vmatprep.mubr.bf16.mxu0 %v16636_v12  ;;  %v3823_v52 = vmul.f32 0.1, %v3777_v43  ;;  %vm3807_vm15 = vcmp.gt.f32.partialorder %v3777_v43, 0.0  ;;  %v3685_v23 = vadd.f32 %v10185_v34, %v3588_v36  ;;  %v3596_v39 = vadd.f32 %v10127_v2, %v3291_v8  ;;  %v14343_v42 = vld [vmem:[#allocation9 + $0x38] ss:$12 sps:$4 sm:$0xff]  }
 0x708   : > { %v10187_v57 = vpop.f32.mrf.mxu1  ;;  %v14359_v34 = vld [vmem:[#allocation9 + $0x20] ss:$12 sps:$4 sm:$0xff]   ;;  %v14366_v36 = vld [vmem:[#allocation9 + $0x4] ss:$12 sps:$4 sm:$0xff]  }
 0x709   : > { %v10188_v4 = vadd.f32 %v10187_v57, %v10186_v25  ;;  %v3839_v0 = vsel %vm3807_vm15, %v3777_v43, %v3823_v52  ;;  %v3782_v6 = vadd.f32 %v3781_v60, %v3685_v23  ;;  %v14241_v60 = vld [vmem:[#allocation9 + $0xb0] ss:$12 sps:$4 sm:$0xff]   ;;  %v14326_v43 = vld [vmem:[#allocation9 + $0x60] ss:$12 sps:$4 sm:$0xff]   ;;  %v14369_v52 = vld [vmem:[#allocation9 + $0x8] ss:$12 sps:$4 sm:$0xff]  }
 0x70a   : > { %v10189_v63 = vpop.f32.mrf.mxu1  ;;  %v14190_v38 = vpack.c.bf16 %v3839_v0, %v3838_v41 }
 0x70b   : > { %v3688_v11 = vadd.f32 %v10188_v4, %v3591_v47  ;;  %v3824_v54 = vmul.f32 0.1, %v3782_v6  ;;  %vm3808_vm4 = vcmp.gt.f32.partialorder %v3782_v6, 0.0  ;;  %v14330_v4 = vld [vmem:[#allocation9 + $0x4c] ss:$12 sps:$4 sm:$0xff]  }
 0x70c   : > { %v10190_v3 = vpop.f32.mrf.mxu1  ;;  %v14352_v47 = vld [vmem:[#allocation9 + $0x30] ss:$12 sps:$4 sm:$0xff]  }
 0x70d   : > { %v3785_v7 = vadd.f32 %v3784_v59, %v3688_v11  ;;  %v10191_v25 = vadd.f32 %v10190_v3, %v10189_v63  ;;  %v3840_v57 = vsel %vm3808_vm4, %v3782_v6, %v3824_v54  ;;  %v14287_v3 = vld [vmem:[#allocation9 + $0xa8] ss:$12 sps:$4 sm:$0xff]   ;;  %v14378_v11 = vld [vmem:[#allocation9] ss:$12 sps:$4 sm:$0xff]  }
 0x70e   : > { %9507 = vmatmul.mubr.msk.bf16.gmra.mxu1 %vm4063_vm6, %v14165_v37  ;;  %9515 = vmatmul.mubr.msk.bf16.gmra.mxu0 %vm4063_vm6, %v14165_v37  ;;  %v10192_v50 = vpop.f32.mrf.mxu1 }
 0x70f   : > { %4160 = vmatprep.mubr.bf16.mxu1 %v16636_v12  ;;  %4273 = vmatprep.mubr.bf16.mxu0 %v16636_v12  ;;  %v3825_v61 = vmul.f32 0.1, %v3785_v7  ;;  %vm3809_vm3 = vcmp.gt.f32.partialorder %v3785_v7, 0.0  ;;  %v3693_v55 = vadd.f32 %v10191_v25, %v3596_v39 }
 0x710   : > { %v10193_v14 = vpop.f32.mrf.mxu1 }
 0x711   : > { %v10194_v13 = vadd.f32 %v10193_v14, %v10192_v50  ;;  %v3841_v58 = vsel %vm3809_vm3, %v3785_v7, %v3825_v61  ;;  %v3790_v62 = vadd.f32 %v14162_v15, %v3693_v55  ;;  %v11365_v15 = vld [vmem:[%s16470_s2 + $0x80] ss:$48 sps:$4 sm:$0xff]   ;;  %v14340_v50 = vld [vmem:[#allocation9 + $0x34] ss:$12 sps:$4 sm:$0xff]  }
 0x712   : > { %v14199_v31 = vpack.c.bf16 %v3841_v58, %v3840_v57 }
 0x713   : > { %v3696_v49 = vadd.f32 %v10194_v13, %v3599_v22  ;;  %v3826_v1 = vmul.f32 0.1, %v3790_v62  ;;  %vm3810_vm0 = vcmp.gt.f32.partialorder %v3790_v62, 0.0 }
 0x715   : > { %v3793_v40 = vadd.f32 %v10387_v56, %v3696_v49  ;;  %v3842_v63 = vsel %vm3810_vm0, %v3790_v62, %v3826_v1  ;;  %v14333_v56 = vld [vmem:[#allocation9 + $0x50] ss:$12 sps:$4 sm:$0xff]  }
 0x716   : > { %9508 = vmatmul.mubr.msk.bf16.gmra.mxu1 %vm4063_vm6, %v14178_v17  ;;  %9516 = vmatmul.mubr.msk.bf16.gmra.mxu0 %vm4063_vm6, %v14178_v17 }
 0x717   : > { %4170 = vmatprep.mubr.bf16.mxu1 %v16636_v12  ;;  %4283 = vmatprep.mubr.bf16.mxu0 %v16636_v12  ;;  %v3827_v44 = vmul.f32 0.1, %v3793_v40  ;;  %vm3811_vm5 = vcmp.gt.f32.partialorder %v3793_v40, 0.0 }
 0x719   : > { %v3843_v10 = vsel %vm3811_vm5, %v3793_v40, %v3827_v44 }
 0x71a   : > { %v14207_v18 = vpack.c.bf16 %v3843_v10, %v3842_v63 }
 0x71e   : > { %9509 = vmatmul.mubr.msk.bf16.gmra.mxu1 %vm4063_vm6, %v14190_v38  ;;  %9517 = vmatmul.mubr.msk.bf16.gmra.mxu0 %vm4063_vm6, %v14190_v38 }
 0x71f   : > { %4180 = vmatprep.mubr.bf16.mxu1 %v16636_v12  ;;  %4293 = vmatprep.mubr.bf16.mxu0 %v16636_v12 }
 0x726   : > { %9510 = vmatmul.mubr.msk.bf16.gmra.mxu1 %vm4063_vm6, %v14199_v31  ;;  %9518 = vmatmul.mubr.msk.bf16.gmra.mxu0 %vm4063_vm6, %v14199_v31 }
 0x727   : > { %4190 = vmatprep.mubr.bf16.mxu1 %v16636_v12  ;;  %4303 = vmatprep.mubr.bf16.mxu0 %v16636_v12 }
 0x72e   : > { %9511 = vmatmul.mubr.msk.bf16.gmra.mxu1 %vm4063_vm6, %v14207_v18  ;;  %9519 = vmatmul.mubr.msk.bf16.gmra.mxu0 %vm4063_vm6, %v14207_v18 }
 0x72f   : > { %4346 = vmatprep.mubr.bf16.mxu1 %v16636_v12  ;;  %4459 = vmatprep.mubr.bf16.mxu0 %v16636_v12 }
 0x736   : > { %9520 = vmatmul.mubr.msk.bf16.vlgmr.msra.gmra.mxu1 %vm4063_vm6, %v14085_v51  ;;  %9528 = vmatmul.mubr.msk.bf16.vlgmr.msra.gmra.mxu0 %vm4063_vm6, %v14085_v51 }
 0x737   : > { %4356 = vmatprep.mubr.bf16.mxu1 %v16636_v12  ;;  %4469 = vmatprep.mubr.bf16.mxu0 %v16636_v12 }
 0x738   : > { %4553 = vmatpush1.bf16.msra.mxu1 %v11365_v15  ;;  %4666 = vmatpush1.bf16.msra.mxu0 %v11368_v9 }
 0x739   : > { %4554 = vmatprep.subr.bf16.mxu1 %v11373_v27  ;;  %4667 = vmatprep.subr.bf16.mxu0 %v11376_v33 }
 0x73c   : > { %4555 = vmatpush1.bf16.msra.mxu1 %v11371_v48  ;;  %4668 = vmatpush1.bf16.msra.mxu0 %v11374_v28 }
 0x73d   : > { %5167 = vmatprep.subr.bf16.mxu1 %v14239_v26  ;;  %10388 = vmatprep.subr.bf16.mxu0 %v14241_v60 }
 0x73e   : > { %9521 = vmatmul.mubr.msk.bf16.gmra.mxu1 %vm4063_vm6, %v14133_v16  ;;  %9529 = vmatmul.mubr.msk.bf16.gmra.mxu0 %vm4063_vm6, %v14133_v16 }
 0x73f   : > { %4366 = vmatprep.mubr.bf16.mxu1 %v16636_v12  ;;  %4479 = vmatprep.mubr.bf16.mxu0 %v16636_v12 }
 0x746   : > { %9522 = vmatmul.mubr.msk.bf16.gmra.mxu1 %vm4063_vm6, %v14150_v32  ;;  %9530 = vmatmul.mubr.msk.bf16.gmra.mxu0 %vm4063_vm6, %v14150_v32 }
 0x747   : > { %4376 = vmatprep.mubr.bf16.mxu1 %v16636_v12  ;;  %4489 = vmatprep.mubr.bf16.mxu0 %v16636_v12 }
 0x74e   : > { %9523 = vmatmul.mubr.msk.bf16.gmra.mxu1 %vm4063_vm6, %v14165_v37  ;;  %9531 = vmatmul.mubr.msk.bf16.gmra.mxu0 %vm4063_vm6, %v14165_v37 }
 0x74f   : > { %4386 = vmatprep.mubr.bf16.mxu1 %v16636_v12  ;;  %4499 = vmatprep.mubr.bf16.mxu0 %v16636_v12 }
 0x756   : > { %9524 = vmatmul.mubr.msk.bf16.gmra.mxu1 %vm4063_vm6, %v14178_v17  ;;  %9532 = vmatmul.mubr.msk.bf16.gmra.mxu0 %vm4063_vm6, %v14178_v17 }
 0x757   : > { %4396 = vmatprep.mubr.bf16.mxu1 %v16636_v12  ;;  %4509 = vmatprep.mubr.bf16.mxu0 %v16636_v12 }
 0x75e   : > { %9525 = vmatmul.mubr.msk.bf16.gmra.mxu1 %vm4063_vm6, %v14190_v38  ;;  %9533 = vmatmul.mubr.msk.bf16.gmra.mxu0 %vm4063_vm6, %v14190_v38 }
 0x75f   : > { %4406 = vmatprep.mubr.bf16.mxu1 %v16636_v12  ;;  %4519 = vmatprep.mubr.bf16.mxu0 %v16636_v12 }
 0x766   : > { %9526 = vmatmul.mubr.msk.bf16.gmra.mxu1 %vm4063_vm6, %v14199_v31  ;;  %9534 = vmatmul.mubr.msk.bf16.gmra.mxu0 %vm4063_vm6, %v14199_v31 }
 0x767   : > { %4416 = vmatprep.mubr.bf16.mxu1 %v16636_v12  ;;  %4529 = vmatprep.mubr.bf16.mxu0 %v16636_v12 }
 0x76e   : > { %9527 = vmatmul.mubr.msk.bf16.gmra.mxu1 %vm4063_vm6, %v14207_v18  ;;  %9535 = vmatmul.mubr.msk.bf16.gmra.mxu0 %vm4063_vm6, %v14207_v18 }
 0x76f   : > { %4572 = vmatprep.mubr.bf16.mxu1 %v16636_v12  ;;  %4685 = vmatprep.mubr.bf16.mxu0 %v16636_v12 }
 0x776   : > { %9536 = vmatmul.mubr.msk.bf16.vlgmr.msra.gmra.mxu1 %vm4063_vm6, %v14085_v51  ;;  %9544 = vmatmul.mubr.msk.bf16.vlgmr.msra.gmra.mxu0 %vm4063_vm6, %v14085_v51  ;;  %v14310_v51 = vld [vmem:[#allocation9 + $0x78] ss:$12 sps:$4 sm:$0xff]  }
 0x777   : > { %4582 = vmatprep.mubr.bf16.mxu1 %v16636_v12  ;;  %4695 = vmatprep.mubr.bf16.mxu0 %v16636_v12 }
 0x778   : > { %5168 = vmatpush1.bf16.msra.mxu1 %v14287_v3  ;;  %10389 = vmatpush3.bf16.msra.mxu0 %v14241_v60 }
 0x779   : > { %5169 = vmatprep.subr.bf16.mxu1 %v14289_v35  ;;  %10390 = vmatprep.subr.bf16.mxu0 %v14291_v5 }
 0x77c   : > { %5170 = vmatpush1.bf16.msra.mxu1 %v14300_v46  ;;  %10391 = vmatpush3.bf16.msra.mxu0 %v14291_v5 }
 0x77d   : > { %5171 = vmatprep.subr.bf16.mxu1 %v14304_v29  ;;  %10392 = vmatprep.subr.bf16.mxu0 %v14307_v19 }
 0x77e   : > { %9537 = vmatmul.mubr.msk.bf16.gmra.mxu1 %vm4063_vm6, %v14133_v16  ;;  %9545 = vmatmul.mubr.msk.bf16.gmra.mxu0 %vm4063_vm6, %v14133_v16  ;;  %v14336_v16 = vld [vmem:[#allocation9 + $0x48] ss:$12 sps:$4 sm:$0xff]  }
 0x77f   : > { %4592 = vmatprep.mubr.bf16.mxu1 %v16636_v12  ;;  %4705 = vmatprep.mubr.bf16.mxu0 %v16636_v12 }
 0x780   : > { %5172 = vmatpush1.bf16.msra.mxu1 %v14310_v51  ;;  %10393 = vmatpush3.bf16.msra.mxu0 %v14307_v19 }
 0x781   : > { %5173 = vmatprep.subr.bf16.mxu1 %v14314_v21  ;;  %10394 = vmatprep.subr.bf16.mxu0 %v14317_v24 }
 0x784   : > { %5174 = vmatpush1.bf16.msra.mxu1 %v14326_v43  ;;  %10395 = vmatpush3.bf16.msra.mxu0 %v14317_v24 }
 0x785   : > { %5175 = vmatprep.subr.bf16.mxu1 %v14330_v4  ;;  %10396 = vmatprep.subr.bf16.mxu0 %v14333_v56 }
 0x786   : > { %9538 = vmatmul.mubr.msk.bf16.gmra.mxu1 %vm4063_vm6, %v14150_v32  ;;  %9546 = vmatmul.mubr.msk.bf16.gmra.mxu0 %vm4063_vm6, %v14150_v32  ;;  %v14362_v32 = vld [vmem:[#allocation9 + $0x18] ss:$12 sps:$4 sm:$0xff]  }
 0x787   : > { %4602 = vmatprep.mubr.bf16.mxu1 %v16636_v12  ;;  %4715 = vmatprep.mubr.bf16.mxu0 %v16636_v12 }
 0x788   : > { %5176 = vmatpush1.bf16.msra.mxu1 %v14336_v16  ;;  %10397 = vmatpush3.bf16.msra.mxu0 %v14333_v56 }
 0x789   : > { %5177 = vmatprep.subr.bf16.mxu1 %v14340_v50  ;;  %10398 = vmatprep.subr.bf16.mxu0 %v14343_v42 }
 0x78c   : > { %5178 = vmatpush1.bf16.msra.mxu1 %v14352_v47  ;;  %10399 = vmatpush3.bf16.msra.mxu0 %v14343_v42 }
 0x78d   : > { %5179 = vmatprep.subr.bf16.mxu1 %v14356_v45  ;;  %10400 = vmatprep.subr.bf16.mxu0 %v14359_v34 }
 0x78e   : > { %9539 = vmatmul.mubr.msk.bf16.gmra.mxu1 %vm4063_vm6, %v14165_v37  ;;  %9547 = vmatmul.mubr.msk.bf16.gmra.mxu0 %vm4063_vm6, %v14165_v37 }
 0x78f   : > { %4612 = vmatprep.mubr.bf16.mxu1 %v16636_v12  ;;  %4725 = vmatprep.mubr.bf16.mxu0 %v16636_v12 }
 0x790   : > { %5180 = vmatpush1.bf16.msra.mxu1 %v14362_v32  ;;  %10401 = vmatpush3.bf16.msra.mxu0 %v14359_v34 }
 0x791   : > { %5181 = vmatprep.subr.bf16.mxu1 %v14366_v36  ;;  %10402 = vmatprep.subr.bf16.mxu0 %v14369_v52 }
 0x794   : > { %5182 = vmatpush1.bf16.msra.mxu1 %v14378_v11  ;;  %10403 = vmatpush3.bf16.msra.mxu0 %v14369_v52 }
 0x795   : > { %5849 = vmatprep.subr.bf16.mxu0 %v14239_v26  ;;  %10420 = vmatprep.subr.bf16.mxu1 %v14241_v60 }
 0x796   : > { %9540 = vmatmul.mubr.msk.bf16.gmra.mxu1 %vm4063_vm6, %v14178_v17  ;;  %9548 = vmatmul.mubr.msk.bf16.gmra.mxu0 %vm4063_vm6, %v14178_v17 }
 0x797   : > { %4622 = vmatprep.mubr.bf16.mxu1 %v16636_v12  ;;  %4735 = vmatprep.mubr.bf16.mxu0 %v16636_v12 }
 0x79e   : > { %9541 = vmatmul.mubr.msk.bf16.gmra.mxu1 %vm4063_vm6, %v14190_v38  ;;  %9549 = vmatmul.mubr.msk.bf16.gmra.mxu0 %vm4063_vm6, %v14190_v38 }
 0x79f   : > { %4632 = vmatprep.mubr.bf16.mxu1 %v16636_v12  ;;  %4745 = vmatprep.mubr.bf16.mxu0 %v16636_v12 }
 0x7a6   : > { %9542 = vmatmul.mubr.msk.bf16.gmra.mxu1 %vm4063_vm6, %v14199_v31  ;;  %9550 = vmatmul.mubr.msk.bf16.gmra.mxu0 %vm4063_vm6, %v14199_v31 }
 0x7a7   : > { %4642 = vmatprep.mubr.bf16.mxu1 %v16636_v12  ;;  %4755 = vmatprep.mubr.bf16.mxu0 %v16636_v12 }
 0x7ae   : > { %9543 = vmatmul.mubr.msk.bf16.gmra.mxu1 %vm4063_vm6, %v14207_v18  ;;  %9551 = vmatmul.mubr.msk.bf16.gmra.mxu0 %vm4063_vm6, %v14207_v18 }
 0x7af   : > { %5199 = vmatprep.mubr.bf16.mxu1 %v16636_v12  ;;  %10404 = vmatprep.mubr.bf16.mxu0 %v16636_v12 }
 0x7b6   : > { %v14411_v37 = vpop.f32.mrf.mxu1  ;;  %v14413_v17 = vpop.f32.mrf.mxu0  ;;  %5200 = vmatmul.mubr.bf16.vlgmr.msra.gmra.mxu1 %v16636_v12  ;;  %10405 = vmatmul.mubr.bf16.vlgmr.msra.gmra.mxu0 %v16636_v12 }
 0x7b7   : > { %5209 = vmatprep.mubr.bf16.mxu1 %v16636_v12  ;;  %10408 = vmatprep.mubr.bf16.mxu0 %v16636_v12 }
 0x7b8   : > { %v14419_v59 = vpop.f32.mrf.mxu1  ;;  %v14421_v14 = vpop.f32.mrf.mxu0  ;;  %5850 = vmatpush1.bf16.msra.mxu0 %v14287_v3  ;;  %10421 = vmatpush3.bf16.msra.mxu1 %v14241_v60 }
 0x7b9   : > { %16637 = vst [vmem:[#allocation32_spill] sm:$0xff] %v14421_v14  ;;  %5851 = vmatprep.subr.bf16.mxu0 %v14289_v35  ;;  %10422 = vmatprep.subr.bf16.mxu1 %v14291_v5 }
 0x7ba   : > { %v14427_v20 = vpop.f32.mrf.mxu1  ;;  %v14429_v53 = vpop.f32.mrf.mxu0 }
 0x7bc   : > { %v14431_v23 = vpop.f32.mrf.mxu1  ;;  %v14433_v30 = vpop.f32.mrf.mxu0  ;;  %5852 = vmatpush1.bf16.msra.mxu0 %v14300_v46  ;;  %10423 = vmatpush3.bf16.msra.mxu1 %v14291_v5  ;;  %v16495_v46 = vlaneseq }
 0x7bd   : > { %16638 = vst [vmem:[#allocation42_spill] sm:$0xff] %v14433_v30  ;;  %5853 = vmatprep.subr.bf16.mxu0 %v14304_v29  ;;  %10424 = vmatprep.subr.bf16.mxu1 %v14307_v19 }
 0x7be   : > { %v14439_v2 = vpop.f32.mrf.mxu1  ;;  %v14441_v0 = vpop.f32.mrf.mxu0  ;;  %5210 = vmatmul.mubr.bf16.gmra.mxu1 %v16636_v12  ;;  %10409 = vmatmul.mubr.bf16.gmra.mxu0 %v16636_v12 }
 0x7bf   : > { %5219 = vmatprep.mubr.bf16.mxu1 %v16636_v12  ;;  %10412 = vmatprep.mubr.bf16.mxu0 %v16636_v12 }
 0x7c0   : > { %v14447_v7 = vpop.f32.mrf.mxu1  ;;  %v14449_v13 = vpop.f32.mrf.mxu0  ;;  %5854 = vmatpush1.bf16.msra.mxu0 %v14310_v51  ;;  %10425 = vmatpush3.bf16.msra.mxu1 %v14307_v19 }
 0x7c1   : > { %16639 = vst [vmem:[#allocation44_spill] sm:$0xff] %v14449_v13  ;;  %5855 = vmatprep.subr.bf16.mxu0 %v14314_v21  ;;  %10426 = vmatprep.subr.bf16.mxu1 %v14317_v24 }
 0x7c2   : > { %v14455_v8 = vpop.f32.mrf.mxu1  ;;  %v14457_v41 = vpop.f32.mrf.mxu0 }
 0x7c4   : > { %v14459_v22 = vpop.f32.mrf.mxu1  ;;  %v14461_v6 = vpop.f32.mrf.mxu0  ;;  %5856 = vmatpush1.bf16.msra.mxu0 %v14326_v43  ;;  %10427 = vmatpush3.bf16.msra.mxu1 %v14317_v24  ;;  %v14560_v24 = vshrl.u32 %v16495_v46, 7  ;;  %v3876_v43 = vld [vmem:[#allocation14] ss:$8 sm:$0xf] }
 0x7c5   : > { %16640 = vst [vmem:[#allocation38_spill] sm:$0xff] %v14461_v6  ;;  %5857 = vmatprep.subr.bf16.mxu0 %v14330_v4  ;;  %10428 = vmatprep.subr.bf16.mxu1 %v14333_v56  ;;  %v3877_v4 = vld [vmem:[#allocation14] ss:$8 sm:$0xf0] }
 0x7c6   : > { %v14467_v25 = vpop.f32.mrf.mxu1  ;;  %v14469_v38 = vpop.f32.mrf.mxu0  ;;  %5220 = vmatmul.mubr.bf16.gmra.mxu1 %v16636_v12  ;;  %10413 = vmatmul.mubr.bf16.gmra.mxu0 %v16636_v12 }
 0x7c7   : > { %5229 = vmatprep.mubr.bf16.mxu1 %v16636_v12  ;;  %10416 = vmatprep.mubr.bf16.mxu0 %v16636_v12 }
 0x7c8   : > { %v14475_v39 = vpop.f32.mrf.mxu1  ;;  %v14477_v61 = vpop.f32.mrf.mxu0  ;;  %5858 = vmatpush1.bf16.msra.mxu0 %v14336_v16  ;;  %10429 = vmatpush3.bf16.msra.mxu1 %v14333_v56 }
 0x7c9   : > { %16641 = vst [vmem:[#allocation29_spill] sm:$0xff] %v14477_v61  ;;  %5859 = vmatprep.subr.bf16.mxu0 %v14340_v50  ;;  %10430 = vmatprep.subr.bf16.mxu1 %v14343_v42 }
 0x7ca   : > { %v14483_v49 = vpop.f32.mrf.mxu1  ;;  %v14485_v54 = vpop.f32.mrf.mxu0 }
 0x7cc   : > { %v14487_v55 = vpop.f32.mrf.mxu1  ;;  %v14489_v58 = vpop.f32.mrf.mxu0  ;;  %5860 = vmatpush1.bf16.msra.mxu0 %v14352_v47  ;;  %10431 = vmatpush3.bf16.msra.mxu1 %v14343_v42  ;;  %v14572_v47 = vor.u32 %v3877_v4, %v3876_v43 }
 0x7cd   : > { %16642 = vst [vmem:[#allocation28_spill] sm:$0xff] %v14489_v58  ;;  %5861 = vmatprep.subr.bf16.mxu0 %v14356_v45  ;;  %10432 = vmatprep.subr.bf16.mxu1 %v14359_v34  ;;  %v14575_v45 = vsub.s32 0, %v14560_v24 }
 0x7ce   : > { %v14495_v40 = vpop.f32.mrf.mxu1  ;;  %v14497_v57 = vpop.f32.mrf.mxu0  ;;  %5230 = vmatmul.mubr.bf16.gmra.mxu1 %v16636_v12  ;;  %10417 = vmatmul.mubr.bf16.gmra.mxu0 %v16636_v12 }
 0x7cf   : > { %5239 = vmatprep.mubr.bf16.mxu1 %v16636_v12  ;;  %5881 = vmatprep.mubr.bf16.mxu0 %v16636_v12  ;;  %16653 = vst [vmem:[#allocation33_spill] sm:$0xff] %v14575_v45  ;;  %v14596_v4 = vrot.slane %v14572_v47, %v14575_v45 }
 0x7d0   : > { %v14503_v62 = vpop.f32.mrf.mxu1  ;;  %v14505_v31 = vpop.f32.mrf.mxu0  ;;  %5862 = vmatpush1.bf16.msra.mxu0 %v14362_v32  ;;  %10433 = vmatpush3.bf16.msra.mxu1 %v14359_v34  ;;  %v14578_v34 = vsub.s32 2, %v14560_v24 }
 0x7d1   : > { %16643 = vst [vmem:[#allocation31_spill] sm:$0xff] %v14505_v31  ;;  %5863 = vmatprep.subr.bf16.mxu0 %v14366_v36  ;;  %10434 = vmatprep.subr.bf16.mxu1 %v14369_v52 }
 0x7d2   : > { %v14511_v44 = vpop.f32.mrf.mxu1  ;;  %v14513_v1 = vpop.f32.mrf.mxu0  ;;  %16654 = vst [vmem:[#allocation35_spill] sm:$0xff] %v14578_v34 }
 0x7d4   : > { %v14515_v10 = vpop.f32.mrf.mxu1  ;;  %v14517_v63 = vpop.f32.mrf.mxu0  ;;  %5864 = vmatpush1.bf16.msra.mxu0 %v14378_v11  ;;  %10435 = vmatpush3.bf16.msra.mxu1 %v14369_v52  ;;  %v14585_v52 = vsub.s32 1, %v14560_v24  ;;  %v14588_v11 = vsub.s32 3, %v14560_v24 }
 0x7d5   : > { %16644 = vst [vmem:[#allocation36_spill] sm:$0xff] %v14517_v63  ;;  %6531 = vmatprep.subr.bf16.mxu1 %v14239_v26  ;;  %10452 = vmatprep.subr.bf16.mxu0 %v14241_v60 }
 0x7d6   : > { %v14523_v18 = vpop.f32.mrf.mxu1  ;;  %v14525_v15 = vpop.f32.mrf.mxu0  ;;  %5240 = vmatmul.mubr.bf16.gmra.mxu1 %v16636_v12  ;;  %16656 = vst [vmem:[#allocation26_spill] sm:$0xff] %v14585_v52  ;;  %16657 = vst [vmem:[#allocation46_spill] sm:$0xff] %v14588_v11 }
 0x7d7   : > { %5249 = vmatprep.mubr.bf16.mxu1 %v16636_v12 }
 0x7d8   : > { %v14529_v9 = vpop.f32.mrf.mxu1  ;;  %v14531_v27 = vpop.f32.mrf.mxu0 }
 0x7d9   : > { %16645 = vst [vmem:[#allocation27_spill] sm:$0xff] %v14531_v27  ;;  %v14609_v27 = vrot.slane %v14572_v47, %v14588_v11 }
 0x7da   : > { %v14533_v33 = vpop.f32.mrf.mxu1  ;;  %v14535_v48 = vpop.f32.mrf.mxu0 }
 0x7db   : > { %16659 = vst [vmem:[#allocation23_spill] sm:$0xff] %v14609_v27 }
 0x7dc   : > { %v14537_v28 = vpop.f32.mrf.mxu1  ;;  %v14539_v26 = vpop.f32.mrf.mxu0 }
 0x7dd   : > { %16646 = vst [vmem:[#allocation37_spill] sm:$0xff] %v14539_v26  ;;  %v14605_v26 = vrot.slane %v14572_v47, %v14585_v52 }
 0x7de   : > { %v14541_v60 = vpop.f32.mrf.mxu1  ;;  %v14543_v3 = vpop.f32.mrf.mxu0  ;;  %5250 = vmatmul.mubr.bf16.gmra.mxu1 %v16636_v12 }
 0x7df   : > { %16647 = vst [vmem:[#allocation40_spill] sm:$0xff] %v14543_v3  ;;  %5259 = vmatprep.mubr.bf16.mxu1 %v16636_v12 }
 0x7e0   : > { %v14547_v35 = vpop.f32.mrf.mxu1  ;;  %v14549_v5 = vpop.f32.mrf.mxu0 }
 0x7e1   : > { %16648 = vst [vmem:[#allocation34_spill] sm:$0xff] %v14549_v5 }
 0x7e2   : > { %v14551_v29 = vpop.f32.mrf.mxu1  ;;  %v14553_v19 = vpop.f32.mrf.mxu0 }
 0x7e3   : > { %16649 = vst [vmem:[#allocation43_spill] sm:$0xff] %v14553_v19 }
 0x7e4   : > { %v14555_v51 = vpop.f32.mrf.mxu1  ;;  %v14557_v21 = vpop.f32.mrf.mxu0 }
 0x7e5   : > { %16650 = vst [vmem:[#allocation45_spill] sm:$0xff] %v14557_v21 }
 0x7e6   : > { %v14562_v56 = vpop.f32.mrf.mxu1  ;;  %v14564_v16 = vpop.f32.mrf.mxu0  ;;  %5260 = vmatmul.mubr.bf16.gmra.mxu1 %v16636_v12 }
 0x7e7   : > { %16651 = vst [vmem:[#allocation41_spill] sm:$0xff] %v14564_v16  ;;  %5269 = vmatprep.mubr.bf16.mxu1 %v16636_v12 }
 0x7e8   : > { %v14568_v50 = vpop.f32.mrf.mxu1  ;;  %v14570_v42 = vpop.f32.mrf.mxu0 }
 0x7e9   : > { %16652 = vst [vmem:[#allocation30_spill] sm:$0xff] %v14570_v42  ;;  %v14600_v42 = vrot.slane %v14572_v47, %v14578_v34 }
 0x7ea   : > { %v14580_v32 = vpop.f32.mrf.mxu1  ;;  %v14582_v36 = vpop.f32.mrf.mxu0 }
 0x7eb   : > { %16655 = vst [vmem:[#allocation39_spill] sm:$0xff] %v14582_v36 }
 0x7ec   : > { %v14590_v46 = vpop.f32.mrf.mxu1  ;;  %v14592_v43 = vpop.f32.mrf.mxu0 }
 0x7ed   : > { %16658 = vst [vmem:[#allocation22_spill] sm:$0xff] %v14592_v43 }
 0x7ee   : > { %v4192_v21 = vpop.f32.mrf.mxu1  ;;  %v4305_v5 = vpop.f32.mrf.mxu0  ;;  %5270 = vmatmul.mubr.bf16.gmra.mxu1 %v16636_v12 }
 0x7ef   : > { %v14612_v43 = vadd.f32 %v4192_v21, %v14596_v4  ;;  %v14615_v63 = vadd.f32 %v4305_v5, %v14600_v42 }
 0x7f0   : > { %v4194_v31 = vpop.f32.mrf.mxu1  ;;  %v4307_v58 = vpop.f32.mrf.mxu0 }
 0x7f1   : > { %16660 = vst [vmem:[#allocation24_spill] sm:$0xff] %v14612_v43  ;;  %16661 = vst [vmem:[#allocation25_spill] sm:$0xff] %v14615_v63  ;;  %v14618_v61 = vadd.f32 %v4194_v31, %v14605_v26  ;;  %v14621_v6 = vadd.f32 %v4307_v58, %v14609_v27 }
 0x7f2   : > { %v4196_v13 = vpop.f32.mrf.mxu1  ;;  %v4309_v30 = vpop.f32.mrf.mxu0 }
 0x7f3   : > { %16662 = vst [vmem:[#allocation47_spill] sm:$0xff] %v14618_v61  ;;  %16663 = vst [vmem:[#allocation48_spill] sm:$0xff] %v14621_v6  ;;  %v14624_v14 = vadd.f32 %v4196_v13, %v14596_v4  ;;  %v14627_v36 = vadd.f32 %v4309_v30, %v14600_v42 }
 0x7f4   : > { %v14629_v21 = vpop.f32.mrf.mxu1  ;;  %v14631_v5 = vpop.f32.mrf.mxu0 }
 0x7f5   : > { %16664 = vst [vmem:[#allocation49_spill] sm:$0xff] %v14624_v14  ;;  %16665 = vst [vmem:[#allocation50_spill] sm:$0xff] %v14627_v36 }
 0x7f6   : > { %16666 = vst [vmem:[#allocation51_spill] sm:$0xff] %v14631_v5  ;;  %v14633_v63 = vpop.f32.mrf.mxu1  ;;  %v14635_v16 = vpop.f32.mrf.mxu0 }
 0x7f7   : > { %16667 = vst [vmem:[#allocation52_spill] sm:$0xff] %v14633_v63  ;;  %16668 = vst [vmem:[#allocation53_spill] sm:$0xff] %v14635_v16 }
 0x7f8   : > { %v14637_v31 = vpop.f32.mrf.mxu1  ;;  %v14639_v58 = vpop.f32.mrf.mxu0 }
 0x7f9   : > { %16669 = vst [vmem:[#allocation54_spill] sm:$0xff] %v14637_v31  ;;  %16670 = vst [vmem:[#allocation55_spill] sm:$0xff] %v14639_v58 }
 0x7fa   : > { %v14641_v6 = vpop.f32.mrf.mxu1  ;;  %v14643_v27 = vpop.f32.mrf.mxu0 }
 0x7fb   : > { %16671 = vst [vmem:[#allocation56_spill] sm:$0xff] %v14641_v6  ;;  %16672 = vst [vmem:[#allocation57_spill] sm:$0xff] %v14643_v27 }
 0x7fc   : > { %v14645_v13 = vpop.f32.mrf.mxu1  ;;  %v14647_v30 = vpop.f32.mrf.mxu0 }
 0x7fd   : > { %16673 = vst [vmem:[#allocation58_spill] sm:$0xff] %v14645_v13  ;;  %16674 = vst [vmem:[#allocation59_spill] sm:$0xff] %v14647_v30 }
 0x7fe   : > { %v14649_v36 = vpop.f32.mrf.mxu1  ;;  %v14651_v19 = vpop.f32.mrf.mxu0 }
 0x7ff   : > { %16675 = vst [vmem:[#allocation60_spill] sm:$0xff] %v14649_v36  ;;  %16676 = vst [vmem:[#allocation61_spill] sm:$0xff] %v14651_v19 }
 0x800   : > { %v14653_v5 = vpop.f32.mrf.mxu1  ;;  %v14655_v63 = vpop.f32.mrf.mxu0 }
 0x801   : > { %16677 = vst [vmem:[#allocation62_spill] sm:$0xff] %v14653_v5  ;;  %16678 = vst [vmem:[#allocation63_spill] sm:$0xff] %v14655_v63 }
 0x802   : > { %v14657_v16 = vpop.f32.mrf.mxu1  ;;  %v14659_v31 = vpop.f32.mrf.mxu0 }
 0x803   : > { %16679 = vst [vmem:[#allocation64_spill] sm:$0xff] %v14657_v16  ;;  %16680 = vst [vmem:[#allocation65_spill] sm:$0xff] %v14659_v31 }
 0x804   : > { %v14661_v58 = vpop.f32.mrf.mxu1  ;;  %v14663_v6 = vpop.f32.mrf.mxu0 }
 0x805   : > { %16681 = vst [vmem:[#allocation66_spill] sm:$0xff] %v14661_v58  ;;  %16682 = vst [vmem:[#allocation67_spill] sm:$0xff] %v14663_v6 }
 0x806   : > { %v14665_v27 = vpop.f32.mrf.mxu1  ;;  %v14667_v13 = vpop.f32.mrf.mxu0 }
 0x807   : > { %16683 = vst [vmem:[#allocation68_spill] sm:$0xff] %v14665_v27  ;;  %16684 = vst [vmem:[#allocation69_spill] sm:$0xff] %v14667_v13 }
 0x808   : > { %v14669_v30 = vpop.f32.mrf.mxu1  ;;  %v14671_v36 = vpop.f32.mrf.mxu0 }
 0x809   : > { %16685 = vst [vmem:[#allocation70_spill] sm:$0xff] %v14669_v30  ;;  %16686 = vst [vmem:[#allocation71_spill] sm:$0xff] %v14671_v36 }
 0x80a   : > { %v14673_v19 = vpop.f32.mrf.mxu1  ;;  %v14675_v5 = vpop.f32.mrf.mxu0 }
 0x80b   : > { %16687 = vst [vmem:[#allocation72_spill] sm:$0xff] %v14673_v19  ;;  %16688 = vst [vmem:[#allocation73_spill] sm:$0xff] %v14675_v5 }
 0x80c   : > { %v14677_v63 = vpop.f32.mrf.mxu1  ;;  %v14679_v16 = vpop.f32.mrf.mxu0 }
 0x80d   : > { %16689 = vst [vmem:[#allocation74_spill] sm:$0xff] %v14677_v63  ;;  %16690 = vst [vmem:[#allocation75_spill] sm:$0xff] %v14679_v16 }
 0x80e   : > { %v14681_v31 = vpop.f32.mrf.mxu1  ;;  %v14683_v58 = vpop.f32.mrf.mxu0 }
 0x80f   : > { %16691 = vst [vmem:[#allocation76_spill] sm:$0xff] %v14681_v31  ;;  %16692 = vst [vmem:[#allocation77_spill] sm:$0xff] %v14683_v58 }
 0x810   : > { %v14685_v6 = vpop.f32.mrf.mxu1  ;;  %v14687_v27 = vpop.f32.mrf.mxu0 }
 0x811   : > { %16693 = vst [vmem:[#allocation78_spill] sm:$0xff] %v14685_v6  ;;  %16694 = vst [vmem:[#allocation79_spill] sm:$0xff] %v14687_v27 }
 0x812   : > { %v14689_v13 = vpop.f32.mrf.mxu1  ;;  %v14691_v30 = vpop.f32.mrf.mxu0 }
 0x813   : > { %16695 = vst [vmem:[#allocation80_spill] sm:$0xff] %v14689_v13  ;;  %16696 = vst [vmem:[#allocation81_spill] sm:$0xff] %v14691_v30 }
 0x814   : > { %v14693_v36 = vpop.f32.mrf.mxu1  ;;  %v14695_v19 = vpop.f32.mrf.mxu0 }
 0x815   : > { %16697 = vst [vmem:[#allocation82_spill] sm:$0xff] %v14693_v36  ;;  %16698 = vst [vmem:[#allocation83_spill] sm:$0xff] %v14695_v19 }
 0x816   : > { %v14697_v5 = vpop.f32.mrf.mxu1  ;;  %v14699_v63 = vpop.f32.mrf.mxu0 }
 0x817   : > { %16699 = vst [vmem:[#allocation84_spill] sm:$0xff] %v14697_v5  ;;  %16700 = vst [vmem:[#allocation85_spill] sm:$0xff] %v14699_v63 }
 0x818   : > { %v14701_v16 = vpop.f32.mrf.mxu1  ;;  %v14703_v31 = vpop.f32.mrf.mxu0 }
 0x819   : > { %16701 = vst [vmem:[#allocation86_spill] sm:$0xff] %v14701_v16  ;;  %16702 = vst [vmem:[#allocation87_spill] sm:$0xff] %v14703_v31 }
 0x81a   : > { %v14705_v58 = vpop.f32.mrf.mxu1  ;;  %v14707_v6 = vpop.f32.mrf.mxu0 }
 0x81b   : > { %16703 = vst [vmem:[#allocation88_spill] sm:$0xff] %v14705_v58  ;;  %16704 = vst [vmem:[#allocation89_spill] sm:$0xff] %v14707_v6 }
 0x81c   : > { %v14709_v27 = vpop.f32.mrf.mxu1  ;;  %v14711_v13 = vpop.f32.mrf.mxu0 }
 0x81d   : > { %16705 = vst [vmem:[#allocation90_spill] sm:$0xff] %v14709_v27  ;;  %16706 = vst [vmem:[#allocation91_spill] sm:$0xff] %v14711_v13 }
 0x81e   : > { %v14713_v30 = vpop.f32.mrf.mxu1  ;;  %v14715_v36 = vpop.f32.mrf.mxu0 }
 0x81f   : > { %16707 = vst [vmem:[#allocation92_spill] sm:$0xff] %v14713_v30  ;;  %16708 = vst [vmem:[#allocation93_spill] sm:$0xff] %v14715_v36  ;;  %v14738_v36 = vsub.s32 4, %v14560_v24 }
 0x820   : > { %v14717_v19 = vpop.f32.mrf.mxu1  ;;  %v14719_v5 = vpop.f32.mrf.mxu0 }
 0x821   : > { %16709 = vst [vmem:[#allocation94_spill] sm:$0xff] %v14717_v19  ;;  %16710 = vst [vmem:[#allocation95_spill] sm:$0xff] %v14719_v5  ;;  %v14741_v5 = vsub.s32 6, %v14560_v24 }
 0x822   : > { %v14721_v63 = vpop.f32.mrf.mxu1  ;;  %v14723_v16 = vpop.f32.mrf.mxu0  ;;  %16719 = vst [vmem:[#allocation104_spill] sm:$0xff] %v14738_v36 }
 0x823   : > { %16711 = vst [vmem:[#allocation96_spill] sm:$0xff] %v14721_v63  ;;  %16712 = vst [vmem:[#allocation97_spill] sm:$0xff] %v14723_v16 }
 0x824   : > { %v14725_v31 = vpop.f32.mrf.mxu1  ;;  %v14727_v58 = vpop.f32.mrf.mxu0  ;;  %16720 = vst [vmem:[#allocation105_spill] sm:$0xff] %v14741_v5 }
 0x825   : > { %16713 = vst [vmem:[#allocation98_spill] sm:$0xff] %v14725_v31  ;;  %16714 = vst [vmem:[#allocation99_spill] sm:$0xff] %v14727_v58  ;;  %v14748_v58 = vsub.s32 5, %v14560_v24  ;;  %v14751_v31 = vsub.s32 7, %v14560_v24 }
 0x826   : > { %v14729_v6 = vpop.f32.mrf.mxu1  ;;  %v14731_v27 = vpop.f32.mrf.mxu0 }
 0x827   : > { %16715 = vst [vmem:[#allocation100_spill] sm:$0xff] %v14729_v6  ;;  %16716 = vst [vmem:[#allocation101_spill] sm:$0xff] %v14731_v27  ;;  %v14763_v6 = vrot.slane %v14572_v47, %v14741_v5  ;;  %v14767_v63 = vrot.slane %v14572_v47, %v14748_v58  ;;  %v14771_v3 = vrot.slane %v14572_v47, %v14751_v31  ;;  %v14779_v5 = vld [vmem:[#allocation14 + $0x40] ss:$8 sm:$0xf] }
 0x828   : > { %v14733_v13 = vpop.f32.mrf.mxu1  ;;  %v14735_v30 = vpop.f32.mrf.mxu0  ;;  %16723 = vst [vmem:[#allocation108_spill] sm:$0xff] %v14748_v58  ;;  %16724 = vst [vmem:[#allocation109_spill] sm:$0xff] %v14751_v31 }
 0x829   : > { %16717 = vst [vmem:[#allocation102_spill] sm:$0xff] %v14733_v13  ;;  %16718 = vst [vmem:[#allocation103_spill] sm:$0xff] %v14735_v30  ;;  %v14759_v30 = vrot.slane %v14572_v47, %v14738_v36 }
 0x82a   : > { %v14743_v19 = vpop.f32.mrf.mxu1  ;;  %v14745_v16 = vpop.f32.mrf.mxu0  ;;  %16727 = vst [vmem:[#allocation112_spill] sm:$0xff] %v14763_v6  ;;  %16728 = vst [vmem:[#allocation113_spill] sm:$0xff] %v14771_v3 }
 0x82b   : > { %16721 = vst [vmem:[#allocation106_spill] sm:$0xff] %v14743_v19  ;;  %16722 = vst [vmem:[#allocation107_spill] sm:$0xff] %v14745_v16 }
 0x82c   : > { %v14753_v27 = vpop.f32.mrf.mxu1  ;;  %v14755_v13 = vpop.f32.mrf.mxu0 }
 0x82d   : > { %16725 = vst [vmem:[#allocation110_spill] sm:$0xff] %v14753_v27  ;;  %16726 = vst [vmem:[#allocation111_spill] sm:$0xff] %v14755_v13 }
 0x82e   : > { %v4418_v19 = vpop.f32.mrf.mxu1  ;;  %v4531_v16 = vpop.f32.mrf.mxu0 }
 0x82f   : > { %v14774_v13 = vadd.f32 %v4418_v19, %v14759_v30  ;;  %v14777_v36 = vadd.f32 %v4531_v16, %v14763_v6  ;;  %v14795_v16 = vrot.slane %v14779_v5, %v14578_v34 }
 0x830   : > { %v4420_v27 = vpop.f32.mrf.mxu1  ;;  %v4533_v12 = vpop.f32.mrf.mxu0 }
 0x831   : > { %16729 = vst [vmem:[#allocation114_spill] sm:$0xff] %v14777_v36  ;;  %v14782_v61 = vadd.f32 %v4420_v27, %v14767_v63  ;;  %v14785_v58 = vadd.f32 %v4533_v12, %v14771_v3  ;;  %v14803_v12 = vrot.slane %v14779_v5, %v14585_v52  ;;  %v14807_v27 = vrot.slane %v14779_v5, %v14588_v11 }
 0x832   : > { %v4422_v14 = vpop.f32.mrf.mxu1  ;;  %v4535_v43 = vpop.f32.mrf.mxu0 }
 0x833   : > { %16730 = vst [vmem:[#allocation115_spill] sm:$0xff] %v14782_v61  ;;  %16731 = vst [vmem:[#allocation116_spill] sm:$0xff] %v14785_v58  ;;  %v14788_v47 = vadd.f32 %v4422_v14, %v14759_v30  ;;  %v14791_v19 = vadd.f32 %v4535_v43, %v14763_v6 }
 0x834   : > { %v14797_v31 = vpop.f32.mrf.mxu1  ;;  %v14799_v36 = vpop.f32.mrf.mxu0  ;;  %16735 = vst [vmem:[#allocation120_spill] sm:$0xff] %v14803_v12  ;;  %16736 = vst [vmem:[#allocation121_spill] sm:$0xff] %v14807_v27 }
 0x835   : > { %16732 = vst [vmem:[#allocation117_spill] sm:$0xff] %v14791_v19  ;;  %16733 = vst [vmem:[#allocation118_spill] sm:$0xff] %v14797_v31 }
 0x836   : > { %16734 = vst [vmem:[#allocation119_spill] sm:$0xff] %v14799_v36  ;;  %v14809_v14 = vpop.f32.mrf.mxu1  ;;  %v4687_v43 = vpop.f32.mrf.mxu0 }
 0x837   : > { %16737 = vst [vmem:[#allocation122_spill] sm:$0xff] %v14809_v14  ;;  %v14812_v58 = vadd.f32 %v4687_v43, %v14795_v16 }
 0x838   : > { %v4576_v34 = vpop.f32.mrf.mxu1  ;;  %v4689_v19 = vpop.f32.mrf.mxu0 }
 0x839   : > { %16738 = vst [vmem:[#allocation123_spill] sm:$0xff] %v14812_v58  ;;  %v14815_v3 = vadd.f32 %v4576_v34, %v14803_v12  ;;  %v14818_v36 = vadd.f32 %v4689_v19, %v14807_v27 }
 0x83a   : > { %v14820_v52 = vpop.f32.mrf.mxu1  ;;  %v4691_v6 = vpop.f32.mrf.mxu0 }
 0x83b   : > { %16739 = vst [vmem:[#allocation124_spill] sm:$0xff] %v14815_v3  ;;  %16740 = vst [vmem:[#allocation125_spill] sm:$0xff] %v14818_v36  ;;  %v14823_v11 = vadd.f32 %v4691_v6, %v14795_v16 }
 0x83c   : > { %16741 = vst [vmem:[#allocation126_spill] sm:$0xff] %v14820_v52  ;;  %v14825_v31 = vpop.f32.mrf.mxu1  ;;  %v14827_v14 = vpop.f32.mrf.mxu0 }
 0x83d   : > { %16742 = vst [vmem:[#allocation127_spill] sm:$0xff] %v14823_v11  ;;  %16743 = vst [vmem:[#allocation128_spill] sm:$0xff] %v14825_v31 }
 0x83e   : > { %16744 = vst [vmem:[#allocation129_spill] sm:$0xff] %v14827_v14  ;;  %v14829_v43 = vpop.f32.mrf.mxu1  ;;  %v4697_v58 = vpop.f32.mrf.mxu0 }
 0x83f   : > { %16745 = vst [vmem:[#allocation130_spill] sm:$0xff] %v14829_v43  ;;  %v14832_v61 = vadd.f32 %v4697_v58, %v14795_v16 }
 0x840   : > { %v4586_v34 = vpop.f32.mrf.mxu1  ;;  %v4699_v3 = vpop.f32.mrf.mxu0 }
 0x841   : > { %16746 = vst [vmem:[#allocation131_spill] sm:$0xff] %v14832_v61  ;;  %v14835_v19 = vadd.f32 %v4586_v34, %v14803_v12  ;;  %v14838_v36 = vadd.f32 %v4699_v3, %v14807_v27 }
 0x842   : > { %v14840_v6 = vpop.f32.mrf.mxu1  ;;  %v4701_v11 = vpop.f32.mrf.mxu0 }
 0x843   : > { %16747 = vst [vmem:[#allocation132_spill] sm:$0xff] %v14835_v19  ;;  %16748 = vst [vmem:[#allocation133_spill] sm:$0xff] %v14838_v36  ;;  %v14843_v31 = vadd.f32 %v4701_v11, %v14795_v16 }
 0x844   : > { %16749 = vst [vmem:[#allocation134_spill] sm:$0xff] %v14840_v6  ;;  %v14845_v14 = vpop.f32.mrf.mxu1  ;;  %v14847_v43 = vpop.f32.mrf.mxu0 }
 0x845   : > { %16750 = vst [vmem:[#allocation135_spill] sm:$0xff] %v14843_v31  ;;  %16751 = vst [vmem:[#allocation136_spill] sm:$0xff] %v14845_v14 }
 0x846   : > { %16752 = vst [vmem:[#allocation137_spill] sm:$0xff] %v14847_v43  ;;  %v14849_v58 = vpop.f32.mrf.mxu1  ;;  %v4707_v61 = vpop.f32.mrf.mxu0 }
 0x847   : > { %16753 = vst [vmem:[#allocation138_spill] sm:$0xff] %v14849_v58  ;;  %v14852_v52 = vadd.f32 %v4707_v61, %v14795_v16 }
 0x848   : > { %v4596_v34 = vpop.f32.mrf.mxu1  ;;  %v4709_v19 = vpop.f32.mrf.mxu0 }
 0x849   : > { %16754 = vst [vmem:[#allocation139_spill] sm:$0xff] %v14852_v52  ;;  %v14855_v3 = vadd.f32 %v4596_v34, %v14803_v12  ;;  %v14858_v36 = vadd.f32 %v4709_v19, %v14807_v27 }
 0x84a   : > { %v14860_v11 = vpop.f32.mrf.mxu1  ;;  %v4711_v31 = vpop.f32.mrf.mxu0 }
 0x84b   : > { %16755 = vst [vmem:[#allocation140_spill] sm:$0xff] %v14855_v3  ;;  %16756 = vst [vmem:[#allocation141_spill] sm:$0xff] %v14858_v36  ;;  %v14863_v14 = vadd.f32 %v4711_v31, %v14795_v16 }
 0x84c   : > { %16757 = vst [vmem:[#allocation142_spill] sm:$0xff] %v14860_v11  ;;  %v14865_v43 = vpop.f32.mrf.mxu1  ;;  %v14867_v58 = vpop.f32.mrf.mxu0 }
 0x84d   : > { %16758 = vst [vmem:[#allocation143_spill] sm:$0xff] %v14863_v14  ;;  %16759 = vst [vmem:[#allocation144_spill] sm:$0xff] %v14865_v43 }
 0x84e   : > { %16760 = vst [vmem:[#allocation145_spill] sm:$0xff] %v14867_v58  ;;  %v14869_v61 = vpop.f32.mrf.mxu1  ;;  %v4717_v52 = vpop.f32.mrf.mxu0 }
 0x84f   : > { %16761 = vst [vmem:[#allocation146_spill] sm:$0xff] %v14869_v61  ;;  %v14872_v6 = vadd.f32 %v4717_v52, %v14795_v16 }
 0x850   : > { %v4606_v34 = vpop.f32.mrf.mxu1  ;;  %v4719_v3 = vpop.f32.mrf.mxu0 }
 0x851   : > { %16762 = vst [vmem:[#allocation147_spill] sm:$0xff] %v14872_v6  ;;  %v14875_v19 = vadd.f32 %v4606_v34, %v14803_v12  ;;  %v14878_v36 = vadd.f32 %v4719_v3, %v14807_v27 }
 0x852   : > { %v14880_v31 = vpop.f32.mrf.mxu1  ;;  %v4721_v14 = vpop.f32.mrf.mxu0 }
 0x853   : > { %16763 = vst [vmem:[#allocation148_spill] sm:$0xff] %v14875_v19  ;;  %16764 = vst [vmem:[#allocation149_spill] sm:$0xff] %v14878_v36  ;;  %v14883_v43 = vadd.f32 %v4721_v14, %v14795_v16 }
 0x854   : > { %16765 = vst [vmem:[#allocation150_spill] sm:$0xff] %v14880_v31  ;;  %v14885_v58 = vpop.f32.mrf.mxu1  ;;  %v14887_v61 = vpop.f32.mrf.mxu0 }
 0x855   : > { %16766 = vst [vmem:[#allocation151_spill] sm:$0xff] %v14883_v43  ;;  %16767 = vst [vmem:[#allocation152_spill] sm:$0xff] %v14885_v58 }
 0x856   : > { %16768 = vst [vmem:[#allocation153_spill] sm:$0xff] %v14887_v61  ;;  %v14889_v52 = vpop.f32.mrf.mxu1  ;;  %v4727_v6 = vpop.f32.mrf.mxu0 }
 0x857   : > { %16769 = vst [vmem:[#allocation154_spill] sm:$0xff] %v14889_v52  ;;  %v14892_v11 = vadd.f32 %v4727_v6, %v14795_v16 }
 0x858   : > { %v4616_v34 = vpop.f32.mrf.mxu1  ;;  %v4729_v19 = vpop.f32.mrf.mxu0 }
 0x859   : > { %16770 = vst [vmem:[#allocation155_spill] sm:$0xff] %v14892_v11  ;;  %v14895_v3 = vadd.f32 %v4616_v34, %v14803_v12  ;;  %v14898_v36 = vadd.f32 %v4729_v19, %v14807_v27 }
 0x85a   : > { %v14900_v14 = vpop.f32.mrf.mxu1  ;;  %v4731_v43 = vpop.f32.mrf.mxu0 }
 0x85b   : > { %16771 = vst [vmem:[#allocation156_spill] sm:$0xff] %v14895_v3  ;;  %16772 = vst [vmem:[#allocation157_spill] sm:$0xff] %v14898_v36  ;;  %v14903_v58 = vadd.f32 %v4731_v43, %v14795_v16  ;;  %v8579_v43 = vadd.s32 8, %v14560_v24 }
 0x85c   : > { %16773 = vst [vmem:[#allocation158_spill] sm:$0xff] %v14900_v14  ;;  %v14905_v61 = vpop.f32.mrf.mxu1  ;;  %v14907_v52 = vpop.f32.mrf.mxu0 }
 0x85d   : > { %16774 = vst [vmem:[#allocation159_spill] sm:$0xff] %v14903_v58  ;;  %16775 = vst [vmem:[#allocation160_spill] sm:$0xff] %v14905_v61  ;;  %v16781_v58 = vlaneseq }
 0x85e   : > { %16776 = vst [vmem:[#allocation161_spill] sm:$0xff] %v14907_v52  ;;  %v14909_v6 = vpop.f32.mrf.mxu1  ;;  %v4737_v11 = vpop.f32.mrf.mxu0 }
 0x85f   : > { %16777 = vst [vmem:[#allocation162_spill] sm:$0xff] %v14909_v6  ;;  %v14912_v31 = vadd.f32 %v4737_v11, %v14795_v16  ;;  %v8581_v61 = vand.u32 127, %v16781_v58 }
 0x860   : > { %v4626_v34 = vpop.f32.mrf.mxu1  ;;  %v4739_v3 = vpop.f32.mrf.mxu0 }
 0x861   : > { %16778 = vst [vmem:[#allocation163_spill] sm:$0xff] %v14912_v31  ;;  %v14915_v19 = vadd.f32 %v4626_v34, %v14803_v12  ;;  %v14918_v36 = vadd.f32 %v4739_v3, %v14807_v27  ;;  %vm8582_vm1 = vcmp.eq.s32.totalorder %v14560_v24, %v8581_v61  ;;  %vm8583_vm6 = vcmp.eq.s32.totalorder %v8579_v43, %v8581_v61 }
 0x862   : > { %v14922_v14 = vpop.f32.mrf.mxu1  ;;  %v4741_v52 = vpop.f32.mrf.mxu0  ;;  %v16517_v31 = vmov 0.0  }
 0x863   : > { %16779 = vst [vmem:[#allocation164_spill] sm:$0xff] %v14915_v19  ;;  %16780 = vst [vmem:[#allocation165_spill] sm:$0xff] %v14918_v36  ;;  %v14925_v6 = vadd.f32 %v4741_v52, %v14795_v16  ;;  %v14933_v3 = vsel %vm8582_vm1, 1.0, %v16517_v31  ;;  %v14936_v36 = vsel %vm8583_vm6, 1.0, %v16517_v31 }
 0x864   : > { %16782 = vst [vmem:[#allocation166_spill] sm:$0xff] %v14922_v14  ;;  %v14928_v11 = vpop.f32.mrf.mxu1  ;;  %v14930_v34 = vpop.f32.mrf.mxu0  ;;  %16786 = vst [vmem:[#allocation170_spill] sm:$0xff] %v14933_v3 }
 0x865   : > { %16783 = vst [vmem:[#allocation167_spill] sm:$0xff] %v14925_v6  ;;  %16784 = vst [vmem:[#allocation168_spill] sm:$0xff] %v14928_v11 }
 0x866   : > { %16785 = vst [vmem:[#allocation169_spill] sm:$0xff] %v14930_v34  ;;  %16787 = vst [vmem:[#allocation171_spill] sm:$0xff] %v14936_v36  ;;  %v14938_v58 = vpop.f32.mrf.mxu1  ;;  %v4747_v19 = vpop.f32.mrf.mxu0 }
 0x867   : > { %16788 = vst [vmem:[#allocation172_spill] sm:$0xff] %v14938_v58  ;;  %v14941_v52 = vadd.f32 %v4747_v19, %v14795_v16  ;;  %v14960_v19 = vrot.slane %v14779_v5, %v14575_v45 }
 0x868   : > { %v4636_v6 = vpop.f32.mrf.mxu1  ;;  %v4749_v24 = vpop.f32.mrf.mxu0 }
 0x869   : > { %16789 = vst [vmem:[#allocation173_spill] sm:$0xff] %v14941_v52  ;;  %v14944_v61 = vadd.f32 %v4636_v6, %v14803_v12  ;;  %v14947_v43 = vadd.f32 %v4749_v24, %v14807_v27  ;;  %16796 = vst [vmem:[#allocation180_spill] sm:$0xff] %v14960_v19 }
 0x86a   : > { %v14949_v34 = vpop.f32.mrf.mxu1  ;;  %v4751_v3 = vpop.f32.mrf.mxu0 }
 0x86b   : > { %16790 = vst [vmem:[#allocation174_spill] sm:$0xff] %v14944_v61  ;;  %16791 = vst [vmem:[#allocation175_spill] sm:$0xff] %v14947_v43  ;;  %v14952_v31 = vadd.f32 %v4751_v3, %v14795_v16 }
 0x86c   : > { %16792 = vst [vmem:[#allocation176_spill] sm:$0xff] %v14949_v34  ;;  %v14954_v36 = vpop.f32.mrf.mxu1  ;;  %v14956_v11 = vpop.f32.mrf.mxu0 }
 0x86d   : > { %16793 = vst [vmem:[#allocation177_spill] sm:$0xff] %v14952_v31  ;;  %16794 = vst [vmem:[#allocation178_spill] sm:$0xff] %v14954_v36 }
 0x86e   : > { %16795 = vst [vmem:[#allocation179_spill] sm:$0xff] %v14956_v11  ;;  %v4644_v52 = vpop.f32.mrf.mxu1  ;;  %v4757_v6 = vpop.f32.mrf.mxu0 }
 0x86f   : > { %v14963_v61 = vadd.f32 %v4644_v52, %v14960_v19  ;;  %v14966_v24 = vadd.f32 %v4757_v6, %v14795_v16  ;;  %v4123_v6 = vadd.f32 %v14411_v37, %v14596_v4  ;;  %v4133_v37 = vadd.f32 %v14439_v2, %v14596_v4 }
 0x870   : > { %v4646_v43 = vpop.f32.mrf.mxu1  ;;  %v4759_v34 = vpop.f32.mrf.mxu0  ;;  %v4139_v2 = vadd.f32 %v14459_v22, %v14605_v26 }
 0x871   : > { %16797 = vst [vmem:[#allocation181_spill] sm:$0xff] %v14963_v61  ;;  %16798 = vst [vmem:[#allocation182_spill] sm:$0xff] %v14966_v24  ;;  %v14969_v3 = vadd.f32 %v4646_v43, %v14803_v12  ;;  %v14972_v31 = vadd.f32 %v4759_v34, %v14807_v27  ;;  %v4125_v43 = vadd.f32 %v14419_v59, %v14605_v26 }
 0x872   : > { %v4648_v11 = vpop.f32.mrf.mxu1  ;;  %v4761_v36 = vpop.f32.mrf.mxu0 }
 0x873   : > { %16799 = vst [vmem:[#allocation183_spill] sm:$0xff] %v14969_v3  ;;  %16800 = vst [vmem:[#allocation184_spill] sm:$0xff] %v14972_v31  ;;  %v14975_v5 = vadd.f32 %v4648_v11, %v14960_v19  ;;  %v14978_v45 = vadd.f32 %v4761_v36, %v14795_v16  ;;  %v4127_v31 = vadd.f32 %v14427_v20, %v14596_v4 }
 0x874   : > { %v14980_v52 = vpop.f32.mrf.mxu1  ;;  %v4129_v36 = vadd.f32 %v14431_v23, %v14605_v26  ;;  %v4135_v20 = vadd.f32 %v14447_v7, %v14605_v26  ;;  %v4137_v23 = vadd.f32 %v14455_v8, %v14596_v4  ;;  %v4143_v7 = vadd.f32 %v14467_v25, %v14596_v4 }
 0x875   : > { %16801 = vst [vmem:[#allocation185_spill] sm:$0xff] %v14975_v5  ;;  %16802 = vst [vmem:[#allocation186_spill] sm:$0xff] %v14978_v45  ;;  %v4145_v8 = vadd.f32 %v14475_v39, %v14605_v26 }
 0x876   : > { %16803 = vst [vmem:[#allocation187_spill] sm:$0xff] %v14980_v52  ;;  %v5201_v24 = vpop.f32.mrf.mxu1 }
 0x877   : > { %v5377_v3 = vadd.f32 %v5201_v24, %v4123_v6 }
 0x878   : > { %v5203_v34 = vpop.f32.mrf.mxu1 }
 0x879   : > { %v9576_v27 = vmul.f32 -1.442695, %v5377_v3  ;;  %v5489_v11 = vadd.f32 %v5203_v34, %v4125_v43 }
 0x87a   : > { %v5205_v12 = vpop.f32.mrf.mxu1 }
 0x87b   : > { %11505 = vpow2.f32 %v9576_v27  ;;  %v9592_v16 = vmul.f32 -1.442695, %v5489_v11  ;;  %v5378_v45 = vadd.f32 %v5205_v12, %v4127_v31 }
 0x87c   : > { %v5207_v52 = vpop.f32.mrf.mxu1 }
 0x87d   : > { %11507 = vpow2.f32 %v9592_v16  ;;  %v9577_v59 = vmul.f32 -1.442695, %v5378_v45  ;;  %v5490_v24 = vadd.f32 %v5207_v52, %v4129_v36 }
 0x87e   : > { %v5211_v6 = vpop.f32.mrf.mxu1 }
 0x87f   : > { %11509 = vpow2.f32 %v9577_v59  ;;  %v9593_v3 = vmul.f32 -1.442695, %v5490_v24  ;;  %v5379_v43 = vadd.f32 %v5211_v6, %v4133_v37  ;;  %v15002_v59 = vpop.f32.mrf.mxu0 }
 0x880   : > { %v5213_v34 = vpop.f32.mrf.mxu1  ;;  %16804 = vst [vmem:[#allocation188_spill] sm:$0xff] %v15002_v59 }
 0x881   : > { %11511 = vpow2.f32 %v9593_v3  ;;  %v9578_v12 = vmul.f32 -1.442695, %v5379_v43  ;;  %v5491_v27 = vadd.f32 %v5213_v34, %v4135_v20  ;;  %v4147_v3 = vadd.f32 %v14483_v49, %v14596_v4 }
 0x882   : > { %v5215_v31 = vpop.f32.mrf.mxu1 }
 0x883   : > { %11513 = vpow2.f32 %v9578_v12  ;;  %v9594_v45 = vmul.f32 -1.442695, %v5491_v27  ;;  %v5380_v52 = vadd.f32 %v5215_v31, %v4137_v23  ;;  %v15006_v23 = vpop.f32.mrf.mxu0  ;;  %v4149_v27 = vadd.f32 %v14487_v55, %v14605_v26 }
 0x884   : > { %v5217_v11 = vpop.f32.mrf.mxu1  ;;  %v4155_v55 = vadd.f32 %v14503_v62, %v14605_v26 }
 0x885   : > { %11515 = vpow2.f32 %v9594_v45  ;;  %v9579_v36 = vmul.f32 -1.442695, %v5380_v52  ;;  %v5492_v16 = vadd.f32 %v5217_v11, %v4139_v2  ;;  %v4153_v11 = vadd.f32 %v14495_v40, %v14596_v4 }
 0x886   : > { %v5221_v37 = vpop.f32.mrf.mxu1  ;;  %v4157_v40 = vadd.f32 %v14511_v44, %v14596_v4  ;;  %v4163_v44 = vadd.f32 %v14523_v18, %v14596_v4 }
 0x887   : > { %11517 = vpow2.f32 %v9579_v36  ;;  %v9595_v24 = vmul.f32 -1.442695, %v5492_v16  ;;  %v5381_v6 = vadd.f32 %v5221_v37, %v4143_v7  ;;  %v5314_v37 = vpop.f32.mrf.mxu0 }
 0x888   : > { %v11506_v22 = vpop.eup %11505  ;;  %v5223_v20 = vpop.f32.mrf.mxu1 }
 0x889   : > { %v5441_v43 = vadd.f32 1.0, %v11506_v22  ;;  %v9580_v34 = vmul.f32 -1.442695, %v5381_v6  ;;  %v5493_v25 = vadd.f32 %v5223_v20, %v4145_v8  ;;  %11519 = vpow2.f32 %v9595_v24 }
 0x88a   : > { %v11508_v12 = vpop.eup %11507  ;;  %v5225_v39 = vpop.f32.mrf.mxu1 }
 0x88b   : > { %11521 = vrcp.f32 %v5441_v43  ;;  %v5553_v31 = vadd.f32 1.0, %v11508_v12  ;;  %v9596_v2 = vmul.f32 -1.442695, %v5493_v25  ;;  %v5382_v45 = vadd.f32 %v5225_v39, %v4147_v3 }
 0x88c   : > { %v11510_v52 = vpop.eup %11509  ;;  %11523 = vpow2.f32 %v9580_v34  ;;  %v5227_v49 = vpop.f32.mrf.mxu1 }
 0x88d   : > { %11525 = vrcp.f32 %v5553_v31  ;;  %v5442_v7 = vadd.f32 1.0, %v11510_v52  ;;  %v9581_v36 = vmul.f32 -1.442695, %v5382_v45  ;;  %v5494_v16 = vadd.f32 %v5227_v49, %v4149_v27  ;;  %v15016_v27 = vpop.f32.mrf.mxu0  ;;  %v15022_v49 = vld [vmem:[#allocation14 + $0x1] ss:$0 sm:$0xff] }
 0x88e   : > { %v11512_v8 = vpop.eup %11511  ;;  %11527 = vpow2.f32 %v9596_v2  ;;  %v5231_v24 = vpop.f32.mrf.mxu1  ;;  %v4159_v31 = vadd.f32 %v14515_v10, %v14605_v26  ;;  %v4240_v10 = vadd.f32 %v14429_v53, %v14600_v42  ;;  %v15041_v53 = vadd.f32 %v14469_v38, %v14600_v42 }
 0x88f   : > { %11529 = vrcp.f32 %v5442_v7  ;;  %v5554_v6 = vadd.f32 1.0, %v11512_v8  ;;  %v9597_v22 = vmul.f32 -1.442695, %v5494_v16  ;;  %v5383_v20 = vadd.f32 %v5231_v24, %v4153_v11 }
 0x890   : > { %v11514_v3 = vpop.eup %11513  ;;  %11531 = vpow2.f32 %v9581_v36  ;;  %v5233_v43 = vpop.f32.mrf.mxu1  ;;  %v4236_v24 = vadd.f32 %v14413_v17, %v14600_v42  ;;  %v15037_v17 = vadd.f32 %v14457_v41, %v14600_v42  ;;  %v15055_v38 = vadd.f32 %v14513_v1, %v14600_v42 }
 0x891   : > { %11533 = vrcp.f32 %v5554_v6  ;;  %v5443_v34 = vadd.f32 1.0, %v11514_v3  ;;  %v9582_v25 = vmul.f32 -1.442695, %v5383_v20  ;;  %v5495_v12 = vadd.f32 %v5233_v43, %v4155_v55  ;;  %v5317_v55 = vpop.f32.mrf.mxu0 }
 0x892   : > { %v11516_v39 = vpop.eup %11515  ;;  %11535 = vpow2.f32 %v9597_v22  ;;  %v5235_v62 = vpop.f32.mrf.mxu1  ;;  %v15030_v6 = vadd.f32 %v14441_v0, %v14600_v42  ;;  %v15045_v0 = vadd.f32 %v14485_v54, %v14600_v42  ;;  %v4167_v54 = vadd.f32 %v14533_v33, %v14596_v4 }
 0x893   : > { %11537 = vrcp.f32 %v5443_v34  ;;  %v5555_v2 = vadd.f32 1.0, %v11516_v39  ;;  %v5384_v45 = vadd.f32 %v5235_v62, %v4157_v40  ;;  %v9598_v36 = vmul.f32 -1.442695, %v5495_v12  ;;  %v15033_v43 = vpop.f32.mrf.mxu0 }
 0x894   : > { %v11518_v52 = vpop.eup %11517  ;;  %11539 = vpow2.f32 %v9582_v25  ;;  %v5237_v11 = vpop.f32.mrf.mxu1  ;;  %v5601_v40 = vadd.f32 %v5314_v37, %v15022_v49  ;;  %v15049_v37 = vadd.f32 %v14497_v57, %v14600_v42  ;;  %v4165_v1 = vadd.f32 %v14529_v9, %v14605_v26 }
 0x895   : > { %v5444_v7 = vadd.f32 1.0, %v11518_v52  ;;  %v9583_v16 = vmul.f32 -1.442695, %v5384_v45  ;;  %v5496_v8 = vadd.f32 %v5237_v11, %v4159_v31  ;;  %11541 = vrcp.f32 %v5555_v2  ;;  %v15060_v11 = vpop.f32.mrf.mxu0 }
 0x896   : > { %v5241_v18 = vpop.f32.mrf.mxu1  ;;  %v11520_v22 = vpop.eup %11519 }
 0x897   : > { %11543 = vrcp.f32 %v5444_v7  ;;  %v9599_v20 = vmul.f32 -1.442695, %v5496_v8  ;;  %v5385_v3 = vadd.f32 %v5241_v18, %v4163_v44  ;;  %v5556_v52 = vadd.f32 1.0, %v11520_v22 }
 0x898   : > { %v11522_v34 = vpop.eup %11521  ;;  %11545 = vpow2.f32 %v9583_v16  ;;  %v5243_v25 = vpop.f32.mrf.mxu1  ;;  %v5602_v44 = vadd.f32 %v5317_v55, %v15022_v49  ;;  %v15070_v18 = vadd.f32 %v14535_v48, %v14600_v42  ;;  %v4169_v55 = vadd.f32 %v14537_v28, %v14605_v26 }
 0x899   : > { %v11524_v12 = vpop.eup %11523  ;;  %11547 = vpow2.f32 %v9598_v36  ;;  %v9584_v39 = vmul.f32 -1.442695, %v5385_v3  ;;  %v5617_v62 = vmul.f32 %v11522_v34, %v5601_v40  ;;  %v15064_v36 = vadd.f32 %v14525_v15, %v14600_v42 }
 0x89a   : > { %v15051_v41 = vpop.eup %11525  ;;  %v5445_v31 = vadd.f32 1.0, %v11524_v12  ;;  %11549 = vpow2.f32 %v9599_v20  ;;  %v5245_v2 = vpop.f32.mrf.mxu1  ;;  %v5497_v3 = vadd.f32 %v5243_v25, %v4165_v1  ;;  %v4173_v12 = vadd.f32 %v14541_v60, %v14596_v4 }
 0x89b   : > { %v11528_v45 = vpop.eup %11527  ;;  %11551 = vpow2.f32 %v9584_v39  ;;  %v5633_v57 = vadd.f32 %v5617_v62, %v4236_v24  ;;  %v5386_v33 = vadd.f32 %v5245_v2, %v4167_v54  ;;  %v5603_v48 = vadd.f32 %v15006_v23, %v15022_v49  ;;  %v15080_v62 = vpop.f32.mrf.mxu0 }
 0x89c   : > { %v11530_v7 = vpop.eup %11529  ;;  %11553 = vrcp.f32 %v5445_v31  ;;  %v5247_v16 = vpop.f32.mrf.mxu1  ;;  %v5557_v15 = vadd.f32 1.0, %v11528_v45  ;;  %v4175_v54 = vadd.f32 %v14547_v35, %v14605_v26  ;;  %v4177_v25 = vadd.f32 %v14551_v29, %v14596_v4 }
 0x89d   : > { %v11532_v8 = vpop.eup %11531  ;;  %11555 = vtanh.f32 %v5633_v57  ;;  %v5618_v24 = vmul.f32 %v11530_v7, %v5602_v44  ;;  %v9585_v40 = vmul.f32 -1.442695, %v5386_v33  ;;  %v15088_v31 = vadd.f32 %v14555_v51, %v14605_v26 }
 0x89e   : > { %v15074_v22 = vpop.eup %11533  ;;  %v5446_v20 = vadd.f32 1.0, %v11532_v8  ;;  %v5251_v9 = vpop.f32.mrf.mxu1  ;;  %11557 = vrcp.f32 %v5556_v52  ;;  %v4183_v23 = vadd.f32 %v14562_v56, %v14596_v4  ;;  %v9600_v52 = vmul.f32 -1.442695, %v5497_v3 }
 0x89f   : > { %v11536_v34 = vpop.eup %11535  ;;  %v5634_v39 = vadd.f32 %v5618_v24, %v4240_v10  ;;  %v15094_v10 = vadd.f32 %v14568_v50, %v14605_v26  ;;  %v5498_v29 = vadd.f32 %v5247_v16, %v4169_v55  ;;  %v5604_v1 = vadd.f32 %v15016_v27, %v15022_v49  ;;  %v5333_v56 = vpop.f32.mrf.mxu0 }
 0x8a0   : > { %v11538_v28 = vpop.eup %11537  ;;  %11559 = vrcp.f32 %v5446_v20  ;;  %v5253_v60 = vpop.f32.mrf.mxu1  ;;  %v5558_v51 = vadd.f32 1.0, %v11536_v34  ;;  %v4187_v50 = vadd.f32 %v14580_v32, %v14596_v4  ;;  %v15105_v8 = vadd.f32 %v14590_v46, %v14605_v26 }
 0x8a1   : > { %v11540_v2 = vpop.eup %11539  ;;  %v5619_v45 = vmul.f32 %v11538_v28, %v5603_v48  ;;  %11561 = vpow2.f32 %v9585_v40  ;;  %v5387_v16 = vadd.f32 %v5251_v9, %v4173_v12  ;;  %v15115_v20 = vpop.f32.mrf.mxu0  ;;  %v9601_v46 = vmul.f32 -1.442695, %v5498_v29 }
 0x8a2   : > { %11563 = vrcp.f32 %v5557_v15  ;;  %v5447_v35 = vadd.f32 1.0, %v11540_v2  ;;  %v5255_v57 = vpop.f32.mrf.mxu1  ;;  %v15096_v44 = vpop.eup %11541  ;;  %v15113_v15 = vadd.f32 %v15033_v43, %v15022_v49  ;;  %v5665_v43 = vsub.f32 1.0, %v15051_v41 }
 0x8a3   : > { %v5635_v7 = vadd.f32 %v5619_v45, %v15030_v6  ;;  %11565 = vtanh.f32 %v5634_v39  ;;  %v15109_v6 = vadd.f32 %v14629_v21, %v14605_v26  ;;  %v5388_v3 = vadd.f32 %v5255_v57, %v4177_v25 }
 0x8a4   : > { %v11544_v33 = vpop.eup %11543  ;;  %11567 = vrcp.f32 %v5447_v35  ;;  %v5257_v55 = vpop.f32.mrf.mxu1  ;;  %v5499_v26 = vadd.f32 %v5253_v60, %v4175_v54  ;;  %v5605_v21 = vadd.f32 %v15060_v11, %v15022_v49  ;;  %v9586_v48 = vmul.f32 -1.442695, %v5387_v16 }
 0x8a5   : > { %v11546_v24 = vpop.eup %11545  ;;  %11569 = vtanh.f32 %v5635_v7  ;;  %v5620_v27 = vmul.f32 %v11544_v33, %v5604_v1  ;;  %v5606_v28 = vadd.f32 %v5333_v56, %v15022_v49  ;;  %v5697_v25 = vmul.f32 0.0, %v15051_v41 }
 0x8a6   : > { %v11548_v32 = vpop.eup %11547  ;;  %v5448_v4 = vadd.f32 1.0, %v11546_v24  ;;  %11571 = vpow2.f32 %v9600_v52  ;;  %v5261_v40 = vpop.f32.mrf.mxu1  ;;  %v9587_v54 = vmul.f32 -1.442695, %v5388_v3  ;;  %v5666_v57 = vsub.f32 1.0, %v15074_v22 }
 0x8a7   : > { %v11550_v9 = vpop.eup %11549  ;;  %11573 = vrcp.f32 %v5558_v51  ;;  %v5636_v34 = vadd.f32 %v5620_v27, %v15037_v17  ;;  %v5559_v45 = vadd.f32 1.0, %v11548_v32  ;;  %v5346_v52 = vpop.f32.mrf.mxu0  ;;  %v5389_v60 = vadd.f32 %v5261_v40, %v4183_v23 }
 0x8a8   : > { %v11552_v12 = vpop.eup %11551  ;;  %11575 = vrcp.f32 %v5448_v4  ;;  %v5263_v39 = vpop.f32.mrf.mxu1  ;;  %v9602_v7 = vmul.f32 -1.442695, %v5499_v26  ;;  %v5560_v56 = vadd.f32 1.0, %v11550_v9  ;;  %v5500_v41 = vadd.f32 %v5257_v55, %v15088_v31 }
 0x8a9   : > { %v11554_v2 = vpop.eup %11553  ;;  %v5449_v35 = vadd.f32 1.0, %v11552_v12  ;;  %11577 = vtanh.f32 %v5636_v34  ;;  %v5698_v27 = vmul.f32 0.0, %v15074_v22  ;;  %v15131_v4 = vpop.f32.mrf.mxu0  ;;  %v9588_v3 = vmul.f32 -1.442695, %v5389_v60  ;;  %v16805_v60 = vld [vmem:[#allocation24_spill] sm:$0xff] }
 0x8aa   : > { %v11556_v17 = vpop.eup %11555  ;;  %11579 = vpow2.f32 %v9601_v46  ;;  %v5621_v11 = vmul.f32 %v11554_v2, %v5605_v21  ;;  %v5265_v29 = vpop.f32.mrf.mxu1  ;;  %v5501_v40 = vadd.f32 %v5263_v39, %v15094_v10  ;;  %v9603_v26 = vmul.f32 -1.442695, %v5500_v41 }
 0x8ab   : > { %11581 = vrcp.f32 %v5449_v35  ;;  %v5681_v51 = vmul.f32 %v11556_v17, %v5665_v43  ;;  %v15124_v1 = vpop.eup %11557  ;;  %v5390_v32 = vadd.f32 %v5265_v29, %v4187_v50  ;;  %v5667_v50 = vsub.f32 1.0, %v15096_v44  ;;  %v5349_v39 = vpop.f32.mrf.mxu0 }
 0x8ac   : > { %11583 = vpow2.f32 %v9586_v48  ;;  %v5637_v33 = vadd.f32 %v5621_v11, %v15041_v53  ;;  %v5267_v16 = vpop.f32.mrf.mxu1 }
 0x8ad   : > { %v11560_v24 = vpop.eup %11559  ;;  %11585 = vrcp.f32 %v5559_v45  ;;  %v15129_v23 = vadd.f32 %v5697_v25, %v5681_v51  ;;  %v9589_v48 = vmul.f32 -1.442695, %v5390_v32  ;;  %v9604_v25 = vmul.f32 -1.442695, %v5501_v40 }
 0x8ae   : > { %v11562_v46 = vpop.eup %11561  ;;  %11587 = vpow2.f32 %v9587_v54  ;;  %v5622_v9 = vmul.f32 %v11560_v24, %v5606_v28  ;;  %v5271_v34 = vpop.f32.mrf.mxu1  ;;  %v5608_v45 = vadd.f32 %v15080_v62, %v15022_v49  ;;  %v15152_v51 = vadd.f32 %v5349_v39, %v15022_v49 }
 0x8af   : > { %v15134_v31 = vpop.eup %11563  ;;  %vm5729_vm7 = vcmp.gt.f32.partialorder %v15129_v23, 0.0  ;;  %v5745_v53 = vmul.f32 0.1, %v15129_v23  ;;  %v5450_v22 = vadd.f32 1.0, %v11562_v46  ;;  %11589 = vpow2.f32 %v9602_v7 }
 0x8b0   : > { %v11566_v55 = vpop.eup %11565  ;;  %11591 = vrcp.f32 %v5560_v56  ;;  %v5638_v21 = vadd.f32 %v5622_v9, %v15045_v0  ;;  %v5273_v35 = vpop.f32.mrf.mxu1  ;;  %v5391_v11 = vadd.f32 %v5271_v34, %v16805_v60  ;;  %v5668_v62 = vsub.f32 1.0, %v15124_v1  ;;  %v12180_v60 = vld [vmem:[#allocation9 + $0x98] ss:$12 sps:$4 sm:$0xff]  }
 0x8b1   : > { %v11568_v12 = vpop.eup %11567  ;;  %v5761_v10 = vsel %vm5729_vm7, %v15129_v23, %v5745_v53  ;;  %11593 = vrcp.f32 %v5450_v22  ;;  %v5682_v43 = vmul.f32 %v11566_v55, %v5666_v57  ;;  %v5700_v9 = vmul.f32 0.0, %v15124_v1  ;;  %v16806_v55 = vld [vmem:[#allocation49_spill] sm:$0xff] }
 0x8b2   : > { %v11570_v28 = vpop.eup %11569  ;;  %5777 = vst [vmem:[#allocation3] sm:$0xff] %v5761_v10  ;;  %v5623_v2 = vmul.f32 %v11568_v12, %v15113_v15  ;;  %11595 = vpow2.f32 %v9588_v3  ;;  %v5609_v15 = vadd.f32 %v5346_v52, %v15022_v49  ;;  %v9590_v3 = vmul.f32 -1.442695, %v5391_v11 }
 0x8b3   : > { %v11572_v17 = vpop.eup %11571  ;;  %v5683_v54 = vmul.f32 %v11570_v28, %v5667_v50  ;;  %v15144_v0 = vadd.f32 %v5698_v27, %v5682_v43  ;;  %11597 = vtanh.f32 %v5637_v33  ;;  %v5699_v33 = vmul.f32 0.0, %v15096_v44  ;;  %v5275_v27 = vpop.f32.mrf.mxu1 }
 0x8b4   : > { %v15147_v29 = vpop.eup %11573  ;;  %11599 = vpow2.f32 %v9603_v26  ;;  %v5639_v57 = vadd.f32 %v5623_v2, %v15049_v37  ;;  %v5502_v37 = vadd.f32 %v5267_v16, %v15105_v8  ;;  %v5669_v34 = vsub.f32 1.0, %v15134_v31 }
 0x8b5   : > { %v11576_v7 = vpop.eup %11575  ;;  %vm5730_vm8 = vcmp.gt.f32.partialorder %v15144_v0, 0.0  ;;  %v5746_v56 = vmul.f32 0.1, %v15144_v0  ;;  %11601 = vpow2.f32 %v9589_v48  ;;  %v5561_v22 = vadd.f32 1.0, %v11572_v17  ;;  %v15178_v17 = vld [vmem:[#allocation9 + $0xb0] ss:$12 sps:$4 sm:$0xff]  }
 0x8b6   : > { %v11578_v41 = vpop.eup %11577  ;;  %11603 = vtanh.f32 %v5639_v57  ;;  %v5624_v24 = vmul.f32 %v11576_v7, %v5608_v45  ;;  %v5392_v8 = vadd.f32 %v5275_v27, %v16806_v55  ;;  %v5841_v16 = vpack.c.bf16 %v15144_v0, %v15129_v23 }
 0x8b7   : > { %v11580_v52 = vpop.eup %11579  ;;  %v5684_v32 = vmul.f32 %v11578_v41, %v5668_v62  ;;  %v5762_v46 = vsel %vm5730_vm8, %v15144_v0, %v5746_v56  ;;  %11605 = vpow2.f32 %v9604_v25  ;;  %v15168_v10 = vadd.f32 %v5699_v33, %v5683_v54 }
 0x8b8   : > { %v11582_v40 = vpop.eup %11581  ;;  %5778 = vst [vmem:[#allocation3 + $0x20] sm:$0xff] %v5762_v46  ;;  %v5640_v53 = vadd.f32 %v5624_v24, %v15055_v38  ;;  %11607 = vtanh.f32 %v5638_v21  ;;  %v9605_v48 = vmul.f32 -1.442695, %v5502_v37  ;;  %v16807_v38 = vld [vmem:[#allocation47_spill] sm:$0xff]  ;;  %5882 = vmatmul.mubr.bf16.vlgmr.msra.gmra.mxu0 %v5841_v16  ;;  %10436 = vmatprep.mubr.bf16.mxu1 %v5841_v16  ;;  %v5562_v2 = vadd.f32 1.0, %v11580_v52 }
 0x8b9   : > { %v11584_v44 = vpop.eup %11583  ;;  %v5625_v50 = vmul.f32 %v11582_v40, %v5609_v15  ;;  %v15170_v1 = vadd.f32 %v5700_v9, %v5684_v32  ;;  %v5503_v21 = vadd.f32 %v5273_v35, %v16807_v38  ;;  %v16808_v45 = vmov 0   ;;  %10453 = vmatpush3.bf16.msra.mxu0 %v15178_v17  ;;  %v5277_v15 = vpop.f32.mrf.mxu1  ;;  %v12181_v40 = vld [vmem:[#allocation9 + $0xa8] ss:$12 sps:$4 sm:$0xff]   ;;  %v12182_v9 = vld [vmem:[#allocation9 + $0x80] ss:$12 sps:$4 sm:$0xff]  }
 0x8ba   : > { %v15166_v26 = vpop.eup %11585  ;;  %v5451_v12 = vadd.f32 1.0, %v11584_v44  ;;  %11609 = vtanh.f32 %v5640_v53  ;;  %5891 = vmatprep.mubr.bf16.mxu0 %v16808_v45  ;;  %vm5731_vm9 = vcmp.gt.f32.partialorder %v15168_v10, 0.0  ;;  %v9591_v35 = vmul.f32 -1.442695, %v5392_v8  ;;  %10454 = vmatprep.subr.bf16.mxu0 %v12180_v60  ;;  %v16809_v44 = vld [vmem:[#allocation40_spill] sm:$0xff]  ;;  %v15205_v8 = vpop.f32.mrf.mxu0 }
 0x8bb   : > { %v11588_v43 = vpop.eup %11587  ;;  %11611 = vpow2.f32 %v9590_v3  ;;  %v15174_v39 = vadd.f32 %v5625_v50, %v15064_v36  ;;  %vm5732_vm10 = vcmp.gt.f32.partialorder %v15170_v1, 0.0  ;;  %v5747_v36 = vmul.f32 0.1, %v15168_v10 }
 0x8bc   : > { %v11590_v28 = vpop.eup %11589  ;;  %11613 = vrcp.f32 %v5451_v12  ;;  %v5452_v25 = vadd.f32 1.0, %v11588_v43  ;;  %v5701_v57 = vmul.f32 0.0, %v15134_v31  ;;  %v5748_v7 = vmul.f32 0.1, %v15170_v1 }
 0x8bd   : > { %v15181_v54 = vpop.eup %11591  ;;  %11615 = vrcp.f32 %v5561_v22  ;;  %v5842_v62 = vpack.c.bf16 %v15170_v1, %v15168_v10  ;;  %v5563_v41 = vadd.f32 1.0, %v11590_v28  ;;  %v5763_v24 = vsel %vm5731_vm9, %v15168_v10, %v5747_v36  ;;  %10455 = vmatpush3.bf16.msra.mxu0 %v12180_v60 }
 0x8be   : > { %v11594_v11 = vpop.eup %11593  ;;  %11617 = vrcp.f32 %v5452_v25  ;;  %v9606_v31 = vmul.f32 -1.442695, %v5503_v21  ;;  %v5764_v52 = vsel %vm5732_vm10, %v15170_v1, %v5748_v7  ;;  %5779 = vst [vmem:[#allocation3 + $0x40] sm:$0xff] %v5763_v24  ;;  %10456 = vmatprep.subr.bf16.mxu0 %v12182_v9  ;;  %v15200_v22 = vadd.f32 %v16809_v44, %v14600_v42  ;;  %v12184_v25 = vld [vmem:[#allocation9 + $0x90] ss:$12 sps:$4 sm:$0xff]  }
 0x8bf   : > { %v11596_v56 = vpop.eup %11595  ;;  %11619 = vpow2.f32 %v9605_v48  ;;  %v5626_v33 = vmul.f32 %v11594_v11, %v15152_v51  ;;  %10437 = vmatmul.mubr.bf16.vlgmr.msra.gmra.mxu1 %v5842_v62  ;;  %v5504_v51 = vadd.f32 %v5277_v15, %v15109_v6  ;;  %5780 = vst [vmem:[#allocation3 + $0x60] sm:$0xff] %v5764_v52  ;;  %v5671_v55 = vsub.f32 1.0, %v15166_v26  ;;  %v12183_v6 = vld [vmem:[#allocation9 + $0x94] ss:$12 sps:$4 sm:$0xff]   ;;  %v12186_v11 = vld [vmem:[#allocation9 + $0x7c] ss:$12 sps:$4 sm:$0xff]  }
 0x8c0   : > { %v11598_v37 = vpop.eup %11597  ;;  %11621 = vrcp.f32 %v5562_v2  ;;  %v5453_v27 = vadd.f32 1.0, %v11596_v56  ;;  %6532 = vmatpush1.bf16.msra.mxu1 %v12181_v40  ;;  %v5670_v16 = vsub.f32 1.0, %v15147_v29  ;;  %5892 = vmatmul.mubr.bf16.gmra.mxu0 %v5842_v62  ;;  %v5702_v48 = vmul.f32 0.0, %v15147_v29  ;;  %v12189_v40 = vld [vmem:[#allocation9 + $0x64] ss:$12 sps:$4 sm:$0xff]  }
 0x8c1   : > { %v11600_v32 = vpop.eup %11599  ;;  %v5685_v46 = vmul.f32 %v11598_v37, %v5669_v34  ;;  %11623 = vpow2.f32 %v9591_v35  ;;  %v5642_v3 = vadd.f32 %v5626_v33, %v15070_v18  ;;  %v5611_v34 = vadd.f32 %v15115_v20, %v15022_v49  ;;  %6533 = vmatprep.subr.bf16.mxu1 %v12183_v6  ;;  %5901 = vmatprep.mubr.bf16.mxu0 %v16808_v45  ;;  %v12185_v35 = vld [vmem:[#allocation9 + $0x68] ss:$12 sps:$4 sm:$0xff]  }
 0x8c2   : > { %v11602_v53 = vpop.eup %11601  ;;  %11625 = vrcp.f32 %v5453_v27  ;;  %v5703_v38 = vmul.f32 0.0, %v15166_v26  ;;  %10457 = vmatpush3.bf16.msra.mxu0 %v12182_v9  ;;  %v5672_v28 = vsub.f32 1.0, %v15181_v54  ;;  %v9607_v2 = vmul.f32 -1.442695, %v5504_v51  ;;  %v5362_v26 = vpop.f32.mrf.mxu0 }
 0x8c3   : > { %v11604_v18 = vpop.eup %11603  ;;  %11627 = vrcp.f32 %v5563_v41  ;;  %v5454_v50 = vadd.f32 1.0, %v11602_v53  ;;  %v15208_v12 = vadd.f32 %v5701_v57, %v5685_v46  ;;  %10458 = vmatprep.subr.bf16.mxu0 %v12185_v35  ;;  %v5704_v15 = vmul.f32 0.0, %v15181_v54  ;;  %v16810_v53 = vld [vmem:[#allocation43_spill] sm:$0xff] }
 0x8c4   : > { %v11606_v43 = vpop.eup %11605  ;;  %v5687_v21 = vmul.f32 %v11604_v18, %v5671_v55  ;;  %11629 = vpow2.f32 %v9606_v31  ;;  %6534 = vmatpush1.bf16.msra.mxu1 %v12184_v25  ;;  %v5564_v7 = vadd.f32 1.0, %v11600_v32  ;;  %v5612_v62 = vadd.f32 %v15131_v4, %v15022_v49  ;;  %v12187_v4 = vld [vmem:[#allocation9 + $0x78] ss:$12 sps:$4 sm:$0xff]   ;;  %v12188_v31 = vld [vmem:[#allocation9 + $0x50] ss:$12 sps:$4 sm:$0xff]  }
 0x8c5   : > { %v11608_v20 = vpop.eup %11607  ;;  %11631 = vrcp.f32 %v5454_v50  ;;  %vm5733_vm11 = vcmp.gt.f32.partialorder %v15208_v12, 0.0  ;;  %v5749_v29 = vmul.f32 0.1, %v15208_v12  ;;  %6535 = vmatprep.subr.bf16.mxu1 %v12186_v11  ;;  %v5565_v41 = vadd.f32 1.0, %v11606_v43 }
 0x8c6   : > { %v5686_v36 = vmul.f32 %v11608_v20, %v5670_v16  ;;  %11633 = vtanh.f32 %v15174_v39  ;;  %v15217_v60 = vadd.f32 %v5703_v38, %v5687_v21  ;;  %10459 = vmatpush3.bf16.msra.mxu0 %v12185_v35  ;;  %v4290_v44 = vadd.f32 %v16810_v53, %v14600_v42  ;;  %v12190_v38 = vld [vmem:[#allocation9 + $0x60] ss:$12 sps:$4 sm:$0xff]  }
 0x8c7   : > { %v11610_v57 = vpop.eup %11609  ;;  %11635 = vtanh.f32 %v5642_v3  ;;  %v5765_v39 = vsel %vm5733_vm11, %v15208_v12, %v5749_v29  ;;  %10460 = vmatprep.subr.bf16.mxu0 %v12188_v31  ;;  %v15235_v3 = vpop.f32.mrf.mxu0  ;;  %v5613_v20 = vadd.f32 %v5362_v26, %v15022_v49  ;;  %v16811_v26 = vld [vmem:[#allocation41_spill] sm:$0xff] }
 0x8c8   : > { %v11612_v56 = vpop.eup %11611  ;;  %v5688_v33 = vmul.f32 %v11610_v57, %v5672_v28  ;;  %v15222_v24 = vadd.f32 %v5702_v48, %v5686_v36  ;;  %11637 = vpow2.f32 %v9607_v2  ;;  %5781 = vst [vmem:[#allocation3 + $0x80] sm:$0xff] %v5765_v39  ;;  %vm5735_vm12 = vcmp.gt.f32.partialorder %v15217_v60, 0.0  ;;  %6536 = vmatpush1.bf16.msra.mxu1 %v12187_v4  ;;  %v12191_v2 = vld [vmem:[#allocation9 + $0x4c] ss:$12 sps:$4 sm:$0xff]   ;;  %v16812_v4 = vld [vmem:[#allocation39_spill] sm:$0xff] }
 0x8c9   : > { %v11614_v37 = vpop.eup %11613  ;;  %v5455_v27 = vadd.f32 1.0, %v11612_v56  ;;  %v5751_v54 = vmul.f32 0.1, %v15217_v60  ;;  %6537 = vmatprep.subr.bf16.mxu1 %v12189_v40  ;;  %v5365_v28 = vpop.f32.mrf.mxu0  ;;  %v12192_v57 = vld [vmem:[#allocation9 + $0x38] ss:$12 sps:$4 sm:$0xff]  }
 0x8ca   : > { %v15229_v52 = vpop.eup %11615  ;;  %v5627_v32 = vmul.f32 %v11614_v37, %v5611_v34  ;;  %vm5734_vm13 = vcmp.gt.f32.partialorder %v15222_v24, 0.0  ;;  %v5750_v46 = vmul.f32 0.1, %v15222_v24  ;;  %v5843_v51 = vpack.c.bf16 %v15222_v24, %v15208_v12  ;;  %10461 = vmatpush3.bf16.msra.mxu0 %v12188_v31  ;;  %v12195_v40 = vld [vmem:[#allocation9 + $0x20] ss:$12 sps:$4 sm:$0xff]  }
 0x8cb   : > { %v11618_v9 = vpop.eup %11617  ;;  %11639 = vrcp.f32 %v5455_v27  ;;  %v15239_v55 = vadd.f32 %v5704_v15, %v5688_v33  ;;  %v5767_v48 = vsel %vm5735_vm12, %v15217_v60, %v5751_v54  ;;  %10462 = vmatprep.subr.bf16.mxu0 %v12192_v57  ;;  %v5673_v39 = vsub.f32 1.0, %v15229_v52  ;;  %v12193_v27 = vld [vmem:[#allocation9 + $0x48] ss:$12 sps:$4 sm:$0xff]  }
 0x8cc   : > { %v11620_v6 = vpop.eup %11619  ;;  %11641 = vrcp.f32 %v5564_v7  ;;  %v5643_v34 = vadd.f32 %v5627_v32, %v15200_v22  ;;  %v5628_v18 = vmul.f32 %v11618_v9, %v5612_v62  ;;  %v5766_v16 = vsel %vm5734_vm13, %v15222_v24, %v5750_v46  ;;  %5902 = vmatmul.mubr.bf16.gmra.mxu0 %v5843_v51  ;;  %10440 = vmatprep.mubr.bf16.mxu1 %v5843_v51  ;;  %v12194_v51 = vld [vmem:[#allocation9 + $0x34] ss:$12 sps:$4 sm:$0xff]  }
 0x8cd   : > { %v11622_v50 = vpop.eup %11621  ;;  %11643 = vrcp.f32 %v5565_v41  ;;  %5782 = vst [vmem:[#allocation3 + $0xa0] sm:$0xff] %v5766_v16  ;;  %5911 = vmatprep.mubr.bf16.mxu0 %v16808_v45  ;;  %vm5736_vm14 = vcmp.gt.f32.partialorder %v15239_v55, 0.0  ;;  %v5752_v43 = vmul.f32 0.1, %v15239_v55  ;;  %6538 = vmatpush1.bf16.msra.mxu1 %v12190_v38  ;;  %5783 = vst [vmem:[#allocation3 + $0xc0] sm:$0xff] %v5767_v48  ;;  %v5566_v35 = vadd.f32 1.0, %v11620_v6 }
 0x8ce   : > { %v11624_v22 = vpop.eup %11623  ;;  %11645 = vtanh.f32 %v5643_v34  ;;  %v5644_v21 = vadd.f32 %v5628_v18, %v4290_v44  ;;  %6539 = vmatprep.subr.bf16.mxu1 %v12191_v2  ;;  %v5844_v11 = vpack.c.bf16 %v15239_v55, %v15217_v60  ;;  %v4296_v7 = vadd.f32 %v16811_v26, %v14600_v42  ;;  %10463 = vmatpush3.bf16.msra.mxu0 %v12192_v57  ;;  %v12196_v48 = vld [vmem:[#allocation9 + $0x30] ss:$12 sps:$4 sm:$0xff]  }
 0x8cf   : > { %v11626_v25 = vpop.eup %11625  ;;  %v5456_v36 = vadd.f32 1.0, %v11624_v22  ;;  %v5768_v29 = vsel %vm5736_vm14, %v15239_v55, %v5752_v43  ;;  %v5614_v41 = vadd.f32 %v5365_v28, %v15022_v49  ;;  %v4300_v31 = vadd.f32 %v16812_v4, %v14600_v42  ;;  %10464 = vmatprep.subr.bf16.mxu0 %v12195_v40  ;;  %v12197_v22 = vld [vmem:[#allocation9 + $0x1c] ss:$12 sps:$4 sm:$0xff]  }
 0x8d0   : > { %v15255_v15 = vpop.eup %11627  ;;  %11647 = vtanh.f32 %v5644_v21  ;;  %v5629_v62 = vmul.f32 %v11626_v25, %v5613_v20  ;;  %5784 = vst [vmem:[#allocation3 + $0xe0] sm:$0xff] %v5768_v29  ;;  %10441 = vmatmul.mubr.bf16.gmra.mxu1 %v5844_v11  ;;  %v5674_v32 = vsub.f32 1.0, %v11622_v50  ;;  %v5705_v53 = vmul.f32 0.0, %v15229_v52  ;;  %v12198_v21 = vld [vmem:[#allocation9 + $0x8] ss:$12 sps:$4 sm:$0xff]  }
 0x8d1   : > { %v11630_v56 = vpop.eup %11629  ;;  %11649 = vrcp.f32 %v5456_v36  ;;  %6540 = vmatpush1.bf16.msra.mxu1 %v12193_v27  ;;  %v5706_v34 = vmul.f32 0.0, %v11622_v50  ;;  %v5615_v38 = vadd.f32 %v15205_v8, %v15022_v49  ;;  %v5675_v36 = vsub.f32 1.0, %v15255_v15  ;;  %v12201_v27 = vld [vmem:[#allocation9 + $0xac] ss:$12 sps:$4 sm:$0xff]  }
 0x8d2   : > { %v11632_v33 = vpop.eup %11631  ;;  %v5645_v37 = vadd.f32 %v5629_v62, %v4296_v7  ;;  %11651 = vrcp.f32 %v5566_v35  ;;  %6541 = vmatprep.subr.bf16.mxu1 %v12194_v51  ;;  %v5567_v44 = vadd.f32 1.0, %v11630_v56  ;;  %10465 = vmatpush3.bf16.msra.mxu0 %v12195_v40  ;;  %v16813_v7 = vld [vmem:[#allocation25_spill] sm:$0xff]  ;;  %v5616_v4 = vadd.f32 %v15235_v3, %v15022_v49  ;;  %v12202_v40 = vld [vmem:[#allocation9] ss:$12 sps:$4 sm:$0xff]  }
 0x8d3   : > { %v11634_v54 = vpop.eup %11633  ;;  %v5630_v46 = vmul.f32 %v11632_v33, %v5614_v41  ;;  %10466 = vmatprep.subr.bf16.mxu0 %v12198_v21  ;;  %v12200_v41 = vld [vmem:[#allocation9 + $0x4] ss:$12 sps:$4 sm:$0xff]   ;;  %v5707_v33 = vmul.f32 0.0, %v15255_v15 }
 0x8d4   : > { %v11636_v9 = vpop.eup %11635  ;;  %v5689_v6 = vmul.f32 %v11634_v54, %v5673_v39  ;;  %11653 = vtanh.f32 %v5645_v37  ;;  %5912 = vmatmul.mubr.bf16.gmra.mxu0 %v5844_v11  ;;  %v12199_v11 = vld [vmem:[#allocation9 + $0x18] ss:$12 sps:$4 sm:$0xff]  }
 0x8d5   : > { %v5690_v18 = vmul.f32 %v11636_v9, %v5674_v32  ;;  %v5646_v16 = vadd.f32 %v5630_v46, %v4300_v31  ;;  %5921 = vmatprep.mubr.bf16.mxu0 %v16808_v45  ;;  %v11638_v42 = vpop.eup %11637  ;;  %6542 = vmatpush1.bf16.msra.mxu1 %v12196_v48 }
 0x8d6   : > { %v15265_v43 = vadd.f32 %v5705_v53, %v5689_v6  ;;  %6543 = vmatprep.subr.bf16.mxu1 %v12197_v22  ;;  %10467 = vmatpush3.bf16.msra.mxu0 %v12198_v21  ;;  %v5568_v26 = vadd.f32 1.0, %v11638_v42 }
 0x8d7   : > { %11655 = vtanh.f32 %v5646_v16  ;;  %v15269_v52 = vadd.f32 %v5706_v34, %v5690_v18  ;;  %7213 = vmatprep.subr.bf16.mxu0 %v12201_v27  ;;  %v16814_v34 = vld [vmem:[#allocation50_spill] sm:$0xff] }
 0x8d8   : > { %v11640_v50 = vpop.eup %11639  ;;  %11657 = vrcp.f32 %v5567_v44  ;;  %vm5737_vm15 = vcmp.gt.f32.partialorder %v15265_v43, 0.0  ;;  %v5753_v20 = vmul.f32 0.1, %v15265_v43 }
 0x8d9   : > { %v11642_v28 = vpop.eup %11641  ;;  %v5631_v2 = vmul.f32 %v11640_v50, %v5615_v38  ;;  %vm5738_vm2 = vcmp.gt.f32.partialorder %v15269_v52, 0.0  ;;  %v5754_v25 = vmul.f32 0.1, %v15269_v52  ;;  %v5845_v8 = vpack.c.bf16 %v15269_v52, %v15265_v43  ;;  %6544 = vmatpush1.bf16.msra.mxu1 %v12199_v11 }
 0x8da   : > { %v11644_v35 = vpop.eup %11643  ;;  %v5769_v29 = vsel %vm5737_vm15, %v15265_v43, %v5753_v20  ;;  %6545 = vmatprep.subr.bf16.mxu1 %v12200_v41  ;;  %v5676_v39 = vsub.f32 1.0, %v11642_v28  ;;  %v5708_v32 = vmul.f32 0.0, %v11642_v28 }
 0x8db   : > { %v11646_v57 = vpop.eup %11645  ;;  %v5647_v62 = vadd.f32 %v5631_v2, %v16813_v7  ;;  %v5770_v56 = vsel %vm5738_vm2, %v15269_v52, %v5754_v25  ;;  %5785 = vst [vmem:[#allocation3 + $0x100] sm:$0xff] %v5769_v29  ;;  %10444 = vmatprep.mubr.bf16.mxu1 %v5845_v8  ;;  %v5677_v53 = vsub.f32 1.0, %v11644_v35  ;;  %v5709_v6 = vmul.f32 0.0, %v11644_v35 }
 0x8dc   : > { %v5691_v37 = vmul.f32 %v11646_v57, %v5675_v36  ;;  %5786 = vst [vmem:[#allocation3 + $0x120] sm:$0xff] %v5770_v56  ;;  %5922 = vmatmul.mubr.bf16.gmra.mxu0 %v5845_v8 }
 0x8dd   : > { %v11648_v54 = vpop.eup %11647  ;;  %11659 = vtanh.f32 %v5647_v62  ;;  %5931 = vmatprep.mubr.bf16.mxu0 %v16808_v45  ;;  %6546 = vmatpush1.bf16.msra.mxu1 %v12202_v40 }
 0x8de   : > { %v11650_v31 = vpop.eup %11649  ;;  %v5692_v46 = vmul.f32 %v11648_v54, %v5676_v39  ;;  %v15285_v51 = vadd.f32 %v5707_v33, %v5691_v37  ;;  %11661 = vrcp.f32 %v5568_v26  ;;  %10484 = vmatprep.subr.bf16.mxu1 %v15178_v17 }
 0x8df   : > { %v5632_v15 = vmul.f32 %v11650_v31, %v5616_v4  ;;  %v11652_v9 = vpop.eup %11651 }
 0x8e0   : > { %v15288_v44 = vadd.f32 %v5708_v32, %v5692_v46  ;;  %vm5739_vm3 = vcmp.gt.f32.partialorder %v15285_v51, 0.0  ;;  %v5755_v49 = vmul.f32 0.1, %v15285_v51  ;;  %v5678_v17 = vsub.f32 1.0, %v11652_v9 }
 0x8e1   : > { %v11654_v3 = vpop.eup %11653  ;;  %v5648_v18 = vadd.f32 %v5632_v15, %v16814_v34  ;;  %v5710_v28 = vmul.f32 0.0, %v11652_v9  ;;  %v16816_v15 = vld [vmem:[#allocation23_spill] sm:$0xff]  ;;  %v16817_v9 = vld [vmem:[#allocation32_spill] sm:$0xff] }
 0x8e2   : > { %v5693_v16 = vmul.f32 %v11654_v3, %v5677_v53  ;;  %vm5740_vm4 = vcmp.gt.f32.partialorder %v15288_v44, 0.0  ;;  %v5756_v42 = vmul.f32 0.1, %v15288_v44  ;;  %v5771_v48 = vsel %vm5739_vm3, %v15285_v51, %v5755_v49  ;;  %v16818_v3 = vld [vmem:[#allocation52_spill] sm:$0xff] }
 0x8e3   : > { %11663 = vtanh.f32 %v5648_v18  ;;  %5787 = vst [vmem:[#allocation3 + $0x140] sm:$0xff] %v5771_v48  ;;  %v5846_v38 = vpack.c.bf16 %v15288_v44, %v15285_v51  ;;  %v4238_v53 = vadd.f32 %v16817_v9, %v16816_v15 }
 0x8e4   : > { %v11656_v22 = vpop.eup %11655  ;;  %v5772_v21 = vsel %vm5740_vm4, %v15288_v44, %v5756_v42  ;;  %v15299_v50 = vadd.f32 %v5709_v6, %v5693_v16  ;;  %v4349_v6 = vadd.f32 %v16818_v3, %v14759_v30  ;;  %v16819_v16 = vld [vmem:[#allocation42_spill] sm:$0xff]  ;;  %v16825_v3 = vld [vmem:[#allocation29_spill] sm:$0xff] }
 0x8e5   : > { %v11658_v20 = vpop.eup %11657  ;;  %v5694_v2 = vmul.f32 %v11656_v22, %v5678_v17  ;;  %5788 = vst [vmem:[#allocation3 + $0x160] sm:$0xff] %v5772_v21  ;;  %5932 = vmatmul.mubr.bf16.gmra.mxu0 %v5846_v38  ;;  %10445 = vmatmul.mubr.bf16.gmra.mxu1 %v5846_v38  ;;  %v4242_v42 = vadd.f32 %v16819_v16, %v16816_v15  ;;  %v16820_v22 = vld [vmem:[#allocation56_spill] sm:$0xff] }
 0x8e6   : > { %5941 = vmatprep.mubr.bf16.mxu0 %v16808_v45  ;;  %vm5741_vm5 = vcmp.gt.f32.partialorder %v15299_v50, 0.0  ;;  %v5757_v25 = vmul.f32 0.1, %v15299_v50  ;;  %v5679_v36 = vsub.f32 1.0, %v11658_v20  ;;  %v5711_v26 = vmul.f32 0.0, %v11658_v20 }
 0x8e7   : > { %v15304_v8 = vadd.f32 %v5710_v28, %v5694_v2  ;;  %v4353_v21 = vadd.f32 %v16820_v22, %v14759_v30  ;;  %v16821_v2 = vld [vmem:[#allocation44_spill] sm:$0xff] }
 0x8e8   : > { %v5773_v35 = vsel %vm5741_vm5, %v15299_v50, %v5757_v25  ;;  %v4248_v25 = vadd.f32 %v16821_v2, %v16816_v15 }
 0x8e9   : > { %vm5742_vm0 = vcmp.gt.f32.partialorder %v15304_v8, 0.0  ;;  %v5758_v29 = vmul.f32 0.1, %v15304_v8  ;;  %5789 = vst [vmem:[#allocation3 + $0x180] sm:$0xff] %v5773_v35  ;;  %v5847_v11 = vpack.c.bf16 %v15304_v8, %v15299_v50 }
 0x8ea   : > { %v11660_v57 = vpop.eup %11659 }
 0x8eb   : > { %v5695_v7 = vmul.f32 %v11660_v57, %v5679_v36  ;;  %v5774_v62 = vsel %vm5742_vm0, %v15304_v8, %v5758_v29  ;;  %10448 = vmatprep.mubr.bf16.mxu1 %v5847_v11  ;;  %v11662_v56 = vpop.eup %11661  ;;  %v16822_v57 = vld [vmem:[#allocation60_spill] sm:$0xff] }
 0x8ec   : > { %5790 = vst [vmem:[#allocation3 + $0x1a0] sm:$0xff] %v5774_v62  ;;  %v5680_v33 = vsub.f32 1.0, %v11662_v56  ;;  %v5712_v27 = vmul.f32 0.0, %v11662_v56  ;;  %v16823_v62 = vld [vmem:[#allocation38_spill] sm:$0xff] }
 0x8ed   : > { %5942 = vmatmul.mubr.bf16.gmra.mxu0 %v5847_v11  ;;  %v15312_v41 = vadd.f32 %v5711_v26, %v5695_v7  ;;  %v4359_v26 = vadd.f32 %v16822_v57, %v14759_v30  ;;  %v4252_v56 = vadd.f32 %v16823_v62, %v16816_v15 }
 0x8ee   : > { %5951 = vmatprep.mubr.bf16.mxu0 %v16808_v45 }
 0x8ef   : > { %vm5743_vm1 = vcmp.gt.f32.partialorder %v15312_v41, 0.0  ;;  %v5759_v39 = vmul.f32 0.1, %v15312_v41 }
 0x8f0   : > { %v11664_v37 = vpop.eup %11663 }
 0x8f1   : > { %v5696_v54 = vmul.f32 %v11664_v37, %v5680_v33  ;;  %v5775_v4 = vsel %vm5743_vm1, %v15312_v41, %v5759_v39 }
 0x8f2   : > { %5791 = vst [vmem:[#allocation3 + $0x1c0] sm:$0xff] %v5775_v4  ;;  %v16824_v4 = vld [vmem:[#allocation64_spill] sm:$0xff] }
 0x8f3   : > { %v15318_v31 = vadd.f32 %v5712_v27, %v5696_v54 }
 0x8f5   : > { %16815 = vst [vmem:[#allocation24_spill] sm:$0xff] %v15318_v31  ;;  %vm5744_vm6 = vcmp.gt.f32.partialorder %v15318_v31, 0.0  ;;  %v5760_v32 = vmul.f32 0.1, %v15318_v31  ;;  %v5848_v46 = vpack.c.bf16 %v15318_v31, %v15312_v41 }
 0x8f7   : > { %v5776_v40 = vsel %vm5744_vm6, %v15318_v31, %v5760_v32  ;;  %5952 = vmatmul.mubr.bf16.gmra.mxu0 %v5848_v46  ;;  %10449 = vmatmul.mubr.bf16.gmra.mxu1 %v5848_v46  ;;  %v4363_v32 = vadd.f32 %v16824_v4, %v14759_v30 }
 0x8f8   : > { %5792 = vst [vmem:[#allocation3 + $0x1e0] sm:$0xff] %v5776_v40  ;;  %6563 = vmatprep.mubr.bf16.mxu1 %v16808_v45 }
 0x978   : > { %v5883_v49 = vpop.f32.mrf.mxu0 }
 0x979   : > { %v6059_v34 = vadd.f32 %v5883_v49, %v4238_v53 }
 0x97a   : > { %v5885_v18 = vpop.f32.mrf.mxu0 }
 0x97b   : > { %v9608_v48 = vmul.f32 -1.442695, %v6059_v34  ;;  %v6171_v17 = vadd.f32 %v5885_v18, %v4349_v6  ;;  %v4258_v6 = vadd.f32 %v16825_v3, %v16816_v15 }
 0x97c   : > { %v5887_v38 = vpop.f32.mrf.mxu0 }
 0x97d   : > { %11665 = vpow2.f32 %v9608_v48  ;;  %v6060_v20 = vadd.f32 %v5887_v38, %v4242_v42  ;;  %v9624_v35 = vmul.f32 -1.442695, %v6171_v17  ;;  %v16826_v42 = vld [vmem:[#allocation68_spill] sm:$0xff] }
 0x97e   : > { %v5889_v28 = vpop.f32.mrf.mxu0  ;;  %v4369_v48 = vadd.f32 %v16826_v42, %v14759_v30 }
 0x97f   : > { %v9609_v36 = vmul.f32 -1.442695, %v6060_v20  ;;  %v6172_v29 = vadd.f32 %v5889_v28, %v4353_v21  ;;  %v16827_v21 = vld [vmem:[#allocation28_spill] sm:$0xff] }
 0x980   : > { %v5893_v11 = vpop.f32.mrf.mxu0  ;;  %v4262_v20 = vadd.f32 %v16827_v21, %v16816_v15  ;;  %v16833_v21 = vld [vmem:[#allocation37_spill] sm:$0xff] }
 0x981   : > { %11667 = vpow2.f32 %v9609_v36  ;;  %v6061_v7 = vadd.f32 %v5893_v11, %v4248_v25  ;;  %v9625_v39 = vmul.f32 -1.442695, %v6172_v29  ;;  %v15348_v25 = vpop.f32.mrf.mxu1  ;;  %v16828_v29 = vld [vmem:[#allocation72_spill] sm:$0xff] }
 0x982   : > { %v5895_v33 = vpop.f32.mrf.mxu0  ;;  %11669 = vpow2.f32 %v9624_v35  ;;  %v4373_v11 = vadd.f32 %v16828_v29, %v14759_v30 }
 0x983   : > { %v9610_v37 = vmul.f32 -1.442695, %v6061_v7  ;;  %v6173_v27 = vadd.f32 %v5895_v33, %v4359_v26  ;;  %v16829_v33 = vld [vmem:[#allocation31_spill] sm:$0xff] }
 0x984   : > { %v5897_v54 = vpop.f32.mrf.mxu0 }
 0x985   : > { %11671 = vpow2.f32 %v9610_v37  ;;  %v9626_v46 = vmul.f32 -1.442695, %v6173_v27  ;;  %v6062_v40 = vadd.f32 %v5897_v54, %v4252_v56  ;;  %v5996_v54 = vpop.f32.mrf.mxu1 }
 0x986   : > { %v5899_v9 = vpop.f32.mrf.mxu0  ;;  %11673 = vpow2.f32 %v9625_v39  ;;  %v4268_v39 = vadd.f32 %v16829_v33, %v16816_v15 }
 0x987   : > { %v9611_v53 = vmul.f32 -1.442695, %v6062_v40  ;;  %v6174_v49 = vadd.f32 %v5899_v9, %v4363_v32  ;;  %11675 = vpow2.f32 %v9626_v46  ;;  %v16830_v46 = vld [vmem:[#allocation76_spill] sm:$0xff] }
 0x988   : > { %v4379_v40 = vadd.f32 %v16830_v46, %v14759_v30 }
 0x989   : > { %11677 = vpow2.f32 %v9611_v53  ;;  %v9627_v34 = vmul.f32 -1.442695, %v6174_v49 }
 0x98a   : > { %v11666_v16 = vpop.eup %11665 }
 0x98b   : > { %v6123_v38 = vadd.f32 1.0, %v11666_v16  ;;  %11679 = vpow2.f32 %v9627_v34 }
 0x98c   : > { %v5903_v18 = vpop.f32.mrf.mxu0 }
 0x98d   : > { %v6063_v17 = vadd.f32 %v5903_v18, %v4258_v6  ;;  %11681 = vrcp.f32 %v6123_v38  ;;  %v16831_v18 = vld [vmem:[#allocation36_spill] sm:$0xff]  ;;  %v16832_v38 = vld [vmem:[#allocation27_spill] sm:$0xff] }
 0x98e   : > { %v5905_v22 = vpop.f32.mrf.mxu0  ;;  %v11668_v36 = vpop.eup %11667  ;;  %v4272_v16 = vadd.f32 %v16831_v18, %v16816_v15 }
 0x98f   : > { %v9612_v28 = vmul.f32 -1.442695, %v6063_v17  ;;  %v6175_v2 = vadd.f32 %v5905_v22, %v4369_v48  ;;  %v6124_v7 = vadd.f32 1.0, %v11668_v36  ;;  %v11670_v56 = vpop.eup %11669  ;;  %v4278_v22 = vadd.f32 %v16832_v38, %v16816_v15 }
 0x990   : > { %v5907_v35 = vpop.f32.mrf.mxu0  ;;  %v6235_v49 = vadd.f32 1.0, %v11670_v56 }
 0x991   : > { %11683 = vpow2.f32 %v9612_v28  ;;  %v9628_v57 = vmul.f32 -1.442695, %v6175_v2  ;;  %v6064_v26 = vadd.f32 %v5907_v35, %v4262_v20  ;;  %v15362_v20 = vadd.f32 %v16833_v21, %v16816_v15  ;;  %v16834_v28 = vld [vmem:[#allocation34_spill] sm:$0xff]  ;;  %v15368_v35 = vpop.f32.mrf.mxu1 }
 0x992   : > { %v5909_v62 = vpop.f32.mrf.mxu0  ;;  %v11672_v32 = vpop.eup %11671  ;;  %v15366_v2 = vadd.f32 %v16834_v28, %v16816_v15 }
 0x993   : > { %11685 = vpow2.f32 %v9628_v57  ;;  %v9613_v37 = vmul.f32 -1.442695, %v6064_v26  ;;  %v6176_v27 = vadd.f32 %v5909_v62, %v4373_v11  ;;  %v6125_v3 = vadd.f32 1.0, %v11672_v32  ;;  %v11674_v34 = vpop.eup %11673  ;;  %v16835_v11 = vld [vmem:[#allocation80_spill] sm:$0xff]  ;;  %v16836_v62 = vld [vmem:[#allocation45_spill] sm:$0xff] }
 0x994   : > { %11687 = vrcp.f32 %v6124_v7  ;;  %v5913_v4 = vpop.f32.mrf.mxu0  ;;  %v11676_v17 = vpop.eup %11675  ;;  %v4383_v57 = vadd.f32 %v16835_v11, %v14759_v30  ;;  %v15374_v56 = vadd.f32 %v16836_v62, %v16816_v15  ;;  %v6236_v33 = vadd.f32 1.0, %v11674_v34 }
 0x995   : > { %11689 = vpow2.f32 %v9613_v37  ;;  %v9629_v9 = vmul.f32 -1.442695, %v6176_v27  ;;  %v6065_v53 = vadd.f32 %v5913_v4, %v4268_v39  ;;  %v16837_v27 = vld [vmem:[#allocation30_spill] sm:$0xff]  ;;  %v5999_v34 = vpop.f32.mrf.mxu1 }
 0x996   : > { %v5915_v6 = vpop.f32.mrf.mxu0  ;;  %v11678_v29 = vpop.eup %11677  ;;  %v15378_v4 = vadd.f32 %v16837_v27, %v16816_v15 }
 0x997   : > { %11691 = vpow2.f32 %v9629_v9  ;;  %v9614_v42 = vmul.f32 -1.442695, %v6065_v53  ;;  %v6177_v48 = vadd.f32 %v5915_v6, %v4379_v40  ;;  %v6126_v39 = vadd.f32 1.0, %v11678_v29  ;;  %v16838_v9 = vld [vmem:[#allocation22_spill] sm:$0xff]  ;;  %v15384_v6 = vld [vmem:[#allocation14 + $0x1] ss:$0 sm:$0xff] }
 0x998   : > { %11693 = vrcp.f32 %v6125_v3  ;;  %v5917_v36 = vpop.f32.mrf.mxu0  ;;  %v11680_v40 = vpop.eup %11679  ;;  %v15382_v53 = vadd.f32 %v16838_v9, %v16816_v15  ;;  %v6237_v3 = vadd.f32 1.0, %v11676_v17  ;;  %v16841_v17 = vld [vmem:[#allocation84_spill] sm:$0xff]  ;;  %v16842_v9 = vld [vmem:[#allocation58_spill] sm:$0xff] }
 0x999   : > { %11695 = vpow2.f32 %v9614_v42  ;;  %v9630_v26 = vmul.f32 -1.442695, %v6177_v48  ;;  %v6066_v7 = vadd.f32 %v5917_v36, %v4272_v16  ;;  %v16839_v42 = vld [vmem:[#allocation51_spill] sm:$0xff]  ;;  %v16840_v36 = vld [vmem:[#allocation54_spill] sm:$0xff]  ;;  %v4389_v11 = vadd.f32 %v16841_v17, %v14759_v30 }
 0x99a   : > { %11697 = vrcp.f32 %v6235_v49  ;;  %v5919_v37 = vpop.f32.mrf.mxu0  ;;  %v6283_v49 = vadd.f32 %v15384_v6, %v5996_v54  ;;  %v11682_v16 = vpop.eup %11681  ;;  %v15389_v48 = vadd.f32 %v16839_v42, %v16816_v15  ;;  %v4351_v29 = vadd.f32 %v16840_v36, %v14767_v63  ;;  %v16845_v42 = vld [vmem:[#allocation70_spill] sm:$0xff] }
 0x99b   : > { %11699 = vpow2.f32 %v9630_v26  ;;  %v9615_v32 = vmul.f32 -1.442695, %v6066_v7  ;;  %v6178_v46 = vadd.f32 %v5919_v37, %v4383_v57  ;;  %v6238_v26 = vadd.f32 1.0, %v11680_v40  ;;  %v16844_v40 = vld [vmem:[#allocation66_spill] sm:$0xff] }
 0x99c   : > { %11701 = vrcp.f32 %v6126_v39  ;;  %v5923_v18 = vpop.f32.mrf.mxu0  ;;  %v6299_v54 = vmul.f32 %v11682_v16, %v6283_v49  ;;  %v6284_v7 = vadd.f32 %v15384_v6, %v5999_v34  ;;  %v15396_v39 = vpop.f32.mrf.mxu1  ;;  %v4365_v34 = vadd.f32 %v16844_v40, %v14767_v63 }
 0x99d   : > { %11703 = vpow2.f32 %v9615_v32  ;;  %v9631_v38 = vmul.f32 -1.442695, %v6178_v46  ;;  %v6067_v21 = vadd.f32 %v5923_v18, %v4278_v22  ;;  %v4355_v18 = vadd.f32 %v16842_v9, %v14767_v63 }
 0x99e   : > { %v11684_v28 = vpop.eup %11683  ;;  %11705 = vrcp.f32 %v6236_v33  ;;  %v5925_v57 = vpop.f32.mrf.mxu0  ;;  %v6315_v22 = vadd.f32 %v6299_v54, %v4351_v29  ;;  %v16843_v33 = vld [vmem:[#allocation62_spill] sm:$0xff]  ;;  %v6285_v29 = vadd.f32 %v15384_v6, %v15348_v25 }
 0x99f   : > { %v6127_v62 = vadd.f32 1.0, %v11684_v28  ;;  %11707 = vpow2.f32 %v9631_v38  ;;  %v9616_v37 = vmul.f32 -1.442695, %v6067_v21  ;;  %v6179_v27 = vadd.f32 %v5925_v57, %v4389_v11  ;;  %v6012_v54 = vpop.f32.mrf.mxu1  ;;  %v16849_v25 = vld [vmem:[#allocation86_spill] sm:$0xff] }
 0x9a0   : > { %v11686_v15 = vpop.eup %11685  ;;  %11709 = vrcp.f32 %v6237_v3  ;;  %v5927_v32 = vpop.f32.mrf.mxu0  ;;  %v4361_v49 = vadd.f32 %v16843_v33, %v14767_v63  ;;  %v15406_v38 = vadd.f32 %v16845_v42, %v14767_v63  ;;  %v16846_v3 = vld [vmem:[#allocation74_spill] sm:$0xff] }
 0x9a1   : > { %v11688_v46 = vpop.eup %11687  ;;  %11711 = vrcp.f32 %v6127_v62  ;;  %v15410_v21 = vadd.f32 %v16846_v3, %v14767_v63  ;;  %v6239_v17 = vadd.f32 1.0, %v11686_v15  ;;  %v9632_v9 = vmul.f32 -1.442695, %v6179_v27  ;;  %v16847_v42 = vld [vmem:[#allocation78_spill] sm:$0xff] }
 0x9a2   : > { %v11690_v16 = vpop.eup %11689  ;;  %11713 = vtanh.f32 %v6315_v22  ;;  %v6300_v28 = vmul.f32 %v11688_v46, %v6284_v7  ;;  %v5929_v36 = vpop.f32.mrf.mxu0  ;;  %v6068_v33 = vadd.f32 %v5927_v32, %v15362_v20  ;;  %v15417_v3 = vadd.f32 %v16847_v42, %v14767_v63  ;;  %v16848_v7 = vld [vmem:[#allocation82_spill] sm:$0xff] }
 0x9a3   : > { %11715 = vrcp.f32 %v6238_v26  ;;  %v6128_v11 = vadd.f32 1.0, %v11690_v16  ;;  %v15421_v22 = vadd.f32 %v16848_v7, %v14767_v63  ;;  %v15425_v26 = vadd.f32 %v16849_v25, %v14767_v63  ;;  %v16851_v20 = vld [vmem:[#allocation90_spill] sm:$0xff]  ;;  %v10443_v25 = vpop.f32.mrf.mxu1 }
 0x9a4   : > { %v11692_v57 = vpop.eup %11691  ;;  %v6316_v62 = vadd.f32 %v6300_v28, %v4355_v18  ;;  %11717 = vpow2.f32 %v9616_v37  ;;  %v16850_v37 = vld [vmem:[#allocation88_spill] sm:$0xff]  ;;  %v15431_v32 = vadd.f32 %v16851_v20, %v14767_v63  ;;  %v6286_v28 = vadd.f32 %v15384_v6, %v15368_v35 }
 0x9a5   : > { %v11694_v40 = vpop.eup %11693  ;;  %11719 = vrcp.f32 %v6128_v11  ;;  %v5933_v15 = vpop.f32.mrf.mxu0  ;;  %v4393_v27 = vadd.f32 %v16850_v37, %v14759_v30  ;;  %v6240_v42 = vadd.f32 1.0, %v11692_v57  ;;  %v9617_v61 = vmul.f32 -1.442695, %v6068_v33  ;;  %v16852_v20 = vld [vmem:[#allocation92_spill] sm:$0xff]  ;;  %v16855_v33 = vld [vmem:[#allocation106_spill] sm:$0xff] }
 0x9a6   : > { %v11696_v46 = vpop.eup %11695  ;;  %v6301_v18 = vmul.f32 %v11694_v40, %v6285_v29  ;;  %11721 = vtanh.f32 %v6316_v62  ;;  %v4399_v14 = vadd.f32 %v16852_v20, %v14759_v30  ;;  %v16853_v29 = vld [vmem:[#allocation96_spill] sm:$0xff]  ;;  %v6069_v35 = vadd.f32 %v5933_v15, %v15366_v2  ;;  %v6015_v15 = vpop.f32.mrf.mxu1 }
 0x9a7   : > { %v11698_v16 = vpop.eup %11697  ;;  %11723 = vrcp.f32 %v6239_v17  ;;  %v6129_v7 = vadd.f32 1.0, %v11696_v46  ;;  %v5935_v11 = vpop.f32.mrf.mxu0  ;;  %v6180_v37 = vadd.f32 %v5929_v36, %v4393_v27  ;;  %v4403_v62 = vadd.f32 %v16853_v29, %v14759_v30  ;;  %v16854_v40 = vld [vmem:[#allocation100_spill] sm:$0xff] }
 0x9a8   : > { %v11700_v59 = vpop.eup %11699  ;;  %v6317_v5 = vadd.f32 %v6301_v18, %v4361_v49  ;;  %11725 = vpow2.f32 %v9632_v9  ;;  %v15442_v46 = vadd.f32 %v16854_v40, %v14759_v30  ;;  %v15446_v27 = vadd.f32 %v16855_v33, %v14759_v30 }
 0x9a9   : > { %v11702_v58 = vpop.eup %11701  ;;  %11727 = vrcp.f32 %v6129_v7  ;;  %v5937_v17 = vpop.f32.mrf.mxu0  ;;  %v6241_v9 = vadd.f32 1.0, %v11700_v59  ;;  %v15450_v18 = vadd.f32 %v15384_v6, %v15396_v39  ;;  %v9633_v40 = vmul.f32 -1.442695, %v6180_v37 }
 0x9aa   : > { %v11704_v57 = vpop.eup %11703  ;;  %11729 = vtanh.f32 %v6317_v5  ;;  %v6302_v49 = vmul.f32 %v11702_v58, %v6286_v28  ;;  %v6181_v5 = vadd.f32 %v5935_v11, %v4399_v14  ;;  %v6287_v59 = vadd.f32 %v15384_v6, %v6012_v54  ;;  %v15455_v28 = vpop.f32.mrf.mxu1 }
 0x9ab   : > { %v11706_v36 = vpop.eup %11705  ;;  %11731 = vrcp.f32 %v6240_v42  ;;  %v6130_v2 = vadd.f32 1.0, %v11704_v57  ;;  %v5939_v7 = vpop.f32.mrf.mxu0  ;;  %v9618_v30 = vmul.f32 -1.442695, %v6069_v35  ;;  %v6070_v42 = vadd.f32 %v5937_v17, %v15374_v56 }
 0x9ac   : > { %v11708_v20 = vpop.eup %11707  ;;  %v6318_v29 = vadd.f32 %v6302_v49, %v4365_v34  ;;  %11733 = vpow2.f32 %v9617_v61  ;;  %v6347_v57 = vsub.f32 1.0, %v11698_v16  ;;  %v15459_v19 = vadd.f32 %v15384_v6, %v10443_v25  ;;  %v6028_v25 = vpop.f32.mrf.mxu1 }
 0x9ad   : > { %v15452_v58 = vpop.eup %11709  ;;  %11735 = vrcp.f32 %v6130_v2  ;;  %v5943_v39 = vpop.f32.mrf.mxu0  ;;  %v6242_v61 = vadd.f32 1.0, %v11708_v20  ;;  %v6379_v14 = vmul.f32 %v11698_v16, %v15129_v23  ;;  %v6288_v54 = vadd.f32 %v15384_v6, %v6015_v15 }
 0x9ae   : > { %v11712_v33 = vpop.eup %11711  ;;  %11737 = vrcp.f32 %v6241_v9  ;;  %v6348_v49 = vsub.f32 1.0, %v11706_v36  ;;  %v9634_v17 = vmul.f32 -1.442695, %v6181_v5  ;;  %v9619_v20 = vmul.f32 -1.442695, %v6070_v42 }
 0x9af   : > { %v11714_v34 = vpop.eup %11713  ;;  %11739 = vtanh.f32 %v6318_v29  ;;  %v6303_v11 = vmul.f32 %v11712_v33, %v6287_v59  ;;  %v5945_v37 = vpop.f32.mrf.mxu0  ;;  %v6071_v31 = vadd.f32 %v5943_v39, %v15378_v4  ;;  %v6182_v59 = vadd.f32 %v5939_v7, %v4403_v62 }
 0x9b0   : > { %v15463_v35 = vpop.eup %11715  ;;  %v6363_v56 = vmul.f32 %v11714_v34, %v6347_v57  ;;  %11741 = vpow2.f32 %v9633_v40  ;;  %v6380_v57 = vmul.f32 %v11706_v36, %v15144_v0  ;;  %v6349_v40 = vsub.f32 1.0, %v15452_v58  ;;  %v15476_v62 = vpop.f32.mrf.mxu1 }
 0x9b1   : > { %v11718_v2 = vpop.eup %11717  ;;  %v6319_v9 = vadd.f32 %v6303_v11, %v15406_v38  ;;  %11743 = vpow2.f32 %v9618_v30  ;;  %v5947_v23 = vpop.f32.mrf.mxu0  ;;  %v9620_v0 = vmul.f32 -1.442695, %v6071_v31  ;;  %v9635_v11 = vmul.f32 -1.442695, %v6182_v59 }
 0x9b2   : > { %v11720_v16 = vpop.eup %11719  ;;  %v15467_v29 = vadd.f32 %v6379_v14, %v6363_v56  ;;  %11745 = vrcp.f32 %v6242_v61  ;;  %v6131_v15 = vadd.f32 1.0, %v11718_v2  ;;  %v6072_v36 = vadd.f32 %v5947_v23, %v15382_v53  ;;  %v6031_v23 = vpop.f32.mrf.mxu1 }
 0x9b3   : > { %v11722_v33 = vpop.eup %11721  ;;  %11747 = vtanh.f32 %v6319_v9  ;;  %v6304_v5 = vmul.f32 %v11720_v16, %v6288_v54  ;;  %v5949_v38 = vpop.f32.mrf.mxu0  ;;  %v6291_v31 = vadd.f32 %v15384_v6, %v6028_v25  ;;  %v6183_v9 = vadd.f32 %v5945_v37, %v15442_v46  ;;  %v16856_v46 = vld [vmem:[#allocation48_spill] sm:$0xff] }
 0x9b4   : > { %v15471_v30 = vpop.eup %11723  ;;  %vm6411_vm7 = vcmp.gt.f32.partialorder %v15467_v29, 0.0  ;;  %v6427_v4 = vmul.f32 0.1, %v15467_v29  ;;  %v6364_v42 = vmul.f32 %v11722_v33, %v6348_v49  ;;  %11749 = vrcp.f32 %v6131_v15 }
 0x9b5   : > { %v11726_v39 = vpop.eup %11725  ;;  %v6320_v61 = vadd.f32 %v6304_v5, %v15410_v21  ;;  %11751 = vpow2.f32 %v9619_v20  ;;  %v15484_v49 = vmul.f32 %v15452_v58, %v15168_v10  ;;  %v6184_v33 = vadd.f32 %v5949_v38, %v15446_v27 }
 0x9b6   : > { %v11728_v7 = vpop.eup %11727  ;;  %v6443_v34 = vsel %vm6411_vm7, %v15467_v29, %v6427_v4  ;;  %v15480_v14 = vadd.f32 %v6380_v57, %v6364_v42  ;;  %11753 = vpow2.f32 %v9634_v17  ;;  %v6243_v58 = vadd.f32 1.0, %v11726_v39 }
 0x9b7   : > { %v11730_v54 = vpop.eup %11729  ;;  %6459 = vst [vmem:[#allocation3 + $0x8] sm:$0xff] %v6443_v34  ;;  %v6305_v21 = vmul.f32 %v11728_v7, %v15450_v18  ;;  %11755 = vtanh.f32 %v6320_v61  ;;  %v5953_v56 = vpop.f32.mrf.mxu0  ;;  %v9621_v18 = vmul.f32 -1.442695, %v6072_v36  ;;  %v6382_v4 = vmul.f32 %v15463_v35, %v15170_v1 }
 0x9b8   : > { %v15488_v53 = vpop.eup %11731  ;;  %v6365_v2 = vmul.f32 %v11730_v54, %v6349_v40  ;;  %vm6412_vm8 = vcmp.gt.f32.partialorder %v15480_v14, 0.0  ;;  %v6428_v17 = vmul.f32 0.1, %v15480_v14  ;;  %11757 = vpow2.f32 %v9620_v0 }
 0x9b9   : > { %v11734_v20 = vpop.eup %11733  ;;  %v6321_v10 = vadd.f32 %v6305_v21, %v15417_v3  ;;  %v5955_v16 = vpop.f32.mrf.mxu0  ;;  %11759 = vpow2.f32 %v9635_v11  ;;  %v6350_v40 = vsub.f32 1.0, %v15463_v35  ;;  %v6073_v37 = vadd.f32 %v5953_v56, %v16856_v46 }
 0x9ba   : > { %v11736_v15 = vpop.eup %11735  ;;  %v6444_v25 = vsel %vm6412_vm8, %v15480_v14, %v6428_v17  ;;  %v6132_v59 = vadd.f32 1.0, %v11734_v20  ;;  %v15504_v42 = vadd.f32 %v15384_v6, %v6031_v23  ;;  %v9636_v39 = vmul.f32 -1.442695, %v6183_v9 }
 0x9bb   : > { %v15496_v57 = vpop.eup %11737  ;;  %6460 = vst [vmem:[#allocation3 + $0x28] sm:$0xff] %v6444_v25  ;;  %11761 = vtanh.f32 %v6321_v10  ;;  %v6306_v3 = vmul.f32 %v11736_v15, %v15459_v19  ;;  %v6351_v38 = vsub.f32 1.0, %v15471_v30  ;;  %v6383_v61 = vmul.f32 %v15471_v30, %v15208_v12  ;;  %v5957_v19 = vpop.f32.mrf.mxu0 }
 0x9bc   : > { %v11740_v5 = vpop.eup %11739  ;;  %11763 = vrcp.f32 %v6132_v59  ;;  %v6352_v7 = vsub.f32 1.0, %v15488_v53  ;;  %v6384_v1 = vmul.f32 %v15488_v53, %v15222_v24  ;;  %v9637_v35 = vmul.f32 -1.442695, %v6184_v33 }
 0x9bd   : > { %v11742_v27 = vpop.eup %11741  ;;  %v6322_v0 = vadd.f32 %v6306_v3, %v15421_v22  ;;  %11765 = vpow2.f32 %v9621_v18  ;;  %v6366_v11 = vmul.f32 %v11740_v5, %v6350_v40  ;;  %v9622_v21 = vmul.f32 -1.442695, %v6073_v37  ;;  %v5959_v33 = vpop.f32.mrf.mxu0 }
 0x9be   : > { %v11744_v36 = vpop.eup %11743  ;;  %11767 = vrcp.f32 %v6243_v58  ;;  %v6353_v12 = vsub.f32 1.0, %v15496_v57  ;;  %v6244_v22 = vadd.f32 1.0, %v11742_v27  ;;  %v6074_v30 = vadd.f32 %v5957_v19, %v15389_v48 }
 0x9bf   : > { %v15513_v34 = vpop.eup %11745  ;;  %11769 = vtanh.f32 %v6322_v0  ;;  %v6133_v54 = vadd.f32 1.0, %v11744_v36  ;;  %v15519_v9 = vmul.f32 %v15496_v57, %v15217_v60  ;;  %v6523_v53 = vpack.c.bf16 %v15480_v14, %v15467_v29 }
 0x9c0   : > { %v11748_v56 = vpop.eup %11747  ;;  %11771 = vpow2.f32 %v9636_v39  ;;  %v6185_v58 = vadd.f32 %v5955_v16, %v14774_v13  ;;  %v15525_v23 = vadd.f32 %v15484_v49, %v6365_v2  ;;  %v15527_v60 = vadd.f32 %v6382_v4, %v6366_v11  ;;  %v12204_v13 = vld [vmem:[#allocation9 + $0xb0] ss:$12 sps:$4 sm:$0xff]   ;;  %v12205_v16 = vld [vmem:[#allocation9 + $0x98] ss:$12 sps:$4 sm:$0xff]  }
 0x9c1   : > { %v11750_v17 = vpop.eup %11749  ;;  %v6367_v24 = vmul.f32 %v11748_v56, %v6351_v38  ;;  %11773 = vrcp.f32 %v6133_v54  ;;  %6564 = vmatmul.mubr.bf16.vlgmr.msra.gmra.mxu1 %v6523_v53  ;;  %10468 = vmatprep.mubr.bf16.mxu0 %v6523_v53  ;;  %v6354_v40 = vsub.f32 1.0, %v15513_v34  ;;  %v6186_v5 = vadd.f32 %v5959_v33, %v14788_v47  ;;  %v15552_v54 = vpop.f32.mrf.mxu1 }
 0x9c2   : > { %v11752_v20 = vpop.eup %11751  ;;  %v6307_v10 = vmul.f32 %v11750_v17, %v6291_v31  ;;  %11775 = vpow2.f32 %v9637_v35  ;;  %v9623_v31 = vmul.f32 -1.442695, %v6074_v30  ;;  %6573 = vmatprep.mubr.bf16.mxu1 %v16808_v45  ;;  %vm6413_vm9 = vcmp.gt.f32.partialorder %v15525_v23, 0.0  ;;  %10485 = vmatpush3.bf16.msra.mxu1 %v12204_v13  ;;  %v12208_v17 = vld [vmem:[#allocation9 + $0x94] ss:$12 sps:$4 sm:$0xff]  }
 0x9c3   : > { %v11754_v18 = vpop.eup %11753  ;;  %v6134_v48 = vadd.f32 1.0, %v11752_v20  ;;  %11777 = vpow2.f32 %v9622_v21  ;;  %v15529_v15 = vadd.f32 %v6383_v61, %v6367_v24  ;;  %vm6414_vm10 = vcmp.gt.f32.partialorder %v15527_v60, 0.0  ;;  %10486 = vmatprep.subr.bf16.mxu1 %v12205_v16  ;;  %v12207_v21 = vld [vmem:[#allocation9 + $0xa8] ss:$12 sps:$4 sm:$0xff]   ;;  %v6044_v13 = vpop.f32.mrf.mxu1 }
 0x9c4   : > { %v11756_v25 = vpop.eup %11755  ;;  %11779 = vrcp.f32 %v6244_v22  ;;  %v6323_v59 = vadd.f32 %v6307_v10, %v15425_v26  ;;  %v6429_v2 = vmul.f32 0.1, %v15525_v23  ;;  %v6245_v26 = vadd.f32 1.0, %v11754_v18 }
 0x9c5   : > { %v6368_v49 = vmul.f32 %v11756_v25, %v6352_v7  ;;  %11781 = vrcp.f32 %v6134_v48  ;;  %v11758_v57 = vpop.eup %11757  ;;  %v6430_v3 = vmul.f32 0.1, %v15527_v60  ;;  %v6524_v39 = vpack.c.bf16 %v15527_v60, %v15525_v23  ;;  %v12206_v7 = vld [vmem:[#allocation9 + $0x80] ss:$12 sps:$4 sm:$0xff]   ;;  %v12209_v25 = vld [vmem:[#allocation9 + $0x68] ss:$12 sps:$4 sm:$0xff]  }
 0x9c6   : > { %11783 = vtanh.f32 %v6323_v59  ;;  %v11760_v46 = vpop.eup %11759  ;;  %v6135_v37 = vadd.f32 1.0, %v11758_v57  ;;  %v6445_v4 = vsel %vm6413_vm9, %v15525_v23, %v6429_v2  ;;  %v9638_v38 = vmul.f32 -1.442695, %v6185_v58  ;;  %10487 = vmatpush3.bf16.msra.mxu1 %v12205_v16 }
 0x9c7   : > { %11785 = vpow2.f32 %v9623_v31  ;;  %v6446_v61 = vsel %vm6414_vm10, %v15527_v60, %v6430_v3  ;;  %6461 = vst [vmem:[#allocation3 + $0x48] sm:$0xff] %v6445_v4  ;;  %v15547_v0 = vadd.f32 %v6384_v1, %v6368_v49  ;;  %10469 = vmatmul.mubr.bf16.vlgmr.msra.gmra.mxu0 %v6524_v39  ;;  %vm6415_vm11 = vcmp.gt.f32.partialorder %v15529_v15, 0.0  ;;  %10488 = vmatprep.subr.bf16.mxu1 %v12206_v7  ;;  %v16857_v31 = vld [vmem:[#allocation94_spill] sm:$0xff] }
 0x9c8   : > { %v11762_v27 = vpop.eup %11761  ;;  %11787 = vrcp.f32 %v6135_v37  ;;  %6462 = vst [vmem:[#allocation3 + $0x68] sm:$0xff] %v6446_v61  ;;  %v6431_v36 = vmul.f32 0.1, %v15529_v15  ;;  %7214 = vmatpush1.bf16.msra.mxu0 %v12207_v21  ;;  %v9639_v22 = vmul.f32 -1.442695, %v6186_v5  ;;  %v6386_v48 = vmul.f32 %v15513_v34, %v15239_v55 }
 0x9c9   : > { %v11764_v19 = vpop.eup %11763  ;;  %v6369_v47 = vmul.f32 %v11762_v27, %v6353_v12  ;;  %11789 = vrcp.f32 %v6245_v26  ;;  %vm6416_vm12 = vcmp.gt.f32.partialorder %v15547_v0, 0.0  ;;  %v6432_v1 = vmul.f32 0.1, %v15547_v0  ;;  %6574 = vmatmul.mubr.bf16.gmra.mxu1 %v6524_v39  ;;  %7215 = vmatprep.subr.bf16.mxu0 %v12208_v17  ;;  %v12210_v49 = vld [vmem:[#allocation9 + $0x90] ss:$12 sps:$4 sm:$0xff]  }
 0x9ca   : > { %v11766_v35 = vpop.eup %11765  ;;  %v6308_v11 = vmul.f32 %v11764_v19, %v15504_v42  ;;  %v6447_v30 = vsel %vm6415_vm11, %v15529_v15, %v6431_v36  ;;  %v6525_v42 = vpack.c.bf16 %v15547_v0, %v15529_v15  ;;  %11791 = vpow2.f32 %v9638_v38  ;;  %6583 = vmatprep.mubr.bf16.mxu1 %v16808_v45  ;;  %10489 = vmatpush3.bf16.msra.mxu1 %v12206_v7  ;;  %v12211_v34 = vld [vmem:[#allocation9 + $0x7c] ss:$12 sps:$4 sm:$0xff]   ;;  %v15588_v38 = vpop.f32.mrf.mxu1  ;;  %v12213_v19 = vld [vmem:[#allocation9 + $0x78] ss:$12 sps:$4 sm:$0xff]  }
 0x9cb   : > { %v15556_v56 = vpop.eup %11767  ;;  %v6136_v12 = vadd.f32 1.0, %v11766_v35  ;;  %v6448_v20 = vsel %vm6416_vm12, %v15547_v0, %v6432_v1  ;;  %6463 = vst [vmem:[#allocation3 + $0x88] sm:$0xff] %v6447_v30  ;;  %v15569_v10 = vadd.f32 %v15519_v9, %v6369_v47  ;;  %10490 = vmatprep.subr.bf16.mxu1 %v12209_v25  ;;  %v4401_v33 = vadd.f32 %v16857_v31, %v14767_v63  ;;  %v12212_v4 = vld [vmem:[#allocation9 + $0x50] ss:$12 sps:$4 sm:$0xff]  }
 0x9cc   : > { %v11770_v24 = vpop.eup %11769  ;;  %v6324_v53 = vadd.f32 %v6308_v11, %v15431_v32  ;;  %v6293_v32 = vadd.f32 %v15384_v6, %v15455_v28  ;;  %6464 = vst [vmem:[#allocation3 + $0xa8] sm:$0xff] %v6448_v20  ;;  %10472 = vmatprep.mubr.bf16.mxu0 %v6525_v42  ;;  %v6246_v9 = vadd.f32 1.0, %v11760_v46  ;;  %7216 = vmatpush1.bf16.msra.mxu0 %v12210_v49  ;;  %v16858_v36 = vld [vmem:[#allocation98_spill] sm:$0xff]  ;;  %v12214_v1 = vld [vmem:[#allocation9 + $0x64] ss:$12 sps:$4 sm:$0xff]   ;;  %v6047_v20 = vpop.f32.mrf.mxu1 }
 0x9cd   : > { %v11772_v58 = vpop.eup %11771  ;;  %v6370_v18 = vmul.f32 %v11770_v24, %v6354_v40  ;;  %11793 = vrcp.f32 %v6136_v12  ;;  %vm6417_vm13 = vcmp.gt.f32.partialorder %v15569_v10, 0.0  ;;  %v6433_v28 = vmul.f32 0.1, %v15569_v10  ;;  %7217 = vmatprep.subr.bf16.mxu0 %v12211_v34 }
 0x9ce   : > { %v11774_v59 = vpop.eup %11773  ;;  %11795 = vtanh.f32 %v6324_v53  ;;  %v6355_v40 = vsub.f32 1.0, %v15556_v56  ;;  %v6294_v26 = vadd.f32 %v15384_v6, %v15476_v62  ;;  %10491 = vmatpush3.bf16.msra.mxu1 %v12209_v25  ;;  %v6247_v27 = vadd.f32 1.0, %v11772_v58 }
 0x9cf   : > { %v11776_v2 = vpop.eup %11775  ;;  %v6309_v16 = vmul.f32 %v11774_v59, %v6293_v32  ;;  %v15577_v55 = vadd.f32 %v6386_v48, %v6370_v18  ;;  %11797 = vpow2.f32 %v9639_v22  ;;  %10492 = vmatprep.subr.bf16.mxu1 %v12212_v4  ;;  %v6449_v62 = vsel %vm6417_vm13, %v15569_v10, %v6433_v28  ;;  %v12215_v18 = vld [vmem:[#allocation9 + $0x60] ss:$12 sps:$4 sm:$0xff]   ;;  %v16859_v48 = vld [vmem:[#allocation102_spill] sm:$0xff] }
 0x9d0   : > { %v11778_v57 = vpop.eup %11777  ;;  %11799 = vrcp.f32 %v6246_v9  ;;  %7218 = vmatpush1.bf16.msra.mxu0 %v12213_v19  ;;  %v4405_v7 = vadd.f32 %v16858_v36, %v14767_v63  ;;  %6465 = vst [vmem:[#allocation3 + $0xc8] sm:$0xff] %v6449_v62  ;;  %v6387_v21 = vmul.f32 %v15556_v56, %v15265_v43  ;;  %v6248_v24 = vadd.f32 1.0, %v11776_v2  ;;  %v12216_v43 = vld [vmem:[#allocation9 + $0x38] ss:$12 sps:$4 sm:$0xff]   ;;  %v12219_v28 = vld [vmem:[#allocation9 + $0x20] ss:$12 sps:$4 sm:$0xff]  }
 0x9d1   : > { %v15584_v3 = vpop.eup %11779  ;;  %v6325_v46 = vadd.f32 %v6309_v16, %v4401_v33  ;;  %v6137_v37 = vadd.f32 1.0, %v11778_v57  ;;  %vm6418_vm14 = vcmp.gt.f32.partialorder %v15577_v55, 0.0  ;;  %v6434_v5 = vmul.f32 0.1, %v15577_v55  ;;  %6584 = vmatmul.mubr.bf16.gmra.mxu1 %v6525_v42  ;;  %7219 = vmatprep.subr.bf16.mxu0 %v12214_v1  ;;  %v12217_v59 = vld [vmem:[#allocation9 + $0x4c] ss:$12 sps:$4 sm:$0xff]  }
 0x9d2   : > { %v11782_v39 = vpop.eup %11781  ;;  %v6526_v61 = vpack.c.bf16 %v15577_v55, %v15569_v10  ;;  %6593 = vmatprep.mubr.bf16.mxu1 %v16808_v45  ;;  %v6295_v42 = vadd.f32 %v15384_v6, %v6044_v13  ;;  %10493 = vmatpush3.bf16.msra.mxu1 %v12212_v4  ;;  %v4411_v32 = vadd.f32 %v16859_v48, %v14767_v63  ;;  %v6356_v2 = vsub.f32 1.0, %v15584_v3  ;;  %v12218_v16 = vld [vmem:[#allocation9 + $0x48] ss:$12 sps:$4 sm:$0xff]   ;;  %v16860_v57 = vld [vmem:[#allocation110_spill] sm:$0xff] }
 0x9d3   : > { %v11784_v47 = vpop.eup %11783  ;;  %11801 = vtanh.f32 %v6325_v46  ;;  %v6310_v35 = vmul.f32 %v11782_v39, %v6294_v26  ;;  %v6450_v11 = vsel %vm6418_vm14, %v15577_v55, %v6434_v5  ;;  %10494 = vmatprep.subr.bf16.mxu1 %v12216_v43  ;;  %v6296_v9 = vadd.f32 %v15384_v6, %v6047_v20 }
 0x9d4   : > { %v6371_v12 = vmul.f32 %v11784_v47, %v6355_v40  ;;  %11803 = vrcp.f32 %v6137_v37  ;;  %6466 = vst [vmem:[#allocation3 + $0xe8] sm:$0xff] %v6450_v11  ;;  %10473 = vmatmul.mubr.bf16.gmra.mxu0 %v6526_v61  ;;  %v11786_v22 = vpop.eup %11785  ;;  %v4415_v40 = vadd.f32 %v16860_v57, %v14767_v63  ;;  %v12220_v37 = vld [vmem:[#allocation9 + $0x34] ss:$12 sps:$4 sm:$0xff]   ;;  %v6388_v5 = vmul.f32 %v15584_v3, %v15269_v52 }
 0x9d5   : > { %v6326_v30 = vadd.f32 %v6310_v35, %v4405_v7  ;;  %v11788_v17 = vpop.eup %11787  ;;  %11805 = vrcp.f32 %v6247_v27  ;;  %v6138_v53 = vadd.f32 1.0, %v11786_v22  ;;  %7220 = vmatpush1.bf16.msra.mxu0 %v12215_v18  ;;  %v12222_v47 = vld [vmem:[#allocation9 + $0x8] ss:$12 sps:$4 sm:$0xff]   ;;  %v6297_v3 = vadd.f32 %v15384_v6, %v15552_v54  ;;  %v12225_v18 = vld [vmem:[#allocation9 + $0x4] ss:$12 sps:$4 sm:$0xff]  }
 0x9d6   : > { %v15604_v58 = vadd.f32 %v6387_v21, %v6371_v12  ;;  %v11790_v56 = vpop.eup %11789  ;;  %v6311_v25 = vmul.f32 %v11788_v17, %v6295_v42  ;;  %7221 = vmatprep.subr.bf16.mxu0 %v12217_v59  ;;  %10495 = vmatpush3.bf16.msra.mxu1 %v12216_v43  ;;  %v12223_v35 = vld [vmem:[#allocation9 + $0x1c] ss:$12 sps:$4 sm:$0xff]  }
 0x9d7   : > { %11807 = vtanh.f32 %v6326_v30  ;;  %v11792_v31 = vpop.eup %11791  ;;  %10496 = vmatprep.subr.bf16.mxu1 %v12219_v28  ;;  %v6357_v7 = vsub.f32 1.0, %v11790_v56  ;;  %v6389_v22 = vmul.f32 %v11790_v56, %v15285_v51  ;;  %v16861_v56 = vld [vmem:[#allocation115_spill] sm:$0xff] }
 0x9d8   : > { %11809 = vrcp.f32 %v6138_v53  ;;  %vm6419_vm15 = vcmp.gt.f32.partialorder %v15604_v58, 0.0  ;;  %v6327_v33 = vadd.f32 %v6311_v25, %v4411_v32  ;;  %v6435_v13 = vmul.f32 0.1, %v15604_v58 }
 0x9d9   : > { %11811 = vrcp.f32 %v6248_v24  ;;  %7222 = vmatpush1.bf16.msra.mxu0 %v12218_v16  ;;  %6594 = vmatmul.mubr.bf16.gmra.mxu1 %v6526_v61  ;;  %v6249_v62 = vadd.f32 1.0, %v11792_v31  ;;  %v12221_v61 = vld [vmem:[#allocation9 + $0x30] ss:$12 sps:$4 sm:$0xff]   ;;  %v12224_v24 = vld [vmem:[#allocation9 + $0x18] ss:$12 sps:$4 sm:$0xff]   ;;  %v6298_v32 = vadd.f32 %v15384_v6, %v15588_v38 }
 0x9da   : > { %v11794_v49 = vpop.eup %11793  ;;  %11813 = vtanh.f32 %v6327_v33  ;;  %v6451_v46 = vsel %vm6419_vm15, %v15604_v58, %v6435_v13  ;;  %7223 = vmatprep.subr.bf16.mxu0 %v12220_v37  ;;  %6603 = vmatprep.mubr.bf16.mxu1 %v16808_v45  ;;  %v16862_v33 = vld [vmem:[#allocation118_spill] sm:$0xff] }
 0x9db   : > { %v11796_v34 = vpop.eup %11795  ;;  %v6312_v26 = vmul.f32 %v11794_v49, %v6296_v9  ;;  %6467 = vst [vmem:[#allocation3 + $0x108] sm:$0xff] %v6451_v46  ;;  %10497 = vmatpush3.bf16.msra.mxu1 %v12219_v28  ;;  %v4425_v9 = vadd.f32 %v16862_v33, %v14767_v63 }
 0x9dc   : > { %v6372_v4 = vmul.f32 %v11796_v34, %v6356_v2  ;;  %v11798_v39 = vpop.eup %11797  ;;  %10498 = vmatprep.subr.bf16.mxu1 %v12222_v47 }
 0x9dd   : > { %v6328_v27 = vadd.f32 %v6312_v26, %v4415_v40  ;;  %7224 = vmatpush1.bf16.msra.mxu0 %v12221_v61  ;;  %v11800_v36 = vpop.eup %11799  ;;  %v6250_v30 = vadd.f32 1.0, %v11798_v39 }
 0x9de   : > { %v15620_v19 = vadd.f32 %v6388_v5, %v6372_v4  ;;  %7225 = vmatprep.subr.bf16.mxu0 %v12223_v35  ;;  %v6358_v53 = vsub.f32 1.0, %v11800_v36  ;;  %v6390_v51 = vmul.f32 %v11800_v36, %v15288_v44  ;;  %v12226_v44 = vld [vmem:[#allocation9] ss:$12 sps:$4 sm:$0xff]  }
 0x9df   : > { %11815 = vtanh.f32 %v6328_v27  ;;  %10499 = vmatpush3.bf16.msra.mxu1 %v12222_v47 }
 0x9e0   : > { %v11802_v52 = vpop.eup %11801  ;;  %vm6420_vm2 = vcmp.gt.f32.partialorder %v15620_v19, 0.0  ;;  %v6436_v11 = vmul.f32 0.1, %v15620_v19  ;;  %v6527_v1 = vpack.c.bf16 %v15620_v19, %v15604_v58  ;;  %11817 = vrcp.f32 %v6249_v62 }
 0x9e1   : > { %v11804_v21 = vpop.eup %11803  ;;  %v6373_v12 = vmul.f32 %v11802_v52, %v6357_v7  ;;  %7226 = vmatpush1.bf16.msra.mxu0 %v12224_v24  ;;  %11819 = vrcp.f32 %v6250_v30  ;;  %v16863_v30 = vld [vmem:[#allocation24_spill] sm:$0xff] }
 0x9e2   : > { %v6313_v42 = vmul.f32 %v11804_v21, %v6297_v3  ;;  %v6452_v17 = vsel %vm6420_vm2, %v15620_v19, %v6436_v11  ;;  %10476 = vmatprep.mubr.bf16.mxu0 %v6527_v1  ;;  %v11806_v54 = vpop.eup %11805  ;;  %6604 = vmatmul.mubr.bf16.gmra.mxu1 %v6527_v1 }
 0x9e3   : > { %6468 = vst [vmem:[#allocation3 + $0x128] sm:$0xff] %v6452_v17  ;;  %v15630_v20 = vadd.f32 %v6389_v22, %v6373_v12  ;;  %7227 = vmatprep.subr.bf16.mxu0 %v12225_v18  ;;  %6613 = vmatprep.mubr.bf16.mxu1 %v16808_v45  ;;  %v6359_v2 = vsub.f32 1.0, %v11806_v54  ;;  %v6391_v28 = vmul.f32 %v11806_v54, %v15299_v50 }
 0x9e4   : > { %v11808_v43 = vpop.eup %11807  ;;  %v6329_v48 = vadd.f32 %v6313_v42, %v16861_v56  ;;  %v16866_v56 = vld [vmem:[#allocation53_spill] sm:$0xff] }
 0x9e5   : > { %v11810_v25 = vpop.eup %11809  ;;  %v6374_v59 = vmul.f32 %v11808_v43, %v6358_v53  ;;  %vm6421_vm3 = vcmp.gt.f32.partialorder %v15630_v20, 0.0  ;;  %v6437_v31 = vmul.f32 0.1, %v15630_v20  ;;  %7228 = vmatpush1.bf16.msra.mxu0 %v12226_v44  ;;  %v11411_v43 = vld [vmem:[#allocation11 + $0x74] ss:$8 sps:$4 sm:$0xff]  }
 0x9e6   : > { %11821 = vtanh.f32 %v6329_v48  ;;  %v6314_v13 = vmul.f32 %v11810_v25, %v6298_v32  ;;  %v11812_v49 = vpop.eup %11811  ;;  %8319 = vmatprep.subr.bf16.mxu0 %v11411_v43  ;;  %v16867_v25 = vld [vmem:[#allocation113_spill] sm:$0xff] }
 0x9e7   : > { %v15641_v16 = vadd.f32 %v6390_v51, %v6374_v59  ;;  %v6453_v6 = vsel %vm6421_vm3, %v15630_v20, %v6437_v31  ;;  %v11814_v38 = vpop.eup %11813  ;;  %v6360_v26 = vsub.f32 1.0, %v11812_v49  ;;  %v6392_v50 = vmul.f32 %v11812_v49, %v15304_v8  ;;  %v16865_v51 = vld [vmem:[#allocation112_spill] sm:$0xff]  ;;  %v16868_v59 = vld [vmem:[#allocation55_spill] sm:$0xff] }
 0x9e8   : > { %v6330_v34 = vadd.f32 %v6314_v13, %v4425_v9  ;;  %6469 = vst [vmem:[#allocation3 + $0x148] sm:$0xff] %v6453_v6  ;;  %v6375_v57 = vmul.f32 %v11814_v38, %v6359_v2  ;;  %v4462_v48 = vadd.f32 %v16866_v56, %v16865_v51  ;;  %v4464_v31 = vadd.f32 %v16868_v59, %v16867_v25  ;;  %v16869_v13 = vld [vmem:[#allocation57_spill] sm:$0xff]  ;;  %v16870_v38 = vld [vmem:[#allocation59_spill] sm:$0xff] }
 0x9e9   : > { %vm6422_vm4 = vcmp.gt.f32.partialorder %v15641_v16, 0.0  ;;  %v6438_v63 = vmul.f32 0.1, %v15641_v16  ;;  %v6528_v40 = vpack.c.bf16 %v15641_v16, %v15630_v20  ;;  %v4466_v44 = vadd.f32 %v16869_v13, %v16865_v51  ;;  %v16877_v59 = vld [vmem:[#allocation73_spill] sm:$0xff] }
 0x9ea   : > { %11823 = vtanh.f32 %v6330_v34  ;;  %v15650_v37 = vadd.f32 %v6391_v28, %v6375_v57  ;;  %v4468_v28 = vadd.f32 %v16870_v38, %v16867_v25 }
 0x9eb   : > { %v6454_v46 = vsel %vm6422_vm4, %v15641_v16, %v6438_v63  ;;  %6614 = vmatmul.mubr.bf16.gmra.mxu1 %v6528_v40  ;;  %10477 = vmatmul.mubr.bf16.gmra.mxu0 %v6528_v40  ;;  %v16871_v40 = vld [vmem:[#allocation61_spill] sm:$0xff] }
 0x9ec   : > { %v11816_v5 = vpop.eup %11815  ;;  %6470 = vst [vmem:[#allocation3 + $0x168] sm:$0xff] %v6454_v46  ;;  %6623 = vmatprep.mubr.bf16.mxu1 %v16808_v45  ;;  %vm6423_vm5 = vcmp.gt.f32.partialorder %v15650_v37, 0.0  ;;  %v6439_v39 = vmul.f32 0.1, %v15650_v37 }
 0x9ed   : > { %v6376_v4 = vmul.f32 %v11816_v5, %v6360_v26  ;;  %v11818_v27 = vpop.eup %11817  ;;  %v4472_v26 = vadd.f32 %v16871_v40, %v16865_v51  ;;  %v16879_v40 = vld [vmem:[#allocation77_spill] sm:$0xff] }
 0x9ee   : > { %v6455_v61 = vsel %vm6423_vm5, %v15650_v37, %v6439_v39  ;;  %v11820_v7 = vpop.eup %11819  ;;  %v6361_v8 = vsub.f32 1.0, %v11818_v27  ;;  %v6393_v11 = vmul.f32 %v11818_v27, %v15312_v41 }
 0x9ef   : > { %v15656_v62 = vadd.f32 %v6392_v50, %v6376_v4  ;;  %6471 = vst [vmem:[#allocation3 + $0x188] sm:$0xff] %v6455_v61  ;;  %v6362_v1 = vsub.f32 1.0, %v11820_v7  ;;  %v6394_v42 = vmul.f32 %v11820_v7, %v16863_v30  ;;  %v16872_v4 = vld [vmem:[#allocation63_spill] sm:$0xff]  ;;  %v16875_v30 = vld [vmem:[#allocation69_spill] sm:$0xff] }
 0x9f0   : > { %v4474_v39 = vadd.f32 %v16872_v4, %v16867_v25 }
 0x9f1   : > { %vm6424_vm0 = vcmp.gt.f32.partialorder %v15656_v62, 0.0  ;;  %v6440_v47 = vmul.f32 0.1, %v15656_v62  ;;  %v6529_v36 = vpack.c.bf16 %v15656_v62, %v15650_v37 }
 0x9f3   : > { %v11822_v35 = vpop.eup %11821  ;;  %v6456_v52 = vsel %vm6424_vm0, %v15656_v62, %v6440_v47  ;;  %6624 = vmatmul.mubr.bf16.gmra.mxu1 %v6529_v36  ;;  %10480 = vmatprep.mubr.bf16.mxu0 %v6529_v36  ;;  %v16873_v36 = vld [vmem:[#allocation65_spill] sm:$0xff] }
 0x9f4   : > { %v6377_v3 = vmul.f32 %v11822_v35, %v6361_v8  ;;  %6472 = vst [vmem:[#allocation3 + $0x1a8] sm:$0xff] %v6456_v52  ;;  %6633 = vmatprep.mubr.bf16.mxu1 %v16808_v45  ;;  %v4476_v7 = vadd.f32 %v16873_v36, %v16865_v51 }
 0x9f6   : > { %v15666_v21 = vadd.f32 %v6393_v11, %v6377_v3  ;;  %v16874_v3 = vld [vmem:[#allocation67_spill] sm:$0xff] }
 0x9f7   : > { %v11824_v12 = vpop.eup %11823  ;;  %v4478_v11 = vadd.f32 %v16874_v3, %v16867_v25  ;;  %v16881_v3 = vld [vmem:[#allocation81_spill] sm:$0xff] }
 0x9f8   : > { %v6378_v22 = vmul.f32 %v11824_v12, %v6362_v1  ;;  %vm6425_vm1 = vcmp.gt.f32.partialorder %v15666_v21, 0.0  ;;  %v6441_v17 = vmul.f32 0.1, %v15666_v21 }
 0x9fa   : > { %v15671_v24 = vadd.f32 %v6394_v42, %v6378_v22  ;;  %v6457_v54 = vsel %vm6425_vm1, %v15666_v21, %v6441_v17  ;;  %v4482_v42 = vadd.f32 %v16875_v30, %v16865_v51 }
 0x9fb   : > { %6473 = vst [vmem:[#allocation3 + $0x1c8] sm:$0xff] %v6457_v54 }
 0x9fc   : > { %16864 = vst [vmem:[#allocation49_spill] sm:$0xff] %v15671_v24  ;;  %vm6426_vm6 = vcmp.gt.f32.partialorder %v15671_v24, 0.0  ;;  %v6442_v41 = vmul.f32 0.1, %v15671_v24  ;;  %v6530_v53 = vpack.c.bf16 %v15671_v24, %v15666_v21 }
 0x9fe   : > { %v6458_v18 = vsel %vm6426_vm6, %v15671_v24, %v6442_v41  ;;  %6634 = vmatmul.mubr.bf16.gmra.mxu1 %v6530_v53  ;;  %10481 = vmatmul.mubr.bf16.gmra.mxu0 %v6530_v53  ;;  %v16876_v53 = vld [vmem:[#allocation71_spill] sm:$0xff] }
 0x9ff   : > { %6474 = vst [vmem:[#allocation3 + $0x1e8] sm:$0xff] %v6458_v18  ;;  %7245 = vmatprep.mubr.bf16.mxu0 %v16808_v45  ;;  %v4484_v18 = vadd.f32 %v16876_v53, %v16867_v25 }
 0xa81   : > { %v6565_v32 = vpop.f32.mrf.mxu1 }
 0xa82   : > { %v6741_v33 = vadd.f32 %v6565_v32, %v4462_v48 }
 0xa83   : > { %v6567_v9 = vpop.f32.mrf.mxu1 }
 0xa84   : > { %v9640_v49 = vmul.f32 -1.442695, %v6741_v33  ;;  %v6853_v2 = vadd.f32 %v6567_v9, %v4464_v31  ;;  %v4486_v31 = vadd.f32 %v16877_v59, %v16865_v51  ;;  %v16884_v59 = vld [vmem:[#allocation87_spill] sm:$0xff] }
 0xa85   : > { %v6569_v6 = vpop.f32.mrf.mxu1 }
 0xa86   : > { %11825 = vpow2.f32 %v9640_v49  ;;  %v9656_v34 = vmul.f32 -1.442695, %v6853_v2  ;;  %v6742_v57 = vadd.f32 %v6569_v6, %v4466_v44  ;;  %v16878_v49 = vld [vmem:[#allocation75_spill] sm:$0xff] }
 0xa87   : > { %v6571_v63 = vpop.f32.mrf.mxu1  ;;  %v4488_v2 = vadd.f32 %v16878_v49, %v16867_v25  ;;  %v15704_v6 = vpop.f32.mrf.mxu0 }
 0xa88   : > { %11827 = vpow2.f32 %v9656_v34  ;;  %v9641_v46 = vmul.f32 -1.442695, %v6742_v57  ;;  %v6854_v5 = vadd.f32 %v6571_v63, %v4468_v28 }
 0xa89   : > { %v6575_v50 = vpop.f32.mrf.mxu1 }
 0xa8a   : > { %11829 = vpow2.f32 %v9641_v46  ;;  %v9657_v27 = vmul.f32 -1.442695, %v6854_v5  ;;  %v6743_v61 = vadd.f32 %v6575_v50, %v4472_v26  ;;  %v4492_v26 = vadd.f32 %v16879_v40, %v16865_v51  ;;  %v16888_v40 = vld [vmem:[#allocation95_spill] sm:$0xff] }
 0xa8b   : > { %v6577_v47 = vpop.f32.mrf.mxu1 }
 0xa8c   : > { %11831 = vpow2.f32 %v9657_v27  ;;  %v9642_v8 = vmul.f32 -1.442695, %v6743_v61  ;;  %v6855_v35 = vadd.f32 %v6577_v47, %v4474_v39  ;;  %v16880_v27 = vld [vmem:[#allocation79_spill] sm:$0xff]  ;;  %v6678_v47 = vpop.f32.mrf.mxu0 }
 0xa8d   : > { %v6579_v52 = vpop.f32.mrf.mxu1  ;;  %v4494_v61 = vadd.f32 %v16880_v27, %v16867_v25 }
 0xa8e   : > { %11833 = vpow2.f32 %v9642_v8  ;;  %v9658_v1 = vmul.f32 -1.442695, %v6855_v35  ;;  %v6744_v12 = vadd.f32 %v6579_v52, %v4476_v7 }
 0xa8f   : > { %v6581_v22 = vpop.f32.mrf.mxu1 }
 0xa90   : > { %11835 = vpow2.f32 %v9658_v1  ;;  %v9643_v17 = vmul.f32 -1.442695, %v6744_v12  ;;  %v6856_v54 = vadd.f32 %v6581_v22, %v4478_v11  ;;  %v4496_v11 = vadd.f32 %v16881_v3, %v16865_v51  ;;  %v16891_v3 = vld [vmem:[#allocation101_spill] sm:$0xff] }
 0xa91   : > { %v6585_v41 = vpop.f32.mrf.mxu1 }
 0xa92   : > { %11837 = vpow2.f32 %v9643_v17  ;;  %v9659_v43 = vmul.f32 -1.442695, %v6856_v54  ;;  %v6745_v56 = vadd.f32 %v6585_v41, %v4482_v42  ;;  %v15712_v17 = vpop.f32.mrf.mxu0  ;;  %v16882_v41 = vld [vmem:[#allocation83_spill] sm:$0xff] }
 0xa93   : > { %v11826_v48 = vpop.eup %11825  ;;  %v6587_v32 = vpop.f32.mrf.mxu1  ;;  %v4498_v53 = vadd.f32 %v16882_v41, %v16867_v25 }
 0xa94   : > { %v6805_v33 = vadd.f32 1.0, %v11826_v48  ;;  %v9644_v9 = vmul.f32 -1.442695, %v6745_v56  ;;  %v6857_v13 = vadd.f32 %v6587_v32, %v4484_v18  ;;  %11839 = vpow2.f32 %v9659_v43  ;;  %v16883_v48 = vld [vmem:[#allocation85_spill] sm:$0xff] }
 0xa95   : > { %v11828_v44 = vpop.eup %11827  ;;  %v6589_v38 = vpop.f32.mrf.mxu1  ;;  %v4502_v32 = vadd.f32 %v16883_v48, %v16865_v51 }
 0xa96   : > { %11841 = vrcp.f32 %v6805_v33  ;;  %v6917_v28 = vadd.f32 1.0, %v11828_v44  ;;  %v9660_v34 = vmul.f32 -1.442695, %v6857_v13  ;;  %v6746_v57 = vadd.f32 %v6589_v38, %v4486_v31  ;;  %v16885_v33 = vld [vmem:[#allocation89_spill] sm:$0xff] }
 0xa97   : > { %v11830_v63 = vpop.eup %11829  ;;  %11843 = vpow2.f32 %v9644_v9  ;;  %v6591_v46 = vpop.f32.mrf.mxu1  ;;  %v4504_v31 = vadd.f32 %v16884_v59, %v16867_v25  ;;  %v4506_v9 = vadd.f32 %v16885_v33, %v16865_v51  ;;  %v16894_v59 = vld [vmem:[#allocation103_spill] sm:$0xff] }
 0xa98   : > { %11845 = vrcp.f32 %v6917_v28  ;;  %v6806_v5 = vadd.f32 1.0, %v11830_v63  ;;  %v9645_v50 = vmul.f32 -1.442695, %v6746_v57  ;;  %v6858_v4 = vadd.f32 %v6591_v46, %v4488_v2  ;;  %v16886_v28 = vld [vmem:[#allocation91_spill] sm:$0xff]  ;;  %v16887_v57 = vld [vmem:[#allocation93_spill] sm:$0xff]  ;;  %v6681_v46 = vpop.f32.mrf.mxu0 }
 0xa99   : > { %v11832_v39 = vpop.eup %11831  ;;  %11847 = vpow2.f32 %v9660_v34  ;;  %v6595_v36 = vpop.f32.mrf.mxu1  ;;  %v15724_v34 = vadd.f32 %v16886_v28, %v16867_v25  ;;  %v15728_v63 = vadd.f32 %v16887_v57, %v16865_v51  ;;  %v15757_v33 = vadd.f32 %v16894_v59, %v16867_v25 }
 0xa9a   : > { %11849 = vrcp.f32 %v6806_v5  ;;  %v6918_v7 = vadd.f32 1.0, %v11832_v39  ;;  %v9661_v8 = vmul.f32 -1.442695, %v6858_v4  ;;  %v6747_v35 = vadd.f32 %v6595_v36, %v4492_v26  ;;  %v15734_v4 = vld [vmem:[#allocation14 + $0x1] ss:$0 sm:$0xff] }
 0xa9b   : > { %v11834_v52 = vpop.eup %11833  ;;  %11851 = vpow2.f32 %v9645_v50  ;;  %v6597_v1 = vpop.f32.mrf.mxu1  ;;  %v15732_v26 = vadd.f32 %v16888_v40, %v16867_v25  ;;  %v6965_v39 = vadd.f32 %v15734_v4, %v6678_v47 }
 0xa9c   : > { %11853 = vrcp.f32 %v6918_v7  ;;  %v6807_v12 = vadd.f32 1.0, %v11834_v52  ;;  %v9646_v22 = vmul.f32 -1.442695, %v6747_v35  ;;  %v6859_v30 = vadd.f32 %v6597_v1, %v4494_v61  ;;  %v16889_v7 = vld [vmem:[#allocation97_spill] sm:$0xff]  ;;  %v16890_v35 = vld [vmem:[#allocation99_spill] sm:$0xff]  ;;  %v15749_v1 = vpop.f32.mrf.mxu0 }
 0xa9d   : > { %v11836_v42 = vpop.eup %11835  ;;  %11855 = vpow2.f32 %v9661_v8  ;;  %v6599_v54 = vpop.f32.mrf.mxu1  ;;  %v15739_v8 = vadd.f32 %v16889_v7, %v16865_v51  ;;  %v15743_v52 = vadd.f32 %v16890_v35, %v16867_v25 }
 0xa9e   : > { %11857 = vrcp.f32 %v6807_v12  ;;  %v9662_v18 = vmul.f32 -1.442695, %v6859_v30  ;;  %v6748_v43 = vadd.f32 %v6599_v54, %v4496_v11  ;;  %v6919_v44 = vadd.f32 1.0, %v11836_v42  ;;  %v16893_v30 = vld [vmem:[#allocation122_spill] sm:$0xff]  ;;  %v15764_v57 = vpop.f32.mrf.mxu0 }
 0xa9f   : > { %v11838_v56 = vpop.eup %11837  ;;  %11859 = vpow2.f32 %v9646_v22  ;;  %v6601_v13 = vpop.f32.mrf.mxu1  ;;  %v15747_v11 = vadd.f32 %v16891_v3, %v16865_v51  ;;  %v16892_v22 = vld [vmem:[#allocation180_spill] sm:$0xff] }
 0xaa0   : > { %v6808_v49 = vadd.f32 1.0, %v11838_v56  ;;  %v9647_v2 = vmul.f32 -1.442695, %v6748_v43  ;;  %v6860_v38 = vadd.f32 %v6601_v13, %v4498_v53  ;;  %11861 = vpow2.f32 %v9662_v18 }
 0xaa1   : > { %v11840_v50 = vpop.eup %11839  ;;  %v4575_v42 = vadd.f32 %v16893_v30, %v16892_v22 }
 0xaa2   : > { %v6605_v5 = vpop.f32.mrf.mxu1  ;;  %11863 = vrcp.f32 %v6808_v49  ;;  %v9663_v27 = vmul.f32 -1.442695, %v6860_v38  ;;  %v6920_v18 = vadd.f32 1.0, %v11840_v50  ;;  %v6966_v49 = vadd.f32 %v15734_v4, %v6681_v46  ;;  %v16896_v50 = vld [vmem:[#allocation111_spill] sm:$0xff] }
 0xaa3   : > { %v6749_v61 = vadd.f32 %v6605_v5, %v4502_v32  ;;  %v11842_v36 = vpop.eup %11841  ;;  %11865 = vpow2.f32 %v9647_v2 }
 0xaa4   : > { %v6607_v47 = vpop.f32.mrf.mxu1  ;;  %v11844_v12 = vpop.eup %11843  ;;  %11867 = vrcp.f32 %v6919_v44  ;;  %v6981_v54 = vmul.f32 %v11842_v36, %v6965_v39  ;;  %v16895_v44 = vld [vmem:[#allocation107_spill] sm:$0xff]  ;;  %v15768_v39 = vadd.f32 %v16896_v50, %v16867_v25 }
 0xaa5   : > { %v9648_v41 = vmul.f32 -1.442695, %v6749_v61  ;;  %v15753_v53 = vpop.eup %11845  ;;  %v6809_v43 = vadd.f32 1.0, %v11844_v12  ;;  %11869 = vpow2.f32 %v9663_v27  ;;  %v6861_v56 = vadd.f32 %v6607_v47, %v4504_v31  ;;  %v16897_v27 = vld [vmem:[#allocation126_spill] sm:$0xff] }
 0xaa6   : > { %v6609_v48 = vpop.f32.mrf.mxu1  ;;  %v11848_v32 = vpop.eup %11847  ;;  %v6997_v13 = vadd.f32 %v6981_v54, %v4575_v42  ;;  %v15762_v38 = vadd.f32 %v16895_v44, %v16865_v51  ;;  %v4579_v46 = vadd.f32 %v16897_v27, %v16892_v22  ;;  %v16898_v51 = vld [vmem:[#allocation119_spill] sm:$0xff]  ;;  %v6967_v12 = vadd.f32 %v15734_v4, %v15704_v6  ;;  %v16902_v6 = vld [vmem:[#allocation142_spill] sm:$0xff] }
 0xaa7   : > { %11871 = vpow2.f32 %v9648_v41  ;;  %v11850_v2 = vpop.eup %11849  ;;  %v6921_v28 = vadd.f32 1.0, %v11848_v32  ;;  %v6750_v31 = vadd.f32 %v6609_v48, %v4506_v9  ;;  %v15776_v7 = vadd.f32 %v16898_v51, %v16867_v25  ;;  %v16899_v41 = vld [vmem:[#allocation130_spill] sm:$0xff] }
 0xaa8   : > { %11873 = vrcp.f32 %v6809_v43  ;;  %v6611_v40 = vpop.f32.mrf.mxu1  ;;  %v11852_v5 = vpop.eup %11851  ;;  %v6982_v61 = vmul.f32 %v11850_v2, %v6966_v49  ;;  %v9664_v9 = vmul.f32 -1.442695, %v6861_v56  ;;  %v4585_v43 = vadd.f32 %v16899_v41, %v16892_v22  ;;  %v16900_v48 = vld [vmem:[#allocation134_spill] sm:$0xff] }
 0xaa9   : > { %11875 = vtanh.f32 %v6997_v13  ;;  %v15772_v36 = vpop.eup %11853  ;;  %v6810_v35 = vadd.f32 1.0, %v11852_v5  ;;  %v9649_v42 = vmul.f32 -1.442695, %v6750_v31  ;;  %v4589_v32 = vadd.f32 %v16900_v48, %v16892_v22  ;;  %v16901_v25 = vld [vmem:[#allocation138_spill] sm:$0xff]  ;;  %v10475_v56 = vpop.f32.mrf.mxu0 }
 0xaaa   : > { %11877 = vrcp.f32 %v6920_v18  ;;  %v11856_v47 = vpop.eup %11855  ;;  %v6998_v30 = vadd.f32 %v6982_v61, %v4579_v46  ;;  %v15786_v18 = vadd.f32 %v16901_v25, %v16892_v22  ;;  %v15790_v49 = vadd.f32 %v16902_v6, %v16892_v22  ;;  %v16904_v61 = vld [vmem:[#allocation150_spill] sm:$0xff] }
 0xaab   : > { %v6615_v3 = vpop.f32.mrf.mxu1  ;;  %11879 = vrcp.f32 %v6921_v28  ;;  %v11858_v54 = vpop.eup %11857  ;;  %v6862_v44 = vadd.f32 %v6611_v40, %v15724_v34  ;;  %v16903_v28 = vld [vmem:[#allocation146_spill] sm:$0xff]  ;;  %v6922_v5 = vadd.f32 1.0, %v11856_v47  ;;  %v15799_v51 = vadd.f32 %v16904_v61, %v16892_v22 }
 0xaac   : > { %11881 = vrcp.f32 %v6810_v35  ;;  %v11860_v13 = vpop.eup %11859  ;;  %v6983_v2 = vmul.f32 %v11858_v54, %v6967_v12  ;;  %v15795_v31 = vadd.f32 %v16903_v28, %v16892_v22  ;;  %v6968_v12 = vadd.f32 %v15734_v4, %v15712_v17  ;;  %v16905_v34 = vld [vmem:[#allocation154_spill] sm:$0xff]  ;;  %v6697_v54 = vpop.f32.mrf.mxu0 }
 0xaad   : > { %v6617_v59 = vpop.f32.mrf.mxu1  ;;  %11883 = vtanh.f32 %v6998_v30  ;;  %v6811_v50 = vadd.f32 1.0, %v11860_v13  ;;  %v11862_v46 = vpop.eup %11861  ;;  %v15805_v40 = vadd.f32 %v16905_v34, %v16892_v22  ;;  %v16906_v25 = vld [vmem:[#allocation158_spill] sm:$0xff]  ;;  %v9665_v17 = vmul.f32 -1.442695, %v6862_v44 }
 0xaae   : > { %11885 = vpow2.f32 %v9664_v9  ;;  %v6999_v35 = vadd.f32 %v6983_v2, %v4585_v43  ;;  %v6923_v47 = vadd.f32 1.0, %v11862_v46  ;;  %v6751_v9 = vadd.f32 %v6615_v3, %v15728_v63  ;;  %v16907_v6 = vld [vmem:[#allocation162_spill] sm:$0xff]  ;;  %v15822_v3 = vpop.f32.mrf.mxu0 }
 0xaaf   : > { %v6619_v27 = vpop.f32.mrf.mxu1  ;;  %11887 = vpow2.f32 %v9649_v42  ;;  %v11864_v30 = vpop.eup %11863  ;;  %v15810_v13 = vadd.f32 %v16906_v25, %v16892_v22  ;;  %v15816_v2 = vadd.f32 %v16907_v6, %v16892_v22  ;;  %v15820_v28 = vadd.f32 %v15734_v4, %v15749_v1 }
 0xab0   : > { %11889 = vrcp.f32 %v6811_v50  ;;  %v11866_v48 = vpop.eup %11865  ;;  %v6984_v43 = vmul.f32 %v11864_v30, %v6968_v12  ;;  %v6969_v44 = vadd.f32 %v15734_v4, %v15764_v57  ;;  %v9650_v30 = vmul.f32 -1.442695, %v6751_v9 }
 0xab1   : > { %v6621_v41 = vpop.f32.mrf.mxu1  ;;  %11891 = vtanh.f32 %v6999_v35  ;;  %v15812_v42 = vpop.eup %11867  ;;  %v6812_v63 = vadd.f32 1.0, %v11866_v48  ;;  %v15827_v35 = vadd.f32 %v15734_v4, %v10475_v56  ;;  %v6752_v1 = vadd.f32 %v6619_v27, %v15739_v8 }
 0xab2   : > { %11893 = vrcp.f32 %v6922_v5  ;;  %v11870_v46 = vpop.eup %11869  ;;  %v7000_v61 = vadd.f32 %v6984_v43, %v4589_v32  ;;  %v6970_v5 = vadd.f32 %v15734_v4, %v6697_v54  ;;  %v7029_v25 = vsub.f32 1.0, %v15753_v53  ;;  %v6710_v43 = vpop.f32.mrf.mxu0 }
 0xab3   : > { %v6625_v50 = vpop.f32.mrf.mxu1  ;;  %11895 = vrcp.f32 %v6923_v47  ;;  %v6863_v32 = vadd.f32 %v6617_v59, %v15732_v26  ;;  %v7061_v57 = vmul.f32 %v15753_v53, %v15467_v29  ;;  %v6864_v54 = vadd.f32 %v6621_v41, %v15743_v52 }
 0xab4   : > { %v11872_v12 = vpop.eup %11871  ;;  %11897 = vrcp.f32 %v6812_v63  ;;  %v7030_v8 = vsub.f32 1.0, %v15772_v36  ;;  %v6924_v24 = vadd.f32 1.0, %v11870_v46  ;;  %v9651_v59 = vmul.f32 -1.442695, %v6752_v1 }
 0xab5   : > { %v6627_v34 = vpop.f32.mrf.mxu1  ;;  %v11874_v48 = vpop.eup %11873  ;;  %v6813_v6 = vadd.f32 1.0, %v11872_v12  ;;  %11899 = vpow2.f32 %v9665_v17  ;;  %v6753_v29 = vadd.f32 %v6625_v50, %v15747_v11  ;;  %v7062_v52 = vmul.f32 %v15772_v36, %v15480_v14 }
 0xab6   : > { %v11876_v47 = vpop.eup %11875  ;;  %11901 = vtanh.f32 %v7000_v61  ;;  %v6985_v56 = vmul.f32 %v11874_v48, %v6969_v44  ;;  %v7031_v41 = vsub.f32 1.0, %v15812_v42  ;;  %v9666_v44 = vmul.f32 -1.442695, %v6863_v32 }
 0xab7   : > { %v6629_v9 = vpop.f32.mrf.mxu1  ;;  %v15836_v63 = vpop.eup %11877  ;;  %v7045_v27 = vmul.f32 %v11876_v47, %v7029_v25  ;;  %11903 = vrcp.f32 %v6813_v6  ;;  %v9652_v6 = vmul.f32 -1.442695, %v6753_v29 }
 0xab8   : > { %v15839_v17 = vpop.eup %11879  ;;  %v7001_v26 = vadd.f32 %v6985_v56, %v15786_v18  ;;  %11905 = vpow2.f32 %v9650_v30  ;;  %v15848_v25 = vpop.f32.mrf.mxu0  ;;  %v9667_v18 = vmul.f32 -1.442695, %v6864_v54  ;;  %v6865_v30 = vadd.f32 %v6627_v34, %v15757_v33 }
 0xab9   : > { %v11882_v53 = vpop.eup %11881  ;;  %v15846_v61 = vadd.f32 %v7061_v57, %v7045_v27  ;;  %v6631_v12 = vpop.f32.mrf.mxu1  ;;  %v6754_v32 = vadd.f32 %v6629_v9, %v15762_v38 }
 0xaba   : > { %v11884_v46 = vpop.eup %11883  ;;  %11907 = vtanh.f32 %v7001_v26  ;;  %v6986_v48 = vmul.f32 %v11882_v53, %v6970_v5 }
 0xabb   : > { %v11886_v1 = vpop.eup %11885  ;;  %vm7093_vm7 = vcmp.gt.f32.partialorder %v15846_v61, 0.0  ;;  %v7109_v11 = vmul.f32 0.1, %v15846_v61  ;;  %v7046_v14 = vmul.f32 %v11884_v46, %v7030_v8  ;;  %11909 = vrcp.f32 %v6924_v24  ;;  %v6713_v8 = vpop.f32.mrf.mxu0 }
 0xabc   : > { %v11888_v36 = vpop.eup %11887  ;;  %v7002_v50 = vadd.f32 %v6986_v48, %v15790_v49  ;;  %11911 = vpow2.f32 %v9651_v59  ;;  %v6925_v24 = vadd.f32 1.0, %v11886_v1  ;;  %v16908_v49 = vld [vmem:[#allocation114_spill] sm:$0xff]  ;;  %v7063_v46 = vmul.f32 %v15812_v42, %v15525_v23 }
 0xabd   : > { %v11890_v5 = vpop.eup %11889  ;;  %v7125_v47 = vsel %vm7093_vm7, %v15846_v61, %v7109_v11  ;;  %v15856_v57 = vadd.f32 %v7062_v52, %v7046_v14  ;;  %v6814_v33 = vadd.f32 1.0, %v11888_v36  ;;  %11913 = vpow2.f32 %v9666_v44 }
 0xabe   : > { %v6635_v34 = vpop.f32.mrf.mxu1  ;;  %v11892_v56 = vpop.eup %11891  ;;  %7141 = vst [vmem:[#allocation3 + $0x10] sm:$0xff] %v7125_v47  ;;  %v6987_v54 = vmul.f32 %v11890_v5, %v15820_v28  ;;  %11915 = vtanh.f32 %v7002_v50  ;;  %v6973_v28 = vadd.f32 %v15734_v4, %v6710_v43  ;;  %v9653_v52 = vmul.f32 -1.442695, %v6754_v32 }
 0xabf   : > { %v6755_v27 = vadd.f32 %v6635_v34, %v16908_v49  ;;  %v15860_v26 = vpop.eup %11893  ;;  %v7047_v38 = vmul.f32 %v11892_v56, %v7031_v41  ;;  %vm7094_vm8 = vcmp.gt.f32.partialorder %v15856_v57, 0.0  ;;  %v7110_v9 = vmul.f32 0.1, %v15856_v57 }
 0xac0   : > { %11917 = vrcp.f32 %v6814_v33  ;;  %v6637_v59 = vpop.f32.mrf.mxu1  ;;  %v15864_v29 = vpop.eup %11895  ;;  %v7003_v53 = vadd.f32 %v6987_v54, %v15795_v31  ;;  %v15872_v48 = vadd.f32 %v15734_v4, %v6713_v8  ;;  %v7032_v11 = vsub.f32 1.0, %v15836_v63 }
 0xac1   : > { %11919 = vpow2.f32 %v9652_v6  ;;  %v11898_v44 = vpop.eup %11897  ;;  %v7126_v41 = vsel %vm7094_vm8, %v15856_v57, %v7110_v9  ;;  %v6866_v43 = vadd.f32 %v6631_v12, %v15768_v39  ;;  %v7064_v23 = vmul.f32 %v15836_v63, %v15527_v60  ;;  %v16909_v60 = vld [vmem:[#allocation117_spill] sm:$0xff] }
 0xac2   : > { %11921 = vpow2.f32 %v9667_v18  ;;  %v11900_v1 = vpop.eup %11899  ;;  %7142 = vst [vmem:[#allocation3 + $0x30] sm:$0xff] %v7126_v41  ;;  %v6988_v31 = vmul.f32 %v11898_v44, %v15827_v35  ;;  %v6639_v14 = vpop.f32.mrf.mxu1  ;;  %v9668_v42 = vmul.f32 -1.442695, %v6865_v30  ;;  %v9654_v18 = vmul.f32 -1.442695, %v6755_v27 }
 0xac3   : > { %11923 = vtanh.f32 %v7003_v53  ;;  %v11902_v36 = vpop.eup %11901  ;;  %v7033_v6 = vsub.f32 1.0, %v15839_v17  ;;  %v7065_v32 = vmul.f32 %v15839_v17, %v15529_v15  ;;  %v7034_v39 = vsub.f32 1.0, %v15860_v26  ;;  %v11412_v44 = vld [vmem:[#allocation11 + $0x60] ss:$8 sps:$4 sm:$0xff]  }
 0xac4   : > { %11925 = vrcp.f32 %v6925_v24  ;;  %v11904_v50 = vpop.eup %11903  ;;  %v7004_v5 = vadd.f32 %v6988_v31, %v15799_v51  ;;  %v7066_v12 = vmul.f32 %v15860_v26, %v15547_v0  ;;  %v6756_v63 = vadd.f32 %v6639_v14, %v16909_v60  ;;  %v16910_v51 = vld [vmem:[#allocation116_spill] sm:$0xff]  ;;  %v11409_v24 = vld [vmem:[#allocation11 + $0x70] ss:$8 sps:$4 sm:$0xff]   ;;  %v11417_v14 = vld [vmem:[#allocation11 + $0x54] ss:$8 sps:$4 sm:$0xff]  }
 0xac5   : > { %11927 = vpow2.f32 %v9653_v52  ;;  %v11906_v35 = vpop.eup %11905  ;;  %v6989_v47 = vmul.f32 %v11904_v50, %v6973_v28  ;;  %v7048_v30 = vmul.f32 %v11902_v36, %v7032_v11  ;;  %v9669_v34 = vmul.f32 -1.442695, %v6866_v43  ;;  %v11414_v26 = vld [vmem:[#allocation11 + $0x64] ss:$8 sps:$4 sm:$0xff]  }
 0xac6   : > { %11929 = vtanh.f32 %v7004_v5  ;;  %v6815_v33 = vadd.f32 1.0, %v11906_v35  ;;  %v6926_v54 = vadd.f32 1.0, %v11900_v1  ;;  %v6867_v17 = vadd.f32 %v6637_v59, %v16910_v51 }
 0xac7   : > { %v11908_v56 = vpop.eup %11907  ;;  %v7005_v15 = vadd.f32 %v6989_v47, %v15805_v40  ;;  %11931 = vpow2.f32 %v9654_v18  ;;  %v7035_v49 = vsub.f32 1.0, %v15864_v29  ;;  %v7205_v27 = vpack.c.bf16 %v15856_v57, %v15846_v61  ;;  %v11415_v47 = vld [vmem:[#allocation11 + $0x50] ss:$8 sps:$4 sm:$0xff]  }
 0xac8   : > { %v15889_v8 = vpop.eup %11909  ;;  %v7049_v0 = vmul.f32 %v11908_v56, %v7033_v6  ;;  %11933 = vrcp.f32 %v6815_v33  ;;  %v15896_v53 = vmul.f32 %v15864_v29, %v15569_v10  ;;  %v9655_v40 = vmul.f32 -1.442695, %v6756_v63 }
 0xac9   : > { %v11912_v9 = vpop.eup %11911  ;;  %11935 = vpow2.f32 %v9668_v42  ;;  %v15898_v28 = vadd.f32 %v7063_v46, %v7047_v38  ;;  %7246 = vmatmul.mubr.bf16.vlgmr.msra.gmra.mxu0 %v7205_v27  ;;  %10500 = vmatprep.mubr.bf16.mxu1 %v7205_v27  ;;  %v15900_v41 = vadd.f32 %v7064_v23, %v7048_v30  ;;  %v9670_v31 = vmul.f32 -1.442695, %v6867_v17  ;;  %v6641_v46 = vpop.f32.mrf.mxu1  ;;  %v11420_v30 = vld [vmem:[#allocation11 + $0x44] ss:$8 sps:$4 sm:$0xff]  }
 0xaca   : > { %v11914_v59 = vpop.eup %11913  ;;  %11937 = vtanh.f32 %v7005_v15  ;;  %v6816_v52 = vadd.f32 1.0, %v11912_v9  ;;  %v15902_v1 = vadd.f32 %v7065_v32, %v7049_v0  ;;  %8320 = vmatpush1.bf16.msra.mxu0 %v11409_v24  ;;  %7255 = vmatprep.mubr.bf16.mxu0 %v16808_v45  ;;  %v11418_v0 = vld [vmem:[#allocation11 + $0x40] ss:$8 sps:$4 sm:$0xff]  }
 0xacb   : > { %v11916_v11 = vpop.eup %11915  ;;  %11939 = vrcp.f32 %v6926_v54  ;;  %vm7095_vm9 = vcmp.gt.f32.partialorder %v15898_v28, 0.0  ;;  %v7111_v10 = vmul.f32 0.1, %v15898_v28  ;;  %8321 = vmatprep.subr.bf16.mxu0 %v11414_v26  ;;  %vm7096_vm10 = vcmp.gt.f32.partialorder %v15900_v41, 0.0 }
 0xacc   : > { %v7050_v29 = vmul.f32 %v11916_v11, %v7034_v39  ;;  %11941 = vrcp.f32 %v6816_v52  ;;  %v7112_v43 = vmul.f32 0.1, %v15900_v41  ;;  %v7206_v18 = vpack.c.bf16 %v15900_v41, %v15898_v28 }
 0xacd   : > { %v11918_v38 = vpop.eup %11917  ;;  %11943 = vpow2.f32 %v9669_v34  ;;  %v7127_v42 = vsel %vm7095_vm9, %v15898_v28, %v7111_v10  ;;  %vm7097_vm11 = vcmp.gt.f32.partialorder %v15902_v1, 0.0  ;;  %v6927_v34 = vadd.f32 1.0, %v11914_v59 }
 0xace   : > { %v11920_v36 = vpop.eup %11919  ;;  %v6990_v23 = vmul.f32 %v11918_v38, %v15872_v48  ;;  %11945 = vpow2.f32 %v9655_v40  ;;  %v7128_v32 = vsel %vm7096_vm10, %v15900_v41, %v7112_v43  ;;  %7143 = vst [vmem:[#allocation3 + $0x50] sm:$0xff] %v7127_v42  ;;  %v15914_v5 = vadd.f32 %v7066_v12, %v7050_v29  ;;  %8322 = vmatpush1.bf16.msra.mxu0 %v11412_v44 }
 0xacf   : > { %v11922_v50 = vpop.eup %11921  ;;  %v6817_v6 = vadd.f32 1.0, %v11920_v36  ;;  %11947 = vpow2.f32 %v9670_v31  ;;  %v6868_v48 = vadd.f32 %v6641_v46, %v15776_v7  ;;  %7144 = vst [vmem:[#allocation3 + $0x70] sm:$0xff] %v7128_v32  ;;  %10501 = vmatmul.mubr.bf16.vlgmr.msra.gmra.mxu1 %v7206_v18  ;;  %8323 = vmatprep.subr.bf16.mxu0 %v11417_v14  ;;  %v7113_v12 = vmul.f32 0.1, %v15902_v1  ;;  %v15922_v7 = vpop.f32.mrf.mxu0  ;;  %v11421_v14 = vld [vmem:[#allocation11 + $0x30] ss:$8 sps:$4 sm:$0xff]  }
 0xad0   : > { %v11924_v35 = vpop.eup %11923  ;;  %v7006_v39 = vadd.f32 %v6990_v23, %v15810_v13  ;;  %vm7098_vm12 = vcmp.gt.f32.partialorder %v15914_v5, 0.0  ;;  %v7036_v13 = vsub.f32 1.0, %v15889_v8  ;;  %v7114_v56 = vmul.f32 0.1, %v15914_v5  ;;  %v16911_v32 = vld [vmem:[#allocation166_spill] sm:$0xff] }
 0xad1   : > { %v11926_v60 = vpop.eup %11925  ;;  %v7051_v63 = vmul.f32 %v11924_v35, %v7035_v49  ;;  %11949 = vrcp.f32 %v6817_v6  ;;  %v6928_v54 = vadd.f32 1.0, %v11922_v50  ;;  %7256 = vmatmul.mubr.bf16.gmra.mxu0 %v7206_v18  ;;  %v7129_v51 = vsel %vm7097_vm11, %v15902_v1, %v7113_v12  ;;  %v6726_v31 = vpop.f32.mrf.mxu0  ;;  %v11426_v50 = vld [vmem:[#allocation11 + $0x24] ss:$8 sps:$4 sm:$0xff]  }
 0xad2   : > { %v11928_v33 = vpop.eup %11927  ;;  %11951 = vtanh.f32 %v7006_v39  ;;  %v7207_v17 = vpack.c.bf16 %v15914_v5, %v15902_v1  ;;  %v6975_v49 = vadd.f32 %v15734_v4, %v15822_v3  ;;  %8324 = vmatpush1.bf16.msra.mxu0 %v11415_v47  ;;  %7265 = vmatprep.mubr.bf16.mxu0 %v16808_v45  ;;  %v7130_v27 = vsel %vm7098_vm12, %v15914_v5, %v7114_v56  ;;  %v11423_v3 = vld [vmem:[#allocation11 + $0x34] ss:$8 sps:$4 sm:$0xff]  }
 0xad3   : > { %v6818_v15 = vadd.f32 1.0, %v11928_v33  ;;  %v11930_v24 = vpop.eup %11929  ;;  %7145 = vst [vmem:[#allocation3 + $0x90] sm:$0xff] %v7129_v51  ;;  %v15937_v26 = vadd.f32 %v15896_v53, %v7051_v63  ;;  %v7068_v59 = vmul.f32 %v15889_v8, %v15577_v55  ;;  %v9671_v52 = vmul.f32 -1.442695, %v6868_v48  ;;  %8325 = vmatprep.subr.bf16.mxu0 %v11420_v30  ;;  %7146 = vst [vmem:[#allocation3 + $0xb0] sm:$0xff] %v7130_v27  ;;  %v15954_v39 = vpop.f32.mrf.mxu0  ;;  %v16912_v27 = vld [vmem:[#allocation172_spill] sm:$0xff] }
 0xad4   : > { %v11932_v9 = vpop.eup %11931  ;;  %v7052_v40 = vmul.f32 %v11930_v24, %v7036_v13  ;;  %10504 = vmatprep.mubr.bf16.mxu1 %v7207_v17  ;;  %v7037_v38 = vsub.f32 1.0, %v11926_v60  ;;  %v7069_v8 = vmul.f32 %v11926_v60, %v15604_v58  ;;  %v6976_v43 = vadd.f32 %v15734_v4, %v15848_v25  ;;  %v11424_v33 = vld [vmem:[#allocation11 + $0x20] ss:$8 sps:$4 sm:$0xff]  }
 0xad5   : > { %11953 = vrcp.f32 %v6818_v15  ;;  %v11934_v44 = vpop.eup %11933  ;;  %v6819_v11 = vadd.f32 1.0, %v11932_v9  ;;  %vm7099_vm13 = vcmp.gt.f32.partialorder %v15937_v26, 0.0  ;;  %v7115_v53 = vmul.f32 0.1, %v15937_v26 }
 0xad6   : > { %11955 = vrcp.f32 %v6927_v34  ;;  %v11936_v10 = vpop.eup %11935  ;;  %v6991_v29 = vmul.f32 %v11934_v44, %v6975_v49  ;;  %v15943_v46 = vadd.f32 %v7068_v59, %v7052_v40  ;;  %8326 = vmatpush1.bf16.msra.mxu0 %v11418_v0  ;;  %v4629_v25 = vadd.f32 %v16911_v32, %v16892_v22  ;;  %v6729_v49 = vpop.f32.mrf.mxu0  ;;  %v11427_v44 = vld [vmem:[#allocation11 + $0x10] ss:$8 sps:$4 sm:$0xff]  }
 0xad7   : > { %11957 = vrcp.f32 %v6928_v54  ;;  %v11938_v55 = vpop.eup %11937  ;;  %v7131_v36 = vsel %vm7099_vm13, %v15937_v26, %v7115_v53  ;;  %8327 = vmatprep.subr.bf16.mxu0 %v11423_v3  ;;  %v6929_v35 = vadd.f32 1.0, %v11936_v10  ;;  %v6977_v12 = vadd.f32 %v15734_v4, %v6726_v31  ;;  %v11429_v54 = vld [vmem:[#allocation11 + $0x14] ss:$8 sps:$4 sm:$0xff]   ;;  %v11432_v53 = vld [vmem:[#allocation11 + $0x4] ss:$8 sps:$4 sm:$0xff]  }
 0xad8   : > { %11959 = vrcp.f32 %v6819_v11  ;;  %v11940_v23 = vpop.eup %11939  ;;  %v7007_v42 = vadd.f32 %v6991_v29, %v15816_v2  ;;  %v7053_v18 = vmul.f32 %v11938_v55, %v7037_v38  ;;  %vm7100_vm14 = vcmp.gt.f32.partialorder %v15943_v46, 0.0  ;;  %7147 = vst [vmem:[#allocation3 + $0xd0] sm:$0xff] %v7131_v36 }
 0xad9   : > { %v7116_v6 = vmul.f32 0.1, %v15943_v46  ;;  %v11942_v58 = vpop.eup %11941  ;;  %11961 = vpow2.f32 %v9671_v52  ;;  %v7208_v48 = vpack.c.bf16 %v15943_v46, %v15937_v26  ;;  %7266 = vmatmul.mubr.bf16.gmra.mxu0 %v7207_v17  ;;  %v7038_v17 = vsub.f32 1.0, %v11940_v23 }
 0xada   : > { %v11944_v2 = vpop.eup %11943  ;;  %11963 = vtanh.f32 %v7007_v42  ;;  %v6992_v47 = vmul.f32 %v11942_v58, %v6976_v43  ;;  %v15959_v63 = vadd.f32 %v7069_v8, %v7053_v18  ;;  %8328 = vmatpush1.bf16.msra.mxu0 %v11421_v14  ;;  %7275 = vmatprep.mubr.bf16.mxu0 %v16808_v45  ;;  %v4635_v9 = vadd.f32 %v16912_v27, %v16892_v22  ;;  %v16913_v8 = vld [vmem:[#allocation176_spill] sm:$0xff] }
 0xadb   : > { %v7132_v60 = vsel %vm7100_vm14, %v15943_v46, %v7116_v6  ;;  %v11946_v30 = vpop.eup %11945  ;;  %8329 = vmatprep.subr.bf16.mxu0 %v11426_v50  ;;  %10505 = vmatmul.mubr.bf16.gmra.mxu1 %v7208_v48  ;;  %11965 = vrcp.f32 %v6929_v35  ;;  %v6930_v24 = vadd.f32 1.0, %v11944_v2  ;;  %v7070_v52 = vmul.f32 %v11940_v23, %v15620_v19  ;;  %v11430_v23 = vld [vmem:[#allocation11] ss:$8 sps:$4 sm:$0xff]   ;;  %v11435_v6 = vld [vmem:[#allocation11 + $0xf4] ss:$8 sps:$4 sm:$0xff]  }
 0xadc   : > { %7148 = vst [vmem:[#allocation3 + $0xf0] sm:$0xff] %v7132_v60  ;;  %v11948_v13 = vpop.eup %11947  ;;  %v7008_v34 = vadd.f32 %v6992_v47, %v4629_v25  ;;  %v6820_v56 = vadd.f32 1.0, %v11946_v30  ;;  %vm7101_vm15 = vcmp.gt.f32.partialorder %v15959_v63, 0.0  ;;  %v7117_v15 = vmul.f32 0.1, %v15959_v63 }
 0xadd   : > { %v6978_v31 = vadd.f32 %v15734_v4, %v6729_v49  ;;  %v6931_v38 = vadd.f32 1.0, %v11948_v13  ;;  %v4639_v43 = vadd.f32 %v16913_v8, %v16892_v22  ;;  %v6979_v36 = vadd.f32 %v15734_v4, %v15922_v7  ;;  %v11433_v47 = vld [vmem:[#allocation11 + $0xf0] ss:$8 sps:$4 sm:$0xff]  }
 0xade   : > { %v11950_v51 = vpop.eup %11949  ;;  %11967 = vtanh.f32 %v7008_v34  ;;  %v7133_v59 = vsel %vm7101_vm15, %v15959_v63, %v7117_v15  ;;  %8330 = vmatpush1.bf16.msra.mxu0 %v11424_v33  ;;  %v6980_v15 = vadd.f32 %v15734_v4, %v15954_v39 }
 0xadf   : > { %v11952_v0 = vpop.eup %11951  ;;  %v6993_v40 = vmul.f32 %v11950_v51, %v6977_v12  ;;  %11969 = vrcp.f32 %v6820_v56  ;;  %7149 = vst [vmem:[#allocation3 + $0x110] sm:$0xff] %v7133_v59  ;;  %8331 = vmatprep.subr.bf16.mxu0 %v11429_v54  ;;  %v11438_v12 = vld [vmem:[#allocation11 + $0xe4] ss:$8 sps:$4 sm:$0xff]   ;;  %v11436_v51 = vld [vmem:[#allocation11 + $0xe0] ss:$8 sps:$4 sm:$0xff]  }
 0xae0   : > { %v7054_v3 = vmul.f32 %v11952_v0, %v7038_v17  ;;  %11971 = vrcp.f32 %v6930_v24  ;;  %v11441_v0 = vld [vmem:[#allocation11 + $0xd4] ss:$8 sps:$4 sm:$0xff]  }
 0xae1   : > { %v7009_v11 = vadd.f32 %v6993_v40, %v4635_v9  ;;  %7276 = vmatmul.mubr.bf16.gmra.mxu0 %v7208_v48  ;;  %v16914_v48 = vld [vmem:[#allocation181_spill] sm:$0xff] }
 0xae2   : > { %v11954_v10 = vpop.eup %11953  ;;  %v15970_v29 = vadd.f32 %v7070_v52, %v7054_v3  ;;  %8332 = vmatpush1.bf16.msra.mxu0 %v11427_v44  ;;  %7285 = vmatprep.mubr.bf16.mxu0 %v16808_v45  ;;  %v16915_v3 = vld [vmem:[#allocation185_spill] sm:$0xff] }
 0xae3   : > { %v11956_v55 = vpop.eup %11955  ;;  %11973 = vtanh.f32 %v7009_v11  ;;  %v6994_v19 = vmul.f32 %v11954_v10, %v6978_v31  ;;  %8333 = vmatprep.subr.bf16.mxu0 %v11432_v53  ;;  %v11444_v10 = vld [vmem:[#allocation11 + $0xc4] ss:$8 sps:$4 sm:$0xff]  }
 0xae4   : > { %v11958_v14 = vpop.eup %11957  ;;  %vm7102_vm2 = vcmp.gt.f32.partialorder %v15970_v29, 0.0  ;;  %v7118_v42 = vmul.f32 0.1, %v15970_v29  ;;  %v7209_v22 = vpack.c.bf16 %v15970_v29, %v15959_v63  ;;  %11975 = vrcp.f32 %v6931_v38 }
 0xae5   : > { %v11960_v18 = vpop.eup %11959  ;;  %v7010_v50 = vadd.f32 %v6994_v19, %v4639_v43  ;;  %v7039_v25 = vsub.f32 1.0, %v11956_v55  ;;  %v7071_v30 = vmul.f32 %v11956_v55, %v15630_v20  ;;  %v7040_v34 = vsub.f32 1.0, %v11958_v14  ;;  %v11442_v19 = vld [vmem:[#allocation11 + $0xc0] ss:$8 sps:$4 sm:$0xff]  }
 0xae6   : > { %v6995_v58 = vmul.f32 %v11960_v18, %v6979_v36  ;;  %v7134_v32 = vsel %vm7102_vm2, %v15970_v29, %v7118_v42  ;;  %v11962_v7 = vpop.eup %11961  ;;  %10508 = vmatprep.mubr.bf16.mxu1 %v7209_v22  ;;  %8334 = vmatpush1.bf16.msra.mxu0 %v11430_v23  ;;  %v7072_v20 = vmul.f32 %v11958_v14, %v15641_v16  ;;  %v11439_v16 = vld [vmem:[#allocation11 + $0xd0] ss:$8 sps:$4 sm:$0xff]   ;;  %v11447_v42 = vld [vmem:[#allocation11 + $0xb4] ss:$8 sps:$4 sm:$0xff]  }
 0xae7   : > { %11977 = vtanh.f32 %v7010_v50  ;;  %7150 = vst [vmem:[#allocation3 + $0x130] sm:$0xff] %v7134_v32  ;;  %v11964_v35 = vpop.eup %11963  ;;  %8335 = vmatprep.subr.bf16.mxu0 %v11435_v6  ;;  %v6932_v33 = vadd.f32 1.0, %v11962_v7  ;;  %v11445_v7 = vld [vmem:[#allocation11 + $0xb0] ss:$8 sps:$4 sm:$0xff]  }
 0xae8   : > { %v7011_v2 = vadd.f32 %v6995_v58, %v16914_v48  ;;  %v7055_v60 = vmul.f32 %v11964_v35, %v7039_v25  ;;  %v11966_v13 = vpop.eup %11965  ;;  %v11450_v35 = vld [vmem:[#allocation11 + $0xa4] ss:$8 sps:$4 sm:$0xff]  }
 0xae9   : > { %7286 = vmatmul.mubr.bf16.gmra.mxu0 %v7209_v22  ;;  %v7041_v40 = vsub.f32 1.0, %v11966_v13  ;;  %v7073_v52 = vmul.f32 %v11966_v13, %v15650_v37 }
 0xaea   : > { %11979 = vtanh.f32 %v7011_v2  ;;  %v15984_v56 = vadd.f32 %v7071_v30, %v7055_v60  ;;  %8336 = vmatpush2.bf16.msra.mxu0 %v11433_v47  ;;  %7295 = vmatprep.mubr.bf16.mxu0 %v16808_v45  ;;  %v11453_v30 = vld [vmem:[#allocation11 + $0x94] ss:$8 sps:$4 sm:$0xff]  }
 0xaeb   : > { %v11968_v54 = vpop.eup %11967  ;;  %8337 = vmatprep.subr.bf16.mxu0 %v11438_v12  ;;  %11981 = vrcp.f32 %v6932_v33 }
 0xaec   : > { %v11970_v17 = vpop.eup %11969  ;;  %v7056_v24 = vmul.f32 %v11968_v54, %v7040_v34  ;;  %vm7103_vm3 = vcmp.gt.f32.partialorder %v15984_v56, 0.0  ;;  %v7119_v49 = vmul.f32 0.1, %v15984_v56  ;;  %v16916_v54 = vld [vmem:[#allocation49_spill] sm:$0xff] }
 0xaed   : > { %v6996_v27 = vmul.f32 %v11970_v17, %v6980_v15  ;;  %v11972_v9 = vpop.eup %11971  ;;  %v11456_v17 = vld [vmem:[#allocation11 + $0x84] ss:$8 sps:$4 sm:$0xff]  }
 0xaee   : > { %v15992_v59 = vadd.f32 %v7072_v20, %v7056_v24  ;;  %v7135_v4 = vsel %vm7103_vm3, %v15984_v56, %v7119_v49  ;;  %8338 = vmatpush2.bf16.msra.mxu0 %v11436_v51  ;;  %v7042_v55 = vsub.f32 1.0, %v11972_v9  ;;  %v7074_v14 = vmul.f32 %v11972_v9, %v15656_v62  ;;  %v11451_v51 = vld [vmem:[#allocation11 + $0x90] ss:$8 sps:$4 sm:$0xff]  }
 0xaef   : > { %v7012_v44 = vadd.f32 %v6996_v27, %v16915_v3  ;;  %7151 = vst [vmem:[#allocation3 + $0x150] sm:$0xff] %v7135_v4  ;;  %8339 = vmatprep.subr.bf16.mxu0 %v11441_v0  ;;  %v7840_v0 = vld [vmem:[#allocation3 + $0x8] sm:$0xff]  ;;  %v7843_v4 = vld [vmem:[#allocation3 + $0x20] sm:$0xff] }
 0xaf0   : > { %v11974_v39 = vpop.eup %11973  ;;  %vm7104_vm4 = vcmp.gt.f32.partialorder %v15992_v59, 0.0  ;;  %v7120_v31 = vmul.f32 0.1, %v15992_v59  ;;  %v7210_v53 = vpack.c.bf16 %v15992_v59, %v15984_v56  ;;  %v11454_v27 = vld [vmem:[#allocation11 + $0x80] ss:$8 sps:$4 sm:$0xff]  }
 0xaf1   : > { %v7057_v11 = vmul.f32 %v11974_v39, %v7041_v40  ;;  %11983 = vtanh.f32 %v7012_v44  ;;  %v11976_v38 = vpop.eup %11975  ;;  %v7852_v39 = vld [vmem:[#allocation3 + $0x68] sm:$0xff] }
 0xaf2   : > { %v7136_v37 = vsel %vm7104_vm4, %v15992_v59, %v7120_v31  ;;  %7296 = vmatmul.mubr.bf16.gmra.mxu0 %v7210_v53  ;;  %10509 = vmatmul.mubr.bf16.gmra.mxu1 %v7210_v53  ;;  %v7043_v18 = vsub.f32 1.0, %v11976_v38  ;;  %v7075_v32 = vmul.f32 %v11976_v38, %v15666_v21  ;;  %v11448_v21 = vld [vmem:[#allocation11 + $0xa0] ss:$8 sps:$4 sm:$0xff]   ;;  %v11459_v53 = vld [vmem:[#allocation11 + $0x174] ss:$8 sps:$4 sm:$0xff]  }
 0xaf3   : > { %v16002_v8 = vadd.f32 %v7073_v52, %v7057_v11  ;;  %7152 = vst [vmem:[#allocation3 + $0x170] sm:$0xff] %v7136_v37  ;;  %8340 = vmatpush2.bf16.msra.mxu0 %v11439_v16  ;;  %7305 = vmatprep.mubr.bf16.mxu0 %v16808_v45  ;;  %v7839_v52 = vld [vmem:[#allocation3] sm:$0xff]  ;;  %v7848_v44 = vld [vmem:[#allocation3 + $0x48] sm:$0xff] }
 0xaf4   : > { %v11978_v43 = vpop.eup %11977  ;;  %8341 = vmatprep.subr.bf16.mxu0 %v11444_v10  ;;  %v7903_v3 = vpack.c.bf16 %v7843_v4, %v7839_v52  ;;  %v7908_v16 = vpack.c.bf16 %v7852_v39, %v7848_v44  ;;  %v7851_v11 = vld [vmem:[#allocation3 + $0x60] sm:$0xff]  ;;  %v7860_v31 = vld [vmem:[#allocation3 + $0xa8] sm:$0xff]  ;;  %8432 = vmatprep.subr.bf16.mxu1 %v11459_v53 }
 0xaf5   : > { %v7058_v36 = vmul.f32 %v11978_v43, %v7042_v55  ;;  %vm7105_vm5 = vcmp.gt.f32.partialorder %v16002_v8, 0.0  ;;  %v7121_v23 = vmul.f32 0.1, %v16002_v8  ;;  %v7847_v10 = vld [vmem:[#allocation3 + $0x40] sm:$0xff]  ;;  %v7856_v37 = vld [vmem:[#allocation3 + $0x88] sm:$0xff] }
 0xaf6   : > { %v11457_v38 = vld [vmem:[#allocation11 + $0x170] ss:$8 sps:$4 sm:$0xff]   ;;  %v7907_v55 = vpack.c.bf16 %v7851_v11, %v7847_v10  ;;  %v7912_v43 = vpack.c.bf16 %v7860_v31, %v7856_v37  ;;  %v7888_v52 = vld [vmem:[#allocation3 + $0x188] sm:$0xff]  ;;  %v11483_v44 = vld [vmem:[#allocation11 + $0x1f4] ss:$8 sps:$4 sm:$0xff]  }
 0xaf7   : > { %v11980_v50 = vpop.eup %11979  ;;  %v16008_v22 = vadd.f32 %v7074_v14, %v7058_v36  ;;  %v7137_v6 = vsel %vm7105_vm5, %v16002_v8, %v7121_v23  ;;  %8342 = vmatpush2.bf16.msra.mxu0 %v11442_v19  ;;  %8433 = vmatpush1.bf16.msra.mxu1 %v11457_v38  ;;  %v11462_v19 = vld [vmem:[#allocation11 + $0x164] ss:$8 sps:$4 sm:$0xff]   ;;  %v11460_v14 = vld [vmem:[#allocation11 + $0x160] ss:$8 sps:$4 sm:$0xff]   ;;  %v7859_v36 = vld [vmem:[#allocation3 + $0xa0] sm:$0xff] }
 0xaf8   : > { %v7059_v58 = vmul.f32 %v11980_v50, %v7043_v18  ;;  %7153 = vst [vmem:[#allocation3 + $0x190] sm:$0xff] %v7137_v6  ;;  %8343 = vmatprep.subr.bf16.mxu0 %v11447_v42  ;;  %v11982_v2 = vpop.eup %11981  ;;  %8434 = vmatprep.subr.bf16.mxu1 %v11462_v19  ;;  %v7868_v23 = vld [vmem:[#allocation3 + $0xe8] sm:$0xff]  ;;  %v11465_v42 = vld [vmem:[#allocation11 + $0x154] ss:$8 sps:$4 sm:$0xff]   ;;  %v11463_v50 = vld [vmem:[#allocation11 + $0x150] ss:$8 sps:$4 sm:$0xff]  }
 0xaf9   : > { %vm7106_vm0 = vcmp.gt.f32.partialorder %v16008_v22, 0.0  ;;  %v7122_v62 = vmul.f32 0.1, %v16008_v22  ;;  %v7211_v25 = vpack.c.bf16 %v16008_v22, %v16002_v8  ;;  %v7044_v12 = vsub.f32 1.0, %v11982_v2  ;;  %v7855_v18 = vld [vmem:[#allocation3 + $0x80] sm:$0xff]  ;;  %v7900_v53 = vld [vmem:[#allocation3 + $0x1e8] sm:$0xff] }
 0xafa   : > { %v16016_v48 = vadd.f32 %v7075_v32, %v7059_v58  ;;  %v7076_v15 = vmul.f32 %v11982_v2, %v16916_v54  ;;  %v7911_v6 = vpack.c.bf16 %v7859_v36, %v7855_v18  ;;  %v7864_v58 = vld [vmem:[#allocation3 + $0xc8] sm:$0xff]  ;;  %v11471_v2 = vld [vmem:[#allocation11 + $0x134] ss:$8 sps:$4 sm:$0xff]  }
 0xafb   : > { %v7138_v47 = vsel %vm7106_vm0, %v16008_v22, %v7122_v62  ;;  %7306 = vmatmul.mubr.bf16.gmra.mxu0 %v7211_v25  ;;  %10512 = vmatprep.mubr.bf16.mxu1 %v7211_v25  ;;  %v7916_v32 = vpack.c.bf16 %v7868_v23, %v7864_v58  ;;  %v11466_v62 = vld [vmem:[#allocation11 + $0x140] ss:$8 sps:$4 sm:$0xff]   ;;  %v7867_v25 = vld [vmem:[#allocation3 + $0xe0] sm:$0xff]  ;;  %v11486_v31 = vld [vmem:[#allocation11 + $0x1e4] ss:$8 sps:$4 sm:$0xff]  }
 0xafc   : > { %7154 = vst [vmem:[#allocation3 + $0x1b0] sm:$0xff] %v7138_v47  ;;  %8344 = vmatpush2.bf16.msra.mxu0 %v11445_v7  ;;  %7315 = vmatprep.mubr.bf16.mxu0 %v16808_v45  ;;  %vm7107_vm1 = vcmp.gt.f32.partialorder %v16016_v48, 0.0  ;;  %v7123_v60 = vmul.f32 0.1, %v16016_v48  ;;  %v7844_v45 = vld [vmem:[#allocation3 + $0x28] sm:$0xff]  ;;  %v7863_v47 = vld [vmem:[#allocation3 + $0xc0] sm:$0xff] }
 0xafd   : > { %8345 = vmatprep.subr.bf16.mxu0 %v11450_v35  ;;  %v7904_v9 = vpack.c.bf16 %v7844_v45, %v7840_v0  ;;  %8435 = vmatpush1.bf16.msra.mxu1 %v11460_v14  ;;  %v11468_v7 = vld [vmem:[#allocation11 + $0x144] ss:$8 sps:$4 sm:$0xff]   ;;  %v7879_v4 = vld [vmem:[#allocation3 + $0x140] sm:$0xff]  ;;  %v11484_v10 = vld [vmem:[#allocation11 + $0x1e0] ss:$8 sps:$4 sm:$0xff]  }
 0xafe   : > { %v7139_v33 = vsel %vm7107_vm1, %v16016_v48, %v7123_v60  ;;  %v11984_v13 = vpop.eup %11983  ;;  %8436 = vmatprep.subr.bf16.mxu1 %v11465_v42  ;;  %v7876_v35 = vld [vmem:[#allocation3 + $0x128] sm:$0xff]  ;;  %v7915_v60 = vpack.c.bf16 %v7867_v25, %v7863_v47  ;;  %v7891_v11 = vld [vmem:[#allocation3 + $0x1a0] sm:$0xff] }
 0xaff   : > { %7155 = vst [vmem:[#allocation3 + $0x1d0] sm:$0xff] %v7139_v33  ;;  %v7060_v34 = vmul.f32 %v11984_v13, %v7044_v12  ;;  %v11474_v33 = vld [vmem:[#allocation11 + $0x124] ss:$8 sps:$4 sm:$0xff]   ;;  %v11472_v13 = vld [vmem:[#allocation11 + $0x120] ss:$8 sps:$4 sm:$0xff]   ;;  %v7887_v38 = vld [vmem:[#allocation3 + $0x180] sm:$0xff] }
 0xb00   : > { %8346 = vmatpush2.bf16.msra.mxu0 %v11448_v21  ;;  %v11469_v21 = vld [vmem:[#allocation11 + $0x130] ss:$8 sps:$4 sm:$0xff]   ;;  %v7884_v54 = vld [vmem:[#allocation3 + $0x168] sm:$0xff]  ;;  %v11489_v19 = vld [vmem:[#allocation11 + $0x1d4] ss:$8 sps:$4 sm:$0xff]  }
 0xb01   : > { %8347 = vmatprep.subr.bf16.mxu0 %v11453_v30  ;;  %v16024_v24 = vadd.f32 %v7076_v15, %v7060_v34  ;;  %8437 = vmatpush1.bf16.msra.mxu1 %v11463_v50  ;;  %v7872_v30 = vld [vmem:[#allocation3 + $0x108] sm:$0xff]  ;;  %v7875_v34 = vld [vmem:[#allocation3 + $0x120] sm:$0xff] }
 0xb02   : > { %8438 = vmatprep.subr.bf16.mxu1 %v11468_v7  ;;  %v7920_v12 = vpack.c.bf16 %v7876_v35, %v7872_v30  ;;  %v11477_v15 = vld [vmem:[#allocation11 + $0x114] ss:$8 sps:$4 sm:$0xff]   ;;  %v11480_v0 = vld [vmem:[#allocation11 + $0x104] ss:$8 sps:$4 sm:$0xff]   ;;  %v11487_v14 = vld [vmem:[#allocation11 + $0x1d0] ss:$8 sps:$4 sm:$0xff]  }
 0xb03   : > { %vm7108_vm6 = vcmp.gt.f32.partialorder %v16024_v24, 0.0  ;;  %v7124_v20 = vmul.f32 0.1, %v16024_v24  ;;  %v7212_v49 = vpack.c.bf16 %v16024_v24, %v16016_v48  ;;  %v7896_v37 = vld [vmem:[#allocation3 + $0x1c8] sm:$0xff]  ;;  %v7899_v36 = vld [vmem:[#allocation3 + $0x1e0] sm:$0xff] }
 0xb04   : > { %8348 = vmatpush2.bf16.msra.mxu0 %v11451_v51  ;;  %v7871_v51 = vld [vmem:[#allocation3 + $0x100] sm:$0xff]  ;;  %v11492_v23 = vld [vmem:[#allocation11 + $0x1c4] ss:$8 sps:$4 sm:$0xff]   ;;  %v11490_v42 = vld [vmem:[#allocation11 + $0x1c0] ss:$8 sps:$4 sm:$0xff]  }
 0xb05   : > { %8349 = vmatprep.subr.bf16.mxu0 %v11456_v17  ;;  %v7140_v40 = vsel %vm7108_vm6, %v16024_v24, %v7124_v20  ;;  %7316 = vmatmul.mubr.bf16.gmra.mxu0 %v7212_v49  ;;  %v11475_v17 = vld [vmem:[#allocation11 + $0x110] ss:$8 sps:$4 sm:$0xff]   ;;  %v7919_v45 = vpack.c.bf16 %v7875_v34, %v7871_v51  ;;  %v7880_v20 = vld [vmem:[#allocation3 + $0x148] sm:$0xff] }
 0xb06   : > { %10513 = vmatmul.mubr.bf16.gmra.mxu1 %v7212_v49  ;;  %7156 = vst [vmem:[#allocation3 + $0x1f0] sm:$0xff] %v7140_v40  ;;  %8351 = vmatprep.mubr.bf16.mxu0 %v7904_v9  ;;  %v7924_v49 = vpack.c.bf16 %v7884_v54, %v7880_v20  ;;  %v7883_v9 = vld [vmem:[#allocation3 + $0x160] sm:$0xff]  ;;  %v7892_v40 = vld [vmem:[#allocation3 + $0x1a8] sm:$0xff] }
 0xb07   : > { %8439 = vmatpush1.bf16.msra.mxu1 %v11466_v62  ;;  %v7923_v39 = vpack.c.bf16 %v7883_v9, %v7879_v4  ;;  %v7895_v18 = vld [vmem:[#allocation3 + $0x1c0] sm:$0xff]  ;;  %v11496_v7 = vld [vmem:[#allocation11 + $0x1a0] ss:$8 sps:$4 sm:$0xff]   ;;  %v11504_v35 = vld [vmem:[#allocation11 + $0x184] ss:$8 sps:$4 sm:$0xff]  }
 0xb08   : > { %8350 = vmatpush2.bf16.msra.mxu0 %v11454_v27  ;;  %8440 = vmatprep.subr.bf16.mxu1 %v11471_v2  ;;  %v11478_v27 = vld [vmem:[#allocation11 + $0x100] ss:$8 sps:$4 sm:$0xff]   ;;  %v7931_v50 = vpack.c.bf16 %v7899_v36, %v7895_v18  ;;  %v11493_v58 = vld [vmem:[#allocation11 + $0x1b0] ss:$8 sps:$4 sm:$0xff]   ;;  %v11501_v62 = vld [vmem:[#allocation11 + $0x194] ss:$8 sps:$4 sm:$0xff]  }
 0xb09   : > { %v11499_v25 = vld [vmem:[#allocation11 + $0x190] ss:$8 sps:$4 sm:$0xff]   ;;  %v11502_v2 = vld [vmem:[#allocation11 + $0x180] ss:$8 sps:$4 sm:$0xff]  }
 0xb0a   : > { %v16920_v54 = vld [vmem:[#allocation123_spill] sm:$0xff]  ;;  %v16922_v4 = vld [vmem:[#allocation132_spill] sm:$0xff] }
 0xb0b   : > { %8441 = vmatpush1.bf16.msra.mxu1 %v11469_v21  ;;  %v16917_v21 = vld [vmem:[#allocation124_spill] sm:$0xff] }
 0xb0c   : > { %8442 = vmatprep.subr.bf16.mxu1 %v11474_v33  ;;  %v16919_v33 = vld [vmem:[#allocation128_spill] sm:$0xff] }
 0xb0d   : > { %8352 = vmatmul.mubr.bf16.vlgmr.msra.gmra.mxu0 %v7903_v3  ;;  %v7928_v3 = vpack.c.bf16 %v7892_v40, %v7888_v52 }
 0xb0e   : > { %8361 = vmatprep.mubr.bf16.mxu0 %v7908_v16  ;;  %v11481_v16 = vld [vmem:[#allocation11 + $0x1f0] ss:$8 sps:$4 sm:$0xff]  }
 0xb0f   : > { %8443 = vmatpush1.bf16.msra.mxu1 %v11472_v13 }
 0xb10   : > { %8444 = vmatprep.subr.bf16.mxu1 %v11477_v15 }
 0xb13   : > { %8445 = vmatpush1.bf16.msra.mxu1 %v11475_v17 }
 0xb14   : > { %8446 = vmatprep.subr.bf16.mxu1 %v11480_v0  ;;  %v16921_v0 = vld [vmem:[#allocation127_spill] sm:$0xff] }
 0xb15   : > { %8362 = vmatmul.mubr.bf16.gmra.mxu0 %v7907_v55  ;;  %v7927_v55 = vpack.c.bf16 %v7891_v11, %v7887_v38  ;;  %v16924_v11 = vld [vmem:[#allocation131_spill] sm:$0xff] }
 0xb16   : > { %8371 = vmatprep.mubr.bf16.mxu0 %v7912_v43  ;;  %v7932_v43 = vpack.c.bf16 %v7900_v53, %v7896_v37 }
 0xb17   : > { %8447 = vmatpush1.bf16.msra.mxu1 %v11478_v27 }
 0xb18   : > { %8448 = vmatprep.subr.bf16.mxu1 %v11483_v44 }
 0xb1b   : > { %8449 = vmatpush2.bf16.msra.mxu1 %v11481_v16 }
 0xb1c   : > { %8450 = vmatprep.subr.bf16.mxu1 %v11486_v31 }
 0xb1d   : > { %8372 = vmatmul.mubr.bf16.gmra.mxu0 %v7911_v6  ;;  %v11495_v6 = vld [vmem:[#allocation11 + $0x1b4] ss:$8 sps:$4 sm:$0xff]  }
 0xb1e   : > { %8381 = vmatprep.mubr.bf16.mxu0 %v7916_v32  ;;  %v11498_v32 = vld [vmem:[#allocation11 + $0x1a4] ss:$8 sps:$4 sm:$0xff]  }
 0xb1f   : > { %8451 = vmatpush2.bf16.msra.mxu1 %v11484_v10 }
 0xb20   : > { %8452 = vmatprep.subr.bf16.mxu1 %v11489_v19 }
 0xb23   : > { %8453 = vmatpush2.bf16.msra.mxu1 %v11487_v14 }
 0xb24   : > { %8454 = vmatprep.subr.bf16.mxu1 %v11492_v23  ;;  %v16926_v23 = vld [vmem:[#allocation140_spill] sm:$0xff] }
 0xb25   : > { %8382 = vmatmul.mubr.bf16.gmra.mxu0 %v7915_v60 }
 0xb26   : > { %8391 = vmatprep.mubr.bf16.mxu0 %v7920_v12  ;;  %v16918_v12 = vld [vmem:[#allocation120_spill] sm:$0xff] }
 0xb27   : > { %8455 = vmatpush2.bf16.msra.mxu1 %v11490_v42  ;;  %v4581_v13 = vadd.f32 %v16919_v33, %v16918_v12 }
 0xb28   : > { %8456 = vmatprep.subr.bf16.mxu1 %v11495_v6  ;;  %v16927_v6 = vld [vmem:[#allocation144_spill] sm:$0xff] }
 0xb2b   : > { %8457 = vmatpush2.bf16.msra.mxu1 %v11493_v58  ;;  %v4601_v58 = vadd.f32 %v16927_v6, %v16918_v12 }
 0xb2c   : > { %8458 = vmatprep.subr.bf16.mxu1 %v11498_v32 }
 0xb2d   : > { %8392 = vmatmul.mubr.bf16.gmra.mxu0 %v7919_v45 }
 0xb2e   : > { %8401 = vmatprep.mubr.bf16.mxu0 %v7924_v49 }
 0xb2f   : > { %8459 = vmatpush2.bf16.msra.mxu1 %v11496_v7 }
 0xb30   : > { %8460 = vmatprep.subr.bf16.mxu1 %v11501_v62  ;;  %v16928_v62 = vld [vmem:[#allocation139_spill] sm:$0xff] }
 0xb33   : > { %8461 = vmatpush2.bf16.msra.mxu1 %v11499_v25 }
 0xb34   : > { %8462 = vmatprep.subr.bf16.mxu1 %v11504_v35 }
 0xb35   : > { %8402 = vmatmul.mubr.bf16.gmra.mxu0 %v7923_v39 }
 0xb36   : > { %8411 = vmatprep.mubr.bf16.mxu0 %v7928_v3  ;;  %v16923_v3 = vld [vmem:[#allocation136_spill] sm:$0xff] }
 0xb37   : > { %8463 = vmatpush2.bf16.msra.mxu1 %v11502_v2  ;;  %v4591_v44 = vadd.f32 %v16923_v3, %v16918_v12 }
 0xb3d   : > { %8412 = vmatmul.mubr.bf16.gmra.mxu0 %v7927_v55 }
 0xb3e   : > { %8421 = vmatprep.mubr.bf16.mxu0 %v7932_v43  ;;  %v16925_v43 = vld [vmem:[#allocation135_spill] sm:$0xff] }
 0xb45   : > { %8422 = vmatmul.mubr.bf16.gmra.mxu0 %v7931_v50 }
 0xb89   : > { %v7247_v47 = vpop.f32.mrf.mxu0 }
 0xb8a   : > { %v7423_v60 = vadd.f32 %v7247_v47, %v16917_v21 }
 0xb8b   : > { %v7249_v30 = vpop.f32.mrf.mxu0 }
 0xb8c   : > { %v9672_v34 = vmul.f32 -1.442695, %v7423_v60  ;;  %v7535_v15 = vadd.f32 %v7249_v30, %v16920_v54 }
 0xb8d   : > { %v7251_v51 = vpop.f32.mrf.mxu0 }
 0xb8e   : > { %11985 = vpow2.f32 %v9672_v34  ;;  %v9688_v17 = vmul.f32 -1.442695, %v7535_v15  ;;  %v7424_v45 = vadd.f32 %v7251_v51, %v4581_v13  ;;  %v16929_v15 = vld [vmem:[#allocation143_spill] sm:$0xff] }
 0xb8f   : > { %v7253_v20 = vpop.f32.mrf.mxu0  ;;  %v16045_v2 = vpop.f32.mrf.mxu1 }
 0xb90   : > { %11987 = vpow2.f32 %v9688_v17  ;;  %v9673_v49 = vmul.f32 -1.442695, %v7424_v45  ;;  %v7536_v27 = vadd.f32 %v7253_v20, %v16921_v0 }
 0xb91   : > { %v7257_v9 = vpop.f32.mrf.mxu0  ;;  %v7360_v45 = vpop.f32.mrf.mxu1 }
 0xb92   : > { %11989 = vpow2.f32 %v9673_v49  ;;  %v9689_v40 = vmul.f32 -1.442695, %v7536_v27  ;;  %v7425_v39 = vadd.f32 %v7257_v9, %v16922_v4  ;;  %v16930_v27 = vld [vmem:[#allocation148_spill] sm:$0xff] }
 0xb93   : > { %v7259_v52 = vpop.f32.mrf.mxu0  ;;  %v16931_v4 = vld [vmem:[#allocation152_spill] sm:$0xff] }
 0xb94   : > { %11991 = vpow2.f32 %v9689_v40  ;;  %v9674_v16 = vmul.f32 -1.442695, %v7425_v39  ;;  %v7537_v31 = vadd.f32 %v7259_v52, %v16924_v11  ;;  %v4611_v39 = vadd.f32 %v16931_v4, %v16918_v12 }
 0xb95   : > { %v7261_v53 = vpop.f32.mrf.mxu0 }
 0xb96   : > { %11993 = vpow2.f32 %v9674_v16  ;;  %v9690_v10 = vmul.f32 -1.442695, %v7537_v31  ;;  %v7426_v38 = vadd.f32 %v7261_v53, %v4591_v44  ;;  %v16932_v16 = vld [vmem:[#allocation147_spill] sm:$0xff]  ;;  %v16052_v53 = vpop.f32.mrf.mxu1 }
 0xb97   : > { %v7263_v55 = vpop.f32.mrf.mxu0 }
 0xb98   : > { %11995 = vpow2.f32 %v9690_v10  ;;  %v9675_v37 = vmul.f32 -1.442695, %v7426_v38  ;;  %v7538_v19 = vadd.f32 %v7263_v55, %v16925_v43 }
 0xb99   : > { %v7267_v14 = vpop.f32.mrf.mxu0 }
 0xb9a   : > { %11997 = vpow2.f32 %v9675_v37  ;;  %v9691_v36 = vmul.f32 -1.442695, %v7538_v19  ;;  %v7427_v42 = vadd.f32 %v7267_v14, %v16926_v23  ;;  %v16933_v23 = vld [vmem:[#allocation151_spill] sm:$0xff] }
 0xb9b   : > { %v11986_v18 = vpop.eup %11985  ;;  %v7269_v50 = vpop.f32.mrf.mxu0 }
 0xb9c   : > { %v7487_v32 = vadd.f32 1.0, %v11986_v18  ;;  %v9676_v7 = vmul.f32 -1.442695, %v7427_v42  ;;  %v7539_v25 = vadd.f32 %v7269_v50, %v16928_v62  ;;  %11999 = vpow2.f32 %v9691_v36  ;;  %v7363_v18 = vpop.f32.mrf.mxu1  ;;  %v16934_v62 = vld [vmem:[#allocation156_spill] sm:$0xff] }
 0xb9d   : > { %v11988_v35 = vpop.eup %11987  ;;  %v7271_v47 = vpop.f32.mrf.mxu0 }
 0xb9e   : > { %12001 = vrcp.f32 %v7487_v32  ;;  %v7599_v21 = vadd.f32 1.0, %v11988_v35  ;;  %v9692_v60 = vmul.f32 -1.442695, %v7539_v25  ;;  %v7428_v30 = vadd.f32 %v7271_v47, %v4601_v58  ;;  %v16055_v58 = vld [vmem:[#allocation14 + $0x1] ss:$0 sm:$0xff]  ;;  %v16059_v47 = vpop.f32.mrf.mxu1 }
 0xb9f   : > { %v11990_v33 = vpop.eup %11989  ;;  %12003 = vpow2.f32 %v9676_v7  ;;  %v7273_v13 = vpop.f32.mrf.mxu0  ;;  %v7647_v32 = vadd.f32 %v16055_v58, %v7360_v45 }
 0xba0   : > { %12005 = vrcp.f32 %v7599_v21  ;;  %v7488_v34 = vadd.f32 1.0, %v11990_v33  ;;  %v9677_v54 = vmul.f32 -1.442695, %v7428_v30  ;;  %v7540_v51 = vadd.f32 %v7273_v13, %v16929_v15  ;;  %v16935_v13 = vld [vmem:[#allocation155_spill] sm:$0xff]  ;;  %v16936_v15 = vld [vmem:[#allocation160_spill] sm:$0xff]  ;;  %v7376_v4 = vpop.f32.mrf.mxu1 }
 0xba1   : > { %v11992_v17 = vpop.eup %11991  ;;  %12007 = vpow2.f32 %v9692_v60  ;;  %v7277_v20 = vpop.f32.mrf.mxu0 }
 0xba2   : > { %12009 = vrcp.f32 %v7488_v34  ;;  %v7600_v49 = vadd.f32 1.0, %v11992_v17  ;;  %v9693_v0 = vmul.f32 -1.442695, %v7540_v51  ;;  %v7429_v9 = vadd.f32 %v7277_v20, %v16930_v27 }
 0xba3   : > { %v11994_v40 = vpop.eup %11993  ;;  %12011 = vpow2.f32 %v9677_v54  ;;  %v7279_v52 = vpop.f32.mrf.mxu0  ;;  %v4621_v51 = vadd.f32 %v16936_v15, %v16918_v12 }
 0xba4   : > { %12013 = vrcp.f32 %v7600_v49  ;;  %v7489_v3 = vadd.f32 1.0, %v11994_v40  ;;  %v9678_v44 = vmul.f32 -1.442695, %v7429_v9  ;;  %v7541_v11 = vadd.f32 %v7279_v52, %v16932_v16  ;;  %v16938_v16 = vld [vmem:[#allocation121_spill] sm:$0xff] }
 0xba5   : > { %v11996_v31 = vpop.eup %11995  ;;  %12015 = vpow2.f32 %v9693_v0  ;;  %v7281_v10 = vpop.f32.mrf.mxu0  ;;  %v16937_v0 = vld [vmem:[#allocation125_spill] sm:$0xff]  ;;  %v7648_v9 = vadd.f32 %v16055_v58, %v7363_v18 }
 0xba6   : > { %12017 = vrcp.f32 %v7489_v3  ;;  %v9694_v38 = vmul.f32 -1.442695, %v7541_v11  ;;  %v7430_v55 = vadd.f32 %v7281_v10, %v4611_v39  ;;  %v7601_v19 = vadd.f32 1.0, %v11996_v31  ;;  %v16939_v11 = vld [vmem:[#allocation129_spill] sm:$0xff] }
 0xba7   : > { %v11998_v37 = vpop.eup %11997  ;;  %12019 = vpow2.f32 %v9678_v44  ;;  %v7283_v43 = vpop.f32.mrf.mxu0  ;;  %v4694_v31 = vadd.f32 %v16939_v11, %v16938_v16 }
 0xba8   : > { %v7490_v14 = vadd.f32 1.0, %v11998_v37  ;;  %v9679_v36 = vmul.f32 -1.442695, %v7430_v55  ;;  %v7542_v42 = vadd.f32 %v7283_v43, %v16933_v23  ;;  %12021 = vpow2.f32 %v9694_v38 }
 0xba9   : > { %v7287_v50 = vpop.f32.mrf.mxu0  ;;  %v12000_v6 = vpop.eup %11999  ;;  %v7649_v55 = vadd.f32 %v16055_v58, %v16045_v2  ;;  %v16942_v2 = vld [vmem:[#allocation145_spill] sm:$0xff] }
 0xbaa   : > { %12023 = vrcp.f32 %v7490_v14  ;;  %v9695_v7 = vmul.f32 -1.442695, %v7542_v42  ;;  %v7431_v25 = vadd.f32 %v7287_v50, %v16934_v62  ;;  %v7602_v17 = vadd.f32 1.0, %v12000_v6  ;;  %v16940_v42 = vld [vmem:[#allocation159_spill] sm:$0xff]  ;;  %v16075_v6 = vpop.f32.mrf.mxu1  ;;  %v16941_v62 = vld [vmem:[#allocation137_spill] sm:$0xff] }
 0xbab   : > { %v12002_v35 = vpop.eup %12001  ;;  %12025 = vpow2.f32 %v9679_v36  ;;  %v7289_v21 = vpop.f32.mrf.mxu0 }
 0xbac   : > { %v12004_v60 = vpop.eup %12003  ;;  %12027 = vrcp.f32 %v7601_v19  ;;  %v7663_v30 = vmul.f32 %v12002_v35, %v7647_v32  ;;  %v9680_v33 = vmul.f32 -1.442695, %v7431_v25  ;;  %v7543_v34 = vadd.f32 %v7289_v21, %v16935_v13 }
 0xbad   : > { %v16062_v54 = vpop.eup %12005  ;;  %v7491_v45 = vadd.f32 1.0, %v12004_v60  ;;  %12029 = vpow2.f32 %v9695_v7  ;;  %v7291_v20 = vpop.f32.mrf.mxu0  ;;  %v4704_v25 = vadd.f32 %v16941_v62, %v16938_v16  ;;  %v16081_v35 = vadd.f32 %v16942_v2, %v16938_v16  ;;  %v16943_v60 = vld [vmem:[#allocation153_spill] sm:$0xff] }
 0xbae   : > { %v12008_v49 = vpop.eup %12007  ;;  %v7679_v27 = vadd.f32 %v7663_v30, %v16937_v0  ;;  %12031 = vpow2.f32 %v9680_v33  ;;  %v9696_v39 = vmul.f32 -1.442695, %v7543_v34  ;;  %v7432_v52 = vadd.f32 %v7291_v20, %v4621_v51  ;;  %v16944_v51 = vld [vmem:[#allocation133_spill] sm:$0xff] }
 0xbaf   : > { %v12010_v40 = vpop.eup %12009  ;;  %12033 = vrcp.f32 %v7491_v45  ;;  %v7293_v3 = vpop.f32.mrf.mxu0  ;;  %v7603_v37 = vadd.f32 1.0, %v12008_v49  ;;  %v16085_v30 = vadd.f32 %v16943_v60, %v16938_v16  ;;  %v7650_v45 = vadd.f32 %v16055_v58, %v16052_v53  ;;  %v16945_v0 = vld [vmem:[#allocation161_spill] sm:$0xff] }
 0xbb0   : > { %v12012_v44 = vpop.eup %12011  ;;  %12035 = vtanh.f32 %v7679_v27  ;;  %v7664_v10 = vmul.f32 %v12010_v40, %v7648_v9  ;;  %v9681_v23 = vmul.f32 -1.442695, %v7432_v52  ;;  %v7544_v18 = vadd.f32 %v7293_v3, %v16940_v42  ;;  %v16946_v9 = vld [vmem:[#allocation168_spill] sm:$0xff] }
 0xbb1   : > { %v16070_v38 = vpop.eup %12013  ;;  %12037 = vrcp.f32 %v7602_v17  ;;  %v7492_v43 = vadd.f32 1.0, %v12012_v44  ;;  %v16092_v27 = vadd.f32 %v16945_v0, %v16938_v16  ;;  %v4631_v40 = vadd.f32 %v16946_v9, %v16918_v12  ;;  %v16947_v52 = vld [vmem:[#allocation164_spill] sm:$0xff] }
 0xbb2   : > { %v7297_v19 = vpop.f32.mrf.mxu0  ;;  %v12016_v14 = vpop.eup %12015  ;;  %v7680_v36 = vadd.f32 %v7664_v10, %v4694_v31  ;;  %12039 = vpow2.f32 %v9696_v39  ;;  %v9697_v20 = vmul.f32 -1.442695, %v7544_v18  ;;  %v16948_v31 = vld [vmem:[#allocation178_spill] sm:$0xff]  ;;  %v7711_v2 = vsub.f32 1.0, %v16062_v54 }
 0xbb3   : > { %v12018_v50 = vpop.eup %12017  ;;  %12041 = vrcp.f32 %v7492_v43  ;;  %v7604_v33 = vadd.f32 1.0, %v12016_v14  ;;  %v7379_v39 = vpop.f32.mrf.mxu1  ;;  %v7433_v3 = vadd.f32 %v7297_v19, %v16947_v52  ;;  %v16099_v10 = vadd.f32 %v16948_v31, %v16918_v12  ;;  %v16952_v52 = vld [vmem:[#allocation174_spill] sm:$0xff] }
 0xbb4   : > { %v7299_v32 = vpop.f32.mrf.mxu0  ;;  %v12020_v7 = vpop.eup %12019  ;;  %v7665_v21 = vmul.f32 %v12018_v50, %v7649_v55  ;;  %12043 = vtanh.f32 %v7680_v36  ;;  %v16103_v55 = vadd.f32 %v16055_v58, %v16059_v47  ;;  %v7651_v14 = vadd.f32 %v16055_v58, %v7376_v4  ;;  %v16949_v50 = vld [vmem:[#allocation163_spill] sm:$0xff] }
 0xbb5   : > { %12045 = vrcp.f32 %v7603_v37  ;;  %v7493_v13 = vadd.f32 1.0, %v12020_v7  ;;  %v12022_v15 = vpop.eup %12021  ;;  %v7652_v18 = vadd.f32 %v16055_v58, %v7379_v39  ;;  %v7545_v7 = vadd.f32 %v7299_v32, %v16949_v50  ;;  %v16950_v32 = vld [vmem:[#allocation167_spill] sm:$0xff] }
 0xbb6   : > { %v7301_v34 = vpop.f32.mrf.mxu0  ;;  %v7681_v17 = vadd.f32 %v7665_v21, %v16944_v51  ;;  %12047 = vpow2.f32 %v9681_v23  ;;  %v7605_v43 = vadd.f32 1.0, %v12022_v15  ;;  %v9682_v47 = vmul.f32 -1.442695, %v7433_v3 }
 0xbb7   : > { %v12024_v49 = vpop.eup %12023  ;;  %12049 = vrcp.f32 %v7493_v13  ;;  %v7434_v21 = vadd.f32 %v7301_v34, %v4631_v40  ;;  %v7743_v4 = vmul.f32 %v16062_v54, %v15846_v61  ;;  %v7712_v51 = vsub.f32 1.0, %v16070_v38  ;;  %v16951_v54 = vld [vmem:[#allocation141_spill] sm:$0xff] }
 0xbb8   : > { %v7303_v44 = vpop.f32.mrf.mxu0  ;;  %v12026_v11 = vpop.eup %12025  ;;  %12051 = vtanh.f32 %v7681_v17  ;;  %v7666_v53 = vmul.f32 %v12024_v49, %v7650_v45  ;;  %v7744_v34 = vmul.f32 %v16070_v38, %v15856_v57  ;;  %v9698_v9 = vmul.f32 -1.442695, %v7545_v7 }
 0xbb9   : > { %v16105_v37 = vpop.eup %12027  ;;  %12053 = vrcp.f32 %v7604_v33  ;;  %v7494_v36 = vadd.f32 1.0, %v12026_v11  ;;  %v7546_v45 = vadd.f32 %v7303_v44, %v16950_v32  ;;  %v9683_v39 = vmul.f32 -1.442695, %v7434_v21 }
 0xbba   : > { %v12030_v23 = vpop.eup %12029  ;;  %v7682_v42 = vadd.f32 %v7666_v53, %v4704_v25  ;;  %12055 = vpow2.f32 %v9697_v20  ;;  %v7713_v31 = vsub.f32 1.0, %v16105_v37 }
 0xbbb   : > { %v7307_v19 = vpop.f32.mrf.mxu0  ;;  %v12032_v62 = vpop.eup %12031  ;;  %12057 = vrcp.f32 %v7494_v36  ;;  %v7606_v13 = vadd.f32 1.0, %v12030_v23  ;;  %v9699_v38 = vmul.f32 -1.442695, %v7546_v45  ;;  %v16953_v36 = vld [vmem:[#allocation173_spill] sm:$0xff] }
 0xbbc   : > { %v12034_v33 = vpop.eup %12033  ;;  %12059 = vtanh.f32 %v7682_v42  ;;  %v7495_v15 = vadd.f32 1.0, %v12032_v62  ;;  %v7435_v3 = vadd.f32 %v7307_v19, %v16952_v52  ;;  %v16125_v62 = vpop.f32.mrf.mxu1 }
 0xbbd   : > { %v7309_v60 = vpop.f32.mrf.mxu0  ;;  %v12036_v25 = vpop.eup %12035  ;;  %12061 = vrcp.f32 %v7605_v43  ;;  %v7667_v17 = vmul.f32 %v12034_v33, %v7651_v14 }
 0xbbe   : > { %v16115_v49 = vpop.eup %12037  ;;  %v7727_v0 = vmul.f32 %v12036_v25, %v7711_v2  ;;  %12063 = vrcp.f32 %v7495_v15  ;;  %v7547_v23 = vadd.f32 %v7309_v60, %v16953_v36  ;;  %v7745_v25 = vmul.f32 %v16105_v37, %v15898_v28  ;;  %v7392_v45 = vpop.f32.mrf.mxu1 }
 0xbbf   : > { %v7311_v20 = vpop.f32.mrf.mxu0  ;;  %v12040_v61 = vpop.eup %12039  ;;  %v7683_v40 = vadd.f32 %v7667_v17, %v16951_v54  ;;  %12065 = vpow2.f32 %v9682_v47  ;;  %v9684_v47 = vmul.f32 -1.442695, %v7435_v3  ;;  %v7655_v3 = vadd.f32 %v16055_v58, %v7392_v45 }
 0xbc0   : > { %v12042_v11 = vpop.eup %12041  ;;  %v7759_v44 = vadd.f32 %v7743_v4, %v7727_v0  ;;  %12067 = vrcp.f32 %v7606_v13  ;;  %v7607_v53 = vadd.f32 1.0, %v12040_v61  ;;  %v7436_v21 = vadd.f32 %v7311_v20, %v16099_v10  ;;  %v16954_v0 = vld [vmem:[#allocation149_spill] sm:$0xff] }
 0xbc1   : > { %v7313_v43 = vpop.f32.mrf.mxu0  ;;  %v12044_v14 = vpop.eup %12043  ;;  %12069 = vtanh.f32 %v7683_v40  ;;  %v7668_v57 = vmul.f32 %v12042_v11, %v7652_v18 }
 0xbc2   : > { %v16123_v42 = vpop.eup %12045  ;;  %vm7775_vm7 = vcmp.gt.f32.partialorder %v7759_v44, 0.0  ;;  %v7791_v50 = vmul.f32 0.1, %v7759_v44  ;;  %v7728_v7 = vmul.f32 %v12044_v14, %v7712_v51  ;;  %12071 = vpow2.f32 %v9698_v9 }
 0xbc3   : > { %v12048_v19 = vpop.eup %12047  ;;  %v7684_v2 = vadd.f32 %v7668_v57, %v16081_v35  ;;  %12073 = vpow2.f32 %v9683_v39  ;;  %v7654_v35 = vadd.f32 %v16055_v58, %v16075_v6  ;;  %v9685_v37 = vmul.f32 -1.442695, %v7436_v21 }
 0xbc4   : > { %v12050_v33 = vpop.eup %12049  ;;  %v16129_v18 = vsel %vm7775_vm7, %v7759_v44, %v7791_v50  ;;  %v7760_v4 = vadd.f32 %v7744_v34, %v7728_v7  ;;  %12075 = vrcp.f32 %v7607_v53  ;;  %v7496_v60 = vadd.f32 1.0, %v12048_v19  ;;  %v16955_v53 = vld [vmem:[#allocation183_spill] sm:$0xff] }
 0xbc5   : > { %v7317_v13 = vpop.f32.mrf.mxu0  ;;  %v12052_v15 = vpop.eup %12051  ;;  %7823 = vst [vmem:[#allocation3 + $0x18] sm:$0xff] %v16129_v18  ;;  %v7669_v51 = vmul.f32 %v12050_v33, %v16103_v55  ;;  %12077 = vtanh.f32 %v7684_v2  ;;  %v7714_v34 = vsub.f32 1.0, %v16115_v49  ;;  %v9700_v6 = vmul.f32 -1.442695, %v7547_v23  ;;  %v16957_v33 = vld [vmem:[#allocation187_spill] sm:$0xff] }
 0xbc6   : > { %v16137_v10 = vpop.eup %12053  ;;  %v7729_v17 = vmul.f32 %v12052_v15, %v7713_v31  ;;  %vm7776_vm8 = vcmp.gt.f32.partialorder %v7760_v4, 0.0  ;;  %v7792_v32 = vmul.f32 0.1, %v7760_v4  ;;  %12079 = vrcp.f32 %v7496_v60  ;;  %v16153_v23 = vpop.f32.mrf.mxu1 }
 0xbc7   : > { %v12056_v20 = vpop.eup %12055  ;;  %v7685_v28 = vadd.f32 %v7669_v51, %v16954_v0  ;;  %12081 = vpow2.f32 %v9684_v47  ;;  %v16143_v54 = vpop.f32.mrf.mxu0  ;;  %v7746_v39 = vmul.f32 %v16115_v49, %v15900_v41  ;;  %v7437_v14 = vadd.f32 %v7317_v13, %v16955_v53  ;;  %v16956_v41 = vld [vmem:[#allocation177_spill] sm:$0xff]  ;;  %v16164_v13 = vld [vmem:[#allocation3 + $0x30] sm:$0xff] }
 0xbc8   : > { %v12058_v9 = vpop.eup %12057  ;;  %v7761_v55 = vadd.f32 %v7745_v25, %v7729_v17  ;;  %v16141_v61 = vsel %vm7776_vm8, %v7760_v4, %v7792_v32  ;;  %12083 = vpow2.f32 %v9699_v38  ;;  %v7608_v36 = vadd.f32 1.0, %v12056_v20  ;;  %v16958_v25 = vld [vmem:[#allocation157_spill] sm:$0xff] }
 0xbc9   : > { %v12060_v40 = vpop.eup %12059  ;;  %7824 = vst [vmem:[#allocation3 + $0x38] sm:$0xff] %v16141_v61  ;;  %12085 = vtanh.f32 %v7685_v28  ;;  %v7670_v52 = vmul.f32 %v12058_v9, %v7654_v35  ;;  %v7548_v49 = vadd.f32 %v7313_v43, %v16956_v41  ;;  %v7321_v47 = vpop.f32.mrf.mxu0  ;;  %v4651_v4 = vadd.f32 %v16957_v33, %v16918_v12 }
 0xbca   : > { %v16149_v11 = vpop.eup %12061  ;;  %vm7777_vm9 = vcmp.gt.f32.partialorder %v7761_v55, 0.0  ;;  %v7793_v31 = vmul.f32 0.1, %v7761_v55  ;;  %v7730_v44 = vmul.f32 %v12060_v40, %v7714_v34  ;;  %12087 = vpow2.f32 %v9685_v37  ;;  %v7395_v12 = vpop.f32.mrf.mxu1  ;;  %v7841_v34 = vld [vmem:[#allocation3 + $0x10] sm:$0xff] }
 0xbcb   : > { %v12064_v57 = vpop.eup %12063  ;;  %v7686_v38 = vadd.f32 %v7670_v52, %v16085_v30  ;;  %12089 = vpow2.f32 %v9700_v6  ;;  %v7715_v30 = vsub.f32 1.0, %v16123_v42  ;;  %v9686_v35 = vmul.f32 -1.442695, %v7437_v14 }
 0xbcc   : > { %v12066_v50 = vpop.eup %12065  ;;  %v16156_v7 = vsel %vm7777_vm9, %v7761_v55, %v7793_v31  ;;  %v7762_v19 = vadd.f32 %v7746_v39, %v7730_v44  ;;  %v7671_v2 = vmul.f32 %v12064_v57, %v7655_v3  ;;  %v7747_v32 = vmul.f32 %v16123_v42, %v15902_v1 }
 0xbcd   : > { %v16158_v21 = vpop.eup %12067  ;;  %7825 = vst [vmem:[#allocation3 + $0x58] sm:$0xff] %v16156_v7  ;;  %12091 = vtanh.f32 %v7686_v38  ;;  %v7497_v60 = vadd.f32 1.0, %v12066_v50  ;;  %v7438_v20 = vadd.f32 %v7321_v47, %v4651_v4  ;;  %v9701_v37 = vmul.f32 -1.442695, %v7548_v49 }
 0xbce   : > { %v12070_v43 = vpop.eup %12069  ;;  %vm7778_vm10 = vcmp.gt.f32.partialorder %v7762_v19, 0.0  ;;  %v7794_v15 = vmul.f32 0.1, %v7762_v19  ;;  %v7687_v51 = vadd.f32 %v7671_v2, %v16958_v25  ;;  %v7905_v9 = vpack.c.bf16 %v16164_v13, %v7841_v34  ;;  %v7323_v2 = vpop.f32.mrf.mxu0 }
 0xbcf   : > { %v12072_v17 = vpop.eup %12071  ;;  %v7731_v45 = vmul.f32 %v12070_v43, %v7715_v30  ;;  %12093 = vrcp.f32 %v7497_v60  ;;  %v7716_v6 = vsub.f32 1.0, %v16137_v10  ;;  %v7748_v42 = vmul.f32 %v16137_v10, %v15914_v5  ;;  %v16960_v43 = vld [vmem:[#allocation186_spill] sm:$0xff] }
 0xbd0   : > { %v12074_v0 = vpop.eup %12073  ;;  %v7810_v28 = vsel %vm7778_vm10, %v7762_v19, %v7794_v15  ;;  %12095 = vrcp.f32 %v7608_v36  ;;  %v7656_v52 = vadd.f32 %v16055_v58, %v7395_v12  ;;  %v9687_v3 = vmul.f32 -1.442695, %v7438_v20  ;;  %v16959_v36 = vld [vmem:[#allocation182_spill] sm:$0xff] }
 0xbd1   : > { %v16170_v55 = vpop.eup %12075  ;;  %7826 = vst [vmem:[#allocation3 + $0x78] sm:$0xff] %v7810_v28  ;;  %v7763_v40 = vadd.f32 %v7747_v32, %v7731_v45  ;;  %12097 = vtanh.f32 %v7687_v51  ;;  %v7498_v39 = vadd.f32 1.0, %v12074_v0  ;;  %v7717_v57 = vsub.f32 1.0, %v16149_v11 }
 0xbd2   : > { %v12078_v1 = vpop.eup %12077  ;;  %12099 = vpow2.f32 %v9686_v35  ;;  %v7549_v41 = vadd.f32 %v16143_v54, %v16959_v36  ;;  %v7749_v5 = vmul.f32 %v16149_v11, %v15937_v26  ;;  %v7718_v33 = vsub.f32 1.0, %v16158_v21  ;;  %v16188_v11 = vpop.f32.mrf.mxu1  ;;  %v16962_v36 = vld [vmem:[#allocation169_spill] sm:$0xff] }
 0xbd3   : > { %v12080_v31 = vpop.eup %12079  ;;  %vm7779_vm11 = vcmp.gt.f32.partialorder %v7763_v40, 0.0  ;;  %v7795_v44 = vmul.f32 0.1, %v7763_v40  ;;  %v7732_v53 = vmul.f32 %v12078_v1, %v7716_v6  ;;  %12101 = vrcp.f32 %v7498_v39  ;;  %v7849_v39 = vld [vmem:[#allocation3 + $0x50] sm:$0xff] }
 0xbd4   : > { %v12082_v14 = vpop.eup %12081  ;;  %v7672_v38 = vmul.f32 %v12080_v31, %v7656_v52  ;;  %12103 = vpow2.f32 %v9701_v37  ;;  %v7906_v54 = vpack.c.bf16 %v16141_v61, %v16129_v18  ;;  %v9702_v13 = vmul.f32 -1.442695, %v7549_v41 }
 0xbd5   : > { %v12084_v49 = vpop.eup %12083  ;;  %v16181_v10 = vsel %vm7779_vm11, %v7763_v40, %v7795_v44  ;;  %v7764_v50 = vadd.f32 %v7748_v42, %v7732_v53  ;;  %v7499_v19 = vadd.f32 1.0, %v12082_v14  ;;  %12105 = vpow2.f32 %v9687_v3  ;;  %v16961_v53 = vld [vmem:[#allocation165_spill] sm:$0xff] }
 0xbd6   : > { %v12086_v47 = vpop.eup %12085  ;;  %7827 = vst [vmem:[#allocation3 + $0x98] sm:$0xff] %v16181_v10  ;;  %v7688_v4 = vadd.f32 %v7672_v38, %v16092_v27  ;;  %v7550_v15 = vadd.f32 %v7323_v2, %v16960_v43  ;;  %8464 = vmatprep.mubr.bf16.mxu1 %v7906_v54  ;;  %v7910_v25 = vpack.c.bf16 %v7810_v28, %v16156_v7  ;;  %v7609_v32 = vadd.f32 1.0, %v12072_v17  ;;  %v7853_v28 = vld [vmem:[#allocation3 + $0x70] sm:$0xff] }
 0xbd7   : > { %v7733_v30 = vmul.f32 %v12086_v47, %v7717_v57  ;;  %vm7780_vm12 = vcmp.gt.f32.partialorder %v7764_v50, 0.0  ;;  %v7796_v60 = vmul.f32 0.1, %v7764_v50  ;;  %12107 = vrcp.f32 %v7499_v19  ;;  %v12088_v26 = vpop.eup %12087  ;;  %8465 = vmatmul.mubr.bf16.vlgmr.msra.gmra.mxu1 %v7905_v9  ;;  %v7408_v9 = vpop.f32.mrf.mxu1  ;;  %v7861_v43 = vld [vmem:[#allocation3 + $0xb0] sm:$0xff] }
 0xbd8   : > { %12109 = vtanh.f32 %v7688_v4  ;;  %v12090_v51 = vpop.eup %12089  ;;  %v7500_v45 = vadd.f32 1.0, %v12088_v26  ;;  %v7750_v61 = vmul.f32 %v16158_v21, %v15943_v46  ;;  %v7657_v12 = vadd.f32 %v16055_v58, %v16125_v62  ;;  %8474 = vmatprep.mubr.bf16.mxu1 %v7910_v25 }
 0xbd9   : > { %v7765_v27 = vadd.f32 %v7749_v5, %v7733_v30  ;;  %v7812_v35 = vsel %vm7780_vm12, %v7764_v50, %v7796_v60  ;;  %v7610_v20 = vadd.f32 1.0, %v12084_v49  ;;  %v7719_v37 = vsub.f32 1.0, %v16170_v55 }
 0xbda   : > { %v12092_v18 = vpop.eup %12091  ;;  %7828 = vst [vmem:[#allocation3 + $0xb8] sm:$0xff] %v7812_v35  ;;  %v7914_v34 = vpack.c.bf16 %v7812_v35, %v16181_v10  ;;  %12111 = vrcp.f32 %v7500_v45  ;;  %v9703_v6 = vmul.f32 -1.442695, %v7550_v15  ;;  %v7751_v42 = vmul.f32 %v16170_v55, %v15959_v63  ;;  %v16208_v10 = vpop.f32.mrf.mxu1  ;;  %v16963_v45 = vld [vmem:[#allocation175_spill] sm:$0xff] }
 0xbdb   : > { %vm7781_vm13 = vcmp.gt.f32.partialorder %v7765_v27, 0.0  ;;  %v7797_v7 = vmul.f32 0.1, %v7765_v27  ;;  %v7734_v0 = vmul.f32 %v12092_v18, %v7718_v33  ;;  %12113 = vpow2.f32 %v9702_v13 }
 0xbdc   : > { %v12094_v17 = vpop.eup %12093  ;;  %12115 = vrcp.f32 %v7609_v32  ;;  %v7658_v52 = vadd.f32 %v16055_v58, %v16153_v23  ;;  %v7909_v3 = vpack.c.bf16 %v7853_v28, %v7849_v39  ;;  %v4744_v41 = vadd.f32 %v16962_v36, %v16938_v16  ;;  %v7411_v13 = vpop.f32.mrf.mxu1  ;;  %v7857_v32 = vld [vmem:[#allocation3 + $0x90] sm:$0xff] }
 0xbdd   : > { %v12096_v46 = vpop.eup %12095  ;;  %v16198_v21 = vsel %vm7781_vm13, %v7765_v27, %v7797_v7  ;;  %v7766_v40 = vadd.f32 %v7750_v61, %v7734_v0  ;;  %v7673_v62 = vmul.f32 %v12094_v17, %v7657_v12  ;;  %12117 = vrcp.f32 %v7610_v20  ;;  %v16964_v0 = vld [vmem:[#allocation179_spill] sm:$0xff] }
 0xbde   : > { %v12098_v1 = vpop.eup %12097  ;;  %7829 = vst [vmem:[#allocation3 + $0xd8] sm:$0xff] %v16198_v21  ;;  %v7611_v49 = vadd.f32 1.0, %v12090_v51  ;;  %12119 = vpow2.f32 %v9703_v6  ;;  %v7659_v4 = vadd.f32 %v16055_v58, %v7408_v9  ;;  %v7720_v30 = vsub.f32 1.0, %v12096_v46 }
 0xbdf   : > { %v12100_v31 = vpop.eup %12099  ;;  %vm7782_vm14 = vcmp.gt.f32.partialorder %v7766_v40, 0.0  ;;  %v7798_v44 = vmul.f32 0.1, %v7766_v40  ;;  %v7689_v14 = vadd.f32 %v7673_v62, %v16961_v53  ;;  %v7735_v57 = vmul.f32 %v12098_v1, %v7719_v37  ;;  %8475 = vmatmul.mubr.bf16.gmra.mxu1 %v7909_v3  ;;  %v7865_v3 = vld [vmem:[#allocation3 + $0xd0] sm:$0xff] }
 0xbe0   : > { %v12102_v38 = vpop.eup %12101  ;;  %v7501_v5 = vadd.f32 1.0, %v12100_v31  ;;  %8484 = vmatprep.mubr.bf16.mxu1 %v7914_v34  ;;  %v7752_v27 = vmul.f32 %v12096_v46, %v15970_v29  ;;  %v7660_v61 = vadd.f32 %v16055_v58, %v7411_v13  ;;  %v7913_v12 = vpack.c.bf16 %v7861_v43, %v7857_v32  ;;  %v7873_v13 = vld [vmem:[#allocation3 + $0x110] sm:$0xff] }
 0xbe1   : > { %v12104_v63 = vpop.eup %12103  ;;  %v7814_v55 = vsel %vm7782_vm14, %v7766_v40, %v7798_v44  ;;  %12121 = vtanh.f32 %v7689_v14  ;;  %v7767_v23 = vadd.f32 %v7751_v42, %v7735_v57  ;;  %v7674_v50 = vmul.f32 %v12102_v38, %v7658_v52  ;;  %v7869_v40 = vld [vmem:[#allocation3 + $0xf0] sm:$0xff] }
 0xbe2   : > { %7830 = vst [vmem:[#allocation3 + $0xf8] sm:$0xff] %v7814_v55  ;;  %12123 = vrcp.f32 %v7501_v5  ;;  %v7918_v19 = vpack.c.bf16 %v7814_v55, %v16198_v21  ;;  %v12106_v2 = vpop.eup %12105  ;;  %v7612_v60 = vadd.f32 1.0, %v12104_v63  ;;  %v4754_v28 = vadd.f32 %v16964_v0, %v16938_v16  ;;  %v16965_v63 = vld [vmem:[#allocation184_spill] sm:$0xff] }
 0xbe3   : > { %vm7783_vm15 = vcmp.gt.f32.partialorder %v7767_v23, 0.0  ;;  %v7799_v47 = vmul.f32 0.1, %v7767_v23  ;;  %v7690_v33 = vadd.f32 %v7674_v50, %v4744_v41  ;;  %12125 = vrcp.f32 %v7611_v49 }
 0xbe4   : > { %v12108_v54 = vpop.eup %12107  ;;  %v7502_v26 = vadd.f32 1.0, %v12106_v2  ;;  %v7661_v52 = vadd.f32 %v16055_v58, %v16188_v11  ;;  %v7917_v14 = vpack.c.bf16 %v7869_v40, %v7865_v3  ;;  %v7893_v40 = vld [vmem:[#allocation3 + $0x1b0] sm:$0xff] }
 0xbe5   : > { %v12110_v15 = vpop.eup %12109  ;;  %v7815_v25 = vsel %vm7783_vm15, %v7767_v23, %v7799_v47  ;;  %12127 = vtanh.f32 %v7690_v33  ;;  %v7675_v51 = vmul.f32 %v12108_v54, %v7659_v4  ;;  %v7662_v23 = vadd.f32 %v16055_v58, %v16208_v10  ;;  %v16966_v47 = vld [vmem:[#allocation188_spill] sm:$0xff] }
 0xbe6   : > { %7831 = vst [vmem:[#allocation3 + $0x118] sm:$0xff] %v7815_v25  ;;  %v7736_v35 = vmul.f32 %v12110_v15, %v7720_v30  ;;  %12129 = vrcp.f32 %v7502_v26  ;;  %v4764_v33 = vadd.f32 %v16966_v47, %v16938_v16 }
 0xbe7   : > { %v7691_v18 = vadd.f32 %v7675_v51, %v16963_v45  ;;  %v12112_v20 = vpop.eup %12111  ;;  %12131 = vrcp.f32 %v7612_v60  ;;  %8485 = vmatmul.mubr.bf16.gmra.mxu1 %v7913_v12 }
 0xbe8   : > { %v7768_v34 = vadd.f32 %v7752_v27, %v7736_v35  ;;  %v12114_v7 = vpop.eup %12113  ;;  %v7676_v17 = vmul.f32 %v12112_v20, %v7660_v61  ;;  %8494 = vmatprep.mubr.bf16.mxu1 %v7918_v19  ;;  %v7877_v19 = vld [vmem:[#allocation3 + $0x130] sm:$0xff] }
 0xbe9   : > { %12133 = vtanh.f32 %v7691_v18  ;;  %v12116_v29 = vpop.eup %12115  ;;  %v7613_v21 = vadd.f32 1.0, %v12114_v7  ;;  %v7921_v43 = vpack.c.bf16 %v7877_v19, %v7873_v13  ;;  %v7881_v7 = vld [vmem:[#allocation3 + $0x150] sm:$0xff] }
 0xbea   : > { %vm7784_vm2 = vcmp.gt.f32.partialorder %v7768_v34, 0.0  ;;  %v7800_v37 = vmul.f32 0.1, %v7768_v34  ;;  %v12118_v9 = vpop.eup %12117  ;;  %v7692_v6 = vadd.f32 %v7676_v17, %v4754_v28  ;;  %v7721_v39 = vsub.f32 1.0, %v12116_v29 }
 0xbeb   : > { %v12120_v62 = vpop.eup %12119  ;;  %v7753_v53 = vmul.f32 %v12116_v29, %v15984_v56  ;;  %v7722_v41 = vsub.f32 1.0, %v12118_v9  ;;  %v7754_v56 = vmul.f32 %v12118_v9, %v15992_v59 }
 0xbec   : > { %v7816_v46 = vsel %vm7784_vm2, %v7768_v34, %v7800_v37  ;;  %12135 = vtanh.f32 %v7692_v6  ;;  %v7614_v49 = vadd.f32 1.0, %v12120_v62 }
 0xbed   : > { %7832 = vst [vmem:[#allocation3 + $0x138] sm:$0xff] %v7816_v46  ;;  %v7922_v1 = vpack.c.bf16 %v7816_v46, %v7815_v25  ;;  %12137 = vrcp.f32 %v7613_v21 }
 0xbee   : > { %v12122_v42 = vpop.eup %12121 }
 0xbef   : > { %v12124_v31 = vpop.eup %12123  ;;  %v7737_v44 = vmul.f32 %v12122_v42, %v7721_v39  ;;  %8495 = vmatmul.mubr.bf16.gmra.mxu1 %v7917_v14  ;;  %v7889_v42 = vld [vmem:[#allocation3 + $0x190] sm:$0xff] }
 0xbf0   : > { %v7677_v57 = vmul.f32 %v12124_v31, %v7661_v52  ;;  %v12126_v38 = vpop.eup %12125  ;;  %8504 = vmatprep.mubr.bf16.mxu1 %v7922_v1  ;;  %v7929_v31 = vpack.c.bf16 %v7893_v40, %v7889_v42  ;;  %v7901_v14 = vld [vmem:[#allocation3 + $0x1f0] sm:$0xff] }
 0xbf1   : > { %v7769_v36 = vadd.f32 %v7753_v53, %v7737_v44  ;;  %v7723_v4 = vsub.f32 1.0, %v12126_v38  ;;  %v7755_v10 = vmul.f32 %v12126_v38, %v16002_v8  ;;  %v7885_v8 = vld [vmem:[#allocation3 + $0x170] sm:$0xff] }
 0xbf2   : > { %v12128_v5 = vpop.eup %12127  ;;  %v7693_v55 = vadd.f32 %v7677_v57, %v16965_v63  ;;  %v7925_v28 = vpack.c.bf16 %v7885_v8, %v7881_v7 }
 0xbf3   : > { %vm7785_vm3 = vcmp.gt.f32.partialorder %v7769_v36, 0.0  ;;  %v7801_v11 = vmul.f32 0.1, %v7769_v36  ;;  %v7738_v50 = vmul.f32 %v12128_v5, %v7722_v41  ;;  %v12130_v2 = vpop.eup %12129 }
 0xbf4   : > { %12139 = vtanh.f32 %v7693_v55  ;;  %v12132_v54 = vpop.eup %12131  ;;  %v7678_v26 = vmul.f32 %v12130_v2, %v7662_v23 }
 0xbf5   : > { %v7817_v30 = vsel %vm7785_vm3, %v7769_v36, %v7801_v11  ;;  %v7770_v60 = vadd.f32 %v7754_v56, %v7738_v50  ;;  %12141 = vrcp.f32 %v7614_v49  ;;  %v7724_v27 = vsub.f32 1.0, %v12132_v54  ;;  %v7897_v36 = vld [vmem:[#allocation3 + $0x1d0] sm:$0xff]  ;;  %v8353_v49 = vpop.f32.mrf.mxu0 }
 0xbf6   : > { %v12134_v58 = vpop.eup %12133  ;;  %7833 = vst [vmem:[#allocation3 + $0x158] sm:$0xff] %v7817_v30  ;;  %v7694_v25 = vadd.f32 %v7678_v26, %v4764_v33  ;;  %v7756_v45 = vmul.f32 %v12132_v54, %v16008_v22  ;;  %v7933_v41 = vpack.c.bf16 %v7901_v14, %v7897_v36 }
 0xbf7   : > { %vm7786_vm4 = vcmp.gt.f32.partialorder %v7770_v60, 0.0  ;;  %v7802_v59 = vmul.f32 0.1, %v7770_v60  ;;  %v7739_v15 = vmul.f32 %v12134_v58, %v7723_v4  ;;  %8505 = vmatmul.mubr.bf16.gmra.mxu1 %v7921_v43  ;;  %v8355_v5 = vpop.f32.mrf.mxu0 }
 0xbf8   : > { %12143 = vtanh.f32 %v7694_v25 }
 0xbf9   : > { %v7818_v51 = vsel %vm7786_vm4, %v7770_v60, %v7802_v59  ;;  %v7771_v16 = vadd.f32 %v7755_v10, %v7739_v15  ;;  %v12136_v35 = vpop.eup %12135  ;;  %v8357_v63 = vpop.f32.mrf.mxu0 }
 0xbfa   : > { %7834 = vst [vmem:[#allocation3 + $0x178] sm:$0xff] %v7818_v51  ;;  %v7926_v32 = vpack.c.bf16 %v7818_v51, %v7817_v30  ;;  %v7740_v61 = vmul.f32 %v12136_v35, %v7724_v27  ;;  %v12138_v12 = vpop.eup %12137 }
 0xbfb   : > { %vm7787_vm5 = vcmp.gt.f32.partialorder %v7771_v16, 0.0  ;;  %v7803_v18 = vmul.f32 0.1, %v7771_v16  ;;  %v7725_v17 = vsub.f32 1.0, %v12138_v12  ;;  %v7757_v22 = vmul.f32 %v12138_v12, %v16016_v48  ;;  %v8359_v55 = vpop.f32.mrf.mxu0 }
 0xbfc   : > { %8514 = vmatprep.mubr.bf16.mxu1 %v7926_v32  ;;  %v7772_v34 = vadd.f32 %v7756_v45, %v7740_v61 }
 0xbfd   : > { %v7819_v20 = vsel %vm7787_vm5, %v7771_v16, %v7803_v18 }
 0xbfe   : > { %7835 = vst [vmem:[#allocation3 + $0x198] sm:$0xff] %v7819_v20  ;;  %vm7788_vm0 = vcmp.gt.f32.partialorder %v7772_v34, 0.0  ;;  %v7804_v0 = vmul.f32 0.1, %v7772_v34 }
 0xbff   : > { %8515 = vmatmul.mubr.bf16.gmra.mxu1 %v7925_v28 }
 0xc00   : > { %v7820_v37 = vsel %vm7788_vm0, %v7772_v34, %v7804_v0 }
 0xc01   : > { %v12140_v29 = vpop.eup %12139  ;;  %7836 = vst [vmem:[#allocation3 + $0x1b8] sm:$0xff] %v7820_v37  ;;  %v7930_v46 = vpack.c.bf16 %v7820_v37, %v7819_v20 }
 0xc02   : > { %v12142_v9 = vpop.eup %12141  ;;  %v7741_v6 = vmul.f32 %v12140_v29, %v7725_v17 }
 0xc03   : > { %8524 = vmatprep.mubr.bf16.mxu1 %v7930_v46  ;;  %v7726_v62 = vsub.f32 1.0, %v12142_v9  ;;  %v7758_v3 = vmul.f32 %v12142_v9, %v16024_v24  ;;  %v8363_v24 = vpop.f32.mrf.mxu0 }
 0xc04   : > { %v7773_v21 = vadd.f32 %v7757_v22, %v7741_v6 }
 0xc05   : > { %v12144_v39 = vpop.eup %12143  ;;  %v8365_v23 = vpop.f32.mrf.mxu0 }
 0xc06   : > { %vm7789_vm1 = vcmp.gt.f32.partialorder %v7773_v21, 0.0  ;;  %v7805_v1 = vmul.f32 0.1, %v7773_v21  ;;  %v7742_v52 = vmul.f32 %v12144_v39, %v7726_v62 }
 0xc07   : > { %8525 = vmatmul.mubr.bf16.gmra.mxu1 %v7929_v31  ;;  %v8367_v11 = vpop.f32.mrf.mxu0 }
 0xc08   : > { %v7821_v44 = vsel %vm7789_vm1, %v7773_v21, %v7805_v1  ;;  %v7774_v53 = vadd.f32 %v7758_v3, %v7742_v52 }
 0xc09   : > { %7837 = vst [vmem:[#allocation3 + $0x1d8] sm:$0xff] %v7821_v44  ;;  %v8369_v50 = vpop.f32.mrf.mxu0 }
 0xc0a   : > { %vm7790_vm6 = vcmp.gt.f32.partialorder %v7774_v53, 0.0  ;;  %v7806_v48 = vmul.f32 0.1, %v7774_v53 }
 0xc0b   : > { %v8373_v56 = vpop.f32.mrf.mxu0 }
 0xc0c   : > { %v7822_v57 = vsel %vm7790_vm6, %v7774_v53, %v7806_v48 }
 0xc0d   : > { %7838 = vst [vmem:[#allocation3 + $0x1f8] sm:$0xff] %v7822_v57  ;;  %v7934_v38 = vpack.c.bf16 %v7822_v57, %v7821_v44  ;;  %v8375_v19 = vpop.f32.mrf.mxu0 }
 0xc0f   : > { %8534 = vmatprep.mubr.bf16.mxu1 %v7934_v38  ;;  %v8377_v2 = vpop.f32.mrf.mxu0 }
 0xc10   : > { %8535 = vmatmul.mubr.bf16.gmra.mxu1 %v7933_v41 }
 0xc11   : > { %v8379_v47 = vpop.f32.mrf.mxu0 }
 0xc13   : > { %v8383_v33 = vpop.f32.mrf.mxu0 }
 0xc15   : > { %v8385_v4 = vpop.f32.mrf.mxu0 }
 0xc17   : > { %v8387_v54 = vpop.f32.mrf.mxu0 }
 0xc19   : > { %v8389_v30 = vpop.f32.mrf.mxu0 }
 0xc1b   : > { %v8393_v13 = vpop.f32.mrf.mxu0 }
 0xc1d   : > { %v8395_v15 = vpop.f32.mrf.mxu0 }
 0xc1f   : > { %v8397_v35 = vpop.f32.mrf.mxu0 }
 0xc21   : > { %v8399_v8 = vpop.f32.mrf.mxu0 }
 0xc23   : > { %v8403_v0 = vpop.f32.mrf.mxu0 }
 0xc25   : > { %v8405_v9 = vpop.f32.mrf.mxu0 }
 0xc27   : > { %v8407_v40 = vpop.f32.mrf.mxu0 }
 0xc29   : > { %v8409_v52 = vpop.f32.mrf.mxu0 }
 0xc2b   : > { %v8413_v48 = vpop.f32.mrf.mxu0 }
 0xc2d   : > { %v8415_v41 = vpop.f32.mrf.mxu0 }
 0xc97   : > { %v8466_v60 = vpop.f32.mrf.mxu1 }
 0xc98   : > { %v8467_v26 = vadd.f32 %v8466_v60, %v8353_v49 }
 0xc99   : > { %v8468_v58 = vpop.f32.mrf.mxu1 }
 0xc9a   : > { %8545 = vst [vmem:[#allocation4] sm:$0xff] %v8467_v26  ;;  %v8469_v10 = vadd.f32 %v8468_v58, %v8355_v5 }
 0xc9b   : > { %v8470_v43 = vpop.f32.mrf.mxu1 }
 0xc9c   : > { %8546 = vst [vmem:[#allocation4 + $0x8] sm:$0xff] %v8469_v10  ;;  %v8471_v59 = vadd.f32 %v8470_v43, %v8357_v63 }
 0xc9d   : > { %v8472_v25 = vpop.f32.mrf.mxu1 }
 0xc9e   : > { %8547 = vst [vmem:[#allocation4 + $0x10] sm:$0xff] %v8471_v59  ;;  %v8473_v51 = vadd.f32 %v8472_v25, %v8359_v55 }
 0xc9f   : > { %v8476_v27 = vpop.f32.mrf.mxu1 }
 0xca0   : > { %8548 = vst [vmem:[#allocation4 + $0x18] sm:$0xff] %v8473_v51  ;;  %v8477_v16 = vadd.f32 %v8476_v27, %v8363_v24  ;;  %v8417_v24 = vpop.f32.mrf.mxu0 }
 0xca1   : > { %v8478_v32 = vpop.f32.mrf.mxu1 }
 0xca2   : > { %8549 = vst [vmem:[#allocation4 + $0x20] sm:$0xff] %v8477_v16  ;;  %v8479_v45 = vadd.f32 %v8478_v32, %v8365_v23 }
 0xca3   : > { %v8480_v18 = vpop.f32.mrf.mxu1 }
 0xca4   : > { %8550 = vst [vmem:[#allocation4 + $0x28] sm:$0xff] %v8479_v45  ;;  %v8481_v61 = vadd.f32 %v8480_v18, %v8367_v11 }
 0xca5   : > { %v8482_v12 = vpop.f32.mrf.mxu1 }
 0xca6   : > { %8551 = vst [vmem:[#allocation4 + $0x30] sm:$0xff] %v8481_v61  ;;  %v8483_v20 = vadd.f32 %v8482_v12, %v8369_v50 }
 0xca7   : > { %v8486_v34 = vpop.f32.mrf.mxu1 }
 0xca8   : > { %8552 = vst [vmem:[#allocation4 + $0x38] sm:$0xff] %v8483_v20  ;;  %v8487_v7 = vadd.f32 %v8486_v34, %v8373_v56 }
 0xca9   : > { %v8488_v28 = vpop.f32.mrf.mxu1 }
 0xcaa   : > { %8553 = vst [vmem:[#allocation4 + $0x40] sm:$0xff] %v8487_v7  ;;  %v8489_v17 = vadd.f32 %v8488_v28, %v8375_v19  ;;  %v8419_v19 = vpop.f32.mrf.mxu0 }
 0xcab   : > { %v8490_v29 = vpop.f32.mrf.mxu1 }
 0xcac   : > { %8554 = vst [vmem:[#allocation4 + $0x48] sm:$0xff] %v8489_v17  ;;  %v8491_v37 = vadd.f32 %v8490_v29, %v8377_v2 }
 0xcad   : > { %v8492_v6 = vpop.f32.mrf.mxu1 }
 0xcae   : > { %8555 = vst [vmem:[#allocation4 + $0x50] sm:$0xff] %v8491_v37  ;;  %v8493_v22 = vadd.f32 %v8492_v6, %v8379_v47 }
 0xcaf   : > { %v8496_v46 = vpop.f32.mrf.mxu1 }
 0xcb0   : > { %8556 = vst [vmem:[#allocation4 + $0x58] sm:$0xff] %v8493_v22  ;;  %v8497_v21 = vadd.f32 %v8496_v46, %v8383_v33 }
 0xcb1   : > { %v8498_v62 = vpop.f32.mrf.mxu1 }
 0xcb2   : > { %8557 = vst [vmem:[#allocation4 + $0x60] sm:$0xff] %v8497_v21  ;;  %v8499_v39 = vadd.f32 %v8498_v62, %v8385_v4 }
 0xcb3   : > { %v8500_v1 = vpop.f32.mrf.mxu1 }
 0xcb4   : > { %8558 = vst [vmem:[#allocation4 + $0x68] sm:$0xff] %v8499_v39  ;;  %v8501_v42 = vadd.f32 %v8500_v1, %v8387_v54  ;;  %v8423_v54 = vpop.f32.mrf.mxu0 }
 0xcb5   : > { %v8502_v3 = vpop.f32.mrf.mxu1 }
 0xcb6   : > { %8559 = vst [vmem:[#allocation4 + $0x70] sm:$0xff] %v8501_v42  ;;  %v8503_v31 = vadd.f32 %v8502_v3, %v8389_v30  ;;  %v8425_v58 = vpop.f32.mrf.mxu0 }
 0xcb7   : > { %v8506_v44 = vpop.f32.mrf.mxu1 }
 0xcb8   : > { %8560 = vst [vmem:[#allocation4 + $0x78] sm:$0xff] %v8503_v31  ;;  %v8507_v53 = vadd.f32 %v8506_v44, %v8393_v13  ;;  %v8427_v25 = vpop.f32.mrf.mxu0 }
 0xcb9   : > { %v8508_v14 = vpop.f32.mrf.mxu1 }
 0xcba   : > { %8561 = vst [vmem:[#allocation4 + $0x80] sm:$0xff] %v8507_v53  ;;  %v8509_v57 = vadd.f32 %v8508_v14, %v8395_v15  ;;  %v8429_v32 = vpop.f32.mrf.mxu0 }
 0xcbb   : > { %v8510_v38 = vpop.f32.mrf.mxu1 }
 0xcbc   : > { %8562 = vst [vmem:[#allocation4 + $0x88] sm:$0xff] %v8509_v57  ;;  %v8511_v36 = vadd.f32 %v8510_v38, %v8397_v35 }
 0xcbd   : > { %v8512_v49 = vpop.f32.mrf.mxu1 }
 0xcbe   : > { %8563 = vst [vmem:[#allocation4 + $0x90] sm:$0xff] %v8511_v36  ;;  %v8513_v5 = vadd.f32 %v8512_v49, %v8399_v8 }
 0xcbf   : > { %v8516_v63 = vpop.f32.mrf.mxu1 }
 0xcc0   : > { %8564 = vst [vmem:[#allocation4 + $0x98] sm:$0xff] %v8513_v5  ;;  %v8517_v55 = vadd.f32 %v8516_v63, %v8403_v0 }
 0xcc1   : > { %v8518_v23 = vpop.f32.mrf.mxu1 }
 0xcc2   : > { %8565 = vst [vmem:[#allocation4 + $0xa0] sm:$0xff] %v8517_v55  ;;  %v8519_v11 = vadd.f32 %v8518_v23, %v8405_v9 }
 0xcc3   : > { %v8520_v50 = vpop.f32.mrf.mxu1 }
 0xcc4   : > { %8566 = vst [vmem:[#allocation4 + $0xa8] sm:$0xff] %v8519_v11  ;;  %v8521_v56 = vadd.f32 %v8520_v50, %v8407_v40 }
 0xcc5   : > { %v8522_v2 = vpop.f32.mrf.mxu1 }
 0xcc6   : > { %8567 = vst [vmem:[#allocation4 + $0xb0] sm:$0xff] %v8521_v56  ;;  %v8523_v47 = vadd.f32 %v8522_v2, %v8409_v52 }
 0xcc7   : > { %v8526_v33 = vpop.f32.mrf.mxu1 }
 0xcc8   : > { %8568 = vst [vmem:[#allocation4 + $0xb8] sm:$0xff] %v8523_v47  ;;  %v8527_v4 = vadd.f32 %v8526_v33, %v8413_v48 }
 0xcc9   : > { %v8528_v30 = vpop.f32.mrf.mxu1 }
 0xcca   : > { %8569 = vst [vmem:[#allocation4 + $0xc0] sm:$0xff] %v8527_v4  ;;  %v8529_v60 = vadd.f32 %v8528_v30, %v8415_v41 }
 0xccb   : > { %v8530_v26 = vpop.f32.mrf.mxu1 }
 0xccc   : > { %8570 = vst [vmem:[#allocation4 + $0xc8] sm:$0xff] %v8529_v60  ;;  %v8531_v13 = vadd.f32 %v8530_v26, %v8417_v24 }
 0xccd   : > { %v8532_v10 = vpop.f32.mrf.mxu1 }
 0xcce   : > { %8571 = vst [vmem:[#allocation4 + $0xd0] sm:$0xff] %v8531_v13  ;;  %v8533_v43 = vadd.f32 %v8532_v10, %v8419_v19 }
 0xcd0   : > { %v8536_v59 = vpop.f32.mrf.mxu1  ;;  %8572 = vst [vmem:[#allocation4 + $0xd8] sm:$0xff] %v8533_v43 }
 0xcd1   : > { %v8537_v15 = vadd.f32 %v8536_v59, %v8423_v54 }
 0xcd2   : > { %v8538_v51 = vpop.f32.mrf.mxu1 }
 0xcd3   : > { %8573 = vst [vmem:[#allocation4 + $0xe0] sm:$0xff] %v8537_v15  ;;  %v8539_v27 = vadd.f32 %v8538_v51, %v8425_v58 }
 0xcd4   : > { %v8540_v16 = vpop.f32.mrf.mxu1 }
 0xcd5   : > { %8574 = vst [vmem:[#allocation4 + $0xe8] sm:$0xff] %v8539_v27  ;;  %v8541_v35 = vadd.f32 %v8540_v16, %v8427_v25 }
 0xcd6   : > { %v8542_v45 = vpop.f32.mrf.mxu1 }
 0xcd7   : > { %8575 = vst [vmem:[#allocation4 + $0xf0] sm:$0xff] %v8541_v35  ;;  %v8543_v18 = vadd.f32 %v8542_v45, %v8429_v32 }
 0xcd9   : > { %8576 = vst [vmem:[#allocation4 + $0xf8] sm:$0xff] %v8543_v18 }
 0xcda LB: >> { %s9768_s24 = sshll.u32 %s12464_s23, 4  ;;  %v16967_v21 = vld [vmem:[#allocation170_spill] sm:$0xff]  ;;  %vm8766_vm7 = vcmask 130048   ;;  %v16968_v42 = vld [vmem:[#allocation171_spill] sm:$0xff]  ;;  %v12491_v32 = vmov 0   ;;  %s9119_s21 = scalar_lea.vmem [#allocation5], %s12464_s23  ;;  %s12464_s23 = sphi %s16231_s23, %s8592_s23  }
 0xcdb   : >> { %s16237_s19 = sshra.s32 %s9768_s24, 3  ;;  %12229 = vset.pattern.permute.xlu0 %v12491_v32  ;;  %12230 = vset.pattern.permute.xlu1 %v12491_v32  ;;  %s8592_s23 = sadd.s32 1, %s12464_s23  }
 0xcdc   : >> { %s9777_s26 = sshll.u32 %s16237_s19, 5  ;;  %s9778_s18 = sshll.u32 %s16237_s19, 4 }
 0xcdd   : >> { %s8598_s13 = scalar_lea.vmem [#allocation3], %s9777_s26  ;;  %s16309_s10 = scalar_lea.vmem [#allocation4], %s9778_s18 }
 0xcde   : >> { %v8604_v61 = vld [vmem:[%s8598_s13 + $0x28] sm:$0xff]  ;;  %v8606_v8 = vld [vmem:[%s8598_s13 + $0x38] sm:$0xff]  ;;  %v8603_v12 = vld [vmem:[%s8598_s13 + $0x20] sm:$0xff]  ;;  %p8589_p7 = scmp.ge.s32.totalorder %s8592_s23, 8  }
 0xcdf   : >> { %8642 = vmatprep.subr.mxu0 %v8604_v61  ;;  %8717 = vmatprep.subr.mxu1 %v8606_v8  ;;  %v8605_v20 = vld [vmem:[%s8598_s13 + $0x30] sm:$0xff]  ;;  %v8600_v34 = vld [vmem:[%s8598_s13 + $0x8] sm:$0xff]  ;;  %v8602_v7 = vld [vmem:[%s8598_s13 + $0x18] sm:$0xff]  ;;  %s9224_s22 = sshll.u32 (%p8589_p7), %s372_s20, 4  ;;  %s9211_s19 = scalar_lea.sflag (%p8589_p7), [#allocation8], %s370_s12  ;;  %s9225_s22 = int_to_ptr.vmem [resolvable:$true] %s9224_s22 }
 0xce0   : >> { %8643 = vmatpush1.xpose.msra.mxu0 %v8603_v12  ;;  %8718 = vmatpush1.xpose.msra.mxu1 %v8605_v20  ;;  %v8599_v0 = vld [vmem:[%s8598_s13] sm:$0xff]  ;;  %v8601_v28 = vld [vmem:[%s8598_s13 + $0x10] sm:$0xff]  ;;  %s12384_s26 = scalar_lea.vmem (%p8589_p7), %s9225_s22, 128 }
 0xce1   : >> { %8644 = vmatprep.subr.mxu0 %v8600_v34  ;;  %8719 = vmatprep.subr.mxu1 %v8602_v7  ;;  %p12385_p8 = scmp.ne.s32.totalorder (%p8589_p7), %s9225_s22, %s12384_s26 }
 0xce2   : >> { %8678 = vmatprep.mubr.f32.mxu0 %v8600_v34  ;;  %8753 = vmatprep.mubr.f32.mxu1 %v8602_v7  ;;  %v12492_v7 = vmov 0.0  }
 0xce3   : > { %p12386_p0 = pnand (%p8589_p7), %p12385_p8, %p12593_p5 }
 0xce4   : >> { %8645 = vmatpush1.xpose.msra.mxu0 %v8599_v0  ;;  %8720 = vmatpush1.xpose.msra.mxu1 %v8601_v28 }
 0xce5   : > { %p12387_p11 = pneg (%p8589_p7), %p12386_p0 }
 0xce7   : >> { %8679 = vmatmul.mubr.f32.vlgmr.msra.gmra.mxu0 %v8599_v0  ;;  %8754 = vmatmul.mubr.f32.vlgmr.msra.gmra.mxu1 %v8601_v28 }
 0xce8   : >> { %8683 = vmatprep.mubr.f32.mxu0 %v8604_v61  ;;  %8758 = vmatprep.mubr.f32.mxu1 %v8606_v8 }
 0xceb   : >> { %8684 = vmatmul.mubr.f32.gmra.mxu0 %v8603_v12  ;;  %8759 = vmatmul.mubr.f32.gmra.mxu1 %v8605_v20 }
 0xda7   : >> { %v8680_v17 = vpop.f32.mrf.mxu0  ;;  %v8755_v29 = vpop.f32.mrf.mxu1 }
 0xda8   : >> { %v8756_v37 = vadd.f32 %v8755_v29, %v8680_v17 }
 0xda9   : >> { %v8682_v9 = vpop.f32.mrf.mxu0  ;;  %v8757_v6 = vpop.f32.mrf.mxu1 }
 0xdaa   : >> { %v8764_v40 = vmul.f32 %v8756_v37, %v16967_v21  ;;  %v8776_v36 = vmul.f32 2.0, %v8756_v37  ;;  %v12493_v9 = vmov 4   ;;  %v12494_v6 = vmov 1  }
 0xdab   : >> { %v8685_v22 = vpop.f32.mrf.mxu0  ;;  %v8760_v46 = vpop.f32.mrf.mxu1  ;;  %v12497_v21 = vmov 2  }
 0xdac   : >> { %v8761_v62 = vadd.f32 %v8760_v46, %v8685_v22  ;;  %v8767_v3 = vsel %vm8766_vm7, %v8764_v40, 0.0  ;;  %v12495_v22 = vmov 6   ;;  %v12496_v46 = vmov 7  }
 0xdad   : >> { %v8687_v39 = vpop.f32.mrf.mxu0  ;;  %v8762_v1 = vpop.f32.mrf.mxu1  ;;  %v12498_v40 = vmov 9  }
 0xdae   : >> { %v8765_v52 = vmul.f32 %v8761_v62, %v16968_v42  ;;  %v8777_v49 = vmul.f32 2.0, %v8761_v62  ;;  %v12499_v62 = vmov 10   ;;  %v12500_v39 = vmov 3  }
 0xdaf   : >> { %v12501_v1 = vmov 12   ;;  %v12502_v42 = vmov 13  }
 0xdb0   : >> { %v8768_v31 = vsel %vm8766_vm7, %v8765_v52, 0.0  ;;  %v12503_v52 = vmov 15  }
 0xdb1   : >> { %v8769_v44 = vadd.f32 %v8768_v31, %v8767_v3  ;;  %v12504_v3 = vmov 5   ;;  %v12505_v31 = vmov 8  }
 0xdb3   : >> { %v8770_v53 = vrot.slane %v8769_v44, 4 }
 0xdb5   : >> { %v8771_v48 = vadd.f32 %v8770_v53, %v8769_v44  ;;  %v12506_v44 = vmov 11   ;;  %v12507_v53 = vmov 14  }
 0xdb7   : >> { %v8772_v14 = vrot.slane %v8771_v48, 2 }
 0xdb9   : >> { %v8773_v57 = vadd.f32 %v8772_v14, %v8771_v48 }
 0xdbb   : >> { %v8774_v38 = vrot.slane %v8773_v57, 1 }
 0xdbd   : >> { %v8775_v41 = vadd.f32 %v8774_v38, %v8773_v57 }
 0xdbf   : >> { %v16244_v5 = vsub.f32 %v8775_v41, %v8776_v36  ;;  %v16246_v63 = vsub.f32 %v8775_v41, %v8777_v49 }
 0xdc1   : >> { %v8780_v55 = vsel %vm8766_vm7, %v16244_v5, inf  ;;  %v8783_v24 = vsel %vm8766_vm7, %v16246_v63, inf }
 0xdc2   : >> { %8781 = vmin.xlane.f32.xlu0 %v8780_v55 }
 0xdc6   : >> { %8784 = vmin.xlane.f32.xlu0 %v8783_v24 }
 0xe4b   : >> { %v8782_v23 = vpop.xlane.xlu0 %8781 }
 0xe4c   : >> { %vm8786_vm8 = vcmp.le.f32.partialorder %v16244_v5, %v8782_v23 }
 0xe4d   : >> { %v8788_v11 = vsel %vm8786_vm8, 3e+38, %v16244_v5 }
 0xe4e   : >> { %v8790_v50 = vsel %vm8766_vm7, %v8788_v11, inf }
 0xe4f   : >> { %8791 = vmin.xlane.f32.xlu1 %v8790_v50  ;;  %v8785_v56 = vpop.xlane.xlu0 %8784 }
 0xe50   : >> { %vm8787_vm9 = vcmp.le.f32.partialorder %v16246_v63, %v8785_v56  ;;  %v8611_v56 = vld [vmem:[%s16309_s10 + $0x8] sm:$0xff] }
 0xe51   : >> { %v8789_v19 = vsel %vm8787_vm9, 3e+38, %v16246_v63 }
 0xe52   : >> { %v8793_v2 = vsel %vm8766_vm7, %v8789_v19, inf }
 0xe53   : >> { %8794 = vmin.xlane.f32.xlu1 %v8793_v2 }
 0xed8   : >> { %v8792_v47 = vpop.xlane.xlu1 %8791 }
 0xed9   : >> { %vm8796_vm10 = vcmp.le.f32.partialorder %v8788_v11, %v8792_v47 }
 0xeda   : >> { %v8798_v33 = vsel %vm8796_vm10, 3e+38, %v8788_v11 }
 0xedb   : >> { %v8800_v4 = vsel %vm8766_vm7, %v8798_v33, inf }
 0xedc   : >> { %8801 = vmin.xlane.f32.xlu0 %v8800_v4  ;;  %v8795_v54 = vpop.xlane.xlu1 %8794  ;;  %v16970_v4 = vld [vmem:[#allocation26_spill] sm:$0xff] }
 0xedd   : >> { %vm8797_vm11 = vcmp.le.f32.partialorder %v8789_v19, %v8795_v54  ;;  %v8871_v54 = vrot.slane %v8611_v56, %v16970_v4 }
 0xede   : >> { %v8799_v30 = vsel %vm8797_vm11, 3e+38, %v8789_v19  ;;  %v16969_v19 = vld [vmem:[#allocation33_spill] sm:$0xff] }
 0xedf   : >> { %v8803_v60 = vsel %vm8766_vm7, %v8799_v30, inf  ;;  %v8855_v2 = vrot.slane %v8611_v56, %v16969_v19 }
 0xee0   : >> { %8804 = vmin.xlane.f32.xlu1 %v8803_v60  ;;  %v16971_v60 = vld [vmem:[#allocation35_spill] sm:$0xff] }
 0xf65   : >> { %v8802_v26 = vpop.xlane.xlu0 %8801 }
 0xf66   : >> { %vm8806_vm12 = vcmp.le.f32.partialorder %v8798_v33, %v8802_v26  ;;  %v8887_v26 = vrot.slane %v8611_v56, %v16971_v60 }
 0xf67   : >> { %v8808_v13 = vsel %vm8806_vm12, 3e+38, %v8798_v33 }
 0xf68   : >> { %v8810_v58 = vsel %vm8766_vm7, %v8808_v13, inf }
 0xf69   : >> { %v8805_v10 = vpop.xlane.xlu1 %8804  ;;  %8811 = vmin.xlane.f32.xlu0 %v8810_v58 }
 0xf6a   : >> { %vm8807_vm13 = vcmp.le.f32.partialorder %v8799_v30, %v8805_v10 }
 0xf6b   : >> { %v8809_v43 = vsel %vm8807_vm13, 3e+38, %v8799_v30 }
 0xf6c   : >> { %v8813_v59 = vsel %vm8766_vm7, %v8809_v43, inf }
 0xf6d   : >> { %8814 = vmin.xlane.f32.xlu1 %v8813_v59 }
 0xff2   : >> { %v8812_v15 = vpop.xlane.xlu0 %8811 }
 0xff3   : >> { %vm8816_vm14 = vcmp.le.f32.partialorder %v8808_v13, %v8812_v15 }
 0xff4   : >> { %v8818_v25 = vsel %vm8816_vm14, 3e+38, %v8808_v13 }
 0xff5   : >> { %v8820_v51 = vsel %vm8766_vm7, %v8818_v25, inf }
 0xff6   : >> { %v8815_v27 = vpop.xlane.xlu1 %8814  ;;  %8821 = vmin.xlane.f32.xlu0 %v8820_v51 }
 0xff7   : >> { %vm8817_vm15 = vcmp.le.f32.partialorder %v8809_v43, %v8815_v27 }
 0xff8   : >> { %v8819_v16 = vsel %vm8817_vm15, 3e+38, %v8809_v43  ;;  %v16972_v43 = vld [vmem:[#allocation46_spill] sm:$0xff] }
 0xff9   : >> { %v8823_v35 = vsel %vm8766_vm7, %v8819_v16, inf  ;;  %v8903_v59 = vrot.slane %v8611_v56, %v16972_v43 }
 0xffa   : >> { %8824 = vmin.xlane.f32.xlu1 %v8823_v35  ;;  %v16973_v35 = vld [vmem:[#allocation104_spill] sm:$0xff] }
0x107f   : >> { %v8822_v45 = vpop.xlane.xlu0 %8821 }
0x1080   : >> { %vm8826_vm2 = vcmp.le.f32.partialorder %v8818_v25, %v8822_v45 }
0x1081   : >> { %v8828_v18 = vsel %vm8826_vm2, 3e+38, %v8818_v25 }
0x1082   : >> { %v8830_v61 = vsel %vm8766_vm7, %v8828_v18, inf  ;;  %v16974_v18 = vld [vmem:[#allocation108_spill] sm:$0xff] }
0x1083   : >> { %v8825_v8 = vpop.xlane.xlu1 %8824  ;;  %8831 = vmin.xlane.f32.xlu0 %v8830_v61  ;;  %v8935_v61 = vrot.slane %v8611_v56, %v16974_v18 }
0x1084   : >> { %vm8827_vm3 = vcmp.le.f32.partialorder %v8819_v16, %v8825_v8 }
0x1085   : >> { %v8829_v12 = vsel %vm8827_vm3, 3e+38, %v8819_v16 }
0x1086   : >> { %v8833_v20 = vsel %vm8766_vm7, %v8829_v12, inf }
0x1087   : >> { %8834 = vmin.xlane.f32.xlu1 %v8833_v20 }
0x110c   : >> { %v8832_v34 = vpop.xlane.xlu0 %8831 }
0x110d   : >> { %vm8836_vm4 = vcmp.le.f32.partialorder %v16244_v5, %v8832_v34 }
0x110e   : >> { %v8838_v0 = vsel %vm8836_vm4, 1.0, %v12492_v7 }
0x110f   : >> { %vm8840_vm5 = vcmp.gt.f32.partialorder %v8838_v0, 0.5 }
0x1110   : >> { %v16267_v28 = vsel %vm8840_vm5, 1, %v12491_v32  ;;  %v8835_v17 = vpop.xlane.xlu1 %8834 }
0x1111   : >> { %vm8837_vm0 = vcmp.le.f32.partialorder %v16246_v63, %v8835_v17  ;;  %8845 = vperm.xlu0 %12229, %v16267_v28  }
0x1112   : >> { %v8839_v29 = vsel %vm8837_vm0, 1.0, %v12492_v7 }
0x1113   : >> { %vm8841_vm1 = vcmp.gt.f32.partialorder %v8839_v29, 0.5 }
0x1114   : >> { %v16271_v37 = vsel %vm8841_vm1, 1, %v12491_v32  ;;  %v8919_v32 = vrot.slane %v8611_v56, %v16973_v35 }
0x1115   : >> { %8848 = vperm.xlu1 %12230, %v16271_v37   ;;  %12235 = vset.pattern.permute.xlu0 %v12493_v9 }
0x1116   : >> { %8912 = vperm.xlu0 %12235, %v16271_v37  }
0x1119   : >> { %12231 = vset.pattern.permute.xlu1 %v12494_v6 }
0x111a   : >> { %8861 = vperm.xlu1 %12231, %v16267_v28   ;;  %12237 = vset.pattern.permute.xlu0 %v12495_v22 }
0x111b   : >> { %8941 = vperm.xlu0 %12237, %v16267_v28  }
0x111e   : >> { %8864 = vperm.xlu1 %12231, %v16271_v37  }
0x111f   : >> { %12240 = vset.pattern.permute.xlu0 %v12496_v46 }
0x1120   : >> { %8960 = vperm.xlu0 %12240, %v16271_v37  }
0x1122   : >> { %12232 = vset.pattern.permute.xlu1 %v12497_v21 }
0x1123   : >> { %8877 = vperm.xlu1 %12232, %v16267_v28  }
0x1124   : >> { %12242 = vset.pattern.permute.xlu0 %v12498_v40 }
0x1125   : >> { %8989 = vperm.xlu0 %12242, %v16267_v28  }
0x1127   : >> { %8880 = vperm.xlu1 %12232, %v16271_v37  }
0x1129   : >> { %12245 = vset.pattern.permute.xlu0 %v12499_v62 }
0x112a   : >> { %9008 = vperm.xlu0 %12245, %v16271_v37  }
0x112b   : >> { %12233 = vset.pattern.permute.xlu1 %v12500_v39  ;;  %v16327_v39 = vld [vmem:[%s16309_s10 + $0x18] sm:$0xff] }
0x112c   : >> { %8893 = vperm.xlu1 %12233, %v16267_v28  }
0x112e   : >> { %12247 = vset.pattern.permute.xlu0 %v12501_v1 }
0x112f   : >> { %9037 = vperm.xlu0 %12247, %v16267_v28  }
0x1130   : >> { %8896 = vperm.xlu1 %12233, %v16271_v37  }
0x1133   : >> { %12250 = vset.pattern.permute.xlu0 %v12502_v42 }
0x1134   : >> { %12234 = vset.pattern.permute.xlu1 %v12493_v9  ;;  %9056 = vperm.xlu0 %12250, %v16271_v37  }
0x1135   : >> { %8909 = vperm.xlu1 %12234, %v16267_v28  }
0x1138   : >> { %12252 = vset.pattern.permute.xlu0 %v12503_v52 }
0x1139   : >> { %12236 = vset.pattern.permute.xlu1 %v12504_v3  ;;  %9085 = vperm.xlu0 %12252, %v16267_v28   ;;  %v8983_v3 = vrot.slane %v16327_v39, %v16969_v19  ;;  %v9134_v19 = vld [vmem:[%s16473_s5 + $0x60] sm:$0xff] (%p8589_p7) }
0x113a   : >> { %8925 = vperm.xlu1 %12236, %v16267_v28  }
0x113e   : >> { %8928 = vperm.xlu1 %12236, %v16271_v37  }
0x1142   : >> { %12238 = vset.pattern.permute.xlu1 %v12495_v22  ;;  %v16975_v22 = vld [vmem:[#allocation105_spill] sm:$0xff] }
0x1143   : >> { %8944 = vperm.xlu1 %12238, %v16271_v37  }
0x1147   : >> { %12239 = vset.pattern.permute.xlu1 %v12496_v46  ;;  %v8951_v46 = vrot.slane %v8611_v56, %v16975_v22 }
0x1148   : >> { %8957 = vperm.xlu1 %12239, %v16267_v28  }
0x114c   : >> { %12241 = vset.pattern.permute.xlu1 %v12505_v31 }
0x114d   : >> { %8973 = vperm.xlu1 %12241, %v16267_v28  }
0x1151   : >> { %8976 = vperm.xlu1 %12241, %v16271_v37  }
0x1155   : >> { %12243 = vset.pattern.permute.xlu1 %v12498_v40  ;;  %v16976_v40 = vld [vmem:[#allocation109_spill] sm:$0xff] }
0x1156   : >> { %8992 = vperm.xlu1 %12243, %v16271_v37  }
0x115a   : >> { %12244 = vset.pattern.permute.xlu1 %v12499_v62  ;;  %v8967_v62 = vrot.slane %v8611_v56, %v16976_v40  ;;  %v9031_v56 = vrot.slane %v16327_v39, %v16972_v43  ;;  %v9131_v43 = vld [vmem:[%s16473_s5 + $0x48] sm:$0xff] (%p8589_p7) }
0x115b   : >> { %9005 = vperm.xlu1 %12244, %v16267_v28  }
0x115f   : >> { %12246 = vset.pattern.permute.xlu1 %v12506_v44 }
0x1160   : >> { %9021 = vperm.xlu1 %12246, %v16267_v28  }
0x1164   : >> { %9024 = vperm.xlu1 %12246, %v16271_v37  }
0x1168   : >> { %12248 = vset.pattern.permute.xlu1 %v12501_v1 }
0x1169   : >> { %9040 = vperm.xlu1 %12248, %v16271_v37  }
0x116d   : >> { %12249 = vset.pattern.permute.xlu1 %v12502_v42 }
0x116e   : >> { %9053 = vperm.xlu1 %12249, %v16267_v28  }
0x1172   : >> { %12251 = vset.pattern.permute.xlu1 %v12507_v53 }
0x1173   : >> { %9069 = vperm.xlu1 %12251, %v16267_v28  }
0x1177   : >> { %9072 = vperm.xlu1 %12251, %v16271_v37  }
0x117b   : >> { %12253 = vset.pattern.permute.xlu1 %v12503_v52 }
0x117c   : >> { %9088 = vperm.xlu1 %12253, %v16271_v37  }
0x118c   : >> { %v8846_v24 = vpop.permute.xlu0 %8845 }
0x118d   : >> { %vm8850_vm6 = vcmp.eq.s32.totalorder %v8846_v24, 1 }
0x118e   : >> { %v8856_v30 = vsel %vm8850_vm6, %v8855_v2, -3e+38 }
0x118f   : >> { %v8858_v15 = vmax.f32 %v8856_v30, -3e+38 }
0x1190   : >> { %v8849_v48 = vpop.permute.xlu1 %8848 }
0x1191   : >> { %v8913_v11 = vpop.permute.xlu0 %8912  ;;  %vm8851_vm9 = vcmp.eq.s32.totalorder %v8849_v48, 1 }
0x1192   : >> { %v8857_v51 = vsel %vm8851_vm9, %v8855_v2, -3e+38  ;;  %vm8915_vm4 = vcmp.eq.s32.totalorder %v8913_v11, 1  ;;  %v9015_v11 = vrot.slane %v16327_v39, %v16971_v60  ;;  %v9132_v60 = vld [vmem:[%s16473_s5 + $0x50] sm:$0xff] (%p8589_p7) }
0x1193   : >> { %v8859_v20 = vmax.f32 %v8857_v51, -3e+38  ;;  %v8921_v48 = vsel %vm8915_vm4, %v8919_v32, -3e+38 }
0x1195   : >> { %v8862_v14 = vpop.permute.xlu1 %8861 }
0x1196   : >> { %v8942_v47 = vpop.permute.xlu0 %8941  ;;  %vm8866_vm7 = vcmp.eq.s32.totalorder %v8862_v14, 1 }
0x1197   : >> { %v8872_v58 = vsel %vm8866_vm7, %v8871_v54, -3e+38  ;;  %vm8946_vm2 = vcmp.eq.s32.totalorder %v8942_v47, 1 }
0x1198   : >> { %v8874_v27 = vmax.f32 %v8858_v15, %v8872_v58  ;;  %v8952_v44 = vsel %vm8946_vm2, %v8951_v46, -3e+38 }
0x1199   : >> { %v8865_v57 = vpop.permute.xlu1 %8864 }
0x119a   : >> { %vm8867_vm11 = vcmp.eq.s32.totalorder %v8865_v57, 1 }
0x119b   : >> { %v16317_v10 = vpop.permute.xlu0 %8960  ;;  %v8873_v8 = vsel %vm8867_vm11, %v8871_v54, -3e+38 }
0x119c   : >> { %v8875_v17 = vmax.f32 %v8859_v20, %v8873_v8  ;;  %v9079_v20 = vrot.slane %v16327_v39, %v16975_v22  ;;  %v9128_v22 = vld [vmem:[%s16473_s5 + $0x30] sm:$0xff] (%p8589_p7) }
0x119e   : >> { %v8878_v38 = vpop.permute.xlu1 %8877 }
0x119f   : >> { %vm8882_vm8 = vcmp.eq.s32.totalorder %v8878_v38, 1 }
0x11a0   : >> { %v8888_v25 = vsel %vm8882_vm8, %v8887_v26, -3e+38  ;;  %v8990_v34 = vpop.permute.xlu0 %8989  ;;  %vm8963_vm8 = vcmp.eq.s32.totalorder %v16317_v10, 1 }
0x11a1   : >> { %v8890_v12 = vmax.f32 %v8874_v27, %v8888_v25  ;;  %vm8994_vm6 = vcmp.eq.s32.totalorder %v8990_v34, 1  ;;  %v8969_v54 = vsel %vm8963_vm8, %v8967_v62, -3e+38  ;;  %v9063_v27 = vrot.slane %v16327_v39, %v16974_v18  ;;  %v9129_v18 = vld [vmem:[%s16473_s5 + $0x38] sm:$0xff] (%p8589_p7) }
0x11a2   : >> { %v8881_v36 = vpop.permute.xlu1 %8880  ;;  %vm12508_vm8 = vmmov (%p8589_p7), 0  }
0x11a3   : >> { %vm8883_vm13 = vcmp.eq.s32.totalorder %v8881_v36, 1 }
0x11a4   : >> { %v8889_v0 = vsel %vm8883_vm13, %v8887_v26, -3e+38 }
0x11a5   : >> { %v8891_v21 = vmax.f32 %v8875_v17, %v8889_v0  ;;  %v9009_v42 = vpop.permute.xlu0 %9008 }
0x11a6   : >> { %vm9011_vm13 = vcmp.eq.s32.totalorder %v9009_v42, 1 }
0x11a7   : >> { %v8894_v41 = vpop.permute.xlu1 %8893  ;;  %v9017_v34 = vsel %vm9011_vm13, %v9015_v11, -3e+38 }
0x11a8   : >> { %vm8898_vm10 = vcmp.eq.s32.totalorder %v8894_v41, 1 }
0x11a9   : >> { %v8904_v45 = vsel %vm8898_vm10, %v8903_v59, -3e+38 }
0x11aa   : >> { %v8906_v28 = vmax.f32 %v8890_v12, %v8904_v45 }
0x11ab   : >> { %v8897_v49 = vpop.permute.xlu1 %8896 }
0x11ac   : >> { %vm8899_vm15 = vcmp.eq.s32.totalorder %v8897_v49, 1 }
0x11ad   : >> { %v8905_v9 = vsel %vm8899_vm15, %v8903_v59, -3e+38 }
0x11ae   : >> { %v8907_v52 = vmax.f32 %v8891_v21, %v8905_v9 }
0x11b0   : >> { %v8910_v5 = vpop.permute.xlu1 %8909  ;;  %v8923_v38 = vmax.f32 %v8907_v52, %v8921_v48  ;;  %v8610_v52 = vld [vmem:[%s16309_s10] sm:$0xff] }
0x11b1   : >> { %vm8914_vm12 = vcmp.eq.s32.totalorder %v8910_v5, 1 }
0x11b2   : >> { %v8920_v7 = vsel %vm8914_vm12, %v8919_v32, -3e+38 }
0x11b3   : >> { %v8922_v6 = vmax.f32 %v8906_v28, %v8920_v7  ;;  %v9095_v28 = vrot.slane %v16327_v39, %v16976_v40  ;;  %v9127_v40 = vld [vmem:[%s16473_s5 + $0x28] sm:$0xff] (%p8589_p7) }
0x11b5   : >> { %v8926_v63 = vpop.permute.xlu1 %8925 }
0x11b6   : >> { %vm8930_vm14 = vcmp.eq.s32.totalorder %v8926_v63, 1  ;;  %v8999_v63 = vrot.slane %v16327_v39, %v16970_v4  ;;  %v9133_v4 = vld [vmem:[%s16473_s5 + $0x58] sm:$0xff] (%p8589_p7) }
0x11b7   : >> { %v8936_v29 = vsel %vm8930_vm14, %v8935_v61, -3e+38 }
0x11b8   : >> { %v8938_v1 = vmax.f32 %v8922_v6, %v8936_v29  ;;  %v9000_v2 = vsel %vm8994_vm6, %v8999_v63, -3e+38 }
0x11b9   : >> { %v16304_v55 = vpop.permute.xlu1 %8928 }
0x11ba   : >> { %vm8931_vm5 = vcmp.eq.s32.totalorder %v16304_v55, 1  ;;  %v8954_v57 = vmax.f32 %v8938_v1, %v8952_v44  ;;  %v9038_v55 = vpop.permute.xlu0 %9037 }
0x11bb   : >> { %v8937_v14 = vsel %vm8931_vm5, %v8935_v61, -3e+38  ;;  %vm9042_vm12 = vcmp.eq.s32.totalorder %v9038_v55, 1 }
0x11bc   : >> { %v8939_v24 = vmax.f32 %v8923_v38, %v8937_v14 }
0x11be   : >> { %v16306_v23 = vpop.permute.xlu1 %8944  ;;  %v9057_v58 = vpop.permute.xlu0 %9056 }
0x11bf   : >> { %vm8947_vm1 = vcmp.eq.s32.totalorder %v16306_v23, 1  ;;  %vm9059_vm5 = vcmp.eq.s32.totalorder %v9057_v58, 1  ;;  %v16978_v58 = vmov (%p8589_p7), 0.0  }
0x11c0   : >> { %v8953_v41 = vsel %vm8947_vm1, %v8951_v46, -3e+38  ;;  %10516 = vmatprep.subr.mxu0 (%p8589_p7), %v16978_v58  ;;  %10548 = vmatprep.mubr.msk.f32.mxu0 (%p8589_p7), %vm12508_vm8, %v16978_v58 }
0x11c1   : >> { %v8955_v23 = vmax.f32 %v8939_v24, %v8953_v41 }
0x11c2   : >> { %v9086_v8 = vpop.permute.xlu0 %9085 }
0x11c3   : >> { %v8958_v50 = vpop.permute.xlu1 %8957  ;;  %v8971_v59 = vmax.f32 %v8955_v23, %v8969_v54 }
0x11c4   : >> { %vm8962_vm3 = vcmp.eq.s32.totalorder %v8958_v50, 1 }
0x11c5   : >> { %v8968_v53 = vsel %vm8962_vm3, %v8967_v62, -3e+38  ;;  %vm9090_vm3 = vcmp.eq.s32.totalorder %v9086_v8, 1 }
0x11c6   : >> { %v8970_v49 = vmax.f32 %v8954_v57, %v8968_v53  ;;  %v9096_v62 = vsel %vm9090_vm3, %v9095_v28, -3e+38  ;;  %v8612_v57 = vld [vmem:[%s16309_s10 + $0x10] sm:$0xff] }
0x11c8   : >> { %v8974_v33 = vpop.permute.xlu1 %8973 }
0x11c9   : >> { %vm8978_vm0 = vcmp.eq.s32.totalorder %v8974_v33, 1 }
0x11ca   : >> { %v8984_v36 = vsel %vm8978_vm0, %v8983_v3, -3e+38 }
0x11cb   : >> { %v8986_v50 = vmax.f32 %v8970_v49, %v8984_v36  ;;  %v16977_v36 = vld [vmem:[#allocation21_spill] sm:$0xff] }
0x11cc   : >> { %v16315_v13 = vpop.permute.xlu1 %8976 }
0x11cd   : >> { %vm8979_vm9 = vcmp.eq.s32.totalorder %v16315_v13, 1  ;;  %v9002_v26 = vmax.f32 %v8986_v50, %v9000_v2  ;;  %v9047_v13 = vrot.slane %v16327_v39, %v16973_v35  ;;  %v9130_v35 = vld [vmem:[%s16473_s5 + $0x40] sm:$0xff] (%p8589_p7) }
0x11ce   : >> { %v8985_v30 = vsel %vm8979_vm9, %v8983_v3, -3e+38 }
0x11cf   : >> { %v8987_v51 = vmax.f32 %v8971_v59, %v8985_v30  ;;  %v9048_v61 = vsel %vm9042_vm12, %v9047_v13, -3e+38  ;;  %v9137_v59 = vld [vmem:[%s16473_s5 + $0x78] sm:$0xff] (%p8589_p7) }
0x11d0   : > { %10517 = vmatpush3.msra.mxu0 (%p8589_p7), %v9137_v59 }
0x11d1   : >> { %v16320_v16 = vpop.permute.xlu1 %8992  ;;  %10518 = vmatprep.subr.mxu0 (%p8589_p7), %v16978_v58 }
0x11d2   : >> { %vm8995_vm11 = vcmp.eq.s32.totalorder %v16320_v16, 1 }
0x11d3   : >> { %v9001_v25 = vsel %vm8995_vm11, %v8999_v63, -3e+38 }
0x11d4   : >> { %v9003_v45 = vmax.f32 %v8987_v51, %v9001_v25  ;;  %v9135_v25 = vld [vmem:[%s16473_s5 + $0x68] sm:$0xff] (%p8589_p7)  ;;  %v9124_v51 = vld [vmem:[%s16473_s5 + $0x10] sm:$0xff] (%p8589_p7) }
0x11d6   : >> { %v9006_v37 = vpop.permute.xlu1 %9005  ;;  %v9019_v17 = vmax.f32 %v9003_v45, %v9017_v34  ;;  %v9138_v45 = vld [vmem:[#allocation14 + $0x3] ss:$0 sm:$0xff] (%p8589_p7) }
0x11d7   : >> { %vm9010_vm7 = vcmp.eq.s32.totalorder %v9006_v37, 1 }
0x11d8   : >> { %v9016_v47 = vsel %vm9010_vm7, %v9015_v11, -3e+38 }
0x11d9   : >> { %v9018_v10 = vmax.f32 %v9002_v26, %v9016_v47 }
0x11db   : >> { %v9022_v31 = vpop.permute.xlu1 %9021 }
0x11dc   : >> { %vm9026_vm10 = vcmp.eq.s32.totalorder %v9022_v31, 1  ;;  %v9065_v31 = vsel %vm9059_vm5, %v9063_v27, -3e+38 }
0x11dd   : >> { %v9032_v15 = vsel %vm9026_vm10, %v9031_v56, -3e+38 }
0x11de   : >> { %v9034_v32 = vmax.f32 %v9018_v10, %v9032_v15  ;;  %v9136_v15 = vld [vmem:[%s16473_s5 + $0x70] sm:$0xff] (%p8589_p7)  ;;  %v9126_v10 = vld [vmem:[%s16473_s5 + $0x20] sm:$0xff] (%p8589_p7) }
0x11df   : >> { %v9025_v5 = vpop.permute.xlu1 %9024  ;;  %10519 = vmatpush3.msra.mxu0 (%p8589_p7), %v9136_v15 }
0x11e0   : >> { %vm9027_vm14 = vcmp.eq.s32.totalorder %v9025_v5, 1  ;;  %v9050_v0 = vmax.f32 %v9034_v32, %v9048_v61  ;;  %10520 = vmatprep.subr.mxu0 (%p8589_p7), %v16978_v58  ;;  %v9122_v32 = vld [vmem:[%s16473_s5] sm:$0xff] (%p8589_p7) }
0x11e1   : >> { %v9033_v7 = vsel %vm9027_vm14, %v9031_v56, -3e+38  ;;  %10521 = vmatpush3.msra.mxu0 (%p8589_p7), %v9135_v25 }
0x11e2   : >> { %v9035_v6 = vmax.f32 %v9019_v17, %v9033_v7  ;;  %10522 = vmatprep.subr.mxu0 (%p8589_p7), %v16978_v58 }
0x11e3   : > { %10523 = vmatpush3.msra.mxu0 (%p8589_p7), %v9134_v19 }
0x11e4   : >> { %v9041_v33 = vpop.permute.xlu1 %9040  ;;  %10524 = vmatprep.subr.mxu0 (%p8589_p7), %v16978_v58 }
0x11e5   : >> { %vm9043_vm2 = vcmp.eq.s32.totalorder %v9041_v33, 1  ;;  %10525 = vmatpush3.msra.mxu0 (%p8589_p7), %v9133_v4 }
0x11e6   : >> { %v9049_v37 = vsel %vm9043_vm2, %v9047_v13, -3e+38  ;;  %10526 = vmatprep.subr.mxu0 (%p8589_p7), %v16978_v58  ;;  %v9125_v13 = vld [vmem:[%s16473_s5 + $0x18] sm:$0xff] (%p8589_p7) }
0x11e7   : >> { %v9051_v1 = vmax.f32 %v9035_v6, %v9049_v37  ;;  %10527 = vmatpush3.msra.mxu0 (%p8589_p7), %v9132_v60 }
0x11e8   : > { %10528 = vmatprep.subr.mxu0 (%p8589_p7), %v16978_v58 }
0x11e9   : >> { %v9054_v16 = vpop.permute.xlu1 %9053  ;;  %v9067_v53 = vmax.f32 %v9051_v1, %v9065_v31  ;;  %10529 = vmatpush3.msra.mxu0 (%p8589_p7), %v9131_v43 }
0x11ea   : >> { %vm9058_vm15 = vcmp.eq.s32.totalorder %v9054_v16, 1  ;;  %10530 = vmatprep.subr.mxu0 (%p8589_p7), %v16978_v58 }
0x11eb   : >> { %v9064_v12 = vsel %vm9058_vm15, %v9063_v27, -3e+38  ;;  %10531 = vmatpush3.msra.mxu0 (%p8589_p7), %v9130_v35  ;;  %v9123_v27 = vld [vmem:[%s16473_s5 + $0x8] sm:$0xff] (%p8589_p7) }
0x11ec   : >> { %v9066_v9 = vmax.f32 %v9050_v0, %v9064_v12  ;;  %10532 = vmatprep.subr.mxu0 (%p8589_p7), %v16978_v58 }
0x11ed   : > { %10533 = vmatpush3.msra.mxu0 (%p8589_p7), %v9129_v18 }
0x11ee   : >> { %v9070_v29 = vpop.permute.xlu1 %9069  ;;  %10534 = vmatprep.subr.mxu0 (%p8589_p7), %v16978_v58 }
0x11ef   : >> { %vm9074_vm4 = vcmp.eq.s32.totalorder %v9070_v29, 1  ;;  %10535 = vmatpush3.msra.mxu0 (%p8589_p7), %v9128_v22 }
0x11f0   : >> { %v9080_v46 = vsel %vm9074_vm4, %v9079_v20, -3e+38  ;;  %10536 = vmatprep.subr.mxu0 (%p8589_p7), %v16978_v58 }
0x11f1   : >> { %v9082_v21 = vmax.f32 %v9066_v9, %v9080_v46  ;;  %10537 = vmatpush3.msra.mxu0 (%p8589_p7), %v9127_v40 }
0x11f2   : >> { %v9073_v42 = vpop.permute.xlu1 %9072  ;;  %10538 = vmatprep.subr.mxu0 (%p8589_p7), %v16978_v58 }
0x11f3   : >> { %v9098_v3 = vmax.f32 %v9082_v21, %v9096_v62  ;;  %vm9075_vm0 = vcmp.eq.s32.totalorder %v9073_v42, 1  ;;  %10539 = vmatpush3.msra.mxu0 (%p8589_p7), %v9126_v10 }
0x11f4   : >> { %v9081_v44 = vsel %vm9075_vm0, %v9079_v20, -3e+38  ;;  %10540 = vmatprep.subr.mxu0 (%p8589_p7), %v16978_v58 }
0x11f5   : >> { %v9100_v39 = vadd.f32 %v9098_v3, %v8610_v52  ;;  %v9083_v14 = vmax.f32 %v9067_v53, %v9081_v44  ;;  %10541 = vmatpush3.msra.mxu0 (%p8589_p7), %v9125_v13 }
0x11f6   : > { %10542 = vmatprep.subr.mxu0 (%p8589_p7), %v16978_v58 }
0x11f7   : >> { %v9089_v48 = vpop.permute.xlu1 %9088  ;;  %v9102_v41 = vadd.f32 %v9100_v39, %v16977_v36  ;;  %10543 = vmatpush3.msra.mxu0 (%p8589_p7), %v9124_v51 }
0x11f8   : >> { %vm9091_vm1 = vcmp.eq.s32.totalorder %v9089_v48, 1  ;;  %10544 = vmatprep.subr.mxu0 (%p8589_p7), %v16978_v58 }
0x11f9   : >> { %v9097_v38 = vsel %vm9091_vm1, %v9095_v28, -3e+38  ;;  %v9106_v63 = vmul.f32 0.1, %v9102_v41  ;;  %vm9104_vm6 = vcmp.gt.f32.partialorder %v9102_v41, 0.0  ;;  %10545 = vmatpush3.msra.mxu0 (%p8589_p7), %v9123_v27 }
0x11fa   : >> { %v9099_v49 = vmax.f32 %v9083_v14, %v9097_v38  ;;  %10546 = vmatprep.subr.mxu0 (%p8589_p7), %v16978_v58 }
0x11fb   : >> { %v9108_v11 = vsel %vm9104_vm6, %v9102_v41, %v9106_v63  ;;  %10547 = vmatpush3.msra.mxu0 (%p8589_p7), %v9122_v32 }
0x11fc   : >> { %v9101_v5 = vadd.f32 %v9099_v49, %v8612_v57 }
0x11fe   : >> { %v9103_v55 = vadd.f32 %v9101_v5, %v16977_v36 }
0x1200   : >> { %vm9105_vm7 = vcmp.gt.f32.partialorder %v9103_v55, 0.0  ;;  %v9107_v24 = vmul.f32 0.1, %v9103_v55 }
0x1202   : >> { %v9109_v50 = vsel %vm9105_vm7, %v9103_v55, %v9107_v24 }
0x1203   : >> { %v9110_v23 = vadd.f32 %v9109_v50, %v9108_v11 }
0x1205   : >> { %v9111_v56 = vrot.slane %v9110_v23, 4 }
0x1207   : >> { %v9112_v2 = vadd.f32 %v9111_v56, %v9110_v23 }
0x1209   : >> { %v9113_v47 = vrot.slane %v9112_v2, 2 }
0x120b   : >> { %v9114_v33 = vadd.f32 %v9113_v47, %v9112_v2 }
0x120d   : >> { %v9115_v54 = vrot.slane %v9114_v33, 1 }
0x120f   : >> { %v9116_v30 = vadd.f32 %v9115_v54, %v9114_v33  ;;  %8591 = sbr.rel (!%p8589_p7) target bundleno = 3290 (0xcda), region = 119 }
0x1211   : >> { %v9118_v26 = vmul.f32 0.0625, %v9116_v30 }
0x1213   : >> { %9120 = vst [vmem:[%s9119_s21] sm:$0x1] %v9118_v26  ;;  %s9774_s21 = sshll.u32 (%p8589_p7), %s12576_s9, 7  ;;  %s12509_s9 = smov (%p8589_p7), [#allocation15]  }
0x1214   : > { %s16429_s24 = scalar_lea.hbm %s16476_s8, %s9774_s21  ;;  %s12388_s23 = sshll.u32 %s12509_s9, 4  ;;  %s12389_s23 = int_to_ptr.vmem [resolvable:$false] %s12388_s23 }
0x1215   : > { %s12390_s13 = scalar_lea.vmem %s12389_s23, 256  ;;  %p12391_p1 = scmp.lt.s32.totalorder %s9225_s22, %s12389_s23 }
0x1216   : > { %p12392_p3 = scmp.lt.s32.totalorder %s12390_s13, %s12384_s26 }
0x1218   : > { %p12393_p13 = por %p12392_p3, %p12391_p1 }
0x121a   : > { %v9121_v16 = vld [vmem:[#allocation5] sm:$0xff]  ;;  %p12394_p9 = pnand %p12393_p13, %p12387_p11 }
0x121b   : > { %10549 = vmatmul.mubr.f32.vlgmr.msra.gmra.mxu0 %v9121_v16 }
0x12db   : > { %v9205_v61 = vpop.f32.mrf.mxu0 }
0x12dc   : > { %v9206_v8 = vadd.f32 %v9205_v61, %v9138_v45 }
0x12dd   : > { %v10550_v12 = vpop.f32.mrf.mxu0 }
0x12de   : > { %9209 = vst [vmem:[%s372_s20] sm:$0xff] %v9206_v8 }
0x12df   : > { %12397 = shalt.err (!%p12394_p9)
}
0x12e0   : > { %s12398_s14 = scalar_lea.hbm %s16429_s24, 128  ;;  %s12402_s18 = scalar_lea.hbm %s16476_s8, 256 }
0x12e1   : > { %p12399_p2 = scmp.ne.s32.totalorder %s16429_s24, %s12398_s14  ;;  %p12403_p10 = scmp.lt.s32.totalorder %s16429_s24, %s16476_s8 }
0x12e2   : > { %p12404_p7 = scmp.lt.s32.totalorder %s12402_s18, %s12398_s14 }
0x12e3   : > { %p12400_p4 = pnand %p12399_p2, %p12593_p5 }
0x12e4   : > { %p12405_p8 = por %p12404_p7, %p12403_p10 }
0x12e5   : > { %p12401_p12 = pneg %p12400_p4 }
0x12e7   : > { %p12406_p0 = pnand %p12405_p8, %p12401_p12 }
0x12e9   : > { %12409 = shalt.err (!%p12406_p0)
}
0x12ea   : > { %10571 = dma.vmem_to_hbm [thread:$0]  (%p12593_p5), %s9225_s22, 128, %s16429_s24, %s9211_s19  }
0x12eb PF: > { %p10603_p11 = scmp.ge.s32.totalorder %s12460_s30, 2  ;;  %s9236_s25 = sand.u32 1, %s12448_s27  }
0x12ec   : > { %s9237_s17 = scalar_lea.sflag [#allocation8], %s9236_s25 }
0x12ed   : > { %p10590_p1 = pnand %p10603_p11, %p12597_p6 }
0x12ef   : > { %p10591_p3 = pneg %p10590_p1 }
0x12f1   : > { %12443 = dma.done.wait (%p10591_p3), %s9237_s17, 128  }
0x12f2   : > { %12445 = vsyncadd (%p10591_p3), %s9237_s17, 4294967168  ;;  %s16979_s26 = sld [smem:[#allocation20_spill]]  ;;  %p21_p13 = scmp.ge.s32.totalorder %s12580_s11, 4  }
0x12f3   : > { %s16980_s27 = smov %s12452_s28  ;;  %s16981_s28 = smov %s12456_s29 }
0x12f4   : > { %s16983_s30 = smov %s12580_s11  ;;  %23 = sbr.rel (!%p21_p13) target bundleno = 6 (0x6), region = 130 }
0x12f8   : > { %s16982_s29 = smov %s16979_s26 }
0x12f9   :  { %9242 = vsyncpa [#allocation7], 1 }
0x12fa   :  { %9244 = vsyncpa [#allocation7 + $0x1], 1 }
0x12fb   :  { %9245 = vsyncpa [#allocation10], 1 }
0x12fc   :  { %9246 = vsyncpa [#allocation13], 1 }
0x12fd   :  { %9247 = vsyncpa [#allocation8], 1 }
0x12fe   :  { %9249 = vsyncpa [#allocation8 + $0x1], 1 }

</bundles_post_ra>
